<compile_context>
chip_gen: v7x
topology: tpu7x:2x2x1
jax: 0.10.0
libtpu: 0.0.40
codegen_flags: <defaults>
</compile_context>

<pallas_src>
import math
import functools

import jax
import jax.numpy as jnp
from jax.experimental import pallas as pl
from jax.experimental.pallas import tpu as pltpu

NEG_INF = -1000000000.0
LEAKY_SLOPE = 0.01   # F.leaky_relu default negative_slope
LN_EPS = 1e-5        # nn.LayerNorm default eps

NUM_LAYERS = 6
NUM_HEADS = 8
LANE = 128


# ----------------------------- shared helpers -------------------------------

def _leaky_relu(x):
    return jnp.where(x >= 0, x, LEAKY_SLOPE * x)


def _layer_norm(x, w, b):
    mean = jnp.mean(x, axis=-1, keepdims=True)
    var = jnp.mean((x - mean) ** 2, axis=-1, keepdims=True)
    return (x - mean) * jax.lax.rsqrt(var + LN_EPS) * w + b


# --------------------------- fused transformer kernel -----------------------

def transformer_kernel(x_ref, mask_ref,
                       wqkv_ref, bqkv_ref, wo_ref, bo_ref,
                       ln_w_ref, ln_b_ref,
                       w1_ref, b1_ref, w2_ref, b2_ref,
                       hw1_ref, hb1_ref, hw2_ref, hb2_ref,
                       out_ref, *, num_layers, num_heads):
    S, E = x_ref.shape                      # batch dim is squeezed by BlockSpec
    H = num_heads
    d = E // H
    Vp = out_ref.shape[-1]

    f32 = jnp.float32
    bf16 = jnp.bfloat16

    x = x_ref[...]                          # (S, E) f32 activations
    mzero = mask_ref[...] == 0              # (S, S) bool, same mask for all heads

    # Weights arrive pre-fused / pre-cast to bf16; biases stay f32.
    wqkv = wqkv_ref[...]                    # (E, 3E) bf16
    wo = wo_ref[...]                        # (E, E)  bf16
    w1 = w1_ref[...]                        # (E, E)  bf16
    w2 = w2_ref[...]                        # (E, E)  bf16
    hw1 = hw1_ref[...]                      # (E, E)  bf16
    hw2 = hw2_ref[...]                      # (E, Vp) bf16

    # Hoist all constant broadcasts out of the layer loop (broadcast_in_dim is
    # not CSE'd by JAX).
    bqkv = jnp.broadcast_to(bqkv_ref[...], (S, 3 * E))
    bo = jnp.broadcast_to(bo_ref[...], (S, E))
    lnw = jnp.broadcast_to(ln_w_ref[...], (S, E))
    lnb = jnp.broadcast_to(ln_b_ref[...], (S, E))
    b1 = jnp.broadcast_to(b1_ref[...], (S, E))
    b2 = jnp.broadcast_to(b2_ref[...], (S, E))
    hb1 = jnp.broadcast_to(hb1_ref[...], (S, E))
    hb2 = jnp.broadcast_to(hb2_ref[...], (S, Vp))

    # Reference quirk: Self_Attention scales by sqrt(K.shape[1]) == sqrt(h).
    inv_scale = 1.0 / math.sqrt(H)

    # 6 deep-copied encoders share identical weights -> reuse the same set.
    # Loop kept unrolled (tiny trip count, full LLO visibility).
    for _ in range(num_layers):
        # ---- fused Q/K/V projection: one (S,E)@(E,3E) matmul ----
        qkv = jnp.dot(x.astype(bf16), wqkv, preferred_element_type=f32) + bqkv
        q = qkv[:, 0:E].astype(bf16)
        k = qkv[:, E:2 * E].astype(bf16)
        v = qkv[:, 2 * E:3 * E].astype(bf16)

        # ---- per-head attention (scores/PV are inherently per-head; the
        #      head-split happens via cheap static lane slices, softmax in f32)
        o_heads = []
        for h in range(H):
            sl = slice(h * d, (h + 1) * d)
            s = jnp.einsum('qd,kd->qk', q[:, sl], k[:, sl],
                           preferred_element_type=f32) * inv_scale
            s = jnp.where(mzero, NEG_INF, s)
            s = s - jnp.max(s, axis=-1, keepdims=True)
            p = jnp.exp(s)
            p = p * pl.reciprocal(jnp.sum(p, axis=-1, keepdims=True), approx=True)
            o_heads.append(jnp.dot(p.astype(bf16), v[:, sl],
                                   preferred_element_type=f32))
        # concat heads back into a lane-dense (S, E) slab
        o = jnp.concatenate(o_heads, axis=-1)

        # ---- output projection (single matmul) + residual + norm ----
        attn = jnp.dot(o.astype(bf16), wo, preferred_element_type=f32) + bo + x
        attn_n = _layer_norm(attn, lnw, lnb)

        # ---- feed forward + residual + norm + leaky_relu ----
        ff = jnp.dot(attn_n.astype(bf16), w1, preferred_element_type=f32) + b1
        ff = _leaky_relu(ff)
        ff = jnp.dot(ff.astype(bf16), w2, preferred_element_type=f32) + b2
        x = _leaky_relu(_layer_norm(ff + attn_n, lnw, lnb))

    # ---- output head (lane-dense padded vocab) ----
    hdn = _leaky_relu(jnp.dot(x.astype(bf16), hw1,
                              preferred_element_type=f32) + hb1)
    logits = jnp.dot(hdn.astype(bf16), hw2, preferred_element_type=f32) + hb2
    out_ref[...] = logits


# ------------------------------- wrapper ------------------------------------

def transformer_forward(inputs, mask, kp, *, vocab_size):
    """inputs: (B, S) int32 token ids; mask: (B, S, S) attention mask."""
    B, S = inputs.shape
    E = kp['embedding'].shape[1]
    Vp = kp['hw2p'].shape[1]

    # Glue (data-dependent gather + positional encoding); dropout = identity.
    x = kp['embedding'][inputs] + kp['pe'][:S]

    def wspec(shape):
        # Constant block across the batch grid: weights are fetched once and
        # stay resident (same block index every step).
        return pl.BlockSpec(shape, lambda b: (0,) * len(shape))

    kernel = functools.partial(transformer_kernel,
                               num_layers=NUM_LAYERS, num_heads=NUM_HEADS)

    out = pl.pallas_call(
        kernel,
        out_shape=jax.ShapeDtypeStruct((B, S, Vp), jnp.float32),
        grid_spec=pltpu.PrefetchScalarGridSpec(
            num_scalar_prefetch=0,
            grid=(B,),                                    # one batch element / step
            in_specs=[
                pl.BlockSpec((None, S, E), lambda b: (b, 0, 0)),   # x
                pl.BlockSpec((None, S, S), lambda b: (b, 0, 0)),   # mask
                wspec((E, 3 * E)), wspec((1, 3 * E)),              # fused QKV
                wspec((E, E)), wspec((1, E)),                      # linear_end
                wspec((1, E)), wspec((1, E)),                      # layer norm w, b
                wspec((E, E)), wspec((1, E)),                      # ff layer_1
                wspec((E, E)), wspec((1, E)),                      # ff layer_2
                wspec((E, E)), wspec((1, E)),                      # head linear_1
                wspec((E, Vp)), wspec((1, Vp)),                    # head linear_2 (padded)
            ],
            out_specs=pl.BlockSpec((None, S, Vp), lambda b: (b, 0, 0)),
        ),
        # "parallel" lets v7x's 2 TensorCores split the batch. At these toy
        # sizes total VMEM residency (weights + one batch slice, double-
        # buffered) is well under the 32 MiB scoped default on every chip.
        compiler_params=pltpu.CompilerParams(
            dimension_semantics=("parallel",)),
    )(x, mask.astype(jnp.int32),
      kp['wqkv'], kp['bqkv'], kp['wo_b'], kp['bo'],
      kp['ln_w'], kp['ln_b'],
      kp['w1_b'], kp['b1'], kp['w2_b'], kp['b2'],
      kp['hw1_b'], kp['hb1'], kp['hw2p'], kp['hb2p'])
    return out[..., :vocab_size]


# --------------------------- params / preparation ----------------------------

def positional_encoding(window_size, embed):
    pos = jnp.arange(window_size, dtype=jnp.float32)[:, None]
    div = jnp.exp(jnp.arange(0, embed, 2, dtype=jnp.float32)
                  * -(math.log(10000.0) / embed))
    pe = jnp.zeros((window_size, embed), jnp.float32)
    pe = pe.at[:, 0::2].set(jnp.sin(pos * div))
    pe = pe.at[:, 1::2].set(jnp.cos(pos * div))
    return pe


def init_params(key, vocab_size, window_size, embed):
    """PyTorch-style params: Linear weight stored as (in, out), bias (1, out)."""
    def linear(k, fan_in, fan_out):
        kw, kb = jax.random.split(k)
        bound = 1.0 / math.sqrt(fan_in)
        w = jax.random.uniform(kw, (fan_in, fan_out), jnp.float32, -bound, bound)
        b = jax.random.uniform(kb, (1, fan_out), jnp.float32, -bound, bound)
        return w, b

    keys = jax.random.split(key, 9)
    p = {}
    p['embedding'] = jax.random.normal(keys[0], (vocab_size, embed), jnp.float32)
    p['pe'] = positional_encoding(window_size, embed)
    p['wq'], p['bq'] = linear(keys[1], embed, embed)
    p['wk'], p['bk'] = linear(keys[2], embed, embed)
    p['wv'], p['bv'] = linear(keys[3], embed, embed)
    p['wo'], p['bo'] = linear(keys[4], embed, embed)
    p['ln_w'] = jnp.ones((1, embed), jnp.float32)
    p['ln_b'] = jnp.zeros((1, embed), jnp.float32)
    p['w1'], p['b1'] = linear(keys[5], embed, embed)
    p['w2'], p['b2'] = linear(keys[6], embed, embed)
    p['hw1'], p['hb1'] = linear(keys[7], embed, embed)
    p['hw2'], p['hb2'] = linear(keys[8], embed, vocab_size)
    return p


def prepare_kernel_params(p):
    """One-time layout prep: fuse QKV weights, cast MXU weights to bf16,
    pad the vocab projection to a lane-dense width (128)."""
    V = p['hw2'].shape[1]
    Vp = ((V + LANE - 1) // LANE) * LANE
    bf16 = jnp.bfloat16
    kp = dict(p)
    kp['wqkv'] = jnp.concatenate([p['wq'], p['wk'], p['wv']], axis=1).astype(bf16)
    kp['bqkv'] = jnp.concatenate([p['bq'], p['bk'], p['bv']], axis=1)   # f32
    kp['wo_b'] = p['wo'].astype(bf16)
    kp['w1_b'] = p['w1'].astype(bf16)
    kp['w2_b'] = p['w2'].astype(bf16)
    kp['hw1_b'] = p['hw1'].astype(bf16)
    kp['hw2p'] = jnp.pad(p['hw2'], ((0, 0), (0, Vp - V))).astype(bf16)
    kp['hb2p'] = jnp.pad(p['hb2'], ((0, 0), (0, Vp - V)))               # f32
    return kp


# ------------------------- pure-JAX reference model --------------------------

def reference_forward(inputs, mask, p):
    emb = p['embedding'][inputs]
    x = emb + p['pe'][:inputs.shape[1]]
    B, S, E = x.shape
    split = E // NUM_HEADS
    for _ in range(NUM_LAYERS):
        q = x @ p['wq'] + p['bq']
        k = x @ p['wk'] + p['bk']
        v = x @ p['wv'] + p['bv']
        qh = q.reshape(B, S, NUM_HEADS, split).transpose(0, 2, 1, 3)
        kh = k.reshape(B, S, NUM_HEADS, split).transpose(0, 2, 1, 3)
        vh = v.reshape(B, S, NUM_HEADS, split).transpose(0, 2, 1, 3)
        s = jnp.einsum('bhqd,bhkd->bhqk', qh, kh) / math.sqrt(NUM_HEADS)
        s = jnp.where(mask[:, None, :, :] == 0, NEG_INF, s)
        a = jax.nn.softmax(s, axis=-1)
        attn = jnp.einsum('bhqk,bhkd->bhqd', a, vh)
        attn = attn.transpose(0, 2, 1, 3).reshape(B, S, E)
        attn = attn @ p['wo'] + p['bo'] + x
        attn_n = _layer_norm(attn, p['ln_w'], p['ln_b'])
        ff = _leaky_relu(attn_n @ p['w1'] + p['b1']) @ p['w2'] + p['b2']
        x = _leaky_relu(_layer_norm(ff + attn_n, p['ln_w'], p['ln_b']))
    h = _leaky_relu(x @ p['hw1'] + p['hb1'])
    return h @ p['hw2'] + p['hb2']


# ----------------------------------- main ------------------------------------

if __name__ == "__main__":
    VOCAB = 64
    WINDOW = 8     # sequence length
    BATCH = 2
    EMBED = 32     # 8 heads x 4

    key = jax.random.PRNGKey(0)
    k_params, k_inp = jax.random.split(key)

    params = init_params(k_params, VOCAB, WINDOW, EMBED)
    kparams = prepare_kernel_params(params)

    inputs = jax.random.randint(k_inp, (BATCH, WINDOW), 0, VOCAB, dtype=jnp.int32)
    # causal mask (same mask broadcast over heads inside the kernel, mask.unsqueeze(1))
    mask = jnp.broadcast_to(
        jnp.tril(jnp.ones((WINDOW, WINDOW), jnp.int32)), (BATCH, WINDOW, WINDOW))

    fwd = jax.jit(functools.partial(transformer_forward, vocab_size=VOCAB))
    out = jax.block_until_ready(fwd(inputs, mask, kparams))

    assert out.shape == (BATCH, WINDOW, VOCAB), out.shape
    assert bool(jnp.all(jnp.isfinite(out)))

    ref = reference_forward(inputs, mask, params)
    max_err = float(jnp.max(jnp.abs(out - ref)))
    # bf16 MXU operands + approx softmax reciprocal vs. an exact f32 reference:
    # compare at a bf16-level tolerance.
    assert jnp.allclose(out, ref, rtol=5e-2, atol=8e-2), max_err

    print("KERNEL_OK")
</pallas_src>

<mosaic_0001>
module attributes {stable_mosaic.version = 11 : i64} {
  func.func @transformer_kernel(%arg0: i32, %arg1: memref<1x8x32xf32, #tpu.memory_space<vmem>>, %arg2: memref<1x8x8xi32, #tpu.memory_space<vmem>>, %arg3: memref<32x96xbf16, #tpu.memory_space<vmem>>, %arg4: memref<1x96xf32, #tpu.memory_space<vmem>>, %arg5: memref<32x32xbf16, #tpu.memory_space<vmem>>, %arg6: memref<1x32xf32, #tpu.memory_space<vmem>>, %arg7: memref<1x32xf32, #tpu.memory_space<vmem>>, %arg8: memref<1x32xf32, #tpu.memory_space<vmem>>, %arg9: memref<32x32xbf16, #tpu.memory_space<vmem>>, %arg10: memref<1x32xf32, #tpu.memory_space<vmem>>, %arg11: memref<32x32xbf16, #tpu.memory_space<vmem>>, %arg12: memref<1x32xf32, #tpu.memory_space<vmem>>, %arg13: memref<32x32xbf16, #tpu.memory_space<vmem>>, %arg14: memref<1x32xf32, #tpu.memory_space<vmem>>, %arg15: memref<32x128xbf16, #tpu.memory_space<vmem>>, %arg16: memref<1x128xf32, #tpu.memory_space<vmem>>, %arg17: memref<1x8x128xf32, #tpu.memory_space<vmem>>) attributes {dimension_semantics = [#tpu.dimension_semantics<parallel>], iteration_bounds = array<i64: 2>, scalar_prefetch = 0 : i64, scratch_operands = 0 : i64, tpu.core_type = #tpu.core_type<tc>, window_params = [{transform_indices = @transform_0, window_bounds = array<i64: 1, 8, 32>}, {transform_indices = @transform_1, window_bounds = array<i64: 1, 8, 8>}, {pipeline_mode = #tpu.pipeline_mode<synchronous>, transform_indices = @transform_2, window_bounds = array<i64: 32, 96>}, {pipeline_mode = #tpu.pipeline_mode<synchronous>, transform_indices = @transform_3, window_bounds = array<i64: 1, 96>}, {pipeline_mode = #tpu.pipeline_mode<synchronous>, transform_indices = @transform_4, window_bounds = array<i64: 32, 32>}, {pipeline_mode = #tpu.pipeline_mode<synchronous>, transform_indices = @transform_5, window_bounds = array<i64: 1, 32>}, {pipeline_mode = #tpu.pipeline_mode<synchronous>, transform_indices = @transform_6, window_bounds = array<i64: 1, 32>}, {pipeline_mode = #tpu.pipeline_mode<synchronous>, transform_indices = @transform_7, window_bounds = array<i64: 1, 32>}, {pipeline_mode = #tpu.pipeline_mode<synchronous>, transform_indices = @transform_8, window_bounds = array<i64: 32, 32>}, {pipeline_mode = #tpu.pipeline_mode<synchronous>, transform_indices = @transform_9, window_bounds = array<i64: 1, 32>}, {pipeline_mode = #tpu.pipeline_mode<synchronous>, transform_indices = @transform_10, window_bounds = array<i64: 32, 32>}, {pipeline_mode = #tpu.pipeline_mode<synchronous>, transform_indices = @transform_11, window_bounds = array<i64: 1, 32>}, {pipeline_mode = #tpu.pipeline_mode<synchronous>, transform_indices = @transform_12, window_bounds = array<i64: 32, 32>}, {pipeline_mode = #tpu.pipeline_mode<synchronous>, transform_indices = @transform_13, window_bounds = array<i64: 1, 32>}, {pipeline_mode = #tpu.pipeline_mode<synchronous>, transform_indices = @transform_14, window_bounds = array<i64: 32, 128>}, {pipeline_mode = #tpu.pipeline_mode<synchronous>, transform_indices = @transform_15, window_bounds = array<i64: 1, 128>}, {transform_indices = @transform_16, window_bounds = array<i64: 1, 8, 128>}]} {
    %c0 = arith.constant 0 : index
    %c0_0 = arith.constant 0 : index
    %c0_1 = arith.constant 0 : index
    %0 = vector.load %arg1[%c0, %c0_0, %c0_1] : memref<1x8x32xf32, #tpu.memory_space<vmem>>, vector<1x8x32xf32>
    %1 = vector.shape_cast %0 : vector<1x8x32xf32> to vector<8x32xf32>
    %c0_2 = arith.constant 0 : index
    %c0_3 = arith.constant 0 : index
    %c0_4 = arith.constant 0 : index
    %2 = vector.load %arg2[%c0_2, %c0_3, %c0_4] : memref<1x8x8xi32, #tpu.memory_space<vmem>>, vector<1x8x8xi32>
    %3 = vector.shape_cast %2 : vector<1x8x8xi32> to vector<8x8xi32>
    %c0_i32 = arith.constant 0 : i32
    %4 = vector.broadcast %c0_i32 : i32 to vector<8x8xi32>
    %5 = arith.cmpi eq, %3, %4 : vector<8x8xi32>
    %c0_5 = arith.constant 0 : index
    %c0_6 = arith.constant 0 : index
    %6 = vector.load %arg3[%c0_5, %c0_6] : memref<32x96xbf16, #tpu.memory_space<vmem>>, vector<32x96xbf16>
    %c0_7 = arith.constant 0 : index
    %c0_8 = arith.constant 0 : index
    %7 = vector.load %arg5[%c0_7, %c0_8] : memref<32x32xbf16, #tpu.memory_space<vmem>>, vector<32x32xbf16>
    %c0_9 = arith.constant 0 : index
    %c0_10 = arith.constant 0 : index
    %8 = vector.load %arg9[%c0_9, %c0_10] : memref<32x32xbf16, #tpu.memory_space<vmem>>, vector<32x32xbf16>
    %c0_11 = arith.constant 0 : index
    %c0_12 = arith.constant 0 : index
    %9 = vector.load %arg11[%c0_11, %c0_12] : memref<32x32xbf16, #tpu.memory_space<vmem>>, vector<32x32xbf16>
    %c0_13 = arith.constant 0 : index
    %c0_14 = arith.constant 0 : index
    %10 = vector.load %arg13[%c0_13, %c0_14] : memref<32x32xbf16, #tpu.memory_space<vmem>>, vector<32x32xbf16>
    %c0_15 = arith.constant 0 : index
    %c0_16 = arith.constant 0 : index
    %11 = vector.load %arg15[%c0_15, %c0_16] : memref<32x128xbf16, #tpu.memory_space<vmem>>, vector<32x128xbf16>
    %c0_17 = arith.constant 0 : index
    %c0_18 = arith.constant 0 : index
    %12 = vector.load %arg4[%c0_17, %c0_18] : memref<1x96xf32, #tpu.memory_space<vmem>>, vector<1x96xf32>
    %13 = vector.shape_cast %12 : vector<1x96xf32> to vector<1x96xf32>
    %14 = vector.broadcast %13 : vector<1x96xf32> to vector<8x96xf32>
    %c0_19 = arith.constant 0 : index
    %c0_20 = arith.constant 0 : index
    %15 = vector.load %arg6[%c0_19, %c0_20] : memref<1x32xf32, #tpu.memory_space<vmem>>, vector<1x32xf32>
    %16 = vector.shape_cast %15 : vector<1x32xf32> to vector<1x32xf32>
    %17 = vector.broadcast %16 : vector<1x32xf32> to vector<8x32xf32>
    %c0_21 = arith.constant 0 : index
    %c0_22 = arith.constant 0 : index
    %18 = vector.load %arg7[%c0_21, %c0_22] : memref<1x32xf32, #tpu.memory_space<vmem>>, vector<1x32xf32>
    %19 = vector.shape_cast %18 : vector<1x32xf32> to vector<1x32xf32>
    %20 = vector.broadcast %19 : vector<1x32xf32> to vector<8x32xf32>
    %c0_23 = arith.constant 0 : index
    %c0_24 = arith.constant 0 : index
    %21 = vector.load %arg8[%c0_23, %c0_24] : memref<1x32xf32, #tpu.memory_space<vmem>>, vector<1x32xf32>
    %22 = vector.shape_cast %21 : vector<1x32xf32> to vector<1x32xf32>
    %23 = vector.broadcast %22 : vector<1x32xf32> to vector<8x32xf32>
    %c0_25 = arith.constant 0 : index
    %c0_26 = arith.constant 0 : index
    %24 = vector.load %arg10[%c0_25, %c0_26] : memref<1x32xf32, #tpu.memory_space<vmem>>, vector<1x32xf32>
    %25 = vector.shape_cast %24 : vector<1x32xf32> to vector<1x32xf32>
    %26 = vector.broadcast %25 : vector<1x32xf32> to vector<8x32xf32>
    %c0_27 = arith.constant 0 : index
    %c0_28 = arith.constant 0 : index
    %27 = vector.load %arg12[%c0_27, %c0_28] : memref<1x32xf32, #tpu.memory_space<vmem>>, vector<1x32xf32>
    %28 = vector.shape_cast %27 : vector<1x32xf32> to vector<1x32xf32>
    %29 = vector.broadcast %28 : vector<1x32xf32> to vector<8x32xf32>
    %c0_29 = arith.constant 0 : index
    %c0_30 = arith.constant 0 : index
    %30 = vector.load %arg14[%c0_29, %c0_30] : memref<1x32xf32, #tpu.memory_space<vmem>>, vector<1x32xf32>
    %31 = vector.shape_cast %30 : vector<1x32xf32> to vector<1x32xf32>
    %32 = vector.broadcast %31 : vector<1x32xf32> to vector<8x32xf32>
    %c0_31 = arith.constant 0 : index
    %c0_32 = arith.constant 0 : index
    %33 = vector.load %arg16[%c0_31, %c0_32] : memref<1x128xf32, #tpu.memory_space<vmem>>, vector<1x128xf32>
    %34 = vector.shape_cast %33 : vector<1x128xf32> to vector<1x128xf32>
    %35 = vector.broadcast %34 : vector<1x128xf32> to vector<8x128xf32>
    %36 = arith.truncf %1 : vector<8x32xf32> to vector<8x32xbf16>
    %cst = arith.constant dense<0.000000e+00> : vector<8x96xf32>
    %37 = tpu.matmul %36, %6, %cst {dimension_numbers = #tpu.dot_dimension_numbers<[1], [0], [0], [1], [0, 0, 1, 1], [], []>} : vector<8x32xbf16>, vector<32x96xbf16>, vector<8x96xf32> -> vector<8x96xf32>
    %38 = arith.addf %37, %14 : vector<8x96xf32>
    %39 = vector.extract_strided_slice %38 {offsets = [0, 0], sizes = [8, 32], strides = [1, 1]} : vector<8x96xf32> to vector<8x32xf32>
    %40 = arith.truncf %39 : vector<8x32xf32> to vector<8x32xbf16>
    %41 = vector.extract_strided_slice %38 {offsets = [0, 32], sizes = [8, 32], strides = [1, 1]} : vector<8x96xf32> to vector<8x32xf32>
    %42 = arith.truncf %41 : vector<8x32xf32> to vector<8x32xbf16>
    %43 = vector.extract_strided_slice %38 {offsets = [0, 64], sizes = [8, 32], strides = [1, 1]} : vector<8x96xf32> to vector<8x32xf32>
    %44 = arith.truncf %43 : vector<8x32xf32> to vector<8x32xbf16>
    %45 = vector.extract_strided_slice %40 {offsets = [0, 0], sizes = [8, 4], strides = [1, 1]} : vector<8x32xbf16> to vector<8x4xbf16>
    %46 = vector.extract_strided_slice %42 {offsets = [0, 0], sizes = [8, 4], strides = [1, 1]} : vector<8x32xbf16> to vector<8x4xbf16>
    "tpu.trace_start"() <{level = 10 : i32, message = "qd,kd->qk"}> : () -> ()
    %cst_33 = arith.constant dense<0.000000e+00> : vector<8x8xf32>
    %47 = tpu.matmul %45, %46, %cst_33 {dimension_numbers = #tpu.dot_dimension_numbers<[1], [1], [0], [0], [0, 0, 1, 0], [], []>} : vector<8x4xbf16>, vector<8x4xbf16>, vector<8x8xf32> -> vector<8x8xf32>
    "tpu.trace_stop"() : () -> ()
    %cst_34 = arith.constant 0.353553385 : f32
    %48 = vector.broadcast %cst_34 : f32 to vector<8x8xf32>
    %49 = arith.mulf %47, %48 : vector<8x8xf32>
    %cst_35 = arith.constant -1.000000e+09 : f32
    %50 = vector.broadcast %cst_35 : f32 to vector<8x8xf32>
    %51 = arith.select %5, %50, %49 : vector<8x8xi1>, vector<8x8xf32>
    %cst_36 = arith.constant dense<0xFF800000> : vector<8xf32>
    %52 = vector.multi_reduction <maximumf>, %51, %cst_36 [1] : vector<8x8xf32> to vector<8xf32>
    %53 = vector.shape_cast %52 : vector<8xf32> to vector<8x1xf32>
    %54 = vector.broadcast %53 : vector<8x1xf32> to vector<8x8xf32>
    %55 = arith.subf %51, %54 : vector<8x8xf32>
    %56 = math.exp %55 : vector<8x8xf32>
    %cst_37 = arith.constant dense<0.000000e+00> : vector<8xf32>
    %57 = vector.multi_reduction <add>, %56, %cst_37 [1] : vector<8x8xf32> to vector<8xf32>
    %58 = vector.shape_cast %57 : vector<8xf32> to vector<8x1xf32>
    %59 = tpu.reciprocal %58 {approx = true} : vector<8x1xf32> -> vector<8x1xf32>
    %60 = vector.broadcast %59 : vector<8x1xf32> to vector<8x8xf32>
    %61 = arith.mulf %56, %60 : vector<8x8xf32>
    %62 = arith.truncf %61 : vector<8x8xf32> to vector<8x8xbf16>
    %63 = vector.extract_strided_slice %44 {offsets = [0, 0], sizes = [8, 4], strides = [1, 1]} : vector<8x32xbf16> to vector<8x4xbf16>
    %cst_38 = arith.constant dense<0.000000e+00> : vector<8x4xf32>
    %64 = tpu.matmul %62, %63, %cst_38 {dimension_numbers = #tpu.dot_dimension_numbers<[1], [0], [0], [1], [0, 0, 1, 1], [], []>} : vector<8x8xbf16>, vector<8x4xbf16>, vector<8x4xf32> -> vector<8x4xf32>
    %65 = vector.extract_strided_slice %40 {offsets = [0, 4], sizes = [8, 4], strides = [1, 1]} : vector<8x32xbf16> to vector<8x4xbf16>
    %66 = vector.extract_strided_slice %42 {offsets = [0, 4], sizes = [8, 4], strides = [1, 1]} : vector<8x32xbf16> to vector<8x4xbf16>
    "tpu.trace_start"() <{level = 10 : i32, message = "qd,kd->qk"}> : () -> ()
    %cst_39 = arith.constant dense<0.000000e+00> : vector<8x8xf32>
    %67 = tpu.matmul %65, %66, %cst_39 {dimension_numbers = #tpu.dot_dimension_numbers<[1], [1], [0], [0], [0, 0, 1, 0], [], []>} : vector<8x4xbf16>, vector<8x4xbf16>, vector<8x8xf32> -> vector<8x8xf32>
    "tpu.trace_stop"() : () -> ()
    %cst_40 = arith.constant 0.353553385 : f32
    %68 = vector.broadcast %cst_40 : f32 to vector<8x8xf32>
    %69 = arith.mulf %67, %68 : vector<8x8xf32>
    %cst_41 = arith.constant -1.000000e+09 : f32
    %70 = vector.broadcast %cst_41 : f32 to vector<8x8xf32>
    %71 = arith.select %5, %70, %69 : vector<8x8xi1>, vector<8x8xf32>
    %cst_42 = arith.constant dense<0xFF800000> : vector<8xf32>
    %72 = vector.multi_reduction <maximumf>, %71, %cst_42 [1] : vector<8x8xf32> to vector<8xf32>
    %73 = vector.shape_cast %72 : vector<8xf32> to vector<8x1xf32>
    %74 = vector.broadcast %73 : vector<8x1xf32> to vector<8x8xf32>
    %75 = arith.subf %71, %74 : vector<8x8xf32>
    %76 = math.exp %75 : vector<8x8xf32>
    %cst_43 = arith.constant dense<0.000000e+00> : vector<8xf32>
    %77 = vector.multi_reduction <add>, %76, %cst_43 [1] : vector<8x8xf32> to vector<8xf32>
    %78 = vector.shape_cast %77 : vector<8xf32> to vector<8x1xf32>
    %79 = tpu.reciprocal %78 {approx = true} : vector<8x1xf32> -> vector<8x1xf32>
    %80 = vector.broadcast %79 : vector<8x1xf32> to vector<8x8xf32>
    %81 = arith.mulf %76, %80 : vector<8x8xf32>
    %82 = arith.truncf %81 : vector<8x8xf32> to vector<8x8xbf16>
    %83 = vector.extract_strided_slice %44 {offsets = [0, 4], sizes = [8, 4], strides = [1, 1]} : vector<8x32xbf16> to vector<8x4xbf16>
    %cst_44 = arith.constant dense<0.000000e+00> : vector<8x4xf32>
    %84 = tpu.matmul %82, %83, %cst_44 {dimension_numbers = #tpu.dot_dimension_numbers<[1], [0], [0], [1], [0, 0, 1, 1], [], []>} : vector<8x8xbf16>, vector<8x4xbf16>, vector<8x4xf32> -> vector<8x4xf32>
    %85 = vector.extract_strided_slice %40 {offsets = [0, 8], sizes = [8, 4], strides = [1, 1]} : vector<8x32xbf16> to vector<8x4xbf16>
    %86 = vector.extract_strided_slice %42 {offsets = [0, 8], sizes = [8, 4], strides = [1, 1]} : vector<8x32xbf16> to vector<8x4xbf16>
    "tpu.trace_start"() <{level = 10 : i32, message = "qd,kd->qk"}> : () -> ()
    %cst_45 = arith.constant dense<0.000000e+00> : vector<8x8xf32>
    %87 = tpu.matmul %85, %86, %cst_45 {dimension_numbers = #tpu.dot_dimension_numbers<[1], [1], [0], [0], [0, 0, 1, 0], [], []>} : vector<8x4xbf16>, vector<8x4xbf16>, vector<8x8xf32> -> vector<8x8xf32>
    "tpu.trace_stop"() : () -> ()
    %cst_46 = arith.constant 0.353553385 : f32
    %88 = vector.broadcast %cst_46 : f32 to vector<8x8xf32>
    %89 = arith.mulf %87, %88 : vector<8x8xf32>
    %cst_47 = arith.constant -1.000000e+09 : f32
    %90 = vector.broadcast %cst_47 : f32 to vector<8x8xf32>
    %91 = arith.select %5, %90, %89 : vector<8x8xi1>, vector<8x8xf32>
    %cst_48 = arith.constant dense<0xFF800000> : vector<8xf32>
    %92 = vector.multi_reduction <maximumf>, %91, %cst_48 [1] : vector<8x8xf32> to vector<8xf32>
    %93 = vector.shape_cast %92 : vector<8xf32> to vector<8x1xf32>
    %94 = vector.broadcast %93 : vector<8x1xf32> to vector<8x8xf32>
    %95 = arith.subf %91, %94 : vector<8x8xf32>
    %96 = math.exp %95 : vector<8x8xf32>
    %cst_49 = arith.constant dense<0.000000e+00> : vector<8xf32>
    %97 = vector.multi_reduction <add>, %96, %cst_49 [1] : vector<8x8xf32> to vector<8xf32>
    %98 = vector.shape_cast %97 : vector<8xf32> to vector<8x1xf32>
    %99 = tpu.reciprocal %98 {approx = true} : vector<8x1xf32> -> vector<8x1xf32>
    %100 = vector.broadcast %99 : vector<8x1xf32> to vector<8x8xf32>
    %101 = arith.mulf %96, %100 : vector<8x8xf32>
    %102 = arith.truncf %101 : vector<8x8xf32> to vector<8x8xbf16>
    %103 = vector.extract_strided_slice %44 {offsets = [0, 8], sizes = [8, 4], strides = [1, 1]} : vector<8x32xbf16> to vector<8x4xbf16>
    %cst_50 = arith.constant dense<0.000000e+00> : vector<8x4xf32>
    %104 = tpu.matmul %102, %103, %cst_50 {dimension_numbers = #tpu.dot_dimension_numbers<[1], [0], [0], [1], [0, 0, 1, 1], [], []>} : vector<8x8xbf16>, vector<8x4xbf16>, vector<8x4xf32> -> vector<8x4xf32>
    %105 = vector.extract_strided_slice %40 {offsets = [0, 12], sizes = [8, 4], strides = [1, 1]} : vector<8x32xbf16> to vector<8x4xbf16>
    %106 = vector.extract_strided_slice %42 {offsets = [0, 12], sizes = [8, 4], strides = [1, 1]} : vector<8x32xbf16> to vector<8x4xbf16>
    "tpu.trace_start"() <{level = 10 : i32, message = "qd,kd->qk"}> : () -> ()
    %cst_51 = arith.constant dense<0.000000e+00> : vector<8x8xf32>
    %107 = tpu.matmul %105, %106, %cst_51 {dimension_numbers = #tpu.dot_dimension_numbers<[1], [1], [0], [0], [0, 0, 1, 0], [], []>} : vector<8x4xbf16>, vector<8x4xbf16>, vector<8x8xf32> -> vector<8x8xf32>
    "tpu.trace_stop"() : () -> ()
    %cst_52 = arith.constant 0.353553385 : f32
    %108 = vector.broadcast %cst_52 : f32 to vector<8x8xf32>
    %109 = arith.mulf %107, %108 : vector<8x8xf32>
    %cst_53 = arith.constant -1.000000e+09 : f32
    %110 = vector.broadcast %cst_53 : f32 to vector<8x8xf32>
    %111 = arith.select %5, %110, %109 : vector<8x8xi1>, vector<8x8xf32>
    %cst_54 = arith.constant dense<0xFF800000> : vector<8xf32>
    %112 = vector.multi_reduction <maximumf>, %111, %cst_54 [1] : vector<8x8xf32> to vector<8xf32>
    %113 = vector.shape_cast %112 : vector<8xf32> to vector<8x1xf32>
    %114 = vector.broadcast %113 : vector<8x1xf32> to vector<8x8xf32>
    %115 = arith.subf %111, %114 : vector<8x8xf32>
    %116 = math.exp %115 : vector<8x8xf32>
    %cst_55 = arith.constant dense<0.000000e+00> : vector<8xf32>
    %117 = vector.multi_reduction <add>, %116, %cst_55 [1] : vector<8x8xf32> to vector<8xf32>
    %118 = vector.shape_cast %117 : vector<8xf32> to vector<8x1xf32>
    %119 = tpu.reciprocal %118 {approx = true} : vector<8x1xf32> -> vector<8x1xf32>
    %120 = vector.broadcast %119 : vector<8x1xf32> to vector<8x8xf32>
    %121 = arith.mulf %116, %120 : vector<8x8xf32>
    %122 = arith.truncf %121 : vector<8x8xf32> to vector<8x8xbf16>
    %123 = vector.extract_strided_slice %44 {offsets = [0, 12], sizes = [8, 4], strides = [1, 1]} : vector<8x32xbf16> to vector<8x4xbf16>
    %cst_56 = arith.constant dense<0.000000e+00> : vector<8x4xf32>
    %124 = tpu.matmul %122, %123, %cst_56 {dimension_numbers = #tpu.dot_dimension_numbers<[1], [0], [0], [1], [0, 0, 1, 1], [], []>} : vector<8x8xbf16>, vector<8x4xbf16>, vector<8x4xf32> -> vector<8x4xf32>
    %125 = vector.extract_strided_slice %40 {offsets = [0, 16], sizes = [8, 4], strides = [1, 1]} : vector<8x32xbf16> to vector<8x4xbf16>
    %126 = vector.extract_strided_slice %42 {offsets = [0, 16], sizes = [8, 4], strides = [1, 1]} : vector<8x32xbf16> to vector<8x4xbf16>
    "tpu.trace_start"() <{level = 10 : i32, message = "qd,kd->qk"}> : () -> ()
    %cst_57 = arith.constant dense<0.000000e+00> : vector<8x8xf32>
    %127 = tpu.matmul %125, %126, %cst_57 {dimension_numbers = #tpu.dot_dimension_numbers<[1], [1], [0], [0], [0, 0, 1, 0], [], []>} : vector<8x4xbf16>, vector<8x4xbf16>, vector<8x8xf32> -> vector<8x8xf32>
    "tpu.trace_stop"() : () -> ()
    %cst_58 = arith.constant 0.353553385 : f32
    %128 = vector.broadcast %cst_58 : f32 to vector<8x8xf32>
    %129 = arith.mulf %127, %128 : vector<8x8xf32>
    %cst_59 = arith.constant -1.000000e+09 : f32
    %130 = vector.broadcast %cst_59 : f32 to vector<8x8xf32>
    %131 = arith.select %5, %130, %129 : vector<8x8xi1>, vector<8x8xf32>
    %cst_60 = arith.constant dense<0xFF800000> : vector<8xf32>
    %132 = vector.multi_reduction <maximumf>, %131, %cst_60 [1] : vector<8x8xf32> to vector<8xf32>
    %133 = vector.shape_cast %132 : vector<8xf32> to vector<8x1xf32>
    %134 = vector.broadcast %133 : vector<8x1xf32> to vector<8x8xf32>
    %135 = arith.subf %131, %134 : vector<8x8xf32>
    %136 = math.exp %135 : vector<8x8xf32>
    %cst_61 = arith.constant dense<0.000000e+00> : vector<8xf32>
    %137 = vector.multi_reduction <add>, %136, %cst_61 [1] : vector<8x8xf32> to vector<8xf32>
    %138 = vector.shape_cast %137 : vector<8xf32> to vector<8x1xf32>
    %139 = tpu.reciprocal %138 {approx = true} : vector<8x1xf32> -> vector<8x1xf32>
    %140 = vector.broadcast %139 : vector<8x1xf32> to vector<8x8xf32>
    %141 = arith.mulf %136, %140 : vector<8x8xf32>
    %142 = arith.truncf %141 : vector<8x8xf32> to vector<8x8xbf16>
    %143 = vector.extract_strided_slice %44 {offsets = [0, 16], sizes = [8, 4], strides = [1, 1]} : vector<8x32xbf16> to vector<8x4xbf16>
    %cst_62 = arith.constant dense<0.000000e+00> : vector<8x4xf32>
    %144 = tpu.matmul %142, %143, %cst_62 {dimension_numbers = #tpu.dot_dimension_numbers<[1], [0], [0], [1], [0, 0, 1, 1], [], []>} : vector<8x8xbf16>, vector<8x4xbf16>, vector<8x4xf32> -> vector<8x4xf32>
    %145 = vector.extract_strided_slice %40 {offsets = [0, 20], sizes = [8, 4], strides = [1, 1]} : vector<8x32xbf16> to vector<8x4xbf16>
    %146 = vector.extract_strided_slice %42 {offsets = [0, 20], sizes = [8, 4], strides = [1, 1]} : vector<8x32xbf16> to vector<8x4xbf16>
    "tpu.trace_start"() <{level = 10 : i32, message = "qd,kd->qk"}> : () -> ()
    %cst_63 = arith.constant dense<0.000000e+00> : vector<8x8xf32>
    %147 = tpu.matmul %145, %146, %cst_63 {dimension_numbers = #tpu.dot_dimension_numbers<[1], [1], [0], [0], [0, 0, 1, 0], [], []>} : vector<8x4xbf16>, vector<8x4xbf16>, vector<8x8xf32> -> vector<8x8xf32>
    "tpu.trace_stop"() : () -> ()
    %cst_64 = arith.constant 0.353553385 : f32
    %148 = vector.broadcast %cst_64 : f32 to vector<8x8xf32>
    %149 = arith.mulf %147, %148 : vector<8x8xf32>
    %cst_65 = arith.constant -1.000000e+09 : f32
    %150 = vector.broadcast %cst_65 : f32 to vector<8x8xf32>
    %151 = arith.select %5, %150, %149 : vector<8x8xi1>, vector<8x8xf32>
    %cst_66 = arith.constant dense<0xFF800000> : vector<8xf32>
    %152 = vector.multi_reduction <maximumf>, %151, %cst_66 [1] : vector<8x8xf32> to vector<8xf32>
    %153 = vector.shape_cast %152 : vector<8xf32> to vector<8x1xf32>
    %154 = vector.broadcast %153 : vector<8x1xf32> to vector<8x8xf32>
    %155 = arith.subf %151, %154 : vector<8x8xf32>
    %156 = math.exp %155 : vector<8x8xf32>
    %cst_67 = arith.constant dense<0.000000e+00> : vector<8xf32>
    %157 = vector.multi_reduction <add>, %156, %cst_67 [1] : vector<8x8xf32> to vector<8xf32>
    %158 = vector.shape_cast %157 : vector<8xf32> to vector<8x1xf32>
    %159 = tpu.reciprocal %158 {approx = true} : vector<8x1xf32> -> vector<8x1xf32>
    %160 = vector.broadcast %159 : vector<8x1xf32> to vector<8x8xf32>
    %161 = arith.mulf %156, %160 : vector<8x8xf32>
    %162 = arith.truncf %161 : vector<8x8xf32> to vector<8x8xbf16>
    %163 = vector.extract_strided_slice %44 {offsets = [0, 20], sizes = [8, 4], strides = [1, 1]} : vector<8x32xbf16> to vector<8x4xbf16>
    %cst_68 = arith.constant dense<0.000000e+00> : vector<8x4xf32>
    %164 = tpu.matmul %162, %163, %cst_68 {dimension_numbers = #tpu.dot_dimension_numbers<[1], [0], [0], [1], [0, 0, 1, 1], [], []>} : vector<8x8xbf16>, vector<8x4xbf16>, vector<8x4xf32> -> vector<8x4xf32>
    %165 = vector.extract_strided_slice %40 {offsets = [0, 24], sizes = [8, 4], strides = [1, 1]} : vector<8x32xbf16> to vector<8x4xbf16>
    %166 = vector.extract_strided_slice %42 {offsets = [0, 24], sizes = [8, 4], strides = [1, 1]} : vector<8x32xbf16> to vector<8x4xbf16>
    "tpu.trace_start"() <{level = 10 : i32, message = "qd,kd->qk"}> : () -> ()
    %cst_69 = arith.constant dense<0.000000e+00> : vector<8x8xf32>
    %167 = tpu.matmul %165, %166, %cst_69 {dimension_numbers = #tpu.dot_dimension_numbers<[1], [1], [0], [0], [0, 0, 1, 0], [], []>} : vector<8x4xbf16>, vector<8x4xbf16>, vector<8x8xf32> -> vector<8x8xf32>
    "tpu.trace_stop"() : () -> ()
    %cst_70 = arith.constant 0.353553385 : f32
    %168 = vector.broadcast %cst_70 : f32 to vector<8x8xf32>
    %169 = arith.mulf %167, %168 : vector<8x8xf32>
    %cst_71 = arith.constant -1.000000e+09 : f32
    %170 = vector.broadcast %cst_71 : f32 to vector<8x8xf32>
    %171 = arith.select %5, %170, %169 : vector<8x8xi1>, vector<8x8xf32>
    %cst_72 = arith.constant dense<0xFF800000> : vector<8xf32>
    %172 = vector.multi_reduction <maximumf>, %171, %cst_72 [1] : vector<8x8xf32> to vector<8xf32>
    %173 = vector.shape_cast %172 : vector<8xf32> to vector<8x1xf32>
    %174 = vector.broadcast %173 : vector<8x1xf32> to vector<8x8xf32>
    %175 = arith.subf %171, %174 : vector<8x8xf32>
    %176 = math.exp %175 : vector<8x8xf32>
    %cst_73 = arith.constant dense<0.000000e+00> : vector<8xf32>
    %177 = vector.multi_reduction <add>, %176, %cst_73 [1] : vector<8x8xf32> to vector<8xf32>
    %178 = vector.shape_cast %177 : vector<8xf32> to vector<8x1xf32>
    %179 = tpu.reciprocal %178 {approx = true} : vector<8x1xf32> -> vector<8x1xf32>
    %180 = vector.broadcast %179 : vector<8x1xf32> to vector<8x8xf32>
    %181 = arith.mulf %176, %180 : vector<8x8xf32>
    %182 = arith.truncf %181 : vector<8x8xf32> to vector<8x8xbf16>
    %183 = vector.extract_strided_slice %44 {offsets = [0, 24], sizes = [8, 4], strides = [1, 1]} : vector<8x32xbf16> to vector<8x4xbf16>
    %cst_74 = arith.constant dense<0.000000e+00> : vector<8x4xf32>
    %184 = tpu.matmul %182, %183, %cst_74 {dimension_numbers = #tpu.dot_dimension_numbers<[1], [0], [0], [1], [0, 0, 1, 1], [], []>} : vector<8x8xbf16>, vector<8x4xbf16>, vector<8x4xf32> -> vector<8x4xf32>
    %185 = vector.extract_strided_slice %40 {offsets = [0, 28], sizes = [8, 4], strides = [1, 1]} : vector<8x32xbf16> to vector<8x4xbf16>
    %186 = vector.extract_strided_slice %42 {offsets = [0, 28], sizes = [8, 4], strides = [1, 1]} : vector<8x32xbf16> to vector<8x4xbf16>
    "tpu.trace_start"() <{level = 10 : i32, message = "qd,kd->qk"}> : () -> ()
    %cst_75 = arith.constant dense<0.000000e+00> : vector<8x8xf32>
    %187 = tpu.matmul %185, %186, %cst_75 {dimension_numbers = #tpu.dot_dimension_numbers<[1], [1], [0], [0], [0, 0, 1, 0], [], []>} : vector<8x4xbf16>, vector<8x4xbf16>, vector<8x8xf32> -> vector<8x8xf32>
    "tpu.trace_stop"() : () -> ()
    %cst_76 = arith.constant 0.353553385 : f32
    %188 = vector.broadcast %cst_76 : f32 to vector<8x8xf32>
    %189 = arith.mulf %187, %188 : vector<8x8xf32>
    %cst_77 = arith.constant -1.000000e+09 : f32
    %190 = vector.broadcast %cst_77 : f32 to vector<8x8xf32>
    %191 = arith.select %5, %190, %189 : vector<8x8xi1>, vector<8x8xf32>
    %cst_78 = arith.constant dense<0xFF800000> : vector<8xf32>
    %192 = vector.multi_reduction <maximumf>, %191, %cst_78 [1] : vector<8x8xf32> to vector<8xf32>
    %193 = vector.shape_cast %192 : vector<8xf32> to vector<8x1xf32>
    %194 = vector.broadcast %193 : vector<8x1xf32> to vector<8x8xf32>
    %195 = arith.subf %191, %194 : vector<8x8xf32>
    %196 = math.exp %195 : vector<8x8xf32>
    %cst_79 = arith.constant dense<0.000000e+00> : vector<8xf32>
    %197 = vector.multi_reduction <add>, %196, %cst_79 [1] : vector<8x8xf32> to vector<8xf32>
    %198 = vector.shape_cast %197 : vector<8xf32> to vector<8x1xf32>
    %199 = tpu.reciprocal %198 {approx = true} : vector<8x1xf32> -> vector<8x1xf32>
    %200 = vector.broadcast %199 : vector<8x1xf32> to vector<8x8xf32>
    %201 = arith.mulf %196, %200 : vector<8x8xf32>
    %202 = arith.truncf %201 : vector<8x8xf32> to vector<8x8xbf16>
    %203 = vector.extract_strided_slice %44 {offsets = [0, 28], sizes = [8, 4], strides = [1, 1]} : vector<8x32xbf16> to vector<8x4xbf16>
    %cst_80 = arith.constant dense<0.000000e+00> : vector<8x4xf32>
    %204 = tpu.matmul %202, %203, %cst_80 {dimension_numbers = #tpu.dot_dimension_numbers<[1], [0], [0], [1], [0, 0, 1, 1], [], []>} : vector<8x8xbf16>, vector<8x4xbf16>, vector<8x4xf32> -> vector<8x4xf32>
    %205 = tpu.concatenate %64, %84, %104, %124, %144, %164, %184, %204 in 1 : vector<8x4xf32>, vector<8x4xf32>, vector<8x4xf32>, vector<8x4xf32>, vector<8x4xf32>, vector<8x4xf32>, vector<8x4xf32>, vector<8x4xf32> -> vector<8x32xf32>
    %206 = arith.truncf %205 : vector<8x32xf32> to vector<8x32xbf16>
    %cst_81 = arith.constant dense<0.000000e+00> : vector<8x32xf32>
    %207 = tpu.matmul %206, %7, %cst_81 {dimension_numbers = #tpu.dot_dimension_numbers<[1], [0], [0], [1], [0, 0, 1, 1], [], []>} : vector<8x32xbf16>, vector<32x32xbf16>, vector<8x32xf32> -> vector<8x32xf32>
    %208 = arith.addf %207, %17 : vector<8x32xf32>
    %209 = arith.addf %208, %1 : vector<8x32xf32>
    %cst_82 = arith.constant dense<0.000000e+00> : vector<8xf32>
    %210 = vector.multi_reduction <add>, %209, %cst_82 [1] : vector<8x32xf32> to vector<8xf32>
    %211 = vector.shape_cast %210 : vector<8xf32> to vector<8x1xf32>
    %cst_83 = arith.constant 3.200000e+01 : f32
    %212 = vector.broadcast %cst_83 : f32 to vector<8x1xf32>
    %213 = arith.divf %211, %212 : vector<8x1xf32>
    %214 = vector.broadcast %213 : vector<8x1xf32> to vector<8x32xf32>
    %215 = arith.subf %209, %214 : vector<8x32xf32>
    %216 = arith.mulf %215, %215 : vector<8x32xf32>
    %cst_84 = arith.constant dense<0.000000e+00> : vector<8xf32>
    %217 = vector.multi_reduction <add>, %216, %cst_84 [1] : vector<8x32xf32> to vector<8xf32>
    %218 = vector.shape_cast %217 : vector<8xf32> to vector<8x1xf32>
    %cst_85 = arith.constant 3.200000e+01 : f32
    %219 = vector.broadcast %cst_85 : f32 to vector<8x1xf32>
    %220 = arith.divf %218, %219 : vector<8x1xf32>
    %221 = vector.broadcast %213 : vector<8x1xf32> to vector<8x32xf32>
    %222 = arith.subf %209, %221 : vector<8x32xf32>
    %cst_86 = arith.constant 9.99999974E-6 : f32
    %223 = vector.broadcast %cst_86 : f32 to vector<8x1xf32>
    %224 = arith.addf %220, %223 : vector<8x1xf32>
    %225 = math.rsqrt %224 : vector<8x1xf32>
    %226 = vector.broadcast %225 : vector<8x1xf32> to vector<8x32xf32>
    %227 = arith.mulf %222, %226 : vector<8x32xf32>
    %228 = arith.mulf %227, %20 : vector<8x32xf32>
    %229 = arith.addf %228, %23 : vector<8x32xf32>
    %230 = arith.truncf %229 : vector<8x32xf32> to vector<8x32xbf16>
    %cst_87 = arith.constant dense<0.000000e+00> : vector<8x32xf32>
    %231 = tpu.matmul %230, %8, %cst_87 {dimension_numbers = #tpu.dot_dimension_numbers<[1], [0], [0], [1], [0, 0, 1, 1], [], []>} : vector<8x32xbf16>, vector<32x32xbf16>, vector<8x32xf32> -> vector<8x32xf32>
    %232 = arith.addf %231, %26 : vector<8x32xf32>
    %cst_88 = arith.constant 0.000000e+00 : f32
    %233 = vector.broadcast %cst_88 : f32 to vector<8x32xf32>
    %234 = arith.cmpf oge, %232, %233 : vector<8x32xf32>
    %cst_89 = arith.constant 0.00999999977 : f32
    %235 = vector.broadcast %cst_89 : f32 to vector<8x32xf32>
    %236 = arith.mulf %235, %232 : vector<8x32xf32>
    %237 = arith.select %234, %232, %236 : vector<8x32xi1>, vector<8x32xf32>
    %238 = arith.truncf %237 : vector<8x32xf32> to vector<8x32xbf16>
    %cst_90 = arith.constant dense<0.000000e+00> : vector<8x32xf32>
    %239 = tpu.matmul %238, %9, %cst_90 {dimension_numbers = #tpu.dot_dimension_numbers<[1], [0], [0], [1], [0, 0, 1, 1], [], []>} : vector<8x32xbf16>, vector<32x32xbf16>, vector<8x32xf32> -> vector<8x32xf32>
    %240 = arith.addf %239, %29 : vector<8x32xf32>
    %241 = arith.addf %240, %229 : vector<8x32xf32>
    %cst_91 = arith.constant dense<0.000000e+00> : vector<8xf32>
    %242 = vector.multi_reduction <add>, %241, %cst_91 [1] : vector<8x32xf32> to vector<8xf32>
    %243 = vector.shape_cast %242 : vector<8xf32> to vector<8x1xf32>
    %cst_92 = arith.constant 3.200000e+01 : f32
    %244 = vector.broadcast %cst_92 : f32 to vector<8x1xf32>
    %245 = arith.divf %243, %244 : vector<8x1xf32>
    %246 = vector.broadcast %245 : vector<8x1xf32> to vector<8x32xf32>
    %247 = arith.subf %241, %246 : vector<8x32xf32>
    %248 = arith.mulf %247, %247 : vector<8x32xf32>
    %cst_93 = arith.constant dense<0.000000e+00> : vector<8xf32>
    %249 = vector.multi_reduction <add>, %248, %cst_93 [1] : vector<8x32xf32> to vector<8xf32>
    %250 = vector.shape_cast %249 : vector<8xf32> to vector<8x1xf32>
    %cst_94 = arith.constant 3.200000e+01 : f32
    %251 = vector.broadcast %cst_94 : f32 to vector<8x1xf32>
    %252 = arith.divf %250, %251 : vector<8x1xf32>
    %253 = vector.broadcast %245 : vector<8x1xf32> to vector<8x32xf32>
    %254 = arith.subf %241, %253 : vector<8x32xf32>
    %cst_95 = arith.constant 9.99999974E-6 : f32
    %255 = vector.broadcast %cst_95 : f32 to vector<8x1xf32>
    %256 = arith.addf %252, %255 : vector<8x1xf32>
    %257 = math.rsqrt %256 : vector<8x1xf32>
    %258 = vector.broadcast %257 : vector<8x1xf32> to vector<8x32xf32>
    %259 = arith.mulf %254, %258 : vector<8x32xf32>
    %260 = arith.mulf %259, %20 : vector<8x32xf32>
    %261 = arith.addf %260, %23 : vector<8x32xf32>
    %cst_96 = arith.constant 0.000000e+00 : f32
    %262 = vector.broadcast %cst_96 : f32 to vector<8x32xf32>
    %263 = arith.cmpf oge, %261, %262 : vector<8x32xf32>
    %cst_97 = arith.constant 0.00999999977 : f32
    %264 = vector.broadcast %cst_97 : f32 to vector<8x32xf32>
    %265 = arith.mulf %264, %261 : vector<8x32xf32>
    %266 = arith.select %263, %261, %265 : vector<8x32xi1>, vector<8x32xf32>
    %267 = arith.truncf %266 : vector<8x32xf32> to vector<8x32xbf16>
    %cst_98 = arith.constant dense<0.000000e+00> : vector<8x96xf32>
    %268 = tpu.matmul %267, %6, %cst_98 {dimension_numbers = #tpu.dot_dimension_numbers<[1], [0], [0], [1], [0, 0, 1, 1], [], []>} : vector<8x32xbf16>, vector<32x96xbf16>, vector<8x96xf32> -> vector<8x96xf32>
    %269 = arith.addf %268, %14 : vector<8x96xf32>
    %270 = vector.extract_strided_slice %269 {offsets = [0, 0], sizes = [8, 32], strides = [1, 1]} : vector<8x96xf32> to vector<8x32xf32>
    %271 = arith.truncf %270 : vector<8x32xf32> to vector<8x32xbf16>
    %272 = vector.extract_strided_slice %269 {offsets = [0, 32], sizes = [8, 32], strides = [1, 1]} : vector<8x96xf32> to vector<8x32xf32>
    %273 = arith.truncf %272 : vector<8x32xf32> to vector<8x32xbf16>
    %274 = vector.extract_strided_slice %269 {offsets = [0, 64], sizes = [8, 32], strides = [1, 1]} : vector<8x96xf32> to vector<8x32xf32>
    %275 = arith.truncf %274 : vector<8x32xf32> to vector<8x32xbf16>
    %276 = vector.extract_strided_slice %271 {offsets = [0, 0], sizes = [8, 4], strides = [1, 1]} : vector<8x32xbf16> to vector<8x4xbf16>
    %277 = vector.extract_strided_slice %273 {offsets = [0, 0], sizes = [8, 4], strides = [1, 1]} : vector<8x32xbf16> to vector<8x4xbf16>
    "tpu.trace_start"() <{level = 10 : i32, message = "qd,kd->qk"}> : () -> ()
    %cst_99 = arith.constant dense<0.000000e+00> : vector<8x8xf32>
    %278 = tpu.matmul %276, %277, %cst_99 {dimension_numbers = #tpu.dot_dimension_numbers<[1], [1], [0], [0], [0, 0, 1, 0], [], []>} : vector<8x4xbf16>, vector<8x4xbf16>, vector<8x8xf32> -> vector<8x8xf32>
    "tpu.trace_stop"() : () -> ()
    %cst_100 = arith.constant 0.353553385 : f32
    %279 = vector.broadcast %cst_100 : f32 to vector<8x8xf32>
    %280 = arith.mulf %278, %279 : vector<8x8xf32>
    %cst_101 = arith.constant -1.000000e+09 : f32
    %281 = vector.broadcast %cst_101 : f32 to vector<8x8xf32>
    %282 = arith.select %5, %281, %280 : vector<8x8xi1>, vector<8x8xf32>
    %cst_102 = arith.constant dense<0xFF800000> : vector<8xf32>
    %283 = vector.multi_reduction <maximumf>, %282, %cst_102 [1] : vector<8x8xf32> to vector<8xf32>
    %284 = vector.shape_cast %283 : vector<8xf32> to vector<8x1xf32>
    %285 = vector.broadcast %284 : vector<8x1xf32> to vector<8x8xf32>
    %286 = arith.subf %282, %285 : vector<8x8xf32>
    %287 = math.exp %286 : vector<8x8xf32>
    %cst_103 = arith.constant dense<0.000000e+00> : vector<8xf32>
    %288 = vector.multi_reduction <add>, %287, %cst_103 [1] : vector<8x8xf32> to vector<8xf32>
    %289 = vector.shape_cast %288 : vector<8xf32> to vector<8x1xf32>
    %290 = tpu.reciprocal %289 {approx = true} : vector<8x1xf32> -> vector<8x1xf32>
    %291 = vector.broadcast %290 : vector<8x1xf32> to vector<8x8xf32>
    %292 = arith.mulf %287, %291 : vector<8x8xf32>
    %293 = arith.truncf %292 : vector<8x8xf32> to vector<8x8xbf16>
    %294 = vector.extract_strided_slice %275 {offsets = [0, 0], sizes = [8, 4], strides = [1, 1]} : vector<8x32xbf16> to vector<8x4xbf16>
    %cst_104 = arith.constant dense<0.000000e+00> : vector<8x4xf32>
    %295 = tpu.matmul %293, %294, %cst_104 {dimension_numbers = #tpu.dot_dimension_numbers<[1], [0], [0], [1], [0, 0, 1, 1], [], []>} : vector<8x8xbf16>, vector<8x4xbf16>, vector<8x4xf32> -> vector<8x4xf32>
    %296 = vector.extract_strided_slice %271 {offsets = [0, 4], sizes = [8, 4], strides = [1, 1]} : vector<8x32xbf16> to vector<8x4xbf16>
    %297 = vector.extract_strided_slice %273 {offsets = [0, 4], sizes = [8, 4], strides = [1, 1]} : vector<8x32xbf16> to vector<8x4xbf16>
    "tpu.trace_start"() <{level = 10 : i32, message = "qd,kd->qk"}> : () -> ()
    %cst_105 = arith.constant dense<0.000000e+00> : vector<8x8xf32>
    %298 = tpu.matmul %296, %297, %cst_105 {dimension_numbers = #tpu.dot_dimension_numbers<[1], [1], [0], [0], [0, 0, 1, 0], [], []>} : vector<8x4xbf16>, vector<8x4xbf16>, vector<8x8xf32> -> vector<8x8xf32>
    "tpu.trace_stop"() : () -> ()
    %cst_106 = arith.constant 0.353553385 : f32
    %299 = vector.broadcast %cst_106 : f32 to vector<8x8xf32>
    %300 = arith.mulf %298, %299 : vector<8x8xf32>
    %cst_107 = arith.constant -1.000000e+09 : f32
    %301 = vector.broadcast %cst_107 : f32 to vector<8x8xf32>
    %302 = arith.select %5, %301, %300 : vector<8x8xi1>, vector<8x8xf32>
    %cst_108 = arith.constant dense<0xFF800000> : vector<8xf32>
    %303 = vector.multi_reduction <maximumf>, %302, %cst_108 [1] : vector<8x8xf32> to vector<8xf32>
    %304 = vector.shape_cast %303 : vector<8xf32> to vector<8x1xf32>
    %305 = vector.broadcast %304 : vector<8x1xf32> to vector<8x8xf32>
    %306 = arith.subf %302, %305 : vector<8x8xf32>
    %307 = math.exp %306 : vector<8x8xf32>
    %cst_109 = arith.constant dense<0.000000e+00> : vector<8xf32>
    %308 = vector.multi_reduction <add>, %307, %cst_109 [1] : vector<8x8xf32> to vector<8xf32>
    %309 = vector.shape_cast %308 : vector<8xf32> to vector<8x1xf32>
    %310 = tpu.reciprocal %309 {approx = true} : vector<8x1xf32> -> vector<8x1xf32>
    %311 = vector.broadcast %310 : vector<8x1xf32> to vector<8x8xf32>
    %312 = arith.mulf %307, %311 : vector<8x8xf32>
    %313 = arith.truncf %312 : vector<8x8xf32> to vector<8x8xbf16>
    %314 = vector.extract_strided_slice %275 {offsets = [0, 4], sizes = [8, 4], strides = [1, 1]} : vector<8x32xbf16> to vector<8x4xbf16>
    %cst_110 = arith.constant dense<0.000000e+00> : vector<8x4xf32>
    %315 = tpu.matmul %313, %314, %cst_110 {dimension_numbers = #tpu.dot_dimension_numbers<[1], [0], [0], [1], [0, 0, 1, 1], [], []>} : vector<8x8xbf16>, vector<8x4xbf16>, vector<8x4xf32> -> vector<8x4xf32>
    %316 = vector.extract_strided_slice %271 {offsets = [0, 8], sizes = [8, 4], strides = [1, 1]} : vector<8x32xbf16> to vector<8x4xbf16>
    %317 = vector.extract_strided_slice %273 {offsets = [0, 8], sizes = [8, 4], strides = [1, 1]} : vector<8x32xbf16> to vector<8x4xbf16>
    "tpu.trace_start"() <{level = 10 : i32, message = "qd,kd->qk"}> : () -> ()
    %cst_111 = arith.constant dense<0.000000e+00> : vector<8x8xf32>
    %318 = tpu.matmul %316, %317, %cst_111 {dimension_numbers = #tpu.dot_dimension_numbers<[1], [1], [0], [0], [0, 0, 1, 0], [], []>} : vector<8x4xbf16>, vector<8x4xbf16>, vector<8x8xf32> -> vector<8x8xf32>
    "tpu.trace_stop"() : () -> ()
    %cst_112 = arith.constant 0.353553385 : f32
    %319 = vector.broadcast %cst_112 : f32 to vector<8x8xf32>
    %320 = arith.mulf %318, %319 : vector<8x8xf32>
    %cst_113 = arith.constant -1.000000e+09 : f32
    %321 = vector.broadcast %cst_113 : f32 to vector<8x8xf32>
    %322 = arith.select %5, %321, %320 : vector<8x8xi1>, vector<8x8xf32>
    %cst_114 = arith.constant dense<0xFF800000> : vector<8xf32>
    %323 = vector.multi_reduction <maximumf>, %322, %cst_114 [1] : vector<8x8xf32> to vector<8xf32>
    %324 = vector.shape_cast %323 : vector<8xf32> to vector<8x1xf32>
    %325 = vector.broadcast %324 : vector<8x1xf32> to vector<8x8xf32>
    %326 = arith.subf %322, %325 : vector<8x8xf32>
    %327 = math.exp %326 : vector<8x8xf32>
    %cst_115 = arith.constant dense<0.000000e+00> : vector<8xf32>
    %328 = vector.multi_reduction <add>, %327, %cst_115 [1] : vector<8x8xf32> to vector<8xf32>
    %329 = vector.shape_cast %328 : vector<8xf32> to vector<8x1xf32>
    %330 = tpu.reciprocal %329 {approx = true} : vector<8x1xf32> -> vector<8x1xf32>
    %331 = vector.broadcast %330 : vector<8x1xf32> to vector<8x8xf32>
    %332 = arith.mulf %327, %331 : vector<8x8xf32>
    %333 = arith.truncf %332 : vector<8x8xf32> to vector<8x8xbf16>
    %334 = vector.extract_strided_slice %275 {offsets = [0, 8], sizes = [8, 4], strides = [1, 1]} : vector<8x32xbf16> to vector<8x4xbf16>
    %cst_116 = arith.constant dense<0.000000e+00> : vector<8x4xf32>
    %335 = tpu.matmul %333, %334, %cst_116 {dimension_numbers = #tpu.dot_dimension_numbers<[1], [0], [0], [1], [0, 0, 1, 1], [], []>} : vector<8x8xbf16>, vector<8x4xbf16>, vector<8x4xf32> -> vector<8x4xf32>
    %336 = vector.extract_strided_slice %271 {offsets = [0, 12], sizes = [8, 4], strides = [1, 1]} : vector<8x32xbf16> to vector<8x4xbf16>
    %337 = vector.extract_strided_slice %273 {offsets = [0, 12], sizes = [8, 4], strides = [1, 1]} : vector<8x32xbf16> to vector<8x4xbf16>
    "tpu.trace_start"() <{level = 10 : i32, message = "qd,kd->qk"}> : () -> ()
    %cst_117 = arith.constant dense<0.000000e+00> : vector<8x8xf32>
    %338 = tpu.matmul %336, %337, %cst_117 {dimension_numbers = #tpu.dot_dimension_numbers<[1], [1], [0], [0], [0, 0, 1, 0], [], []>} : vector<8x4xbf16>, vector<8x4xbf16>, vector<8x8xf32> -> vector<8x8xf32>
    "tpu.trace_stop"() : () -> ()
    %cst_118 = arith.constant 0.353553385 : f32
    %339 = vector.broadcast %cst_118 : f32 to vector<8x8xf32>
    %340 = arith.mulf %338, %339 : vector<8x8xf32>
    %cst_119 = arith.constant -1.000000e+09 : f32
    %341 = vector.broadcast %cst_119 : f32 to vector<8x8xf32>
    %342 = arith.select %5, %341, %340 : vector<8x8xi1>, vector<8x8xf32>
    %cst_120 = arith.constant dense<0xFF800000> : vector<8xf32>
    %343 = vector.multi_reduction <maximumf>, %342, %cst_120 [1] : vector<8x8xf32> to vector<8xf32>
    %344 = vector.shape_cast %343 : vector<8xf32> to vector<8x1xf32>
    %345 = vector.broadcast %344 : vector<8x1xf32> to vector<8x8xf32>
    %346 = arith.subf %342, %345 : vector<8x8xf32>
    %347 = math.exp %346 : vector<8x8xf32>
    %cst_121 = arith.constant dense<0.000000e+00> : vector<8xf32>
    %348 = vector.multi_reduction <add>, %347, %cst_121 [1] : vector<8x8xf32> to vector<8xf32>
    %349 = vector.shape_cast %348 : vector<8xf32> to vector<8x1xf32>
    %350 = tpu.reciprocal %349 {approx = true} : vector<8x1xf32> -> vector<8x1xf32>
    %351 = vector.broadcast %350 : vector<8x1xf32> to vector<8x8xf32>
    %352 = arith.mulf %347, %351 : vector<8x8xf32>
    %353 = arith.truncf %352 : vector<8x8xf32> to vector<8x8xbf16>
    %354 = vector.extract_strided_slice %275 {offsets = [0, 12], sizes = [8, 4], strides = [1, 1]} : vector<8x32xbf16> to vector<8x4xbf16>
    %cst_122 = arith.constant dense<0.000000e+00> : vector<8x4xf32>
    %355 = tpu.matmul %353, %354, %cst_122 {dimension_numbers = #tpu.dot_dimension_numbers<[1], [0], [0], [1], [0, 0, 1, 1], [], []>} : vector<8x8xbf16>, vector<8x4xbf16>, vector<8x4xf32> -> vector<8x4xf32>
    %356 = vector.extract_strided_slice %271 {offsets = [0, 16], sizes = [8, 4], strides = [1, 1]} : vector<8x32xbf16> to vector<8x4xbf16>
    %357 = vector.extract_strided_slice %273 {offsets = [0, 16], sizes = [8, 4], strides = [1, 1]} : vector<8x32xbf16> to vector<8x4xbf16>
    "tpu.trace_start"() <{level = 10 : i32, message = "qd,kd->qk"}> : () -> ()
    %cst_123 = arith.constant dense<0.000000e+00> : vector<8x8xf32>
    %358 = tpu.matmul %356, %357, %cst_123 {dimension_numbers = #tpu.dot_dimension_numbers<[1], [1], [0], [0], [0, 0, 1, 0], [], []>} : vector<8x4xbf16>, vector<8x4xbf16>, vector<8x8xf32> -> vector<8x8xf32>
    "tpu.trace_stop"() : () -> ()
    %cst_124 = arith.constant 0.353553385 : f32
    %359 = vector.broadcast %cst_124 : f32 to vector<8x8xf32>
    %360 = arith.mulf %358, %359 : vector<8x8xf32>
    %cst_125 = arith.constant -1.000000e+09 : f32
    %361 = vector.broadcast %cst_125 : f32 to vector<8x8xf32>
    %362 = arith.select %5, %361, %360 : vector<8x8xi1>, vector<8x8xf32>
    %cst_126 = arith.constant dense<0xFF800000> : vector<8xf32>
    %363 = vector.multi_reduction <maximumf>, %362, %cst_126 [1] : vector<8x8xf32> to vector<8xf32>
    %364 = vector.shape_cast %363 : vector<8xf32> to vector<8x1xf32>
    %365 = vector.broadcast %364 : vector<8x1xf32> to vector<8x8xf32>
    %366 = arith.subf %362, %365 : vector<8x8xf32>
    %367 = math.exp %366 : vector<8x8xf32>
    %cst_127 = arith.constant dense<0.000000e+00> : vector<8xf32>
    %368 = vector.multi_reduction <add>, %367, %cst_127 [1] : vector<8x8xf32> to vector<8xf32>
    %369 = vector.shape_cast %368 : vector<8xf32> to vector<8x1xf32>
    %370 = tpu.reciprocal %369 {approx = true} : vector<8x1xf32> -> vector<8x1xf32>
    %371 = vector.broadcast %370 : vector<8x1xf32> to vector<8x8xf32>
    %372 = arith.mulf %367, %371 : vector<8x8xf32>
    %373 = arith.truncf %372 : vector<8x8xf32> to vector<8x8xbf16>
    %374 = vector.extract_strided_slice %275 {offsets = [0, 16], sizes = [8, 4], strides = [1, 1]} : vector<8x32xbf16> to vector<8x4xbf16>
    %cst_128 = arith.constant dense<0.000000e+00> : vector<8x4xf32>
    %375 = tpu.matmul %373, %374, %cst_128 {dimension_numbers = #tpu.dot_dimension_numbers<[1], [0], [0], [1], [0, 0, 1, 1], [], []>} : vector<8x8xbf16>, vector<8x4xbf16>, vector<8x4xf32> -> vector<8x4xf32>
    %376 = vector.extract_strided_slice %271 {offsets = [0, 20], sizes = [8, 4], strides = [1, 1]} : vector<8x32xbf16> to vector<8x4xbf16>
    %377 = vector.extract_strided_slice %273 {offsets = [0, 20], sizes = [8, 4], strides = [1, 1]} : vector<8x32xbf16> to vector<8x4xbf16>
    "tpu.trace_start"() <{level = 10 : i32, message = "qd,kd->qk"}> : () -> ()
    %cst_129 = arith.constant dense<0.000000e+00> : vector<8x8xf32>
    %378 = tpu.matmul %376, %377, %cst_129 {dimension_numbers = #tpu.dot_dimension_numbers<[1], [1], [0], [0], [0, 0, 1, 0], [], []>} : vector<8x4xbf16>, vector<8x4xbf16>, vector<8x8xf32> -> vector<8x8xf32>
    "tpu.trace_stop"() : () -> ()
    %cst_130 = arith.constant 0.353553385 : f32
    %379 = vector.broadcast %cst_130 : f32 to vector<8x8xf32>
    %380 = arith.mulf %378, %379 : vector<8x8xf32>
    %cst_131 = arith.constant -1.000000e+09 : f32
    %381 = vector.broadcast %cst_131 : f32 to vector<8x8xf32>
    %382 = arith.select %5, %381, %380 : vector<8x8xi1>, vector<8x8xf32>
    %cst_132 = arith.constant dense<0xFF800000> : vector<8xf32>
    %383 = vector.multi_reduction <maximumf>, %382, %cst_132 [1] : vector<8x8xf32> to vector<8xf32>
    %384 = vector.shape_cast %383 : vector<8xf32> to vector<8x1xf32>
    %385 = vector.broadcast %384 : vector<8x1xf32> to vector<8x8xf32>
    %386 = arith.subf %382, %385 : vector<8x8xf32>
    %387 = math.exp %386 : vector<8x8xf32>
    %cst_133 = arith.constant dense<0.000000e+00> : vector<8xf32>
    %388 = vector.multi_reduction <add>, %387, %cst_133 [1] : vector<8x8xf32> to vector<8xf32>
    %389 = vector.shape_cast %388 : vector<8xf32> to vector<8x1xf32>
    %390 = tpu.reciprocal %389 {approx = true} : vector<8x1xf32> -> vector<8x1xf32>
    %391 = vector.broadcast %390 : vector<8x1xf32> to vector<8x8xf32>
    %392 = arith.mulf %387, %391 : vector<8x8xf32>
    %393 = arith.truncf %392 : vector<8x8xf32> to vector<8x8xbf16>
    %394 = vector.extract_strided_slice %275 {offsets = [0, 20], sizes = [8, 4], strides = [1, 1]} : vector<8x32xbf16> to vector<8x4xbf16>
    %cst_134 = arith.constant dense<0.000000e+00> : vector<8x4xf32>
    %395 = tpu.matmul %393, %394, %cst_134 {dimension_numbers = #tpu.dot_dimension_numbers<[1], [0], [0], [1], [0, 0, 1, 1], [], []>} : vector<8x8xbf16>, vector<8x4xbf16>, vector<8x4xf32> -> vector<8x4xf32>
    %396 = vector.extract_strided_slice %271 {offsets = [0, 24], sizes = [8, 4], strides = [1, 1]} : vector<8x32xbf16> to vector<8x4xbf16>
    %397 = vector.extract_strided_slice %273 {offsets = [0, 24], sizes = [8, 4], strides = [1, 1]} : vector<8x32xbf16> to vector<8x4xbf16>
    "tpu.trace_start"() <{level = 10 : i32, message = "qd,kd->qk"}> : () -> ()
    %cst_135 = arith.constant dense<0.000000e+00> : vector<8x8xf32>
    %398 = tpu.matmul %396, %397, %cst_135 {dimension_numbers = #tpu.dot_dimension_numbers<[1], [1], [0], [0], [0, 0, 1, 0], [], []>} : vector<8x4xbf16>, vector<8x4xbf16>, vector<8x8xf32> -> vector<8x8xf32>
    "tpu.trace_stop"() : () -> ()
    %cst_136 = arith.constant 0.353553385 : f32
    %399 = vector.broadcast %cst_136 : f32 to vector<8x8xf32>
    %400 = arith.mulf %398, %399 : vector<8x8xf32>
    %cst_137 = arith.constant -1.000000e+09 : f32
    %401 = vector.broadcast %cst_137 : f32 to vector<8x8xf32>
    %402 = arith.select %5, %401, %400 : vector<8x8xi1>, vector<8x8xf32>
    %cst_138 = arith.constant dense<0xFF800000> : vector<8xf32>
    %403 = vector.multi_reduction <maximumf>, %402, %cst_138 [1] : vector<8x8xf32> to vector<8xf32>
    %404 = vector.shape_cast %403 : vector<8xf32> to vector<8x1xf32>
    %405 = vector.broadcast %404 : vector<8x1xf32> to vector<8x8xf32>
    %406 = arith.subf %402, %405 : vector<8x8xf32>
    %407 = math.exp %406 : vector<8x8xf32>
    %cst_139 = arith.constant dense<0.000000e+00> : vector<8xf32>
    %408 = vector.multi_reduction <add>, %407, %cst_139 [1] : vector<8x8xf32> to vector<8xf32>
    %409 = vector.shape_cast %408 : vector<8xf32> to vector<8x1xf32>
    %410 = tpu.reciprocal %409 {approx = true} : vector<8x1xf32> -> vector<8x1xf32>
    %411 = vector.broadcast %410 : vector<8x1xf32> to vector<8x8xf32>
    %412 = arith.mulf %407, %411 : vector<8x8xf32>
    %413 = arith.truncf %412 : vector<8x8xf32> to vector<8x8xbf16>
    %414 = vector.extract_strided_slice %275 {offsets = [0, 24], sizes = [8, 4], strides = [1, 1]} : vector<8x32xbf16> to vector<8x4xbf16>
    %cst_140 = arith.constant dense<0.000000e+00> : vector<8x4xf32>
    %415 = tpu.matmul %413, %414, %cst_140 {dimension_numbers = #tpu.dot_dimension_numbers<[1], [0], [0], [1], [0, 0, 1, 1], [], []>} : vector<8x8xbf16>, vector<8x4xbf16>, vector<8x4xf32> -> vector<8x4xf32>
    %416 = vector.extract_strided_slice %271 {offsets = [0, 28], sizes = [8, 4], strides = [1, 1]} : vector<8x32xbf16> to vector<8x4xbf16>
    %417 = vector.extract_strided_slice %273 {offsets = [0, 28], sizes = [8, 4], strides = [1, 1]} : vector<8x32xbf16> to vector<8x4xbf16>
    "tpu.trace_start"() <{level = 10 : i32, message = "qd,kd->qk"}> : () -> ()
    %cst_141 = arith.constant dense<0.000000e+00> : vector<8x8xf32>
    %418 = tpu.matmul %416, %417, %cst_141 {dimension_numbers = #tpu.dot_dimension_numbers<[1], [1], [0], [0], [0, 0, 1, 0], [], []>} : vector<8x4xbf16>, vector<8x4xbf16>, vector<8x8xf32> -> vector<8x8xf32>
    "tpu.trace_stop"() : () -> ()
    %cst_142 = arith.constant 0.353553385 : f32
    %419 = vector.broadcast %cst_142 : f32 to vector<8x8xf32>
    %420 = arith.mulf %418, %419 : vector<8x8xf32>
    %cst_143 = arith.constant -1.000000e+09 : f32
    %421 = vector.broadcast %cst_143 : f32 to vector<8x8xf32>
    %422 = arith.select %5, %421, %420 : vector<8x8xi1>, vector<8x8xf32>
    %cst_144 = arith.constant dense<0xFF800000> : vector<8xf32>
    %423 = vector.multi_reduction <maximumf>, %422, %cst_144 [1] : vector<8x8xf32> to vector<8xf32>
    %424 = vector.shape_cast %423 : vector<8xf32> to vector<8x1xf32>
    %425 = vector.broadcast %424 : vector<8x1xf32> to vector<8x8xf32>
    %426 = arith.subf %422, %425 : vector<8x8xf32>
    %427 = math.exp %426 : vector<8x8xf32>
    %cst_145 = arith.constant dense<0.000000e+00> : vector<8xf32>
    %428 = vector.multi_reduction <add>, %427, %cst_145 [1] : vector<8x8xf32> to vector<8xf32>
    %429 = vector.shape_cast %428 : vector<8xf32> to vector<8x1xf32>
    %430 = tpu.reciprocal %429 {approx = true} : vector<8x1xf32> -> vector<8x1xf32>
    %431 = vector.broadcast %430 : vector<8x1xf32> to vector<8x8xf32>
    %432 = arith.mulf %427, %431 : vector<8x8xf32>
    %433 = arith.truncf %432 : vector<8x8xf32> to vector<8x8xbf16>
    %434 = vector.extract_strided_slice %275 {offsets = [0, 28], sizes = [8, 4], strides = [1, 1]} : vector<8x32xbf16> to vector<8x4xbf16>
    %cst_146 = arith.constant dense<0.000000e+00> : vector<8x4xf32>
    %435 = tpu.matmul %433, %434, %cst_146 {dimension_numbers = #tpu.dot_dimension_numbers<[1], [0], [0], [1], [0, 0, 1, 1], [], []>} : vector<8x8xbf16>, vector<8x4xbf16>, vector<8x4xf32> -> vector<8x4xf32>
    %436 = tpu.concatenate %295, %315, %335, %355, %375, %395, %415, %435 in 1 : vector<8x4xf32>, vector<8x4xf32>, vector<8x4xf32>, vector<8x4xf32>, vector<8x4xf32>, vector<8x4xf32>, vector<8x4xf32>, vector<8x4xf32> -> vector<8x32xf32>
    %437 = arith.truncf %436 : vector<8x32xf32> to vector<8x32xbf16>
    %cst_147 = arith.constant dense<0.000000e+00> : vector<8x32xf32>
    %438 = tpu.matmul %437, %7, %cst_147 {dimension_numbers = #tpu.dot_dimension_numbers<[1], [0], [0], [1], [0, 0, 1, 1], [], []>} : vector<8x32xbf16>, vector<32x32xbf16>, vector<8x32xf32> -> vector<8x32xf32>
    %439 = arith.addf %438, %17 : vector<8x32xf32>
    %440 = arith.addf %439, %266 : vector<8x32xf32>
    %cst_148 = arith.constant dense<0.000000e+00> : vector<8xf32>
    %441 = vector.multi_reduction <add>, %440, %cst_148 [1] : vector<8x32xf32> to vector<8xf32>
    %442 = vector.shape_cast %441 : vector<8xf32> to vector<8x1xf32>
    %cst_149 = arith.constant 3.200000e+01 : f32
    %443 = vector.broadcast %cst_149 : f32 to vector<8x1xf32>
    %444 = arith.divf %442, %443 : vector<8x1xf32>
    %445 = vector.broadcast %444 : vector<8x1xf32> to vector<8x32xf32>
    %446 = arith.subf %440, %445 : vector<8x32xf32>
    %447 = arith.mulf %446, %446 : vector<8x32xf32>
    %cst_150 = arith.constant dense<0.000000e+00> : vector<8xf32>
    %448 = vector.multi_reduction <add>, %447, %cst_150 [1] : vector<8x32xf32> to vector<8xf32>
    %449 = vector.shape_cast %448 : vector<8xf32> to vector<8x1xf32>
    %cst_151 = arith.constant 3.200000e+01 : f32
    %450 = vector.broadcast %cst_151 : f32 to vector<8x1xf32>
    %451 = arith.divf %449, %450 : vector<8x1xf32>
    %452 = vector.broadcast %444 : vector<8x1xf32> to vector<8x32xf32>
    %453 = arith.subf %440, %452 : vector<8x32xf32>
    %cst_152 = arith.constant 9.99999974E-6 : f32
    %454 = vector.broadcast %cst_152 : f32 to vector<8x1xf32>
    %455 = arith.addf %451, %454 : vector<8x1xf32>
    %456 = math.rsqrt %455 : vector<8x1xf32>
    %457 = vector.broadcast %456 : vector<8x1xf32> to vector<8x32xf32>
    %458 = arith.mulf %453, %457 : vector<8x32xf32>
    %459 = arith.mulf %458, %20 : vector<8x32xf32>
    %460 = arith.addf %459, %23 : vector<8x32xf32>
    %461 = arith.truncf %460 : vector<8x32xf32> to vector<8x32xbf16>
    %cst_153 = arith.constant dense<0.000000e+00> : vector<8x32xf32>
    %462 = tpu.matmul %461, %8, %cst_153 {dimension_numbers = #tpu.dot_dimension_numbers<[1], [0], [0], [1], [0, 0, 1, 1], [], []>} : vector<8x32xbf16>, vector<32x32xbf16>, vector<8x32xf32> -> vector<8x32xf32>
    %463 = arith.addf %462, %26 : vector<8x32xf32>
    %cst_154 = arith.constant 0.000000e+00 : f32
    %464 = vector.broadcast %cst_154 : f32 to vector<8x32xf32>
    %465 = arith.cmpf oge, %463, %464 : vector<8x32xf32>
    %cst_155 = arith.constant 0.00999999977 : f32
    %466 = vector.broadcast %cst_155 : f32 to vector<8x32xf32>
    %467 = arith.mulf %466, %463 : vector<8x32xf32>
    %468 = arith.select %465, %463, %467 : vector<8x32xi1>, vector<8x32xf32>
    %469 = arith.truncf %468 : vector<8x32xf32> to vector<8x32xbf16>
    %cst_156 = arith.constant dense<0.000000e+00> : vector<8x32xf32>
    %470 = tpu.matmul %469, %9, %cst_156 {dimension_numbers = #tpu.dot_dimension_numbers<[1], [0], [0], [1], [0, 0, 1, 1], [], []>} : vector<8x32xbf16>, vector<32x32xbf16>, vector<8x32xf32> -> vector<8x32xf32>
    %471 = arith.addf %470, %29 : vector<8x32xf32>
    %472 = arith.addf %471, %460 : vector<8x32xf32>
    %cst_157 = arith.constant dense<0.000000e+00> : vector<8xf32>
    %473 = vector.multi_reduction <add>, %472, %cst_157 [1] : vector<8x32xf32> to vector<8xf32>
    %474 = vector.shape_cast %473 : vector<8xf32> to vector<8x1xf32>
    %cst_158 = arith.constant 3.200000e+01 : f32
    %475 = vector.broadcast %cst_158 : f32 to vector<8x1xf32>
    %476 = arith.divf %474, %475 : vector<8x1xf32>
    %477 = vector.broadcast %476 : vector<8x1xf32> to vector<8x32xf32>
    %478 = arith.subf %472, %477 : vector<8x32xf32>
    %479 = arith.mulf %478, %478 : vector<8x32xf32>
    %cst_159 = arith.constant dense<0.000000e+00> : vector<8xf32>
    %480 = vector.multi_reduction <add>, %479, %cst_159 [1] : vector<8x32xf32> to vector<8xf32>
    %481 = vector.shape_cast %480 : vector<8xf32> to vector<8x1xf32>
    %cst_160 = arith.constant 3.200000e+01 : f32
    %482 = vector.broadcast %cst_160 : f32 to vector<8x1xf32>
    %483 = arith.divf %481, %482 : vector<8x1xf32>
    %484 = vector.broadcast %476 : vector<8x1xf32> to vector<8x32xf32>
    %485 = arith.subf %472, %484 : vector<8x32xf32>
    %cst_161 = arith.constant 9.99999974E-6 : f32
    %486 = vector.broadcast %cst_161 : f32 to vector<8x1xf32>
    %487 = arith.addf %483, %486 : vector<8x1xf32>
    %488 = math.rsqrt %487 : vector<8x1xf32>
    %489 = vector.broadcast %488 : vector<8x1xf32> to vector<8x32xf32>
    %490 = arith.mulf %485, %489 : vector<8x32xf32>
    %491 = arith.mulf %490, %20 : vector<8x32xf32>
    %492 = arith.addf %491, %23 : vector<8x32xf32>
    %cst_162 = arith.constant 0.000000e+00 : f32
    %493 = vector.broadcast %cst_162 : f32 to vector<8x32xf32>
    %494 = arith.cmpf oge, %492, %493 : vector<8x32xf32>
    %cst_163 = arith.constant 0.00999999977 : f32
    %495 = vector.broadcast %cst_163 : f32 to vector<8x32xf32>
    %496 = arith.mulf %495, %492 : vector<8x32xf32>
    %497 = arith.select %494, %492, %496 : vector<8x32xi1>, vector<8x32xf32>
    %498 = arith.truncf %497 : vector<8x32xf32> to vector<8x32xbf16>
    %cst_164 = arith.constant dense<0.000000e+00> : vector<8x96xf32>
    %499 = tpu.matmul %498, %6, %cst_164 {dimension_numbers = #tpu.dot_dimension_numbers<[1], [0], [0], [1], [0, 0, 1, 1], [], []>} : vector<8x32xbf16>, vector<32x96xbf16>, vector<8x96xf32> -> vector<8x96xf32>
    %500 = arith.addf %499, %14 : vector<8x96xf32>
    %501 = vector.extract_strided_slice %500 {offsets = [0, 0], sizes = [8, 32], strides = [1, 1]} : vector<8x96xf32> to vector<8x32xf32>
    %502 = arith.truncf %501 : vector<8x32xf32> to vector<8x32xbf16>
    %503 = vector.extract_strided_slice %500 {offsets = [0, 32], sizes = [8, 32], strides = [1, 1]} : vector<8x96xf32> to vector<8x32xf32>
    %504 = arith.truncf %503 : vector<8x32xf32> to vector<8x32xbf16>
    %505 = vector.extract_strided_slice %500 {offsets = [0, 64], sizes = [8, 32], strides = [1, 1]} : vector<8x96xf32> to vector<8x32xf32>
    %506 = arith.truncf %505 : vector<8x32xf32> to vector<8x32xbf16>
    %507 = vector.extract_strided_slice %502 {offsets = [0, 0], sizes = [8, 4], strides = [1, 1]} : vector<8x32xbf16> to vector<8x4xbf16>
    %508 = vector.extract_strided_slice %504 {offsets = [0, 0], sizes = [8, 4], strides = [1, 1]} : vector<8x32xbf16> to vector<8x4xbf16>
    "tpu.trace_start"() <{level = 10 : i32, message = "qd,kd->qk"}> : () -> ()
    %cst_165 = arith.constant dense<0.000000e+00> : vector<8x8xf32>
    %509 = tpu.matmul %507, %508, %cst_165 {dimension_numbers = #tpu.dot_dimension_numbers<[1], [1], [0], [0], [0, 0, 1, 0], [], []>} : vector<8x4xbf16>, vector<8x4xbf16>, vector<8x8xf32> -> vector<8x8xf32>
    "tpu.trace_stop"() : () -> ()
    %cst_166 = arith.constant 0.353553385 : f32
    %510 = vector.broadcast %cst_166 : f32 to vector<8x8xf32>
    %511 = arith.mulf %509, %510 : vector<8x8xf32>
    %cst_167 = arith.constant -1.000000e+09 : f32
    %512 = vector.broadcast %cst_167 : f32 to vector<8x8xf32>
    %513 = arith.select %5, %512, %511 : vector<8x8xi1>, vector<8x8xf32>
    %cst_168 = arith.constant dense<0xFF800000> : vector<8xf32>
    %514 = vector.multi_reduction <maximumf>, %513, %cst_168 [1] : vector<8x8xf32> to vector<8xf32>
    %515 = vector.shape_cast %514 : vector<8xf32> to vector<8x1xf32>
    %516 = vector.broadcast %515 : vector<8x1xf32> to vector<8x8xf32>
    %517 = arith.subf %513, %516 : vector<8x8xf32>
    %518 = math.exp %517 : vector<8x8xf32>
    %cst_169 = arith.constant dense<0.000000e+00> : vector<8xf32>
    %519 = vector.multi_reduction <add>, %518, %cst_169 [1] : vector<8x8xf32> to vector<8xf32>
    %520 = vector.shape_cast %519 : vector<8xf32> to vector<8x1xf32>
    %521 = tpu.reciprocal %520 {approx = true} : vector<8x1xf32> -> vector<8x1xf32>
    %522 = vector.broadcast %521 : vector<8x1xf32> to vector<8x8xf32>
    %523 = arith.mulf %518, %522 : vector<8x8xf32>
    %524 = arith.truncf %523 : vector<8x8xf32> to vector<8x8xbf16>
    %525 = vector.extract_strided_slice %506 {offsets = [0, 0], sizes = [8, 4], strides = [1, 1]} : vector<8x32xbf16> to vector<8x4xbf16>
    %cst_170 = arith.constant dense<0.000000e+00> : vector<8x4xf32>
    %526 = tpu.matmul %524, %525, %cst_170 {dimension_numbers = #tpu.dot_dimension_numbers<[1], [0], [0], [1], [0, 0, 1, 1], [], []>} : vector<8x8xbf16>, vector<8x4xbf16>, vector<8x4xf32> -> vector<8x4xf32>
    %527 = vector.extract_strided_slice %502 {offsets = [0, 4], sizes = [8, 4], strides = [1, 1]} : vector<8x32xbf16> to vector<8x4xbf16>
    %528 = vector.extract_strided_slice %504 {offsets = [0, 4], sizes = [8, 4], strides = [1, 1]} : vector<8x32xbf16> to vector<8x4xbf16>
    "tpu.trace_start"() <{level = 10 : i32, message = "qd,kd->qk"}> : () -> ()
    %cst_171 = arith.constant dense<0.000000e+00> : vector<8x8xf32>
    %529 = tpu.matmul %527, %528, %cst_171 {dimension_numbers = #tpu.dot_dimension_numbers<[1], [1], [0], [0], [0, 0, 1, 0], [], []>} : vector<8x4xbf16>, vector<8x4xbf16>, vector<8x8xf32> -> vector<8x8xf32>
    "tpu.trace_stop"() : () -> ()
    %cst_172 = arith.constant 0.353553385 : f32
    %530 = vector.broadcast %cst_172 : f32 to vector<8x8xf32>
    %531 = arith.mulf %529, %530 : vector<8x8xf32>
    %cst_173 = arith.constant -1.000000e+09 : f32
    %532 = vector.broadcast %cst_173 : f32 to vector<8x8xf32>
    %533 = arith.select %5, %532, %531 : vector<8x8xi1>, vector<8x8xf32>
    %cst_174 = arith.constant dense<0xFF800000> : vector<8xf32>
    %534 = vector.multi_reduction <maximumf>, %533, %cst_174 [1] : vector<8x8xf32> to vector<8xf32>
    %535 = vector.shape_cast %534 : vector<8xf32> to vector<8x1xf32>
    %536 = vector.broadcast %535 : vector<8x1xf32> to vector<8x8xf32>
    %537 = arith.subf %533, %536 : vector<8x8xf32>
    %538 = math.exp %537 : vector<8x8xf32>
    %cst_175 = arith.constant dense<0.000000e+00> : vector<8xf32>
    %539 = vector.multi_reduction <add>, %538, %cst_175 [1] : vector<8x8xf32> to vector<8xf32>
    %540 = vector.shape_cast %539 : vector<8xf32> to vector<8x1xf32>
    %541 = tpu.reciprocal %540 {approx = true} : vector<8x1xf32> -> vector<8x1xf32>
    %542 = vector.broadcast %541 : vector<8x1xf32> to vector<8x8xf32>
    %543 = arith.mulf %538, %542 : vector<8x8xf32>
    %544 = arith.truncf %543 : vector<8x8xf32> to vector<8x8xbf16>
    %545 = vector.extract_strided_slice %506 {offsets = [0, 4], sizes = [8, 4], strides = [1, 1]} : vector<8x32xbf16> to vector<8x4xbf16>
    %cst_176 = arith.constant dense<0.000000e+00> : vector<8x4xf32>
    %546 = tpu.matmul %544, %545, %cst_176 {dimension_numbers = #tpu.dot_dimension_numbers<[1], [0], [0], [1], [0, 0, 1, 1], [], []>} : vector<8x8xbf16>, vector<8x4xbf16>, vector<8x4xf32> -> vector<8x4xf32>
    %547 = vector.extract_strided_slice %502 {offsets = [0, 8], sizes = [8, 4], strides = [1, 1]} : vector<8x32xbf16> to vector<8x4xbf16>
    %548 = vector.extract_strided_slice %504 {offsets = [0, 8], sizes = [8, 4], strides = [1, 1]} : vector<8x32xbf16> to vector<8x4xbf16>
    "tpu.trace_start"() <{level = 10 : i32, message = "qd,kd->qk"}> : () -> ()
    %cst_177 = arith.constant dense<0.000000e+00> : vector<8x8xf32>
    %549 = tpu.matmul %547, %548, %cst_177 {dimension_numbers = #tpu.dot_dimension_numbers<[1], [1], [0], [0], [0, 0, 1, 0], [], []>} : vector<8x4xbf16>, vector<8x4xbf16>, vector<8x8xf32> -> vector<8x8xf32>
    "tpu.trace_stop"() : () -> ()
    %cst_178 = arith.constant 0.353553385 : f32
    %550 = vector.broadcast %cst_178 : f32 to vector<8x8xf32>
    %551 = arith.mulf %549, %550 : vector<8x8xf32>
    %cst_179 = arith.constant -1.000000e+09 : f32
    %552 = vector.broadcast %cst_179 : f32 to vector<8x8xf32>
    %553 = arith.select %5, %552, %551 : vector<8x8xi1>, vector<8x8xf32>
    %cst_180 = arith.constant dense<0xFF800000> : vector<8xf32>
    %554 = vector.multi_reduction <maximumf>, %553, %cst_180 [1] : vector<8x8xf32> to vector<8xf32>
    %555 = vector.shape_cast %554 : vector<8xf32> to vector<8x1xf32>
    %556 = vector.broadcast %555 : vector<8x1xf32> to vector<8x8xf32>
    %557 = arith.subf %553, %556 : vector<8x8xf32>
    %558 = math.exp %557 : vector<8x8xf32>
    %cst_181 = arith.constant dense<0.000000e+00> : vector<8xf32>
    %559 = vector.multi_reduction <add>, %558, %cst_181 [1] : vector<8x8xf32> to vector<8xf32>
    %560 = vector.shape_cast %559 : vector<8xf32> to vector<8x1xf32>
    %561 = tpu.reciprocal %560 {approx = true} : vector<8x1xf32> -> vector<8x1xf32>
    %562 = vector.broadcast %561 : vector<8x1xf32> to vector<8x8xf32>
    %563 = arith.mulf %558, %562 : vector<8x8xf32>
    %564 = arith.truncf %563 : vector<8x8xf32> to vector<8x8xbf16>
    %565 = vector.extract_strided_slice %506 {offsets = [0, 8], sizes = [8, 4], strides = [1, 1]} : vector<8x32xbf16> to vector<8x4xbf16>
    %cst_182 = arith.constant dense<0.000000e+00> : vector<8x4xf32>
    %566 = tpu.matmul %564, %565, %cst_182 {dimension_numbers = #tpu.dot_dimension_numbers<[1], [0], [0], [1], [0, 0, 1, 1], [], []>} : vector<8x8xbf16>, vector<8x4xbf16>, vector<8x4xf32> -> vector<8x4xf32>
    %567 = vector.extract_strided_slice %502 {offsets = [0, 12], sizes = [8, 4], strides = [1, 1]} : vector<8x32xbf16> to vector<8x4xbf16>
    %568 = vector.extract_strided_slice %504 {offsets = [0, 12], sizes = [8, 4], strides = [1, 1]} : vector<8x32xbf16> to vector<8x4xbf16>
    "tpu.trace_start"() <{level = 10 : i32, message = "qd,kd->qk"}> : () -> ()
    %cst_183 = arith.constant dense<0.000000e+00> : vector<8x8xf32>
    %569 = tpu.matmul %567, %568, %cst_183 {dimension_numbers = #tpu.dot_dimension_numbers<[1], [1], [0], [0], [0, 0, 1, 0], [], []>} : vector<8x4xbf16>, vector<8x4xbf16>, vector<8x8xf32> -> vector<8x8xf32>
    "tpu.trace_stop"() : () -> ()
    %cst_184 = arith.constant 0.353553385 : f32
    %570 = vector.broadcast %cst_184 : f32 to vector<8x8xf32>
    %571 = arith.mulf %569, %570 : vector<8x8xf32>
    %cst_185 = arith.constant -1.000000e+09 : f32
    %572 = vector.broadcast %cst_185 : f32 to vector<8x8xf32>
    %573 = arith.select %5, %572, %571 : vector<8x8xi1>, vector<8x8xf32>
    %cst_186 = arith.constant dense<0xFF800000> : vector<8xf32>
    %574 = vector.multi_reduction <maximumf>, %573, %cst_186 [1] : vector<8x8xf32> to vector<8xf32>
    %575 = vector.shape_cast %574 : vector<8xf32> to vector<8x1xf32>
    %576 = vector.broadcast %575 : vector<8x1xf32> to vector<8x8xf32>
    %577 = arith.subf %573, %576 : vector<8x8xf32>
    %578 = math.exp %577 : vector<8x8xf32>
    %cst_187 = arith.constant dense<0.000000e+00> : vector<8xf32>
    %579 = vector.multi_reduction <add>, %578, %cst_187 [1] : vector<8x8xf32> to vector<8xf32>
    %580 = vector.shape_cast %579 : vector<8xf32> to vector<8x1xf32>
    %581 = tpu.reciprocal %580 {approx = true} : vector<8x1xf32> -> vector<8x1xf32>
    %582 = vector.broadcast %581 : vector<8x1xf32> to vector<8x8xf32>
    %583 = arith.mulf %578, %582 : vector<8x8xf32>
    %584 = arith.truncf %583 : vector<8x8xf32> to vector<8x8xbf16>
    %585 = vector.extract_strided_slice %506 {offsets = [0, 12], sizes = [8, 4], strides = [1, 1]} : vector<8x32xbf16> to vector<8x4xbf16>
    %cst_188 = arith.constant dense<0.000000e+00> : vector<8x4xf32>
    %586 = tpu.matmul %584, %585, %cst_188 {dimension_numbers = #tpu.dot_dimension_numbers<[1], [0], [0], [1], [0, 0, 1, 1], [], []>} : vector<8x8xbf16>, vector<8x4xbf16>, vector<8x4xf32> -> vector<8x4xf32>
    %587 = vector.extract_strided_slice %502 {offsets = [0, 16], sizes = [8, 4], strides = [1, 1]} : vector<8x32xbf16> to vector<8x4xbf16>
    %588 = vector.extract_strided_slice %504 {offsets = [0, 16], sizes = [8, 4], strides = [1, 1]} : vector<8x32xbf16> to vector<8x4xbf16>
    "tpu.trace_start"() <{level = 10 : i32, message = "qd,kd->qk"}> : () -> ()
    %cst_189 = arith.constant dense<0.000000e+00> : vector<8x8xf32>
    %589 = tpu.matmul %587, %588, %cst_189 {dimension_numbers = #tpu.dot_dimension_numbers<[1], [1], [0], [0], [0, 0, 1, 0], [], []>} : vector<8x4xbf16>, vector<8x4xbf16>, vector<8x8xf32> -> vector<8x8xf32>
    "tpu.trace_stop"() : () -> ()
    %cst_190 = arith.constant 0.353553385 : f32
    %590 = vector.broadcast %cst_190 : f32 to vector<8x8xf32>
    %591 = arith.mulf %589, %590 : vector<8x8xf32>
    %cst_191 = arith.constant -1.000000e+09 : f32
    %592 = vector.broadcast %cst_191 : f32 to vector<8x8xf32>
    %593 = arith.select %5, %592, %591 : vector<8x8xi1>, vector<8x8xf32>
    %cst_192 = arith.constant dense<0xFF800000> : vector<8xf32>
    %594 = vector.multi_reduction <maximumf>, %593, %cst_192 [1] : vector<8x8xf32> to vector<8xf32>
    %595 = vector.shape_cast %594 : vector<8xf32> to vector<8x1xf32>
    %596 = vector.broadcast %595 : vector<8x1xf32> to vector<8x8xf32>
    %597 = arith.subf %593, %596 : vector<8x8xf32>
    %598 = math.exp %597 : vector<8x8xf32>
    %cst_193 = arith.constant dense<0.000000e+00> : vector<8xf32>
    %599 = vector.multi_reduction <add>, %598, %cst_193 [1] : vector<8x8xf32> to vector<8xf32>
    %600 = vector.shape_cast %599 : vector<8xf32> to vector<8x1xf32>
    %601 = tpu.reciprocal %600 {approx = true} : vector<8x1xf32> -> vector<8x1xf32>
    %602 = vector.broadcast %601 : vector<8x1xf32> to vector<8x8xf32>
    %603 = arith.mulf %598, %602 : vector<8x8xf32>
    %604 = arith.truncf %603 : vector<8x8xf32> to vector<8x8xbf16>
    %605 = vector.extract_strided_slice %506 {offsets = [0, 16], sizes = [8, 4], strides = [1, 1]} : vector<8x32xbf16> to vector<8x4xbf16>
    %cst_194 = arith.constant dense<0.000000e+00> : vector<8x4xf32>
    %606 = tpu.matmul %604, %605, %cst_194 {dimension_numbers = #tpu.dot_dimension_numbers<[1], [0], [0], [1], [0, 0, 1, 1], [], []>} : vector<8x8xbf16>, vector<8x4xbf16>, vector<8x4xf32> -> vector<8x4xf32>
    %607 = vector.extract_strided_slice %502 {offsets = [0, 20], sizes = [8, 4], strides = [1, 1]} : vector<8x32xbf16> to vector<8x4xbf16>
    %608 = vector.extract_strided_slice %504 {offsets = [0, 20], sizes = [8, 4], strides = [1, 1]} : vector<8x32xbf16> to vector<8x4xbf16>
    "tpu.trace_start"() <{level = 10 : i32, message = "qd,kd->qk"}> : () -> ()
    %cst_195 = arith.constant dense<0.000000e+00> : vector<8x8xf32>
    %609 = tpu.matmul %607, %608, %cst_195 {dimension_numbers = #tpu.dot_dimension_numbers<[1], [1], [0], [0], [0, 0, 1, 0], [], []>} : vector<8x4xbf16>, vector<8x4xbf16>, vector<8x8xf32> -> vector<8x8xf32>
    "tpu.trace_stop"() : () -> ()
    %cst_196 = arith.constant 0.353553385 : f32
    %610 = vector.broadcast %cst_196 : f32 to vector<8x8xf32>
    %611 = arith.mulf %609, %610 : vector<8x8xf32>
    %cst_197 = arith.constant -1.000000e+09 : f32
    %612 = vector.broadcast %cst_197 : f32 to vector<8x8xf32>
    %613 = arith.select %5, %612, %611 : vector<8x8xi1>, vector<8x8xf32>
    %cst_198 = arith.constant dense<0xFF800000> : vector<8xf32>
    %614 = vector.multi_reduction <maximumf>, %613, %cst_198 [1] : vector<8x8xf32> to vector<8xf32>
    %615 = vector.shape_cast %614 : vector<8xf32> to vector<8x1xf32>
    %616 = vector.broadcast %615 : vector<8x1xf32> to vector<8x8xf32>
    %617 = arith.subf %613, %616 : vector<8x8xf32>
    %618 = math.exp %617 : vector<8x8xf32>
    %cst_199 = arith.constant dense<0.000000e+00> : vector<8xf32>
    %619 = vector.multi_reduction <add>, %618, %cst_199 [1] : vector<8x8xf32> to vector<8xf32>
    %620 = vector.shape_cast %619 : vector<8xf32> to vector<8x1xf32>
    %621 = tpu.reciprocal %620 {approx = true} : vector<8x1xf32> -> vector<8x1xf32>
    %622 = vector.broadcast %621 : vector<8x1xf32> to vector<8x8xf32>
    %623 = arith.mulf %618, %622 : vector<8x8xf32>
    %624 = arith.truncf %623 : vector<8x8xf32> to vector<8x8xbf16>
    %625 = vector.extract_strided_slice %506 {offsets = [0, 20], sizes = [8, 4], strides = [1, 1]} : vector<8x32xbf16> to vector<8x4xbf16>
    %cst_200 = arith.constant dense<0.000000e+00> : vector<8x4xf32>
    %626 = tpu.matmul %624, %625, %cst_200 {dimension_numbers = #tpu.dot_dimension_numbers<[1], [0], [0], [1], [0, 0, 1, 1], [], []>} : vector<8x8xbf16>, vector<8x4xbf16>, vector<8x4xf32> -> vector<8x4xf32>
    %627 = vector.extract_strided_slice %502 {offsets = [0, 24], sizes = [8, 4], strides = [1, 1]} : vector<8x32xbf16> to vector<8x4xbf16>
    %628 = vector.extract_strided_slice %504 {offsets = [0, 24], sizes = [8, 4], strides = [1, 1]} : vector<8x32xbf16> to vector<8x4xbf16>
    "tpu.trace_start"() <{level = 10 : i32, message = "qd,kd->qk"}> : () -> ()
    %cst_201 = arith.constant dense<0.000000e+00> : vector<8x8xf32>
    %629 = tpu.matmul %627, %628, %cst_201 {dimension_numbers = #tpu.dot_dimension_numbers<[1], [1], [0], [0], [0, 0, 1, 0], [], []>} : vector<8x4xbf16>, vector<8x4xbf16>, vector<8x8xf32> -> vector<8x8xf32>
    "tpu.trace_stop"() : () -> ()
    %cst_202 = arith.constant 0.353553385 : f32
    %630 = vector.broadcast %cst_202 : f32 to vector<8x8xf32>
    %631 = arith.mulf %629, %630 : vector<8x8xf32>
    %cst_203 = arith.constant -1.000000e+09 : f32
    %632 = vector.broadcast %cst_203 : f32 to vector<8x8xf32>
    %633 = arith.select %5, %632, %631 : vector<8x8xi1>, vector<8x8xf32>
    %cst_204 = arith.constant dense<0xFF800000> : vector<8xf32>
    %634 = vector.multi_reduction <maximumf>, %633, %cst_204 [1] : vector<8x8xf32> to vector<8xf32>
    %635 = vector.shape_cast %634 : vector<8xf32> to vector<8x1xf32>
    %636 = vector.broadcast %635 : vector<8x1xf32> to vector<8x8xf32>
    %637 = arith.subf %633, %636 : vector<8x8xf32>
    %638 = math.exp %637 : vector<8x8xf32>
    %cst_205 = arith.constant dense<0.000000e+00> : vector<8xf32>
    %639 = vector.multi_reduction <add>, %638, %cst_205 [1] : vector<8x8xf32> to vector<8xf32>
    %640 = vector.shape_cast %639 : vector<8xf32> to vector<8x1xf32>
    %641 = tpu.reciprocal %640 {approx = true} : vector<8x1xf32> -> vector<8x1xf32>
    %642 = vector.broadcast %641 : vector<8x1xf32> to vector<8x8xf32>
    %643 = arith.mulf %638, %642 : vector<8x8xf32>
    %644 = arith.truncf %643 : vector<8x8xf32> to vector<8x8xbf16>
    %645 = vector.extract_strided_slice %506 {offsets = [0, 24], sizes = [8, 4], strides = [1, 1]} : vector<8x32xbf16> to vector<8x4xbf16>
    %cst_206 = arith.constant dense<0.000000e+00> : vector<8x4xf32>
    %646 = tpu.matmul %644, %645, %cst_206 {dimension_numbers = #tpu.dot_dimension_numbers<[1], [0], [0], [1], [0, 0, 1, 1], [], []>} : vector<8x8xbf16>, vector<8x4xbf16>, vector<8x4xf32> -> vector<8x4xf32>
    %647 = vector.extract_strided_slice %502 {offsets = [0, 28], sizes = [8, 4], strides = [1, 1]} : vector<8x32xbf16> to vector<8x4xbf16>
    %648 = vector.extract_strided_slice %504 {offsets = [0, 28], sizes = [8, 4], strides = [1, 1]} : vector<8x32xbf16> to vector<8x4xbf16>
    "tpu.trace_start"() <{level = 10 : i32, message = "qd,kd->qk"}> : () -> ()
    %cst_207 = arith.constant dense<0.000000e+00> : vector<8x8xf32>
    %649 = tpu.matmul %647, %648, %cst_207 {dimension_numbers = #tpu.dot_dimension_numbers<[1], [1], [0], [0], [0, 0, 1, 0], [], []>} : vector<8x4xbf16>, vector<8x4xbf16>, vector<8x8xf32> -> vector<8x8xf32>
    "tpu.trace_stop"() : () -> ()
    %cst_208 = arith.constant 0.353553385 : f32
    %650 = vector.broadcast %cst_208 : f32 to vector<8x8xf32>
    %651 = arith.mulf %649, %650 : vector<8x8xf32>
    %cst_209 = arith.constant -1.000000e+09 : f32
    %652 = vector.broadcast %cst_209 : f32 to vector<8x8xf32>
    %653 = arith.select %5, %652, %651 : vector<8x8xi1>, vector<8x8xf32>
    %cst_210 = arith.constant dense<0xFF800000> : vector<8xf32>
    %654 = vector.multi_reduction <maximumf>, %653, %cst_210 [1] : vector<8x8xf32> to vector<8xf32>
    %655 = vector.shape_cast %654 : vector<8xf32> to vector<8x1xf32>
    %656 = vector.broadcast %655 : vector<8x1xf32> to vector<8x8xf32>
    %657 = arith.subf %653, %656 : vector<8x8xf32>
    %658 = math.exp %657 : vector<8x8xf32>
    %cst_211 = arith.constant dense<0.000000e+00> : vector<8xf32>
    %659 = vector.multi_reduction <add>, %658, %cst_211 [1] : vector<8x8xf32> to vector<8xf32>
    %660 = vector.shape_cast %659 : vector<8xf32> to vector<8x1xf32>
    %661 = tpu.reciprocal %660 {approx = true} : vector<8x1xf32> -> vector<8x1xf32>
    %662 = vector.broadcast %661 : vector<8x1xf32> to vector<8x8xf32>
    %663 = arith.mulf %658, %662 : vector<8x8xf32>
    %664 = arith.truncf %663 : vector<8x8xf32> to vector<8x8xbf16>
    %665 = vector.extract_strided_slice %506 {offsets = [0, 28], sizes = [8, 4], strides = [1, 1]} : vector<8x32xbf16> to vector<8x4xbf16>
    %cst_212 = arith.constant dense<0.000000e+00> : vector<8x4xf32>
    %666 = tpu.matmul %664, %665, %cst_212 {dimension_numbers = #tpu.dot_dimension_numbers<[1], [0], [0], [1], [0, 0, 1, 1], [], []>} : vector<8x8xbf16>, vector<8x4xbf16>, vector<8x4xf32> -> vector<8x4xf32>
    %667 = tpu.concatenate %526, %546, %566, %586, %606, %626, %646, %666 in 1 : vector<8x4xf32>, vector<8x4xf32>, vector<8x4xf32>, vector<8x4xf32>, vector<8x4xf32>, vector<8x4xf32>, vector<8x4xf32>, vector<8x4xf32> -> vector<8x32xf32>
    %668 = arith.truncf %667 : vector<8x32xf32> to vector<8x32xbf16>
    %cst_213 = arith.constant dense<0.000000e+00> : vector<8x32xf32>
    %669 = tpu.matmul %668, %7, %cst_213 {dimension_numbers = #tpu.dot_dimension_numbers<[1], [0], [0], [1], [0, 0, 1, 1], [], []>} : vector<8x32xbf16>, vector<32x32xbf16>, vector<8x32xf32> -> vector<8x32xf32>
    %670 = arith.addf %669, %17 : vector<8x32xf32>
    %671 = arith.addf %670, %497 : vector<8x32xf32>
    %cst_214 = arith.constant dense<0.000000e+00> : vector<8xf32>
    %672 = vector.multi_reduction <add>, %671, %cst_214 [1] : vector<8x32xf32> to vector<8xf32>
    %673 = vector.shape_cast %672 : vector<8xf32> to vector<8x1xf32>
    %cst_215 = arith.constant 3.200000e+01 : f32
    %674 = vector.broadcast %cst_215 : f32 to vector<8x1xf32>
    %675 = arith.divf %673, %674 : vector<8x1xf32>
    %676 = vector.broadcast %675 : vector<8x1xf32> to vector<8x32xf32>
    %677 = arith.subf %671, %676 : vector<8x32xf32>
    %678 = arith.mulf %677, %677 : vector<8x32xf32>
    %cst_216 = arith.constant dense<0.000000e+00> : vector<8xf32>
    %679 = vector.multi_reduction <add>, %678, %cst_216 [1] : vector<8x32xf32> to vector<8xf32>
    %680 = vector.shape_cast %679 : vector<8xf32> to vector<8x1xf32>
    %cst_217 = arith.constant 3.200000e+01 : f32
    %681 = vector.broadcast %cst_217 : f32 to vector<8x1xf32>
    %682 = arith.divf %680, %681 : vector<8x1xf32>
    %683 = vector.broadcast %675 : vector<8x1xf32> to vector<8x32xf32>
    %684 = arith.subf %671, %683 : vector<8x32xf32>
    %cst_218 = arith.constant 9.99999974E-6 : f32
    %685 = vector.broadcast %cst_218 : f32 to vector<8x1xf32>
    %686 = arith.addf %682, %685 : vector<8x1xf32>
    %687 = math.rsqrt %686 : vector<8x1xf32>
    %688 = vector.broadcast %687 : vector<8x1xf32> to vector<8x32xf32>
    %689 = arith.mulf %684, %688 : vector<8x32xf32>
    %690 = arith.mulf %689, %20 : vector<8x32xf32>
    %691 = arith.addf %690, %23 : vector<8x32xf32>
    %692 = arith.truncf %691 : vector<8x32xf32> to vector<8x32xbf16>
    %cst_219 = arith.constant dense<0.000000e+00> : vector<8x32xf32>
    %693 = tpu.matmul %692, %8, %cst_219 {dimension_numbers = #tpu.dot_dimension_numbers<[1], [0], [0], [1], [0, 0, 1, 1], [], []>} : vector<8x32xbf16>, vector<32x32xbf16>, vector<8x32xf32> -> vector<8x32xf32>
    %694 = arith.addf %693, %26 : vector<8x32xf32>
    %cst_220 = arith.constant 0.000000e+00 : f32
    %695 = vector.broadcast %cst_220 : f32 to vector<8x32xf32>
    %696 = arith.cmpf oge, %694, %695 : vector<8x32xf32>
    %cst_221 = arith.constant 0.00999999977 : f32
    %697 = vector.broadcast %cst_221 : f32 to vector<8x32xf32>
    %698 = arith.mulf %697, %694 : vector<8x32xf32>
    %699 = arith.select %696, %694, %698 : vector<8x32xi1>, vector<8x32xf32>
    %700 = arith.truncf %699 : vector<8x32xf32> to vector<8x32xbf16>
    %cst_222 = arith.constant dense<0.000000e+00> : vector<8x32xf32>
    %701 = tpu.matmul %700, %9, %cst_222 {dimension_numbers = #tpu.dot_dimension_numbers<[1], [0], [0], [1], [0, 0, 1, 1], [], []>} : vector<8x32xbf16>, vector<32x32xbf16>, vector<8x32xf32> -> vector<8x32xf32>
    %702 = arith.addf %701, %29 : vector<8x32xf32>
    %703 = arith.addf %702, %691 : vector<8x32xf32>
    %cst_223 = arith.constant dense<0.000000e+00> : vector<8xf32>
    %704 = vector.multi_reduction <add>, %703, %cst_223 [1] : vector<8x32xf32> to vector<8xf32>
    %705 = vector.shape_cast %704 : vector<8xf32> to vector<8x1xf32>
    %cst_224 = arith.constant 3.200000e+01 : f32
    %706 = vector.broadcast %cst_224 : f32 to vector<8x1xf32>
    %707 = arith.divf %705, %706 : vector<8x1xf32>
    %708 = vector.broadcast %707 : vector<8x1xf32> to vector<8x32xf32>
    %709 = arith.subf %703, %708 : vector<8x32xf32>
    %710 = arith.mulf %709, %709 : vector<8x32xf32>
    %cst_225 = arith.constant dense<0.000000e+00> : vector<8xf32>
    %711 = vector.multi_reduction <add>, %710, %cst_225 [1] : vector<8x32xf32> to vector<8xf32>
    %712 = vector.shape_cast %711 : vector<8xf32> to vector<8x1xf32>
    %cst_226 = arith.constant 3.200000e+01 : f32
    %713 = vector.broadcast %cst_226 : f32 to vector<8x1xf32>
    %714 = arith.divf %712, %713 : vector<8x1xf32>
    %715 = vector.broadcast %707 : vector<8x1xf32> to vector<8x32xf32>
    %716 = arith.subf %703, %715 : vector<8x32xf32>
    %cst_227 = arith.constant 9.99999974E-6 : f32
    %717 = vector.broadcast %cst_227 : f32 to vector<8x1xf32>
    %718 = arith.addf %714, %717 : vector<8x1xf32>
    %719 = math.rsqrt %718 : vector<8x1xf32>
    %720 = vector.broadcast %719 : vector<8x1xf32> to vector<8x32xf32>
    %721 = arith.mulf %716, %720 : vector<8x32xf32>
    %722 = arith.mulf %721, %20 : vector<8x32xf32>
    %723 = arith.addf %722, %23 : vector<8x32xf32>
    %cst_228 = arith.constant 0.000000e+00 : f32
    %724 = vector.broadcast %cst_228 : f32 to vector<8x32xf32>
    %725 = arith.cmpf oge, %723, %724 : vector<8x32xf32>
    %cst_229 = arith.constant 0.00999999977 : f32
    %726 = vector.broadcast %cst_229 : f32 to vector<8x32xf32>
    %727 = arith.mulf %726, %723 : vector<8x32xf32>
    %728 = arith.select %725, %723, %727 : vector<8x32xi1>, vector<8x32xf32>
    %729 = arith.truncf %728 : vector<8x32xf32> to vector<8x32xbf16>
    %cst_230 = arith.constant dense<0.000000e+00> : vector<8x96xf32>
    %730 = tpu.matmul %729, %6, %cst_230 {dimension_numbers = #tpu.dot_dimension_numbers<[1], [0], [0], [1], [0, 0, 1, 1], [], []>} : vector<8x32xbf16>, vector<32x96xbf16>, vector<8x96xf32> -> vector<8x96xf32>
    %731 = arith.addf %730, %14 : vector<8x96xf32>
    %732 = vector.extract_strided_slice %731 {offsets = [0, 0], sizes = [8, 32], strides = [1, 1]} : vector<8x96xf32> to vector<8x32xf32>
    %733 = arith.truncf %732 : vector<8x32xf32> to vector<8x32xbf16>
    %734 = vector.extract_strided_slice %731 {offsets = [0, 32], sizes = [8, 32], strides = [1, 1]} : vector<8x96xf32> to vector<8x32xf32>
    %735 = arith.truncf %734 : vector<8x32xf32> to vector<8x32xbf16>
    %736 = vector.extract_strided_slice %731 {offsets = [0, 64], sizes = [8, 32], strides = [1, 1]} : vector<8x96xf32> to vector<8x32xf32>
    %737 = arith.truncf %736 : vector<8x32xf32> to vector<8x32xbf16>
    %738 = vector.extract_strided_slice %733 {offsets = [0, 0], sizes = [8, 4], strides = [1, 1]} : vector<8x32xbf16> to vector<8x4xbf16>
    %739 = vector.extract_strided_slice %735 {offsets = [0, 0], sizes = [8, 4], strides = [1, 1]} : vector<8x32xbf16> to vector<8x4xbf16>
    "tpu.trace_start"() <{level = 10 : i32, message = "qd,kd->qk"}> : () -> ()
    %cst_231 = arith.constant dense<0.000000e+00> : vector<8x8xf32>
    %740 = tpu.matmul %738, %739, %cst_231 {dimension_numbers = #tpu.dot_dimension_numbers<[1], [1], [0], [0], [0, 0, 1, 0], [], []>} : vector<8x4xbf16>, vector<8x4xbf16>, vector<8x8xf32> -> vector<8x8xf32>
    "tpu.trace_stop"() : () -> ()
    %cst_232 = arith.constant 0.353553385 : f32
    %741 = vector.broadcast %cst_232 : f32 to vector<8x8xf32>
    %742 = arith.mulf %740, %741 : vector<8x8xf32>
    %cst_233 = arith.constant -1.000000e+09 : f32
    %743 = vector.broadcast %cst_233 : f32 to vector<8x8xf32>
    %744 = arith.select %5, %743, %742 : vector<8x8xi1>, vector<8x8xf32>
    %cst_234 = arith.constant dense<0xFF800000> : vector<8xf32>
    %745 = vector.multi_reduction <maximumf>, %744, %cst_234 [1] : vector<8x8xf32> to vector<8xf32>
    %746 = vector.shape_cast %745 : vector<8xf32> to vector<8x1xf32>
    %747 = vector.broadcast %746 : vector<8x1xf32> to vector<8x8xf32>
    %748 = arith.subf %744, %747 : vector<8x8xf32>
    %749 = math.exp %748 : vector<8x8xf32>
    %cst_235 = arith.constant dense<0.000000e+00> : vector<8xf32>
    %750 = vector.multi_reduction <add>, %749, %cst_235 [1] : vector<8x8xf32> to vector<8xf32>
    %751 = vector.shape_cast %750 : vector<8xf32> to vector<8x1xf32>
    %752 = tpu.reciprocal %751 {approx = true} : vector<8x1xf32> -> vector<8x1xf32>
    %753 = vector.broadcast %752 : vector<8x1xf32> to vector<8x8xf32>
    %754 = arith.mulf %749, %753 : vector<8x8xf32>
    %755 = arith.truncf %754 : vector<8x8xf32> to vector<8x8xbf16>
    %756 = vector.extract_strided_slice %737 {offsets = [0, 0], sizes = [8, 4], strides = [1, 1]} : vector<8x32xbf16> to vector<8x4xbf16>
    %cst_236 = arith.constant dense<0.000000e+00> : vector<8x4xf32>
    %757 = tpu.matmul %755, %756, %cst_236 {dimension_numbers = #tpu.dot_dimension_numbers<[1], [0], [0], [1], [0, 0, 1, 1], [], []>} : vector<8x8xbf16>, vector<8x4xbf16>, vector<8x4xf32> -> vector<8x4xf32>
    %758 = vector.extract_strided_slice %733 {offsets = [0, 4], sizes = [8, 4], strides = [1, 1]} : vector<8x32xbf16> to vector<8x4xbf16>
    %759 = vector.extract_strided_slice %735 {offsets = [0, 4], sizes = [8, 4], strides = [1, 1]} : vector<8x32xbf16> to vector<8x4xbf16>
    "tpu.trace_start"() <{level = 10 : i32, message = "qd,kd->qk"}> : () -> ()
    %cst_237 = arith.constant dense<0.000000e+00> : vector<8x8xf32>
    %760 = tpu.matmul %758, %759, %cst_237 {dimension_numbers = #tpu.dot_dimension_numbers<[1], [1], [0], [0], [0, 0, 1, 0], [], []>} : vector<8x4xbf16>, vector<8x4xbf16>, vector<8x8xf32> -> vector<8x8xf32>
    "tpu.trace_stop"() : () -> ()
    %cst_238 = arith.constant 0.353553385 : f32
    %761 = vector.broadcast %cst_238 : f32 to vector<8x8xf32>
    %762 = arith.mulf %760, %761 : vector<8x8xf32>
    %cst_239 = arith.constant -1.000000e+09 : f32
    %763 = vector.broadcast %cst_239 : f32 to vector<8x8xf32>
    %764 = arith.select %5, %763, %762 : vector<8x8xi1>, vector<8x8xf32>
    %cst_240 = arith.constant dense<0xFF800000> : vector<8xf32>
    %765 = vector.multi_reduction <maximumf>, %764, %cst_240 [1] : vector<8x8xf32> to vector<8xf32>
    %766 = vector.shape_cast %765 : vector<8xf32> to vector<8x1xf32>
    %767 = vector.broadcast %766 : vector<8x1xf32> to vector<8x8xf32>
    %768 = arith.subf %764, %767 : vector<8x8xf32>
    %769 = math.exp %768 : vector<8x8xf32>
    %cst_241 = arith.constant dense<0.000000e+00> : vector<8xf32>
    %770 = vector.multi_reduction <add>, %769, %cst_241 [1] : vector<8x8xf32> to vector<8xf32>
    %771 = vector.shape_cast %770 : vector<8xf32> to vector<8x1xf32>
    %772 = tpu.reciprocal %771 {approx = true} : vector<8x1xf32> -> vector<8x1xf32>
    %773 = vector.broadcast %772 : vector<8x1xf32> to vector<8x8xf32>
    %774 = arith.mulf %769, %773 : vector<8x8xf32>
    %775 = arith.truncf %774 : vector<8x8xf32> to vector<8x8xbf16>
    %776 = vector.extract_strided_slice %737 {offsets = [0, 4], sizes = [8, 4], strides = [1, 1]} : vector<8x32xbf16> to vector<8x4xbf16>
    %cst_242 = arith.constant dense<0.000000e+00> : vector<8x4xf32>
    %777 = tpu.matmul %775, %776, %cst_242 {dimension_numbers = #tpu.dot_dimension_numbers<[1], [0], [0], [1], [0, 0, 1, 1], [], []>} : vector<8x8xbf16>, vector<8x4xbf16>, vector<8x4xf32> -> vector<8x4xf32>
    %778 = vector.extract_strided_slice %733 {offsets = [0, 8], sizes = [8, 4], strides = [1, 1]} : vector<8x32xbf16> to vector<8x4xbf16>
    %779 = vector.extract_strided_slice %735 {offsets = [0, 8], sizes = [8, 4], strides = [1, 1]} : vector<8x32xbf16> to vector<8x4xbf16>
    "tpu.trace_start"() <{level = 10 : i32, message = "qd,kd->qk"}> : () -> ()
    %cst_243 = arith.constant dense<0.000000e+00> : vector<8x8xf32>
    %780 = tpu.matmul %778, %779, %cst_243 {dimension_numbers = #tpu.dot_dimension_numbers<[1], [1], [0], [0], [0, 0, 1, 0], [], []>} : vector<8x4xbf16>, vector<8x4xbf16>, vector<8x8xf32> -> vector<8x8xf32>
    "tpu.trace_stop"() : () -> ()
    %cst_244 = arith.constant 0.353553385 : f32
    %781 = vector.broadcast %cst_244 : f32 to vector<8x8xf32>
    %782 = arith.mulf %780, %781 : vector<8x8xf32>
    %cst_245 = arith.constant -1.000000e+09 : f32
    %783 = vector.broadcast %cst_245 : f32 to vector<8x8xf32>
    %784 = arith.select %5, %783, %782 : vector<8x8xi1>, vector<8x8xf32>
    %cst_246 = arith.constant dense<0xFF800000> : vector<8xf32>
    %785 = vector.multi_reduction <maximumf>, %784, %cst_246 [1] : vector<8x8xf32> to vector<8xf32>
    %786 = vector.shape_cast %785 : vector<8xf32> to vector<8x1xf32>
    %787 = vector.broadcast %786 : vector<8x1xf32> to vector<8x8xf32>
    %788 = arith.subf %784, %787 : vector<8x8xf32>
    %789 = math.exp %788 : vector<8x8xf32>
    %cst_247 = arith.constant dense<0.000000e+00> : vector<8xf32>
    %790 = vector.multi_reduction <add>, %789, %cst_247 [1] : vector<8x8xf32> to vector<8xf32>
    %791 = vector.shape_cast %790 : vector<8xf32> to vector<8x1xf32>
    %792 = tpu.reciprocal %791 {approx = true} : vector<8x1xf32> -> vector<8x1xf32>
    %793 = vector.broadcast %792 : vector<8x1xf32> to vector<8x8xf32>
    %794 = arith.mulf %789, %793 : vector<8x8xf32>
    %795 = arith.truncf %794 : vector<8x8xf32> to vector<8x8xbf16>
    %796 = vector.extract_strided_slice %737 {offsets = [0, 8], sizes = [8, 4], strides = [1, 1]} : vector<8x32xbf16> to vector<8x4xbf16>
    %cst_248 = arith.constant dense<0.000000e+00> : vector<8x4xf32>
    %797 = tpu.matmul %795, %796, %cst_248 {dimension_numbers = #tpu.dot_dimension_numbers<[1], [0], [0], [1], [0, 0, 1, 1], [], []>} : vector<8x8xbf16>, vector<8x4xbf16>, vector<8x4xf32> -> vector<8x4xf32>
    %798 = vector.extract_strided_slice %733 {offsets = [0, 12], sizes = [8, 4], strides = [1, 1]} : vector<8x32xbf16> to vector<8x4xbf16>
    %799 = vector.extract_strided_slice %735 {offsets = [0, 12], sizes = [8, 4], strides = [1, 1]} : vector<8x32xbf16> to vector<8x4xbf16>
    "tpu.trace_start"() <{level = 10 : i32, message = "qd,kd->qk"}> : () -> ()
    %cst_249 = arith.constant dense<0.000000e+00> : vector<8x8xf32>
    %800 = tpu.matmul %798, %799, %cst_249 {dimension_numbers = #tpu.dot_dimension_numbers<[1], [1], [0], [0], [0, 0, 1, 0], [], []>} : vector<8x4xbf16>, vector<8x4xbf16>, vector<8x8xf32> -> vector<8x8xf32>
    "tpu.trace_stop"() : () -> ()
    %cst_250 = arith.constant 0.353553385 : f32
    %801 = vector.broadcast %cst_250 : f32 to vector<8x8xf32>
    %802 = arith.mulf %800, %801 : vector<8x8xf32>
    %cst_251 = arith.constant -1.000000e+09 : f32
    %803 = vector.broadcast %cst_251 : f32 to vector<8x8xf32>
    %804 = arith.select %5, %803, %802 : vector<8x8xi1>, vector<8x8xf32>
    %cst_252 = arith.constant dense<0xFF800000> : vector<8xf32>
    %805 = vector.multi_reduction <maximumf>, %804, %cst_252 [1] : vector<8x8xf32> to vector<8xf32>
    %806 = vector.shape_cast %805 : vector<8xf32> to vector<8x1xf32>
    %807 = vector.broadcast %806 : vector<8x1xf32> to vector<8x8xf32>
    %808 = arith.subf %804, %807 : vector<8x8xf32>
    %809 = math.exp %808 : vector<8x8xf32>
    %cst_253 = arith.constant dense<0.000000e+00> : vector<8xf32>
    %810 = vector.multi_reduction <add>, %809, %cst_253 [1] : vector<8x8xf32> to vector<8xf32>
    %811 = vector.shape_cast %810 : vector<8xf32> to vector<8x1xf32>
    %812 = tpu.reciprocal %811 {approx = true} : vector<8x1xf32> -> vector<8x1xf32>
    %813 = vector.broadcast %812 : vector<8x1xf32> to vector<8x8xf32>
    %814 = arith.mulf %809, %813 : vector<8x8xf32>
    %815 = arith.truncf %814 : vector<8x8xf32> to vector<8x8xbf16>
    %816 = vector.extract_strided_slice %737 {offsets = [0, 12], sizes = [8, 4], strides = [1, 1]} : vector<8x32xbf16> to vector<8x4xbf16>
    %cst_254 = arith.constant dense<0.000000e+00> : vector<8x4xf32>
    %817 = tpu.matmul %815, %816, %cst_254 {dimension_numbers = #tpu.dot_dimension_numbers<[1], [0], [0], [1], [0, 0, 1, 1], [], []>} : vector<8x8xbf16>, vector<8x4xbf16>, vector<8x4xf32> -> vector<8x4xf32>
    %818 = vector.extract_strided_slice %733 {offsets = [0, 16], sizes = [8, 4], strides = [1, 1]} : vector<8x32xbf16> to vector<8x4xbf16>
    %819 = vector.extract_strided_slice %735 {offsets = [0, 16], sizes = [8, 4], strides = [1, 1]} : vector<8x32xbf16> to vector<8x4xbf16>
    "tpu.trace_start"() <{level = 10 : i32, message = "qd,kd->qk"}> : () -> ()
    %cst_255 = arith.constant dense<0.000000e+00> : vector<8x8xf32>
    %820 = tpu.matmul %818, %819, %cst_255 {dimension_numbers = #tpu.dot_dimension_numbers<[1], [1], [0], [0], [0, 0, 1, 0], [], []>} : vector<8x4xbf16>, vector<8x4xbf16>, vector<8x8xf32> -> vector<8x8xf32>
    "tpu.trace_stop"() : () -> ()
    %cst_256 = arith.constant 0.353553385 : f32
    %821 = vector.broadcast %cst_256 : f32 to vector<8x8xf32>
    %822 = arith.mulf %820, %821 : vector<8x8xf32>
    %cst_257 = arith.constant -1.000000e+09 : f32
    %823 = vector.broadcast %cst_257 : f32 to vector<8x8xf32>
    %824 = arith.select %5, %823, %822 : vector<8x8xi1>, vector<8x8xf32>
    %cst_258 = arith.constant dense<0xFF800000> : vector<8xf32>
    %825 = vector.multi_reduction <maximumf>, %824, %cst_258 [1] : vector<8x8xf32> to vector<8xf32>
    %826 = vector.shape_cast %825 : vector<8xf32> to vector<8x1xf32>
    %827 = vector.broadcast %826 : vector<8x1xf32> to vector<8x8xf32>
    %828 = arith.subf %824, %827 : vector<8x8xf32>
    %829 = math.exp %828 : vector<8x8xf32>
    %cst_259 = arith.constant dense<0.000000e+00> : vector<8xf32>
    %830 = vector.multi_reduction <add>, %829, %cst_259 [1] : vector<8x8xf32> to vector<8xf32>
    %831 = vector.shape_cast %830 : vector<8xf32> to vector<8x1xf32>
    %832 = tpu.reciprocal %831 {approx = true} : vector<8x1xf32> -> vector<8x1xf32>
    %833 = vector.broadcast %832 : vector<8x1xf32> to vector<8x8xf32>
    %834 = arith.mulf %829, %833 : vector<8x8xf32>
    %835 = arith.truncf %834 : vector<8x8xf32> to vector<8x8xbf16>
    %836 = vector.extract_strided_slice %737 {offsets = [0, 16], sizes = [8, 4], strides = [1, 1]} : vector<8x32xbf16> to vector<8x4xbf16>
    %cst_260 = arith.constant dense<0.000000e+00> : vector<8x4xf32>
    %837 = tpu.matmul %835, %836, %cst_260 {dimension_numbers = #tpu.dot_dimension_numbers<[1], [0], [0], [1], [0, 0, 1, 1], [], []>} : vector<8x8xbf16>, vector<8x4xbf16>, vector<8x4xf32> -> vector<8x4xf32>
    %838 = vector.extract_strided_slice %733 {offsets = [0, 20], sizes = [8, 4], strides = [1, 1]} : vector<8x32xbf16> to vector<8x4xbf16>
    %839 = vector.extract_strided_slice %735 {offsets = [0, 20], sizes = [8, 4], strides = [1, 1]} : vector<8x32xbf16> to vector<8x4xbf16>
    "tpu.trace_start"() <{level = 10 : i32, message = "qd,kd->qk"}> : () -> ()
    %cst_261 = arith.constant dense<0.000000e+00> : vector<8x8xf32>
    %840 = tpu.matmul %838, %839, %cst_261 {dimension_numbers = #tpu.dot_dimension_numbers<[1], [1], [0], [0], [0, 0, 1, 0], [], []>} : vector<8x4xbf16>, vector<8x4xbf16>, vector<8x8xf32> -> vector<8x8xf32>
    "tpu.trace_stop"() : () -> ()
    %cst_262 = arith.constant 0.353553385 : f32
    %841 = vector.broadcast %cst_262 : f32 to vector<8x8xf32>
    %842 = arith.mulf %840, %841 : vector<8x8xf32>
    %cst_263 = arith.constant -1.000000e+09 : f32
    %843 = vector.broadcast %cst_263 : f32 to vector<8x8xf32>
    %844 = arith.select %5, %843, %842 : vector<8x8xi1>, vector<8x8xf32>
    %cst_264 = arith.constant dense<0xFF800000> : vector<8xf32>
    %845 = vector.multi_reduction <maximumf>, %844, %cst_264 [1] : vector<8x8xf32> to vector<8xf32>
    %846 = vector.shape_cast %845 : vector<8xf32> to vector<8x1xf32>
    %847 = vector.broadcast %846 : vector<8x1xf32> to vector<8x8xf32>
    %848 = arith.subf %844, %847 : vector<8x8xf32>
    %849 = math.exp %848 : vector<8x8xf32>
    %cst_265 = arith.constant dense<0.000000e+00> : vector<8xf32>
    %850 = vector.multi_reduction <add>, %849, %cst_265 [1] : vector<8x8xf32> to vector<8xf32>
    %851 = vector.shape_cast %850 : vector<8xf32> to vector<8x1xf32>
    %852 = tpu.reciprocal %851 {approx = true} : vector<8x1xf32> -> vector<8x1xf32>
    %853 = vector.broadcast %852 : vector<8x1xf32> to vector<8x8xf32>
    %854 = arith.mulf %849, %853 : vector<8x8xf32>
    %855 = arith.truncf %854 : vector<8x8xf32> to vector<8x8xbf16>
    %856 = vector.extract_strided_slice %737 {offsets = [0, 20], sizes = [8, 4], strides = [1, 1]} : vector<8x32xbf16> to vector<8x4xbf16>
    %cst_266 = arith.constant dense<0.000000e+00> : vector<8x4xf32>
    %857 = tpu.matmul %855, %856, %cst_266 {dimension_numbers = #tpu.dot_dimension_numbers<[1], [0], [0], [1], [0, 0, 1, 1], [], []>} : vector<8x8xbf16>, vector<8x4xbf16>, vector<8x4xf32> -> vector<8x4xf32>
    %858 = vector.extract_strided_slice %733 {offsets = [0, 24], sizes = [8, 4], strides = [1, 1]} : vector<8x32xbf16> to vector<8x4xbf16>
    %859 = vector.extract_strided_slice %735 {offsets = [0, 24], sizes = [8, 4], strides = [1, 1]} : vector<8x32xbf16> to vector<8x4xbf16>
    "tpu.trace_start"() <{level = 10 : i32, message = "qd,kd->qk"}> : () -> ()
    %cst_267 = arith.constant dense<0.000000e+00> : vector<8x8xf32>
    %860 = tpu.matmul %858, %859, %cst_267 {dimension_numbers = #tpu.dot_dimension_numbers<[1], [1], [0], [0], [0, 0, 1, 0], [], []>} : vector<8x4xbf16>, vector<8x4xbf16>, vector<8x8xf32> -> vector<8x8xf32>
    "tpu.trace_stop"() : () -> ()
    %cst_268 = arith.constant 0.353553385 : f32
    %861 = vector.broadcast %cst_268 : f32 to vector<8x8xf32>
    %862 = arith.mulf %860, %861 : vector<8x8xf32>
    %cst_269 = arith.constant -1.000000e+09 : f32
    %863 = vector.broadcast %cst_269 : f32 to vector<8x8xf32>
    %864 = arith.select %5, %863, %862 : vector<8x8xi1>, vector<8x8xf32>
    %cst_270 = arith.constant dense<0xFF800000> : vector<8xf32>
    %865 = vector.multi_reduction <maximumf>, %864, %cst_270 [1] : vector<8x8xf32> to vector<8xf32>
    %866 = vector.shape_cast %865 : vector<8xf32> to vector<8x1xf32>
    %867 = vector.broadcast %866 : vector<8x1xf32> to vector<8x8xf32>
    %868 = arith.subf %864, %867 : vector<8x8xf32>
    %869 = math.exp %868 : vector<8x8xf32>
    %cst_271 = arith.constant dense<0.000000e+00> : vector<8xf32>
    %870 = vector.multi_reduction <add>, %869, %cst_271 [1] : vector<8x8xf32> to vector<8xf32>
    %871 = vector.shape_cast %870 : vector<8xf32> to vector<8x1xf32>
    %872 = tpu.reciprocal %871 {approx = true} : vector<8x1xf32> -> vector<8x1xf32>
    %873 = vector.broadcast %872 : vector<8x1xf32> to vector<8x8xf32>
    %874 = arith.mulf %869, %873 : vector<8x8xf32>
    %875 = arith.truncf %874 : vector<8x8xf32> to vector<8x8xbf16>
    %876 = vector.extract_strided_slice %737 {offsets = [0, 24], sizes = [8, 4], strides = [1, 1]} : vector<8x32xbf16> to vector<8x4xbf16>
    %cst_272 = arith.constant dense<0.000000e+00> : vector<8x4xf32>
    %877 = tpu.matmul %875, %876, %cst_272 {dimension_numbers = #tpu.dot_dimension_numbers<[1], [0], [0], [1], [0, 0, 1, 1], [], []>} : vector<8x8xbf16>, vector<8x4xbf16>, vector<8x4xf32> -> vector<8x4xf32>
    %878 = vector.extract_strided_slice %733 {offsets = [0, 28], sizes = [8, 4], strides = [1, 1]} : vector<8x32xbf16> to vector<8x4xbf16>
    %879 = vector.extract_strided_slice %735 {offsets = [0, 28], sizes = [8, 4], strides = [1, 1]} : vector<8x32xbf16> to vector<8x4xbf16>
    "tpu.trace_start"() <{level = 10 : i32, message = "qd,kd->qk"}> : () -> ()
    %cst_273 = arith.constant dense<0.000000e+00> : vector<8x8xf32>
    %880 = tpu.matmul %878, %879, %cst_273 {dimension_numbers = #tpu.dot_dimension_numbers<[1], [1], [0], [0], [0, 0, 1, 0], [], []>} : vector<8x4xbf16>, vector<8x4xbf16>, vector<8x8xf32> -> vector<8x8xf32>
    "tpu.trace_stop"() : () -> ()
    %cst_274 = arith.constant 0.353553385 : f32
    %881 = vector.broadcast %cst_274 : f32 to vector<8x8xf32>
    %882 = arith.mulf %880, %881 : vector<8x8xf32>
    %cst_275 = arith.constant -1.000000e+09 : f32
    %883 = vector.broadcast %cst_275 : f32 to vector<8x8xf32>
    %884 = arith.select %5, %883, %882 : vector<8x8xi1>, vector<8x8xf32>
    %cst_276 = arith.constant dense<0xFF800000> : vector<8xf32>
    %885 = vector.multi_reduction <maximumf>, %884, %cst_276 [1] : vector<8x8xf32> to vector<8xf32>
    %886 = vector.shape_cast %885 : vector<8xf32> to vector<8x1xf32>
    %887 = vector.broadcast %886 : vector<8x1xf32> to vector<8x8xf32>
    %888 = arith.subf %884, %887 : vector<8x8xf32>
    %889 = math.exp %888 : vector<8x8xf32>
    %cst_277 = arith.constant dense<0.000000e+00> : vector<8xf32>
    %890 = vector.multi_reduction <add>, %889, %cst_277 [1] : vector<8x8xf32> to vector<8xf32>
    %891 = vector.shape_cast %890 : vector<8xf32> to vector<8x1xf32>
    %892 = tpu.reciprocal %891 {approx = true} : vector<8x1xf32> -> vector<8x1xf32>
    %893 = vector.broadcast %892 : vector<8x1xf32> to vector<8x8xf32>
    %894 = arith.mulf %889, %893 : vector<8x8xf32>
    %895 = arith.truncf %894 : vector<8x8xf32> to vector<8x8xbf16>
    %896 = vector.extract_strided_slice %737 {offsets = [0, 28], sizes = [8, 4], strides = [1, 1]} : vector<8x32xbf16> to vector<8x4xbf16>
    %cst_278 = arith.constant dense<0.000000e+00> : vector<8x4xf32>
    %897 = tpu.matmul %895, %896, %cst_278 {dimension_numbers = #tpu.dot_dimension_numbers<[1], [0], [0], [1], [0, 0, 1, 1], [], []>} : vector<8x8xbf16>, vector<8x4xbf16>, vector<8x4xf32> -> vector<8x4xf32>
    %898 = tpu.concatenate %757, %777, %797, %817, %837, %857, %877, %897 in 1 : vector<8x4xf32>, vector<8x4xf32>, vector<8x4xf32>, vector<8x4xf32>, vector<8x4xf32>, vector<8x4xf32>, vector<8x4xf32>, vector<8x4xf32> -> vector<8x32xf32>
    %899 = arith.truncf %898 : vector<8x32xf32> to vector<8x32xbf16>
    %cst_279 = arith.constant dense<0.000000e+00> : vector<8x32xf32>
    %900 = tpu.matmul %899, %7, %cst_279 {dimension_numbers = #tpu.dot_dimension_numbers<[1], [0], [0], [1], [0, 0, 1, 1], [], []>} : vector<8x32xbf16>, vector<32x32xbf16>, vector<8x32xf32> -> vector<8x32xf32>
    %901 = arith.addf %900, %17 : vector<8x32xf32>
    %902 = arith.addf %901, %728 : vector<8x32xf32>
    %cst_280 = arith.constant dense<0.000000e+00> : vector<8xf32>
    %903 = vector.multi_reduction <add>, %902, %cst_280 [1] : vector<8x32xf32> to vector<8xf32>
    %904 = vector.shape_cast %903 : vector<8xf32> to vector<8x1xf32>
    %cst_281 = arith.constant 3.200000e+01 : f32
    %905 = vector.broadcast %cst_281 : f32 to vector<8x1xf32>
    %906 = arith.divf %904, %905 : vector<8x1xf32>
    %907 = vector.broadcast %906 : vector<8x1xf32> to vector<8x32xf32>
    %908 = arith.subf %902, %907 : vector<8x32xf32>
    %909 = arith.mulf %908, %908 : vector<8x32xf32>
    %cst_282 = arith.constant dense<0.000000e+00> : vector<8xf32>
    %910 = vector.multi_reduction <add>, %909, %cst_282 [1] : vector<8x32xf32> to vector<8xf32>
    %911 = vector.shape_cast %910 : vector<8xf32> to vector<8x1xf32>
    %cst_283 = arith.constant 3.200000e+01 : f32
    %912 = vector.broadcast %cst_283 : f32 to vector<8x1xf32>
    %913 = arith.divf %911, %912 : vector<8x1xf32>
    %914 = vector.broadcast %906 : vector<8x1xf32> to vector<8x32xf32>
    %915 = arith.subf %902, %914 : vector<8x32xf32>
    %cst_284 = arith.constant 9.99999974E-6 : f32
    %916 = vector.broadcast %cst_284 : f32 to vector<8x1xf32>
    %917 = arith.addf %913, %916 : vector<8x1xf32>
    %918 = math.rsqrt %917 : vector<8x1xf32>
    %919 = vector.broadcast %918 : vector<8x1xf32> to vector<8x32xf32>
    %920 = arith.mulf %915, %919 : vector<8x32xf32>
    %921 = arith.mulf %920, %20 : vector<8x32xf32>
    %922 = arith.addf %921, %23 : vector<8x32xf32>
    %923 = arith.truncf %922 : vector<8x32xf32> to vector<8x32xbf16>
    %cst_285 = arith.constant dense<0.000000e+00> : vector<8x32xf32>
    %924 = tpu.matmul %923, %8, %cst_285 {dimension_numbers = #tpu.dot_dimension_numbers<[1], [0], [0], [1], [0, 0, 1, 1], [], []>} : vector<8x32xbf16>, vector<32x32xbf16>, vector<8x32xf32> -> vector<8x32xf32>
    %925 = arith.addf %924, %26 : vector<8x32xf32>
    %cst_286 = arith.constant 0.000000e+00 : f32
    %926 = vector.broadcast %cst_286 : f32 to vector<8x32xf32>
    %927 = arith.cmpf oge, %925, %926 : vector<8x32xf32>
    %cst_287 = arith.constant 0.00999999977 : f32
    %928 = vector.broadcast %cst_287 : f32 to vector<8x32xf32>
    %929 = arith.mulf %928, %925 : vector<8x32xf32>
    %930 = arith.select %927, %925, %929 : vector<8x32xi1>, vector<8x32xf32>
    %931 = arith.truncf %930 : vector<8x32xf32> to vector<8x32xbf16>
    %cst_288 = arith.constant dense<0.000000e+00> : vector<8x32xf32>
    %932 = tpu.matmul %931, %9, %cst_288 {dimension_numbers = #tpu.dot_dimension_numbers<[1], [0], [0], [1], [0, 0, 1, 1], [], []>} : vector<8x32xbf16>, vector<32x32xbf16>, vector<8x32xf32> -> vector<8x32xf32>
    %933 = arith.addf %932, %29 : vector<8x32xf32>
    %934 = arith.addf %933, %922 : vector<8x32xf32>
    %cst_289 = arith.constant dense<0.000000e+00> : vector<8xf32>
    %935 = vector.multi_reduction <add>, %934, %cst_289 [1] : vector<8x32xf32> to vector<8xf32>
    %936 = vector.shape_cast %935 : vector<8xf32> to vector<8x1xf32>
    %cst_290 = arith.constant 3.200000e+01 : f32
    %937 = vector.broadcast %cst_290 : f32 to vector<8x1xf32>
    %938 = arith.divf %936, %937 : vector<8x1xf32>
    %939 = vector.broadcast %938 : vector<8x1xf32> to vector<8x32xf32>
    %940 = arith.subf %934, %939 : vector<8x32xf32>
    %941 = arith.mulf %940, %940 : vector<8x32xf32>
    %cst_291 = arith.constant dense<0.000000e+00> : vector<8xf32>
    %942 = vector.multi_reduction <add>, %941, %cst_291 [1] : vector<8x32xf32> to vector<8xf32>
    %943 = vector.shape_cast %942 : vector<8xf32> to vector<8x1xf32>
    %cst_292 = arith.constant 3.200000e+01 : f32
    %944 = vector.broadcast %cst_292 : f32 to vector<8x1xf32>
    %945 = arith.divf %943, %944 : vector<8x1xf32>
    %946 = vector.broadcast %938 : vector<8x1xf32> to vector<8x32xf32>
    %947 = arith.subf %934, %946 : vector<8x32xf32>
    %cst_293 = arith.constant 9.99999974E-6 : f32
    %948 = vector.broadcast %cst_293 : f32 to vector<8x1xf32>
    %949 = arith.addf %945, %948 : vector<8x1xf32>
    %950 = math.rsqrt %949 : vector<8x1xf32>
    %951 = vector.broadcast %950 : vector<8x1xf32> to vector<8x32xf32>
    %952 = arith.mulf %947, %951 : vector<8x32xf32>
    %953 = arith.mulf %952, %20 : vector<8x32xf32>
    %954 = arith.addf %953, %23 : vector<8x32xf32>
    %cst_294 = arith.constant 0.000000e+00 : f32
    %955 = vector.broadcast %cst_294 : f32 to vector<8x32xf32>
    %956 = arith.cmpf oge, %954, %955 : vector<8x32xf32>
    %cst_295 = arith.constant 0.00999999977 : f32
    %957 = vector.broadcast %cst_295 : f32 to vector<8x32xf32>
    %958 = arith.mulf %957, %954 : vector<8x32xf32>
    %959 = arith.select %956, %954, %958 : vector<8x32xi1>, vector<8x32xf32>
    %960 = arith.truncf %959 : vector<8x32xf32> to vector<8x32xbf16>
    %cst_296 = arith.constant dense<0.000000e+00> : vector<8x96xf32>
    %961 = tpu.matmul %960, %6, %cst_296 {dimension_numbers = #tpu.dot_dimension_numbers<[1], [0], [0], [1], [0, 0, 1, 1], [], []>} : vector<8x32xbf16>, vector<32x96xbf16>, vector<8x96xf32> -> vector<8x96xf32>
    %962 = arith.addf %961, %14 : vector<8x96xf32>
    %963 = vector.extract_strided_slice %962 {offsets = [0, 0], sizes = [8, 32], strides = [1, 1]} : vector<8x96xf32> to vector<8x32xf32>
    %964 = arith.truncf %963 : vector<8x32xf32> to vector<8x32xbf16>
    %965 = vector.extract_strided_slice %962 {offsets = [0, 32], sizes = [8, 32], strides = [1, 1]} : vector<8x96xf32> to vector<8x32xf32>
    %966 = arith.truncf %965 : vector<8x32xf32> to vector<8x32xbf16>
    %967 = vector.extract_strided_slice %962 {offsets = [0, 64], sizes = [8, 32], strides = [1, 1]} : vector<8x96xf32> to vector<8x32xf32>
    %968 = arith.truncf %967 : vector<8x32xf32> to vector<8x32xbf16>
    %969 = vector.extract_strided_slice %964 {offsets = [0, 0], sizes = [8, 4], strides = [1, 1]} : vector<8x32xbf16> to vector<8x4xbf16>
    %970 = vector.extract_strided_slice %966 {offsets = [0, 0], sizes = [8, 4], strides = [1, 1]} : vector<8x32xbf16> to vector<8x4xbf16>
    "tpu.trace_start"() <{level = 10 : i32, message = "qd,kd->qk"}> : () -> ()
    %cst_297 = arith.constant dense<0.000000e+00> : vector<8x8xf32>
    %971 = tpu.matmul %969, %970, %cst_297 {dimension_numbers = #tpu.dot_dimension_numbers<[1], [1], [0], [0], [0, 0, 1, 0], [], []>} : vector<8x4xbf16>, vector<8x4xbf16>, vector<8x8xf32> -> vector<8x8xf32>
    "tpu.trace_stop"() : () -> ()
    %cst_298 = arith.constant 0.353553385 : f32
    %972 = vector.broadcast %cst_298 : f32 to vector<8x8xf32>
    %973 = arith.mulf %971, %972 : vector<8x8xf32>
    %cst_299 = arith.constant -1.000000e+09 : f32
    %974 = vector.broadcast %cst_299 : f32 to vector<8x8xf32>
    %975 = arith.select %5, %974, %973 : vector<8x8xi1>, vector<8x8xf32>
    %cst_300 = arith.constant dense<0xFF800000> : vector<8xf32>
    %976 = vector.multi_reduction <maximumf>, %975, %cst_300 [1] : vector<8x8xf32> to vector<8xf32>
    %977 = vector.shape_cast %976 : vector<8xf32> to vector<8x1xf32>
    %978 = vector.broadcast %977 : vector<8x1xf32> to vector<8x8xf32>
    %979 = arith.subf %975, %978 : vector<8x8xf32>
    %980 = math.exp %979 : vector<8x8xf32>
    %cst_301 = arith.constant dense<0.000000e+00> : vector<8xf32>
    %981 = vector.multi_reduction <add>, %980, %cst_301 [1] : vector<8x8xf32> to vector<8xf32>
    %982 = vector.shape_cast %981 : vector<8xf32> to vector<8x1xf32>
    %983 = tpu.reciprocal %982 {approx = true} : vector<8x1xf32> -> vector<8x1xf32>
    %984 = vector.broadcast %983 : vector<8x1xf32> to vector<8x8xf32>
    %985 = arith.mulf %980, %984 : vector<8x8xf32>
    %986 = arith.truncf %985 : vector<8x8xf32> to vector<8x8xbf16>
    %987 = vector.extract_strided_slice %968 {offsets = [0, 0], sizes = [8, 4], strides = [1, 1]} : vector<8x32xbf16> to vector<8x4xbf16>
    %cst_302 = arith.constant dense<0.000000e+00> : vector<8x4xf32>
    %988 = tpu.matmul %986, %987, %cst_302 {dimension_numbers = #tpu.dot_dimension_numbers<[1], [0], [0], [1], [0, 0, 1, 1], [], []>} : vector<8x8xbf16>, vector<8x4xbf16>, vector<8x4xf32> -> vector<8x4xf32>
    %989 = vector.extract_strided_slice %964 {offsets = [0, 4], sizes = [8, 4], strides = [1, 1]} : vector<8x32xbf16> to vector<8x4xbf16>
    %990 = vector.extract_strided_slice %966 {offsets = [0, 4], sizes = [8, 4], strides = [1, 1]} : vector<8x32xbf16> to vector<8x4xbf16>
    "tpu.trace_start"() <{level = 10 : i32, message = "qd,kd->qk"}> : () -> ()
    %cst_303 = arith.constant dense<0.000000e+00> : vector<8x8xf32>
    %991 = tpu.matmul %989, %990, %cst_303 {dimension_numbers = #tpu.dot_dimension_numbers<[1], [1], [0], [0], [0, 0, 1, 0], [], []>} : vector<8x4xbf16>, vector<8x4xbf16>, vector<8x8xf32> -> vector<8x8xf32>
    "tpu.trace_stop"() : () -> ()
    %cst_304 = arith.constant 0.353553385 : f32
    %992 = vector.broadcast %cst_304 : f32 to vector<8x8xf32>
    %993 = arith.mulf %991, %992 : vector<8x8xf32>
    %cst_305 = arith.constant -1.000000e+09 : f32
    %994 = vector.broadcast %cst_305 : f32 to vector<8x8xf32>
    %995 = arith.select %5, %994, %993 : vector<8x8xi1>, vector<8x8xf32>
    %cst_306 = arith.constant dense<0xFF800000> : vector<8xf32>
    %996 = vector.multi_reduction <maximumf>, %995, %cst_306 [1] : vector<8x8xf32> to vector<8xf32>
    %997 = vector.shape_cast %996 : vector<8xf32> to vector<8x1xf32>
    %998 = vector.broadcast %997 : vector<8x1xf32> to vector<8x8xf32>
    %999 = arith.subf %995, %998 : vector<8x8xf32>
    %1000 = math.exp %999 : vector<8x8xf32>
    %cst_307 = arith.constant dense<0.000000e+00> : vector<8xf32>
    %1001 = vector.multi_reduction <add>, %1000, %cst_307 [1] : vector<8x8xf32> to vector<8xf32>
    %1002 = vector.shape_cast %1001 : vector<8xf32> to vector<8x1xf32>
    %1003 = tpu.reciprocal %1002 {approx = true} : vector<8x1xf32> -> vector<8x1xf32>
    %1004 = vector.broadcast %1003 : vector<8x1xf32> to vector<8x8xf32>
    %1005 = arith.mulf %1000, %1004 : vector<8x8xf32>
    %1006 = arith.truncf %1005 : vector<8x8xf32> to vector<8x8xbf16>
    %1007 = vector.extract_strided_slice %968 {offsets = [0, 4], sizes = [8, 4], strides = [1, 1]} : vector<8x32xbf16> to vector<8x4xbf16>
    %cst_308 = arith.constant dense<0.000000e+00> : vector<8x4xf32>
    %1008 = tpu.matmul %1006, %1007, %cst_308 {dimension_numbers = #tpu.dot_dimension_numbers<[1], [0], [0], [1], [0, 0, 1, 1], [], []>} : vector<8x8xbf16>, vector<8x4xbf16>, vector<8x4xf32> -> vector<8x4xf32>
    %1009 = vector.extract_strided_slice %964 {offsets = [0, 8], sizes = [8, 4], strides = [1, 1]} : vector<8x32xbf16> to vector<8x4xbf16>
    %1010 = vector.extract_strided_slice %966 {offsets = [0, 8], sizes = [8, 4], strides = [1, 1]} : vector<8x32xbf16> to vector<8x4xbf16>
    "tpu.trace_start"() <{level = 10 : i32, message = "qd,kd->qk"}> : () -> ()
    %cst_309 = arith.constant dense<0.000000e+00> : vector<8x8xf32>
    %1011 = tpu.matmul %1009, %1010, %cst_309 {dimension_numbers = #tpu.dot_dimension_numbers<[1], [1], [0], [0], [0, 0, 1, 0], [], []>} : vector<8x4xbf16>, vector<8x4xbf16>, vector<8x8xf32> -> vector<8x8xf32>
    "tpu.trace_stop"() : () -> ()
    %cst_310 = arith.constant 0.353553385 : f32
    %1012 = vector.broadcast %cst_310 : f32 to vector<8x8xf32>
    %1013 = arith.mulf %1011, %1012 : vector<8x8xf32>
    %cst_311 = arith.constant -1.000000e+09 : f32
    %1014 = vector.broadcast %cst_311 : f32 to vector<8x8xf32>
    %1015 = arith.select %5, %1014, %1013 : vector<8x8xi1>, vector<8x8xf32>
    %cst_312 = arith.constant dense<0xFF800000> : vector<8xf32>
    %1016 = vector.multi_reduction <maximumf>, %1015, %cst_312 [1] : vector<8x8xf32> to vector<8xf32>
    %1017 = vector.shape_cast %1016 : vector<8xf32> to vector<8x1xf32>
    %1018 = vector.broadcast %1017 : vector<8x1xf32> to vector<8x8xf32>
    %1019 = arith.subf %1015, %1018 : vector<8x8xf32>
    %1020 = math.exp %1019 : vector<8x8xf32>
    %cst_313 = arith.constant dense<0.000000e+00> : vector<8xf32>
    %1021 = vector.multi_reduction <add>, %1020, %cst_313 [1] : vector<8x8xf32> to vector<8xf32>
    %1022 = vector.shape_cast %1021 : vector<8xf32> to vector<8x1xf32>
    %1023 = tpu.reciprocal %1022 {approx = true} : vector<8x1xf32> -> vector<8x1xf32>
    %1024 = vector.broadcast %1023 : vector<8x1xf32> to vector<8x8xf32>
    %1025 = arith.mulf %1020, %1024 : vector<8x8xf32>
    %1026 = arith.truncf %1025 : vector<8x8xf32> to vector<8x8xbf16>
    %1027 = vector.extract_strided_slice %968 {offsets = [0, 8], sizes = [8, 4], strides = [1, 1]} : vector<8x32xbf16> to vector<8x4xbf16>
    %cst_314 = arith.constant dense<0.000000e+00> : vector<8x4xf32>
    %1028 = tpu.matmul %1026, %1027, %cst_314 {dimension_numbers = #tpu.dot_dimension_numbers<[1], [0], [0], [1], [0, 0, 1, 1], [], []>} : vector<8x8xbf16>, vector<8x4xbf16>, vector<8x4xf32> -> vector<8x4xf32>
    %1029 = vector.extract_strided_slice %964 {offsets = [0, 12], sizes = [8, 4], strides = [1, 1]} : vector<8x32xbf16> to vector<8x4xbf16>
    %1030 = vector.extract_strided_slice %966 {offsets = [0, 12], sizes = [8, 4], strides = [1, 1]} : vector<8x32xbf16> to vector<8x4xbf16>
    "tpu.trace_start"() <{level = 10 : i32, message = "qd,kd->qk"}> : () -> ()
    %cst_315 = arith.constant dense<0.000000e+00> : vector<8x8xf32>
    %1031 = tpu.matmul %1029, %1030, %cst_315 {dimension_numbers = #tpu.dot_dimension_numbers<[1], [1], [0], [0], [0, 0, 1, 0], [], []>} : vector<8x4xbf16>, vector<8x4xbf16>, vector<8x8xf32> -> vector<8x8xf32>
    "tpu.trace_stop"() : () -> ()
    %cst_316 = arith.constant 0.353553385 : f32
    %1032 = vector.broadcast %cst_316 : f32 to vector<8x8xf32>
    %1033 = arith.mulf %1031, %1032 : vector<8x8xf32>
    %cst_317 = arith.constant -1.000000e+09 : f32
    %1034 = vector.broadcast %cst_317 : f32 to vector<8x8xf32>
    %1035 = arith.select %5, %1034, %1033 : vector<8x8xi1>, vector<8x8xf32>
    %cst_318 = arith.constant dense<0xFF800000> : vector<8xf32>
    %1036 = vector.multi_reduction <maximumf>, %1035, %cst_318 [1] : vector<8x8xf32> to vector<8xf32>
    %1037 = vector.shape_cast %1036 : vector<8xf32> to vector<8x1xf32>
    %1038 = vector.broadcast %1037 : vector<8x1xf32> to vector<8x8xf32>
    %1039 = arith.subf %1035, %1038 : vector<8x8xf32>
    %1040 = math.exp %1039 : vector<8x8xf32>
    %cst_319 = arith.constant dense<0.000000e+00> : vector<8xf32>
    %1041 = vector.multi_reduction <add>, %1040, %cst_319 [1] : vector<8x8xf32> to vector<8xf32>
    %1042 = vector.shape_cast %1041 : vector<8xf32> to vector<8x1xf32>
    %1043 = tpu.reciprocal %1042 {approx = true} : vector<8x1xf32> -> vector<8x1xf32>
    %1044 = vector.broadcast %1043 : vector<8x1xf32> to vector<8x8xf32>
    %1045 = arith.mulf %1040, %1044 : vector<8x8xf32>
    %1046 = arith.truncf %1045 : vector<8x8xf32> to vector<8x8xbf16>
    %1047 = vector.extract_strided_slice %968 {offsets = [0, 12], sizes = [8, 4], strides = [1, 1]} : vector<8x32xbf16> to vector<8x4xbf16>
    %cst_320 = arith.constant dense<0.000000e+00> : vector<8x4xf32>
    %1048 = tpu.matmul %1046, %1047, %cst_320 {dimension_numbers = #tpu.dot_dimension_numbers<[1], [0], [0], [1], [0, 0, 1, 1], [], []>} : vector<8x8xbf16>, vector<8x4xbf16>, vector<8x4xf32> -> vector<8x4xf32>
    %1049 = vector.extract_strided_slice %964 {offsets = [0, 16], sizes = [8, 4], strides = [1, 1]} : vector<8x32xbf16> to vector<8x4xbf16>
    %1050 = vector.extract_strided_slice %966 {offsets = [0, 16], sizes = [8, 4], strides = [1, 1]} : vector<8x32xbf16> to vector<8x4xbf16>
    "tpu.trace_start"() <{level = 10 : i32, message = "qd,kd->qk"}> : () -> ()
    %cst_321 = arith.constant dense<0.000000e+00> : vector<8x8xf32>
    %1051 = tpu.matmul %1049, %1050, %cst_321 {dimension_numbers = #tpu.dot_dimension_numbers<[1], [1], [0], [0], [0, 0, 1, 0], [], []>} : vector<8x4xbf16>, vector<8x4xbf16>, vector<8x8xf32> -> vector<8x8xf32>
    "tpu.trace_stop"() : () -> ()
    %cst_322 = arith.constant 0.353553385 : f32
    %1052 = vector.broadcast %cst_322 : f32 to vector<8x8xf32>
    %1053 = arith.mulf %1051, %1052 : vector<8x8xf32>
    %cst_323 = arith.constant -1.000000e+09 : f32
    %1054 = vector.broadcast %cst_323 : f32 to vector<8x8xf32>
    %1055 = arith.select %5, %1054, %1053 : vector<8x8xi1>, vector<8x8xf32>
    %cst_324 = arith.constant dense<0xFF800000> : vector<8xf32>
    %1056 = vector.multi_reduction <maximumf>, %1055, %cst_324 [1] : vector<8x8xf32> to vector<8xf32>
    %1057 = vector.shape_cast %1056 : vector<8xf32> to vector<8x1xf32>
    %1058 = vector.broadcast %1057 : vector<8x1xf32> to vector<8x8xf32>
    %1059 = arith.subf %1055, %1058 : vector<8x8xf32>
    %1060 = math.exp %1059 : vector<8x8xf32>
    %cst_325 = arith.constant dense<0.000000e+00> : vector<8xf32>
    %1061 = vector.multi_reduction <add>, %1060, %cst_325 [1] : vector<8x8xf32> to vector<8xf32>
    %1062 = vector.shape_cast %1061 : vector<8xf32> to vector<8x1xf32>
    %1063 = tpu.reciprocal %1062 {approx = true} : vector<8x1xf32> -> vector<8x1xf32>
    %1064 = vector.broadcast %1063 : vector<8x1xf32> to vector<8x8xf32>
    %1065 = arith.mulf %1060, %1064 : vector<8x8xf32>
    %1066 = arith.truncf %1065 : vector<8x8xf32> to vector<8x8xbf16>
    %1067 = vector.extract_strided_slice %968 {offsets = [0, 16], sizes = [8, 4], strides = [1, 1]} : vector<8x32xbf16> to vector<8x4xbf16>
    %cst_326 = arith.constant dense<0.000000e+00> : vector<8x4xf32>
    %1068 = tpu.matmul %1066, %1067, %cst_326 {dimension_numbers = #tpu.dot_dimension_numbers<[1], [0], [0], [1], [0, 0, 1, 1], [], []>} : vector<8x8xbf16>, vector<8x4xbf16>, vector<8x4xf32> -> vector<8x4xf32>
    %1069 = vector.extract_strided_slice %964 {offsets = [0, 20], sizes = [8, 4], strides = [1, 1]} : vector<8x32xbf16> to vector<8x4xbf16>
    %1070 = vector.extract_strided_slice %966 {offsets = [0, 20], sizes = [8, 4], strides = [1, 1]} : vector<8x32xbf16> to vector<8x4xbf16>
    "tpu.trace_start"() <{level = 10 : i32, message = "qd,kd->qk"}> : () -> ()
    %cst_327 = arith.constant dense<0.000000e+00> : vector<8x8xf32>
    %1071 = tpu.matmul %1069, %1070, %cst_327 {dimension_numbers = #tpu.dot_dimension_numbers<[1], [1], [0], [0], [0, 0, 1, 0], [], []>} : vector<8x4xbf16>, vector<8x4xbf16>, vector<8x8xf32> -> vector<8x8xf32>
    "tpu.trace_stop"() : () -> ()
    %cst_328 = arith.constant 0.353553385 : f32
    %1072 = vector.broadcast %cst_328 : f32 to vector<8x8xf32>
    %1073 = arith.mulf %1071, %1072 : vector<8x8xf32>
    %cst_329 = arith.constant -1.000000e+09 : f32
    %1074 = vector.broadcast %cst_329 : f32 to vector<8x8xf32>
    %1075 = arith.select %5, %1074, %1073 : vector<8x8xi1>, vector<8x8xf32>
    %cst_330 = arith.constant dense<0xFF800000> : vector<8xf32>
    %1076 = vector.multi_reduction <maximumf>, %1075, %cst_330 [1] : vector<8x8xf32> to vector<8xf32>
    %1077 = vector.shape_cast %1076 : vector<8xf32> to vector<8x1xf32>
    %1078 = vector.broadcast %1077 : vector<8x1xf32> to vector<8x8xf32>
    %1079 = arith.subf %1075, %1078 : vector<8x8xf32>
    %1080 = math.exp %1079 : vector<8x8xf32>
    %cst_331 = arith.constant dense<0.000000e+00> : vector<8xf32>
    %1081 = vector.multi_reduction <add>, %1080, %cst_331 [1] : vector<8x8xf32> to vector<8xf32>
    %1082 = vector.shape_cast %1081 : vector<8xf32> to vector<8x1xf32>
    %1083 = tpu.reciprocal %1082 {approx = true} : vector<8x1xf32> -> vector<8x1xf32>
    %1084 = vector.broadcast %1083 : vector<8x1xf32> to vector<8x8xf32>
    %1085 = arith.mulf %1080, %1084 : vector<8x8xf32>
    %1086 = arith.truncf %1085 : vector<8x8xf32> to vector<8x8xbf16>
    %1087 = vector.extract_strided_slice %968 {offsets = [0, 20], sizes = [8, 4], strides = [1, 1]} : vector<8x32xbf16> to vector<8x4xbf16>
    %cst_332 = arith.constant dense<0.000000e+00> : vector<8x4xf32>
    %1088 = tpu.matmul %1086, %1087, %cst_332 {dimension_numbers = #tpu.dot_dimension_numbers<[1], [0], [0], [1], [0, 0, 1, 1], [], []>} : vector<8x8xbf16>, vector<8x4xbf16>, vector<8x4xf32> -> vector<8x4xf32>
    %1089 = vector.extract_strided_slice %964 {offsets = [0, 24], sizes = [8, 4], strides = [1, 1]} : vector<8x32xbf16> to vector<8x4xbf16>
    %1090 = vector.extract_strided_slice %966 {offsets = [0, 24], sizes = [8, 4], strides = [1, 1]} : vector<8x32xbf16> to vector<8x4xbf16>
    "tpu.trace_start"() <{level = 10 : i32, message = "qd,kd->qk"}> : () -> ()
    %cst_333 = arith.constant dense<0.000000e+00> : vector<8x8xf32>
    %1091 = tpu.matmul %1089, %1090, %cst_333 {dimension_numbers = #tpu.dot_dimension_numbers<[1], [1], [0], [0], [0, 0, 1, 0], [], []>} : vector<8x4xbf16>, vector<8x4xbf16>, vector<8x8xf32> -> vector<8x8xf32>
    "tpu.trace_stop"() : () -> ()
    %cst_334 = arith.constant 0.353553385 : f32
    %1092 = vector.broadcast %cst_334 : f32 to vector<8x8xf32>
    %1093 = arith.mulf %1091, %1092 : vector<8x8xf32>
    %cst_335 = arith.constant -1.000000e+09 : f32
    %1094 = vector.broadcast %cst_335 : f32 to vector<8x8xf32>
    %1095 = arith.select %5, %1094, %1093 : vector<8x8xi1>, vector<8x8xf32>
    %cst_336 = arith.constant dense<0xFF800000> : vector<8xf32>
    %1096 = vector.multi_reduction <maximumf>, %1095, %cst_336 [1] : vector<8x8xf32> to vector<8xf32>
    %1097 = vector.shape_cast %1096 : vector<8xf32> to vector<8x1xf32>
    %1098 = vector.broadcast %1097 : vector<8x1xf32> to vector<8x8xf32>
    %1099 = arith.subf %1095, %1098 : vector<8x8xf32>
    %1100 = math.exp %1099 : vector<8x8xf32>
    %cst_337 = arith.constant dense<0.000000e+00> : vector<8xf32>
    %1101 = vector.multi_reduction <add>, %1100, %cst_337 [1] : vector<8x8xf32> to vector<8xf32>
    %1102 = vector.shape_cast %1101 : vector<8xf32> to vector<8x1xf32>
    %1103 = tpu.reciprocal %1102 {approx = true} : vector<8x1xf32> -> vector<8x1xf32>
    %1104 = vector.broadcast %1103 : vector<8x1xf32> to vector<8x8xf32>
    %1105 = arith.mulf %1100, %1104 : vector<8x8xf32>
    %1106 = arith.truncf %1105 : vector<8x8xf32> to vector<8x8xbf16>
    %1107 = vector.extract_strided_slice %968 {offsets = [0, 24], sizes = [8, 4], strides = [1, 1]} : vector<8x32xbf16> to vector<8x4xbf16>
    %cst_338 = arith.constant dense<0.000000e+00> : vector<8x4xf32>
    %1108 = tpu.matmul %1106, %1107, %cst_338 {dimension_numbers = #tpu.dot_dimension_numbers<[1], [0], [0], [1], [0, 0, 1, 1], [], []>} : vector<8x8xbf16>, vector<8x4xbf16>, vector<8x4xf32> -> vector<8x4xf32>
    %1109 = vector.extract_strided_slice %964 {offsets = [0, 28], sizes = [8, 4], strides = [1, 1]} : vector<8x32xbf16> to vector<8x4xbf16>
    %1110 = vector.extract_strided_slice %966 {offsets = [0, 28], sizes = [8, 4], strides = [1, 1]} : vector<8x32xbf16> to vector<8x4xbf16>
    "tpu.trace_start"() <{level = 10 : i32, message = "qd,kd->qk"}> : () -> ()
    %cst_339 = arith.constant dense<0.000000e+00> : vector<8x8xf32>
    %1111 = tpu.matmul %1109, %1110, %cst_339 {dimension_numbers = #tpu.dot_dimension_numbers<[1], [1], [0], [0], [0, 0, 1, 0], [], []>} : vector<8x4xbf16>, vector<8x4xbf16>, vector<8x8xf32> -> vector<8x8xf32>
    "tpu.trace_stop"() : () -> ()
    %cst_340 = arith.constant 0.353553385 : f32
    %1112 = vector.broadcast %cst_340 : f32 to vector<8x8xf32>
    %1113 = arith.mulf %1111, %1112 : vector<8x8xf32>
    %cst_341 = arith.constant -1.000000e+09 : f32
    %1114 = vector.broadcast %cst_341 : f32 to vector<8x8xf32>
    %1115 = arith.select %5, %1114, %1113 : vector<8x8xi1>, vector<8x8xf32>
    %cst_342 = arith.constant dense<0xFF800000> : vector<8xf32>
    %1116 = vector.multi_reduction <maximumf>, %1115, %cst_342 [1] : vector<8x8xf32> to vector<8xf32>
    %1117 = vector.shape_cast %1116 : vector<8xf32> to vector<8x1xf32>
    %1118 = vector.broadcast %1117 : vector<8x1xf32> to vector<8x8xf32>
    %1119 = arith.subf %1115, %1118 : vector<8x8xf32>
    %1120 = math.exp %1119 : vector<8x8xf32>
    %cst_343 = arith.constant dense<0.000000e+00> : vector<8xf32>
    %1121 = vector.multi_reduction <add>, %1120, %cst_343 [1] : vector<8x8xf32> to vector<8xf32>
    %1122 = vector.shape_cast %1121 : vector<8xf32> to vector<8x1xf32>
    %1123 = tpu.reciprocal %1122 {approx = true} : vector<8x1xf32> -> vector<8x1xf32>
    %1124 = vector.broadcast %1123 : vector<8x1xf32> to vector<8x8xf32>
    %1125 = arith.mulf %1120, %1124 : vector<8x8xf32>
    %1126 = arith.truncf %1125 : vector<8x8xf32> to vector<8x8xbf16>
    %1127 = vector.extract_strided_slice %968 {offsets = [0, 28], sizes = [8, 4], strides = [1, 1]} : vector<8x32xbf16> to vector<8x4xbf16>
    %cst_344 = arith.constant dense<0.000000e+00> : vector<8x4xf32>
    %1128 = tpu.matmul %1126, %1127, %cst_344 {dimension_numbers = #tpu.dot_dimension_numbers<[1], [0], [0], [1], [0, 0, 1, 1], [], []>} : vector<8x8xbf16>, vector<8x4xbf16>, vector<8x4xf32> -> vector<8x4xf32>
    %1129 = tpu.concatenate %988, %1008, %1028, %1048, %1068, %1088, %1108, %1128 in 1 : vector<8x4xf32>, vector<8x4xf32>, vector<8x4xf32>, vector<8x4xf32>, vector<8x4xf32>, vector<8x4xf32>, vector<8x4xf32>, vector<8x4xf32> -> vector<8x32xf32>
    %1130 = arith.truncf %1129 : vector<8x32xf32> to vector<8x32xbf16>
    %cst_345 = arith.constant dense<0.000000e+00> : vector<8x32xf32>
    %1131 = tpu.matmul %1130, %7, %cst_345 {dimension_numbers = #tpu.dot_dimension_numbers<[1], [0], [0], [1], [0, 0, 1, 1], [], []>} : vector<8x32xbf16>, vector<32x32xbf16>, vector<8x32xf32> -> vector<8x32xf32>
    %1132 = arith.addf %1131, %17 : vector<8x32xf32>
    %1133 = arith.addf %1132, %959 : vector<8x32xf32>
    %cst_346 = arith.constant dense<0.000000e+00> : vector<8xf32>
    %1134 = vector.multi_reduction <add>, %1133, %cst_346 [1] : vector<8x32xf32> to vector<8xf32>
    %1135 = vector.shape_cast %1134 : vector<8xf32> to vector<8x1xf32>
    %cst_347 = arith.constant 3.200000e+01 : f32
    %1136 = vector.broadcast %cst_347 : f32 to vector<8x1xf32>
    %1137 = arith.divf %1135, %1136 : vector<8x1xf32>
    %1138 = vector.broadcast %1137 : vector<8x1xf32> to vector<8x32xf32>
    %1139 = arith.subf %1133, %1138 : vector<8x32xf32>
    %1140 = arith.mulf %1139, %1139 : vector<8x32xf32>
    %cst_348 = arith.constant dense<0.000000e+00> : vector<8xf32>
    %1141 = vector.multi_reduction <add>, %1140, %cst_348 [1] : vector<8x32xf32> to vector<8xf32>
    %1142 = vector.shape_cast %1141 : vector<8xf32> to vector<8x1xf32>
    %cst_349 = arith.constant 3.200000e+01 : f32
    %1143 = vector.broadcast %cst_349 : f32 to vector<8x1xf32>
    %1144 = arith.divf %1142, %1143 : vector<8x1xf32>
    %1145 = vector.broadcast %1137 : vector<8x1xf32> to vector<8x32xf32>
    %1146 = arith.subf %1133, %1145 : vector<8x32xf32>
    %cst_350 = arith.constant 9.99999974E-6 : f32
    %1147 = vector.broadcast %cst_350 : f32 to vector<8x1xf32>
    %1148 = arith.addf %1144, %1147 : vector<8x1xf32>
    %1149 = math.rsqrt %1148 : vector<8x1xf32>
    %1150 = vector.broadcast %1149 : vector<8x1xf32> to vector<8x32xf32>
    %1151 = arith.mulf %1146, %1150 : vector<8x32xf32>
    %1152 = arith.mulf %1151, %20 : vector<8x32xf32>
    %1153 = arith.addf %1152, %23 : vector<8x32xf32>
    %1154 = arith.truncf %1153 : vector<8x32xf32> to vector<8x32xbf16>
    %cst_351 = arith.constant dense<0.000000e+00> : vector<8x32xf32>
    %1155 = tpu.matmul %1154, %8, %cst_351 {dimension_numbers = #tpu.dot_dimension_numbers<[1], [0], [0], [1], [0, 0, 1, 1], [], []>} : vector<8x32xbf16>, vector<32x32xbf16>, vector<8x32xf32> -> vector<8x32xf32>
    %1156 = arith.addf %1155, %26 : vector<8x32xf32>
    %cst_352 = arith.constant 0.000000e+00 : f32
    %1157 = vector.broadcast %cst_352 : f32 to vector<8x32xf32>
    %1158 = arith.cmpf oge, %1156, %1157 : vector<8x32xf32>
    %cst_353 = arith.constant 0.00999999977 : f32
    %1159 = vector.broadcast %cst_353 : f32 to vector<8x32xf32>
    %1160 = arith.mulf %1159, %1156 : vector<8x32xf32>
    %1161 = arith.select %1158, %1156, %1160 : vector<8x32xi1>, vector<8x32xf32>
    %1162 = arith.truncf %1161 : vector<8x32xf32> to vector<8x32xbf16>
    %cst_354 = arith.constant dense<0.000000e+00> : vector<8x32xf32>
    %1163 = tpu.matmul %1162, %9, %cst_354 {dimension_numbers = #tpu.dot_dimension_numbers<[1], [0], [0], [1], [0, 0, 1, 1], [], []>} : vector<8x32xbf16>, vector<32x32xbf16>, vector<8x32xf32> -> vector<8x32xf32>
    %1164 = arith.addf %1163, %29 : vector<8x32xf32>
    %1165 = arith.addf %1164, %1153 : vector<8x32xf32>
    %cst_355 = arith.constant dense<0.000000e+00> : vector<8xf32>
    %1166 = vector.multi_reduction <add>, %1165, %cst_355 [1] : vector<8x32xf32> to vector<8xf32>
    %1167 = vector.shape_cast %1166 : vector<8xf32> to vector<8x1xf32>
    %cst_356 = arith.constant 3.200000e+01 : f32
    %1168 = vector.broadcast %cst_356 : f32 to vector<8x1xf32>
    %1169 = arith.divf %1167, %1168 : vector<8x1xf32>
    %1170 = vector.broadcast %1169 : vector<8x1xf32> to vector<8x32xf32>
    %1171 = arith.subf %1165, %1170 : vector<8x32xf32>
    %1172 = arith.mulf %1171, %1171 : vector<8x32xf32>
    %cst_357 = arith.constant dense<0.000000e+00> : vector<8xf32>
    %1173 = vector.multi_reduction <add>, %1172, %cst_357 [1] : vector<8x32xf32> to vector<8xf32>
    %1174 = vector.shape_cast %1173 : vector<8xf32> to vector<8x1xf32>
    %cst_358 = arith.constant 3.200000e+01 : f32
    %1175 = vector.broadcast %cst_358 : f32 to vector<8x1xf32>
    %1176 = arith.divf %1174, %1175 : vector<8x1xf32>
    %1177 = vector.broadcast %1169 : vector<8x1xf32> to vector<8x32xf32>
    %1178 = arith.subf %1165, %1177 : vector<8x32xf32>
    %cst_359 = arith.constant 9.99999974E-6 : f32
    %1179 = vector.broadcast %cst_359 : f32 to vector<8x1xf32>
    %1180 = arith.addf %1176, %1179 : vector<8x1xf32>
    %1181 = math.rsqrt %1180 : vector<8x1xf32>
    %1182 = vector.broadcast %1181 : vector<8x1xf32> to vector<8x32xf32>
    %1183 = arith.mulf %1178, %1182 : vector<8x32xf32>
    %1184 = arith.mulf %1183, %20 : vector<8x32xf32>
    %1185 = arith.addf %1184, %23 : vector<8x32xf32>
    %cst_360 = arith.constant 0.000000e+00 : f32
    %1186 = vector.broadcast %cst_360 : f32 to vector<8x32xf32>
    %1187 = arith.cmpf oge, %1185, %1186 : vector<8x32xf32>
    %cst_361 = arith.constant 0.00999999977 : f32
    %1188 = vector.broadcast %cst_361 : f32 to vector<8x32xf32>
    %1189 = arith.mulf %1188, %1185 : vector<8x32xf32>
    %1190 = arith.select %1187, %1185, %1189 : vector<8x32xi1>, vector<8x32xf32>
    %1191 = arith.truncf %1190 : vector<8x32xf32> to vector<8x32xbf16>
    %cst_362 = arith.constant dense<0.000000e+00> : vector<8x96xf32>
    %1192 = tpu.matmul %1191, %6, %cst_362 {dimension_numbers = #tpu.dot_dimension_numbers<[1], [0], [0], [1], [0, 0, 1, 1], [], []>} : vector<8x32xbf16>, vector<32x96xbf16>, vector<8x96xf32> -> vector<8x96xf32>
    %1193 = arith.addf %1192, %14 : vector<8x96xf32>
    %1194 = vector.extract_strided_slice %1193 {offsets = [0, 0], sizes = [8, 32], strides = [1, 1]} : vector<8x96xf32> to vector<8x32xf32>
    %1195 = arith.truncf %1194 : vector<8x32xf32> to vector<8x32xbf16>
    %1196 = vector.extract_strided_slice %1193 {offsets = [0, 32], sizes = [8, 32], strides = [1, 1]} : vector<8x96xf32> to vector<8x32xf32>
    %1197 = arith.truncf %1196 : vector<8x32xf32> to vector<8x32xbf16>
    %1198 = vector.extract_strided_slice %1193 {offsets = [0, 64], sizes = [8, 32], strides = [1, 1]} : vector<8x96xf32> to vector<8x32xf32>
    %1199 = arith.truncf %1198 : vector<8x32xf32> to vector<8x32xbf16>
    %1200 = vector.extract_strided_slice %1195 {offsets = [0, 0], sizes = [8, 4], strides = [1, 1]} : vector<8x32xbf16> to vector<8x4xbf16>
    %1201 = vector.extract_strided_slice %1197 {offsets = [0, 0], sizes = [8, 4], strides = [1, 1]} : vector<8x32xbf16> to vector<8x4xbf16>
    "tpu.trace_start"() <{level = 10 : i32, message = "qd,kd->qk"}> : () -> ()
    %cst_363 = arith.constant dense<0.000000e+00> : vector<8x8xf32>
    %1202 = tpu.matmul %1200, %1201, %cst_363 {dimension_numbers = #tpu.dot_dimension_numbers<[1], [1], [0], [0], [0, 0, 1, 0], [], []>} : vector<8x4xbf16>, vector<8x4xbf16>, vector<8x8xf32> -> vector<8x8xf32>
    "tpu.trace_stop"() : () -> ()
    %cst_364 = arith.constant 0.353553385 : f32
    %1203 = vector.broadcast %cst_364 : f32 to vector<8x8xf32>
    %1204 = arith.mulf %1202, %1203 : vector<8x8xf32>
    %cst_365 = arith.constant -1.000000e+09 : f32
    %1205 = vector.broadcast %cst_365 : f32 to vector<8x8xf32>
    %1206 = arith.select %5, %1205, %1204 : vector<8x8xi1>, vector<8x8xf32>
    %cst_366 = arith.constant dense<0xFF800000> : vector<8xf32>
    %1207 = vector.multi_reduction <maximumf>, %1206, %cst_366 [1] : vector<8x8xf32> to vector<8xf32>
    %1208 = vector.shape_cast %1207 : vector<8xf32> to vector<8x1xf32>
    %1209 = vector.broadcast %1208 : vector<8x1xf32> to vector<8x8xf32>
    %1210 = arith.subf %1206, %1209 : vector<8x8xf32>
    %1211 = math.exp %1210 : vector<8x8xf32>
    %cst_367 = arith.constant dense<0.000000e+00> : vector<8xf32>
    %1212 = vector.multi_reduction <add>, %1211, %cst_367 [1] : vector<8x8xf32> to vector<8xf32>
    %1213 = vector.shape_cast %1212 : vector<8xf32> to vector<8x1xf32>
    %1214 = tpu.reciprocal %1213 {approx = true} : vector<8x1xf32> -> vector<8x1xf32>
    %1215 = vector.broadcast %1214 : vector<8x1xf32> to vector<8x8xf32>
    %1216 = arith.mulf %1211, %1215 : vector<8x8xf32>
    %1217 = arith.truncf %1216 : vector<8x8xf32> to vector<8x8xbf16>
    %1218 = vector.extract_strided_slice %1199 {offsets = [0, 0], sizes = [8, 4], strides = [1, 1]} : vector<8x32xbf16> to vector<8x4xbf16>
    %cst_368 = arith.constant dense<0.000000e+00> : vector<8x4xf32>
    %1219 = tpu.matmul %1217, %1218, %cst_368 {dimension_numbers = #tpu.dot_dimension_numbers<[1], [0], [0], [1], [0, 0, 1, 1], [], []>} : vector<8x8xbf16>, vector<8x4xbf16>, vector<8x4xf32> -> vector<8x4xf32>
    %1220 = vector.extract_strided_slice %1195 {offsets = [0, 4], sizes = [8, 4], strides = [1, 1]} : vector<8x32xbf16> to vector<8x4xbf16>
    %1221 = vector.extract_strided_slice %1197 {offsets = [0, 4], sizes = [8, 4], strides = [1, 1]} : vector<8x32xbf16> to vector<8x4xbf16>
    "tpu.trace_start"() <{level = 10 : i32, message = "qd,kd->qk"}> : () -> ()
    %cst_369 = arith.constant dense<0.000000e+00> : vector<8x8xf32>
    %1222 = tpu.matmul %1220, %1221, %cst_369 {dimension_numbers = #tpu.dot_dimension_numbers<[1], [1], [0], [0], [0, 0, 1, 0], [], []>} : vector<8x4xbf16>, vector<8x4xbf16>, vector<8x8xf32> -> vector<8x8xf32>
    "tpu.trace_stop"() : () -> ()
    %cst_370 = arith.constant 0.353553385 : f32
    %1223 = vector.broadcast %cst_370 : f32 to vector<8x8xf32>
    %1224 = arith.mulf %1222, %1223 : vector<8x8xf32>
    %cst_371 = arith.constant -1.000000e+09 : f32
    %1225 = vector.broadcast %cst_371 : f32 to vector<8x8xf32>
    %1226 = arith.select %5, %1225, %1224 : vector<8x8xi1>, vector<8x8xf32>
    %cst_372 = arith.constant dense<0xFF800000> : vector<8xf32>
    %1227 = vector.multi_reduction <maximumf>, %1226, %cst_372 [1] : vector<8x8xf32> to vector<8xf32>
    %1228 = vector.shape_cast %1227 : vector<8xf32> to vector<8x1xf32>
    %1229 = vector.broadcast %1228 : vector<8x1xf32> to vector<8x8xf32>
    %1230 = arith.subf %1226, %1229 : vector<8x8xf32>
    %1231 = math.exp %1230 : vector<8x8xf32>
    %cst_373 = arith.constant dense<0.000000e+00> : vector<8xf32>
    %1232 = vector.multi_reduction <add>, %1231, %cst_373 [1] : vector<8x8xf32> to vector<8xf32>
    %1233 = vector.shape_cast %1232 : vector<8xf32> to vector<8x1xf32>
    %1234 = tpu.reciprocal %1233 {approx = true} : vector<8x1xf32> -> vector<8x1xf32>
    %1235 = vector.broadcast %1234 : vector<8x1xf32> to vector<8x8xf32>
    %1236 = arith.mulf %1231, %1235 : vector<8x8xf32>
    %1237 = arith.truncf %1236 : vector<8x8xf32> to vector<8x8xbf16>
    %1238 = vector.extract_strided_slice %1199 {offsets = [0, 4], sizes = [8, 4], strides = [1, 1]} : vector<8x32xbf16> to vector<8x4xbf16>
    %cst_374 = arith.constant dense<0.000000e+00> : vector<8x4xf32>
    %1239 = tpu.matmul %1237, %1238, %cst_374 {dimension_numbers = #tpu.dot_dimension_numbers<[1], [0], [0], [1], [0, 0, 1, 1], [], []>} : vector<8x8xbf16>, vector<8x4xbf16>, vector<8x4xf32> -> vector<8x4xf32>
    %1240 = vector.extract_strided_slice %1195 {offsets = [0, 8], sizes = [8, 4], strides = [1, 1]} : vector<8x32xbf16> to vector<8x4xbf16>
    %1241 = vector.extract_strided_slice %1197 {offsets = [0, 8], sizes = [8, 4], strides = [1, 1]} : vector<8x32xbf16> to vector<8x4xbf16>
    "tpu.trace_start"() <{level = 10 : i32, message = "qd,kd->qk"}> : () -> ()
    %cst_375 = arith.constant dense<0.000000e+00> : vector<8x8xf32>
    %1242 = tpu.matmul %1240, %1241, %cst_375 {dimension_numbers = #tpu.dot_dimension_numbers<[1], [1], [0], [0], [0, 0, 1, 0], [], []>} : vector<8x4xbf16>, vector<8x4xbf16>, vector<8x8xf32> -> vector<8x8xf32>
    "tpu.trace_stop"() : () -> ()
    %cst_376 = arith.constant 0.353553385 : f32
    %1243 = vector.broadcast %cst_376 : f32 to vector<8x8xf32>
    %1244 = arith.mulf %1242, %1243 : vector<8x8xf32>
    %cst_377 = arith.constant -1.000000e+09 : f32
    %1245 = vector.broadcast %cst_377 : f32 to vector<8x8xf32>
    %1246 = arith.select %5, %1245, %1244 : vector<8x8xi1>, vector<8x8xf32>
    %cst_378 = arith.constant dense<0xFF800000> : vector<8xf32>
    %1247 = vector.multi_reduction <maximumf>, %1246, %cst_378 [1] : vector<8x8xf32> to vector<8xf32>
    %1248 = vector.shape_cast %1247 : vector<8xf32> to vector<8x1xf32>
    %1249 = vector.broadcast %1248 : vector<8x1xf32> to vector<8x8xf32>
    %1250 = arith.subf %1246, %1249 : vector<8x8xf32>
    %1251 = math.exp %1250 : vector<8x8xf32>
    %cst_379 = arith.constant dense<0.000000e+00> : vector<8xf32>
    %1252 = vector.multi_reduction <add>, %1251, %cst_379 [1] : vector<8x8xf32> to vector<8xf32>
    %1253 = vector.shape_cast %1252 : vector<8xf32> to vector<8x1xf32>
    %1254 = tpu.reciprocal %1253 {approx = true} : vector<8x1xf32> -> vector<8x1xf32>
    %1255 = vector.broadcast %1254 : vector<8x1xf32> to vector<8x8xf32>
    %1256 = arith.mulf %1251, %1255 : vector<8x8xf32>
    %1257 = arith.truncf %1256 : vector<8x8xf32> to vector<8x8xbf16>
    %1258 = vector.extract_strided_slice %1199 {offsets = [0, 8], sizes = [8, 4], strides = [1, 1]} : vector<8x32xbf16> to vector<8x4xbf16>
    %cst_380 = arith.constant dense<0.000000e+00> : vector<8x4xf32>
    %1259 = tpu.matmul %1257, %1258, %cst_380 {dimension_numbers = #tpu.dot_dimension_numbers<[1], [0], [0], [1], [0, 0, 1, 1], [], []>} : vector<8x8xbf16>, vector<8x4xbf16>, vector<8x4xf32> -> vector<8x4xf32>
    %1260 = vector.extract_strided_slice %1195 {offsets = [0, 12], sizes = [8, 4], strides = [1, 1]} : vector<8x32xbf16> to vector<8x4xbf16>
    %1261 = vector.extract_strided_slice %1197 {offsets = [0, 12], sizes = [8, 4], strides = [1, 1]} : vector<8x32xbf16> to vector<8x4xbf16>
    "tpu.trace_start"() <{level = 10 : i32, message = "qd,kd->qk"}> : () -> ()
    %cst_381 = arith.constant dense<0.000000e+00> : vector<8x8xf32>
    %1262 = tpu.matmul %1260, %1261, %cst_381 {dimension_numbers = #tpu.dot_dimension_numbers<[1], [1], [0], [0], [0, 0, 1, 0], [], []>} : vector<8x4xbf16>, vector<8x4xbf16>, vector<8x8xf32> -> vector<8x8xf32>
    "tpu.trace_stop"() : () -> ()
    %cst_382 = arith.constant 0.353553385 : f32
    %1263 = vector.broadcast %cst_382 : f32 to vector<8x8xf32>
    %1264 = arith.mulf %1262, %1263 : vector<8x8xf32>
    %cst_383 = arith.constant -1.000000e+09 : f32
    %1265 = vector.broadcast %cst_383 : f32 to vector<8x8xf32>
    %1266 = arith.select %5, %1265, %1264 : vector<8x8xi1>, vector<8x8xf32>
    %cst_384 = arith.constant dense<0xFF800000> : vector<8xf32>
    %1267 = vector.multi_reduction <maximumf>, %1266, %cst_384 [1] : vector<8x8xf32> to vector<8xf32>
    %1268 = vector.shape_cast %1267 : vector<8xf32> to vector<8x1xf32>
    %1269 = vector.broadcast %1268 : vector<8x1xf32> to vector<8x8xf32>
    %1270 = arith.subf %1266, %1269 : vector<8x8xf32>
    %1271 = math.exp %1270 : vector<8x8xf32>
    %cst_385 = arith.constant dense<0.000000e+00> : vector<8xf32>
    %1272 = vector.multi_reduction <add>, %1271, %cst_385 [1] : vector<8x8xf32> to vector<8xf32>
    %1273 = vector.shape_cast %1272 : vector<8xf32> to vector<8x1xf32>
    %1274 = tpu.reciprocal %1273 {approx = true} : vector<8x1xf32> -> vector<8x1xf32>
    %1275 = vector.broadcast %1274 : vector<8x1xf32> to vector<8x8xf32>
    %1276 = arith.mulf %1271, %1275 : vector<8x8xf32>
    %1277 = arith.truncf %1276 : vector<8x8xf32> to vector<8x8xbf16>
    %1278 = vector.extract_strided_slice %1199 {offsets = [0, 12], sizes = [8, 4], strides = [1, 1]} : vector<8x32xbf16> to vector<8x4xbf16>
    %cst_386 = arith.constant dense<0.000000e+00> : vector<8x4xf32>
    %1279 = tpu.matmul %1277, %1278, %cst_386 {dimension_numbers = #tpu.dot_dimension_numbers<[1], [0], [0], [1], [0, 0, 1, 1], [], []>} : vector<8x8xbf16>, vector<8x4xbf16>, vector<8x4xf32> -> vector<8x4xf32>
    %1280 = vector.extract_strided_slice %1195 {offsets = [0, 16], sizes = [8, 4], strides = [1, 1]} : vector<8x32xbf16> to vector<8x4xbf16>
    %1281 = vector.extract_strided_slice %1197 {offsets = [0, 16], sizes = [8, 4], strides = [1, 1]} : vector<8x32xbf16> to vector<8x4xbf16>
    "tpu.trace_start"() <{level = 10 : i32, message = "qd,kd->qk"}> : () -> ()
    %cst_387 = arith.constant dense<0.000000e+00> : vector<8x8xf32>
    %1282 = tpu.matmul %1280, %1281, %cst_387 {dimension_numbers = #tpu.dot_dimension_numbers<[1], [1], [0], [0], [0, 0, 1, 0], [], []>} : vector<8x4xbf16>, vector<8x4xbf16>, vector<8x8xf32> -> vector<8x8xf32>
    "tpu.trace_stop"() : () -> ()
    %cst_388 = arith.constant 0.353553385 : f32
    %1283 = vector.broadcast %cst_388 : f32 to vector<8x8xf32>
    %1284 = arith.mulf %1282, %1283 : vector<8x8xf32>
    %cst_389 = arith.constant -1.000000e+09 : f32
    %1285 = vector.broadcast %cst_389 : f32 to vector<8x8xf32>
    %1286 = arith.select %5, %1285, %1284 : vector<8x8xi1>, vector<8x8xf32>
    %cst_390 = arith.constant dense<0xFF800000> : vector<8xf32>
    %1287 = vector.multi_reduction <maximumf>, %1286, %cst_390 [1] : vector<8x8xf32> to vector<8xf32>
    %1288 = vector.shape_cast %1287 : vector<8xf32> to vector<8x1xf32>
    %1289 = vector.broadcast %1288 : vector<8x1xf32> to vector<8x8xf32>
    %1290 = arith.subf %1286, %1289 : vector<8x8xf32>
    %1291 = math.exp %1290 : vector<8x8xf32>
    %cst_391 = arith.constant dense<0.000000e+00> : vector<8xf32>
    %1292 = vector.multi_reduction <add>, %1291, %cst_391 [1] : vector<8x8xf32> to vector<8xf32>
    %1293 = vector.shape_cast %1292 : vector<8xf32> to vector<8x1xf32>
    %1294 = tpu.reciprocal %1293 {approx = true} : vector<8x1xf32> -> vector<8x1xf32>
    %1295 = vector.broadcast %1294 : vector<8x1xf32> to vector<8x8xf32>
    %1296 = arith.mulf %1291, %1295 : vector<8x8xf32>
    %1297 = arith.truncf %1296 : vector<8x8xf32> to vector<8x8xbf16>
    %1298 = vector.extract_strided_slice %1199 {offsets = [0, 16], sizes = [8, 4], strides = [1, 1]} : vector<8x32xbf16> to vector<8x4xbf16>
    %cst_392 = arith.constant dense<0.000000e+00> : vector<8x4xf32>
    %1299 = tpu.matmul %1297, %1298, %cst_392 {dimension_numbers = #tpu.dot_dimension_numbers<[1], [0], [0], [1], [0, 0, 1, 1], [], []>} : vector<8x8xbf16>, vector<8x4xbf16>, vector<8x4xf32> -> vector<8x4xf32>
    %1300 = vector.extract_strided_slice %1195 {offsets = [0, 20], sizes = [8, 4], strides = [1, 1]} : vector<8x32xbf16> to vector<8x4xbf16>
    %1301 = vector.extract_strided_slice %1197 {offsets = [0, 20], sizes = [8, 4], strides = [1, 1]} : vector<8x32xbf16> to vector<8x4xbf16>
    "tpu.trace_start"() <{level = 10 : i32, message = "qd,kd->qk"}> : () -> ()
    %cst_393 = arith.constant dense<0.000000e+00> : vector<8x8xf32>
    %1302 = tpu.matmul %1300, %1301, %cst_393 {dimension_numbers = #tpu.dot_dimension_numbers<[1], [1], [0], [0], [0, 0, 1, 0], [], []>} : vector<8x4xbf16>, vector<8x4xbf16>, vector<8x8xf32> -> vector<8x8xf32>
    "tpu.trace_stop"() : () -> ()
    %cst_394 = arith.constant 0.353553385 : f32
    %1303 = vector.broadcast %cst_394 : f32 to vector<8x8xf32>
    %1304 = arith.mulf %1302, %1303 : vector<8x8xf32>
    %cst_395 = arith.constant -1.000000e+09 : f32
    %1305 = vector.broadcast %cst_395 : f32 to vector<8x8xf32>
    %1306 = arith.select %5, %1305, %1304 : vector<8x8xi1>, vector<8x8xf32>
    %cst_396 = arith.constant dense<0xFF800000> : vector<8xf32>
    %1307 = vector.multi_reduction <maximumf>, %1306, %cst_396 [1] : vector<8x8xf32> to vector<8xf32>
    %1308 = vector.shape_cast %1307 : vector<8xf32> to vector<8x1xf32>
    %1309 = vector.broadcast %1308 : vector<8x1xf32> to vector<8x8xf32>
    %1310 = arith.subf %1306, %1309 : vector<8x8xf32>
    %1311 = math.exp %1310 : vector<8x8xf32>
    %cst_397 = arith.constant dense<0.000000e+00> : vector<8xf32>
    %1312 = vector.multi_reduction <add>, %1311, %cst_397 [1] : vector<8x8xf32> to vector<8xf32>
    %1313 = vector.shape_cast %1312 : vector<8xf32> to vector<8x1xf32>
    %1314 = tpu.reciprocal %1313 {approx = true} : vector<8x1xf32> -> vector<8x1xf32>
    %1315 = vector.broadcast %1314 : vector<8x1xf32> to vector<8x8xf32>
    %1316 = arith.mulf %1311, %1315 : vector<8x8xf32>
    %1317 = arith.truncf %1316 : vector<8x8xf32> to vector<8x8xbf16>
    %1318 = vector.extract_strided_slice %1199 {offsets = [0, 20], sizes = [8, 4], strides = [1, 1]} : vector<8x32xbf16> to vector<8x4xbf16>
    %cst_398 = arith.constant dense<0.000000e+00> : vector<8x4xf32>
    %1319 = tpu.matmul %1317, %1318, %cst_398 {dimension_numbers = #tpu.dot_dimension_numbers<[1], [0], [0], [1], [0, 0, 1, 1], [], []>} : vector<8x8xbf16>, vector<8x4xbf16>, vector<8x4xf32> -> vector<8x4xf32>
    %1320 = vector.extract_strided_slice %1195 {offsets = [0, 24], sizes = [8, 4], strides = [1, 1]} : vector<8x32xbf16> to vector<8x4xbf16>
    %1321 = vector.extract_strided_slice %1197 {offsets = [0, 24], sizes = [8, 4], strides = [1, 1]} : vector<8x32xbf16> to vector<8x4xbf16>
    "tpu.trace_start"() <{level = 10 : i32, message = "qd,kd->qk"}> : () -> ()
    %cst_399 = arith.constant dense<0.000000e+00> : vector<8x8xf32>
    %1322 = tpu.matmul %1320, %1321, %cst_399 {dimension_numbers = #tpu.dot_dimension_numbers<[1], [1], [0], [0], [0, 0, 1, 0], [], []>} : vector<8x4xbf16>, vector<8x4xbf16>, vector<8x8xf32> -> vector<8x8xf32>
    "tpu.trace_stop"() : () -> ()
    %cst_400 = arith.constant 0.353553385 : f32
    %1323 = vector.broadcast %cst_400 : f32 to vector<8x8xf32>
    %1324 = arith.mulf %1322, %1323 : vector<8x8xf32>
    %cst_401 = arith.constant -1.000000e+09 : f32
    %1325 = vector.broadcast %cst_401 : f32 to vector<8x8xf32>
    %1326 = arith.select %5, %1325, %1324 : vector<8x8xi1>, vector<8x8xf32>
    %cst_402 = arith.constant dense<0xFF800000> : vector<8xf32>
    %1327 = vector.multi_reduction <maximumf>, %1326, %cst_402 [1] : vector<8x8xf32> to vector<8xf32>
    %1328 = vector.shape_cast %1327 : vector<8xf32> to vector<8x1xf32>
    %1329 = vector.broadcast %1328 : vector<8x1xf32> to vector<8x8xf32>
    %1330 = arith.subf %1326, %1329 : vector<8x8xf32>
    %1331 = math.exp %1330 : vector<8x8xf32>
    %cst_403 = arith.constant dense<0.000000e+00> : vector<8xf32>
    %1332 = vector.multi_reduction <add>, %1331, %cst_403 [1] : vector<8x8xf32> to vector<8xf32>
    %1333 = vector.shape_cast %1332 : vector<8xf32> to vector<8x1xf32>
    %1334 = tpu.reciprocal %1333 {approx = true} : vector<8x1xf32> -> vector<8x1xf32>
    %1335 = vector.broadcast %1334 : vector<8x1xf32> to vector<8x8xf32>
    %1336 = arith.mulf %1331, %1335 : vector<8x8xf32>
    %1337 = arith.truncf %1336 : vector<8x8xf32> to vector<8x8xbf16>
    %1338 = vector.extract_strided_slice %1199 {offsets = [0, 24], sizes = [8, 4], strides = [1, 1]} : vector<8x32xbf16> to vector<8x4xbf16>
    %cst_404 = arith.constant dense<0.000000e+00> : vector<8x4xf32>
    %1339 = tpu.matmul %1337, %1338, %cst_404 {dimension_numbers = #tpu.dot_dimension_numbers<[1], [0], [0], [1], [0, 0, 1, 1], [], []>} : vector<8x8xbf16>, vector<8x4xbf16>, vector<8x4xf32> -> vector<8x4xf32>
    %1340 = vector.extract_strided_slice %1195 {offsets = [0, 28], sizes = [8, 4], strides = [1, 1]} : vector<8x32xbf16> to vector<8x4xbf16>
    %1341 = vector.extract_strided_slice %1197 {offsets = [0, 28], sizes = [8, 4], strides = [1, 1]} : vector<8x32xbf16> to vector<8x4xbf16>
    "tpu.trace_start"() <{level = 10 : i32, message = "qd,kd->qk"}> : () -> ()
    %cst_405 = arith.constant dense<0.000000e+00> : vector<8x8xf32>
    %1342 = tpu.matmul %1340, %1341, %cst_405 {dimension_numbers = #tpu.dot_dimension_numbers<[1], [1], [0], [0], [0, 0, 1, 0], [], []>} : vector<8x4xbf16>, vector<8x4xbf16>, vector<8x8xf32> -> vector<8x8xf32>
    "tpu.trace_stop"() : () -> ()
    %cst_406 = arith.constant 0.353553385 : f32
    %1343 = vector.broadcast %cst_406 : f32 to vector<8x8xf32>
    %1344 = arith.mulf %1342, %1343 : vector<8x8xf32>
    %cst_407 = arith.constant -1.000000e+09 : f32
    %1345 = vector.broadcast %cst_407 : f32 to vector<8x8xf32>
    %1346 = arith.select %5, %1345, %1344 : vector<8x8xi1>, vector<8x8xf32>
    %cst_408 = arith.constant dense<0xFF800000> : vector<8xf32>
    %1347 = vector.multi_reduction <maximumf>, %1346, %cst_408 [1] : vector<8x8xf32> to vector<8xf32>
    %1348 = vector.shape_cast %1347 : vector<8xf32> to vector<8x1xf32>
    %1349 = vector.broadcast %1348 : vector<8x1xf32> to vector<8x8xf32>
    %1350 = arith.subf %1346, %1349 : vector<8x8xf32>
    %1351 = math.exp %1350 : vector<8x8xf32>
    %cst_409 = arith.constant dense<0.000000e+00> : vector<8xf32>
    %1352 = vector.multi_reduction <add>, %1351, %cst_409 [1] : vector<8x8xf32> to vector<8xf32>
    %1353 = vector.shape_cast %1352 : vector<8xf32> to vector<8x1xf32>
    %1354 = tpu.reciprocal %1353 {approx = true} : vector<8x1xf32> -> vector<8x1xf32>
    %1355 = vector.broadcast %1354 : vector<8x1xf32> to vector<8x8xf32>
    %1356 = arith.mulf %1351, %1355 : vector<8x8xf32>
    %1357 = arith.truncf %1356 : vector<8x8xf32> to vector<8x8xbf16>
    %1358 = vector.extract_strided_slice %1199 {offsets = [0, 28], sizes = [8, 4], strides = [1, 1]} : vector<8x32xbf16> to vector<8x4xbf16>
    %cst_410 = arith.constant dense<0.000000e+00> : vector<8x4xf32>
    %1359 = tpu.matmul %1357, %1358, %cst_410 {dimension_numbers = #tpu.dot_dimension_numbers<[1], [0], [0], [1], [0, 0, 1, 1], [], []>} : vector<8x8xbf16>, vector<8x4xbf16>, vector<8x4xf32> -> vector<8x4xf32>
    %1360 = tpu.concatenate %1219, %1239, %1259, %1279, %1299, %1319, %1339, %1359 in 1 : vector<8x4xf32>, vector<8x4xf32>, vector<8x4xf32>, vector<8x4xf32>, vector<8x4xf32>, vector<8x4xf32>, vector<8x4xf32>, vector<8x4xf32> -> vector<8x32xf32>
    %1361 = arith.truncf %1360 : vector<8x32xf32> to vector<8x32xbf16>
    %cst_411 = arith.constant dense<0.000000e+00> : vector<8x32xf32>
    %1362 = tpu.matmul %1361, %7, %cst_411 {dimension_numbers = #tpu.dot_dimension_numbers<[1], [0], [0], [1], [0, 0, 1, 1], [], []>} : vector<8x32xbf16>, vector<32x32xbf16>, vector<8x32xf32> -> vector<8x32xf32>
    %1363 = arith.addf %1362, %17 : vector<8x32xf32>
    %1364 = arith.addf %1363, %1190 : vector<8x32xf32>
    %cst_412 = arith.constant dense<0.000000e+00> : vector<8xf32>
    %1365 = vector.multi_reduction <add>, %1364, %cst_412 [1] : vector<8x32xf32> to vector<8xf32>
    %1366 = vector.shape_cast %1365 : vector<8xf32> to vector<8x1xf32>
    %cst_413 = arith.constant 3.200000e+01 : f32
    %1367 = vector.broadcast %cst_413 : f32 to vector<8x1xf32>
    %1368 = arith.divf %1366, %1367 : vector<8x1xf32>
    %1369 = vector.broadcast %1368 : vector<8x1xf32> to vector<8x32xf32>
    %1370 = arith.subf %1364, %1369 : vector<8x32xf32>
    %1371 = arith.mulf %1370, %1370 : vector<8x32xf32>
    %cst_414 = arith.constant dense<0.000000e+00> : vector<8xf32>
    %1372 = vector.multi_reduction <add>, %1371, %cst_414 [1] : vector<8x32xf32> to vector<8xf32>
    %1373 = vector.shape_cast %1372 : vector<8xf32> to vector<8x1xf32>
    %cst_415 = arith.constant 3.200000e+01 : f32
    %1374 = vector.broadcast %cst_415 : f32 to vector<8x1xf32>
    %1375 = arith.divf %1373, %1374 : vector<8x1xf32>
    %1376 = vector.broadcast %1368 : vector<8x1xf32> to vector<8x32xf32>
    %1377 = arith.subf %1364, %1376 : vector<8x32xf32>
    %cst_416 = arith.constant 9.99999974E-6 : f32
    %1378 = vector.broadcast %cst_416 : f32 to vector<8x1xf32>
    %1379 = arith.addf %1375, %1378 : vector<8x1xf32>
    %1380 = math.rsqrt %1379 : vector<8x1xf32>
    %1381 = vector.broadcast %1380 : vector<8x1xf32> to vector<8x32xf32>
    %1382 = arith.mulf %1377, %1381 : vector<8x32xf32>
    %1383 = arith.mulf %1382, %20 : vector<8x32xf32>
    %1384 = arith.addf %1383, %23 : vector<8x32xf32>
    %1385 = arith.truncf %1384 : vector<8x32xf32> to vector<8x32xbf16>
    %cst_417 = arith.constant dense<0.000000e+00> : vector<8x32xf32>
    %1386 = tpu.matmul %1385, %8, %cst_417 {dimension_numbers = #tpu.dot_dimension_numbers<[1], [0], [0], [1], [0, 0, 1, 1], [], []>} : vector<8x32xbf16>, vector<32x32xbf16>, vector<8x32xf32> -> vector<8x32xf32>
    %1387 = arith.addf %1386, %26 : vector<8x32xf32>
    %cst_418 = arith.constant 0.000000e+00 : f32
    %1388 = vector.broadcast %cst_418 : f32 to vector<8x32xf32>
    %1389 = arith.cmpf oge, %1387, %1388 : vector<8x32xf32>
    %cst_419 = arith.constant 0.00999999977 : f32
    %1390 = vector.broadcast %cst_419 : f32 to vector<8x32xf32>
    %1391 = arith.mulf %1390, %1387 : vector<8x32xf32>
    %1392 = arith.select %1389, %1387, %1391 : vector<8x32xi1>, vector<8x32xf32>
    %1393 = arith.truncf %1392 : vector<8x32xf32> to vector<8x32xbf16>
    %cst_420 = arith.constant dense<0.000000e+00> : vector<8x32xf32>
    %1394 = tpu.matmul %1393, %9, %cst_420 {dimension_numbers = #tpu.dot_dimension_numbers<[1], [0], [0], [1], [0, 0, 1, 1], [], []>} : vector<8x32xbf16>, vector<32x32xbf16>, vector<8x32xf32> -> vector<8x32xf32>
    %1395 = arith.addf %1394, %29 : vector<8x32xf32>
    %1396 = arith.addf %1395, %1384 : vector<8x32xf32>
    %cst_421 = arith.constant dense<0.000000e+00> : vector<8xf32>
    %1397 = vector.multi_reduction <add>, %1396, %cst_421 [1] : vector<8x32xf32> to vector<8xf32>
    %1398 = vector.shape_cast %1397 : vector<8xf32> to vector<8x1xf32>
    %cst_422 = arith.constant 3.200000e+01 : f32
    %1399 = vector.broadcast %cst_422 : f32 to vector<8x1xf32>
    %1400 = arith.divf %1398, %1399 : vector<8x1xf32>
    %1401 = vector.broadcast %1400 : vector<8x1xf32> to vector<8x32xf32>
    %1402 = arith.subf %1396, %1401 : vector<8x32xf32>
    %1403 = arith.mulf %1402, %1402 : vector<8x32xf32>
    %cst_423 = arith.constant dense<0.000000e+00> : vector<8xf32>
    %1404 = vector.multi_reduction <add>, %1403, %cst_423 [1] : vector<8x32xf32> to vector<8xf32>
    %1405 = vector.shape_cast %1404 : vector<8xf32> to vector<8x1xf32>
    %cst_424 = arith.constant 3.200000e+01 : f32
    %1406 = vector.broadcast %cst_424 : f32 to vector<8x1xf32>
    %1407 = arith.divf %1405, %1406 : vector<8x1xf32>
    %1408 = vector.broadcast %1400 : vector<8x1xf32> to vector<8x32xf32>
    %1409 = arith.subf %1396, %1408 : vector<8x32xf32>
    %cst_425 = arith.constant 9.99999974E-6 : f32
    %1410 = vector.broadcast %cst_425 : f32 to vector<8x1xf32>
    %1411 = arith.addf %1407, %1410 : vector<8x1xf32>
    %1412 = math.rsqrt %1411 : vector<8x1xf32>
    %1413 = vector.broadcast %1412 : vector<8x1xf32> to vector<8x32xf32>
    %1414 = arith.mulf %1409, %1413 : vector<8x32xf32>
    %1415 = arith.mulf %1414, %20 : vector<8x32xf32>
    %1416 = arith.addf %1415, %23 : vector<8x32xf32>
    %cst_426 = arith.constant 0.000000e+00 : f32
    %1417 = vector.broadcast %cst_426 : f32 to vector<8x32xf32>
    %1418 = arith.cmpf oge, %1416, %1417 : vector<8x32xf32>
    %cst_427 = arith.constant 0.00999999977 : f32
    %1419 = vector.broadcast %cst_427 : f32 to vector<8x32xf32>
    %1420 = arith.mulf %1419, %1416 : vector<8x32xf32>
    %1421 = arith.select %1418, %1416, %1420 : vector<8x32xi1>, vector<8x32xf32>
    %1422 = arith.truncf %1421 : vector<8x32xf32> to vector<8x32xbf16>
    %cst_428 = arith.constant dense<0.000000e+00> : vector<8x32xf32>
    %1423 = tpu.matmul %1422, %10, %cst_428 {dimension_numbers = #tpu.dot_dimension_numbers<[1], [0], [0], [1], [0, 0, 1, 1], [], []>} : vector<8x32xbf16>, vector<32x32xbf16>, vector<8x32xf32> -> vector<8x32xf32>
    %1424 = arith.addf %1423, %32 : vector<8x32xf32>
    %cst_429 = arith.constant 0.000000e+00 : f32
    %1425 = vector.broadcast %cst_429 : f32 to vector<8x32xf32>
    %1426 = arith.cmpf oge, %1424, %1425 : vector<8x32xf32>
    %cst_430 = arith.constant 0.00999999977 : f32
    %1427 = vector.broadcast %cst_430 : f32 to vector<8x32xf32>
    %1428 = arith.mulf %1427, %1424 : vector<8x32xf32>
    %1429 = arith.select %1426, %1424, %1428 : vector<8x32xi1>, vector<8x32xf32>
    %1430 = arith.truncf %1429 : vector<8x32xf32> to vector<8x32xbf16>
    %cst_431 = arith.constant dense<0.000000e+00> : vector<8x128xf32>
    %1431 = tpu.matmul %1430, %11, %cst_431 {dimension_numbers = #tpu.dot_dimension_numbers<[1], [0], [0], [1], [0, 0, 1, 1], [], []>} : vector<8x32xbf16>, vector<32x128xbf16>, vector<8x128xf32> -> vector<8x128xf32>
    %1432 = arith.addf %1431, %35 : vector<8x128xf32>
    %c0_432 = arith.constant 0 : index
    %c0_433 = arith.constant 0 : index
    %c0_434 = arith.constant 0 : index
    %1433 = vector.load %arg17[%c0_432, %c0_433, %c0_434] : memref<1x8x128xf32, #tpu.memory_space<vmem>>, vector<1x8x128xf32>
    %1434 = vector.shape_cast %1433 : vector<1x8x128xf32> to vector<8x128xf32>
    %1435 = vector.shape_cast %1432 : vector<8x128xf32> to vector<1x8x128xf32>
    tpu.vector_store %arg17[%c0_432, %c0_433, %c0_434], %1435 {strides = array<i32>} : memref<1x8x128xf32, #tpu.memory_space<vmem>>, vector<1x8x128xf32>,
    return
  }
  func.func @transform_0(%arg0: i32) -> (i32, i32, i32) {
    %c0_i32 = arith.constant 0 : i32
    %c0_i32_0 = arith.constant 0 : i32
    %c0_i32_1 = arith.constant 0 : i32
    return %arg0, %c0_i32, %c0_i32_0 : i32, i32, i32
  }
  func.func @transform_1(%arg0: i32) -> (i32, i32, i32) {
    %c0_i32 = arith.constant 0 : i32
    %c0_i32_0 = arith.constant 0 : i32
    %c0_i32_1 = arith.constant 0 : i32
    return %arg0, %c0_i32, %c0_i32_0 : i32, i32, i32
  }
  func.func @transform_2(%arg0: i32) -> (i32, i32) {
    %c0_i32 = arith.constant 0 : i32
    %c0_i32_0 = arith.constant 0 : i32
    %c0_i32_1 = arith.constant 0 : i32
    return %c0_i32, %c0_i32_0 : i32, i32
  }
  func.func @transform_3(%arg0: i32) -> (i32, i32) {
    %c0_i32 = arith.constant 0 : i32
    %c0_i32_0 = arith.constant 0 : i32
    %c0_i32_1 = arith.constant 0 : i32
    return %c0_i32, %c0_i32_0 : i32, i32
  }
  func.func @transform_4(%arg0: i32) -> (i32, i32) {
    %c0_i32 = arith.constant 0 : i32
    %c0_i32_0 = arith.constant 0 : i32
    %c0_i32_1 = arith.constant 0 : i32
    return %c0_i32, %c0_i32_0 : i32, i32
  }
  func.func @transform_5(%arg0: i32) -> (i32, i32) {
    %c0_i32 = arith.constant 0 : i32
    %c0_i32_0 = arith.constant 0 : i32
    %c0_i32_1 = arith.constant 0 : i32
    return %c0_i32, %c0_i32_0 : i32, i32
  }
  func.func @transform_6(%arg0: i32) -> (i32, i32) {
    %c0_i32 = arith.constant 0 : i32
    %c0_i32_0 = arith.constant 0 : i32
    %c0_i32_1 = arith.constant 0 : i32
    return %c0_i32, %c0_i32_0 : i32, i32
  }
  func.func @transform_7(%arg0: i32) -> (i32, i32) {
    %c0_i32 = arith.constant 0 : i32
    %c0_i32_0 = arith.constant 0 : i32
    %c0_i32_1 = arith.constant 0 : i32
    return %c0_i32, %c0_i32_0 : i32, i32
  }
  func.func @transform_8(%arg0: i32) -> (i32, i32) {
    %c0_i32 = arith.constant 0 : i32
    %c0_i32_0 = arith.constant 0 : i32
    %c0_i32_1 = arith.constant 0 : i32
    return %c0_i32, %c0_i32_0 : i32, i32
  }
  func.func @transform_9(%arg0: i32) -> (i32, i32) {
    %c0_i32 = arith.constant 0 : i32
    %c0_i32_0 = arith.constant 0 : i32
    %c0_i32_1 = arith.constant 0 : i32
    return %c0_i32, %c0_i32_0 : i32, i32
  }
  func.func @transform_10(%arg0: i32) -> (i32, i32) {
    %c0_i32 = arith.constant 0 : i32
    %c0_i32_0 = arith.constant 0 : i32
    %c0_i32_1 = arith.constant 0 : i32
    return %c0_i32, %c0_i32_0 : i32, i32
  }
  func.func @transform_11(%arg0: i32) -> (i32, i32) {
    %c0_i32 = arith.constant 0 : i32
    %c0_i32_0 = arith.constant 0 : i32
    %c0_i32_1 = arith.constant 0 : i32
    return %c0_i32, %c0_i32_0 : i32, i32
  }
  func.func @transform_12(%arg0: i32) -> (i32, i32) {
    %c0_i32 = arith.constant 0 : i32
    %c0_i32_0 = arith.constant 0 : i32
    %c0_i32_1 = arith.constant 0 : i32
    return %c0_i32, %c0_i32_0 : i32, i32
  }
  func.func @transform_13(%arg0: i32) -> (i32, i32) {
    %c0_i32 = arith.constant 0 : i32
    %c0_i32_0 = arith.constant 0 : i32
    %c0_i32_1 = arith.constant 0 : i32
    return %c0_i32, %c0_i32_0 : i32, i32
  }
  func.func @transform_14(%arg0: i32) -> (i32, i32) {
    %c0_i32 = arith.constant 0 : i32
    %c0_i32_0 = arith.constant 0 : i32
    %c0_i32_1 = arith.constant 0 : i32
    return %c0_i32, %c0_i32_0 : i32, i32
  }
  func.func @transform_15(%arg0: i32) -> (i32, i32) {
    %c0_i32 = arith.constant 0 : i32
    %c0_i32_0 = arith.constant 0 : i32
    %c0_i32_1 = arith.constant 0 : i32
    return %c0_i32, %c0_i32_0 : i32, i32
  }
  func.func @transform_16(%arg0: i32) -> (i32, i32, i32) {
    %c0_i32 = arith.constant 0 : i32
    %c0_i32_0 = arith.constant 0 : i32
    %c0_i32_1 = arith.constant 0 : i32
    return %arg0, %c0_i32, %c0_i32_0 : i32, i32, i32
  }
}

</mosaic_0001>

<bundles_post_ra>
// kernel: transformer_forward.1
= control target key start
LH: loop header
LB: loop body
LE: loop exit
PB: predicated region body
PF: predicated region fallthrough
CT: control target
= control target key end

     0   :  { %s11382_s0 = inlined_call_operand.vmem [shape: f32[2,8,32], index: 0, kind: input, shape index: {}]   ;;  %s11383_s1 = inlined_call_operand.vmem [shape: s32[2,8,8], index: 1, kind: input, shape index: {}]   ;;  %s11384_s2 = inlined_call_operand.vmem [shape: bf16[32,96], index: 2, kind: input, shape index: {}]   ;;  %s11385_s3 = inlined_call_operand.vmem [shape: f32[1,96], index: 3, kind: input, shape index: {}]   ;;  %s11386_s4 = inlined_call_operand.vmem [shape: bf16[32,32], index: 4, kind: input, shape index: {}]   ;;  %s11387_s5 = inlined_call_operand.vmem [shape: f32[1,32], index: 5, kind: input, shape index: {}]   ;;  %s11388_s6 = inlined_call_operand.vmem [shape: f32[1,32], index: 6, kind: input, shape index: {}]   ;;  %s11389_s7 = inlined_call_operand.vmem [shape: f32[1,32], index: 7, kind: input, shape index: {}]   ;;  %s11390_s8 = inlined_call_operand.vmem [shape: bf16[32,32], index: 8, kind: input, shape index: {}]   ;;  %s11391_s9 = inlined_call_operand.vmem [shape: f32[1,32], index: 9, kind: input, shape index: {}]   ;;  %s11392_s10 = inlined_call_operand.vmem [shape: bf16[32,32], index: 10, kind: input, shape index: {}]   ;;  %s11393_s11 = inlined_call_operand.vmem [shape: f32[1,32], index: 11, kind: input, shape index: {}]   ;;  %s11394_s12 = inlined_call_operand.vmem [shape: bf16[32,32], index: 12, kind: input, shape index: {}]   ;;  %s11395_s13 = inlined_call_operand.vmem [shape: f32[1,32], index: 13, kind: input, shape index: {}]   ;;  %s11396_s14 = inlined_call_operand.vmem [shape: bf16[32,128], index: 14, kind: input, shape index: {}]   ;;  %s11397_s15 = inlined_call_operand.vmem [shape: f32[1,128], index: 15, kind: input, shape index: {}]   ;;  %s11398_s16 = inlined_call_operand.hbm [shape: f32[2,8,128], index: 16, kind: output, shape index: {}]  }
   0x1   :  { %11483 = sst [smem:[#allocation14_spill]] %s11382_s0 }
   0x2   :  { %11484 = sst [smem:[#allocation15_spill]] %s11383_s1 }
   0x3   :  { %11485 = sst [smem:[#allocation16_spill]] %s11384_s2 }
   0x4   :  { %11486 = sst [smem:[#allocation17_spill]] %s11385_s3 }
   0x5   :  { %11487 = sst [smem:[#allocation18_spill]] %s11386_s4 }
   0x6   :  { %11488 = sst [smem:[#allocation19_spill]] %s11387_s5 }
   0x7   :  { %11489 = sst [smem:[#allocation20_spill]] %s11388_s6 }
   0x8   :  { %11490 = sst [smem:[#allocation21_spill]] %s11389_s7 }
   0x9   :  { %11491 = sst [smem:[#allocation22_spill]] %s11390_s8 }
   0xa   :  { %11492 = sst [smem:[#allocation23_spill]] %s11391_s9 }
   0xb   :  { %11493 = sst [smem:[#allocation24_spill]] %s11392_s10 }
   0xc   :  { %11494 = sst [smem:[#allocation25_spill]] %s11393_s11 }
   0xd   :  { %11495 = sst [smem:[#allocation26_spill]] %s11394_s12 }
   0xe   :  { %11496 = sst [smem:[#allocation27_spill]] %s11395_s13 }
   0xf   :  { %11497 = sst [smem:[#allocation28_spill]] %s11396_s14 }
  0x10   :  { %11498 = sst [smem:[#allocation29_spill]] %s11397_s15 }
  0x11   :  { %11499 = sst [smem:[#allocation30_spill]] %s11398_s16 }
  0x12   :  { %21 = vsyncpa [#allocation3], 0 }
  0x13   :  { %23 = vsyncpa [#allocation3 + $0x1], 0  ;;  %s9463_s21 = smov 0   ;;  %s9465_s22 = smov 0  }
  0x14   :  { %s9467_s23 = smov 0   ;;  %s9469_s24 = smov 0  }
  0x15 LB: > { %11500 = sst [smem:[#allocation5_spill]] %s9331_s21  ;;  %s9484_s25 = sadd.s32 4294967295, %s9343_s24   ;;  %s9343_s24 = sphi %s9469_s24, %s11600_s24   ;;  %s9339_s23 = sphi %s9467_s23, %s11603_s23   ;;  %s9335_s22 = sphi %s9465_s22, %s11602_s22   ;;  %s9331_s21 = sphi %s9463_s21, %s11601_s21  }
  0x16   : > { %11501 = sst [smem:[#allocation6_spill]] %s9335_s22  ;;  %s7747_s26 = sadd.s32 4294967294, %s9343_s24  }
  0x17   : > { %11502 = sst [smem:[#allocation7_spill]] %s9339_s23  ;;  %s9488_s27 = sadd.s32 1, %s9343_s24  }
  0x18   : > { %11503 = sst [smem:[#allocation8_spill]] %s9343_s24  ;;  %s382_s28 = sadd.s32 1, %s9339_s23 }
  0x19   : > { %11504 = sst [smem:[#allocation9_spill]] %s9484_s25  ;;  %s379_s29 = ssub.s32 %s9343_s24, %s9488_s27 }
  0x1a   : > { %11505 = sst [smem:[#allocation10_spill]] %s9488_s27  ;;  %p392_p0 = scmp.ne.s32.totalorder %s9339_s23, %s9335_s22 }
  0x1b   : > { %p380_p1 = scmp.eq.s32.totalorder %s379_s29, 0  ;;  %p393_p2 = scmp.eq.s32.totalorder %s9484_s25, 1 }
  0x1c   : > { %p398_p3 = scmp.ne.s32.totalorder %s9335_s22, %s9331_s21  ;;  %p399_p4 = scmp.eq.s32.totalorder %s7747_s26, 1 }
  0x1d   : > { %s9499_s30 = scalar_select %p380_p1, %s9339_s23, %s382_s28  }
  0x1e   : > { %p9501_p5 = por %p393_p2, %p392_p0  ;;  %p9505_p6 = por %p399_p4, %p398_p3 }
  0x1f   : > { %11506 = sst [smem:[#allocation11_spill]] %s9499_s30  ;;  %p7750_p7 = scmp.ge.s32.totalorder %s9343_s24, 1 }
  0x20   : > { %s11507_s0 = scalar_select %p9501_p5, 1, 0 }
  0x21   : > { %s11509_s17 = scalar_select %p9505_p6, 1, 0 }
  0x22   : > { %11508 = sst [smem:[#allocation12_spill]] %s11507_s0  ;;  %p473_p8 = scmp.lt.s32.totalorder %s9343_s24, 3 }
  0x23   : > { %11510 = sst [smem:[#allocation13_spill]] %s11509_s17 }
  0x24   : > { %p474_p9 = pnand %p7750_p7, %p473_p8 }
  0x25   : > { %s11511_s2 = sld [smem:[#allocation16_spill]] (!%p474_p9)  ;;  %v9345_v1 = vmov (!%p474_p9), 0.0   ;;  %vm9346_vm0 = vmmov (!%p474_p9), 0   ;;  %p526_p10 = scmp.lt.s32.totalorder (!%p474_p9), %s9484_s25, 1  ;;  %vm631_vm1 = vcmask (!%p474_p9), 261120   ;;  %vm679_vm2 = vcmask (!%p474_p9), 31744  }
  0x26   : > { %477 = sbr.rel (%p474_p9) target bundleno = 16063 (0x3ebf), region = 84  ;;  %8170 = vmatprep.subr.bf16.mxu0 (!%p474_p9), %v9345_v1  ;;  %8178 = vmatprep.subr.bf16.mxu1 (!%p474_p9), %v9345_v1  ;;  %s11512_s20 = sld [smem:[#allocation14_spill]] (!%p474_p9)  ;;  %vm728_vm4 = vcmask (!%p474_p9), 64512   ;;  %vm746_vm5 = vcmask (!%p474_p9), 1043456   ;;  %vm1604_vm6 = vcmask (!%p474_p9), 97280   ;;  %vm1606_vm7 = vcmask (!%p474_p9), 130048  }
  0x27   : > { %8174 = vmatprep.mubr.msk.bf16.mxu0 (!%p474_p9), %vm9346_vm0, %v9345_v1  ;;  %8180 = vmatprep.mubr.msk.bf16.mxu1 (!%p474_p9), %vm9346_vm0, %v9345_v1  ;;  %s11513_s3 = sld [smem:[#allocation17_spill]] (!%p474_p9)  ;;  %s11400_s18 = smov (!%p474_p9), 124   ;;  %vm1608_vm8 = vcmask (!%p474_p9), 162816   ;;  %vm1610_vm9 = vcmask (!%p474_p9), 195584   ;;  %vm1612_vm10 = vcmask (!%p474_p9), 228352  }
  0x28   : > { %s11402_s19 = smov (!%p474_p9), 96   ;;  %s11406_s23 = smov (!%p474_p9), 92  }
  0x29   : > { %s11408_s30 = smov (!%p474_p9), 84   ;;  %s11514_s1 = sld [smem:[#allocation15_spill]] (!%p474_p9) }
  0x2a   : > { %s11515_s4 = sld [smem:[#allocation18_spill]] (!%p474_p9)  ;;  %s11516_s5 = sld [smem:[#allocation19_spill]] (!%p474_p9) }
  0x2b   : > { %v9514_v0 = vld [vmem:[%s11511_s2] sm:$0xff] (!%p474_p9)   ;;  %v9522_v2 = vld [vmem:[%s11511_s2 + $0x8] sm:$0xff] (!%p474_p9)   ;;  %s11517_s8 = sld [smem:[#allocation22_spill]] (!%p474_p9)  ;;  %s11518_s6 = sld [smem:[#allocation20_spill]] (!%p474_p9) }
  0x2c   : > { %8171 = vmatpush3.bf16.msra.mxu0 (!%p474_p9), %v9514_v0  ;;  %s11519_s7 = sld [smem:[#allocation21_spill]] (!%p474_p9)  ;;  %s11520_s10 = sld [smem:[#allocation24_spill]] (!%p474_p9) }
  0x2d   : > { %8172 = vmatprep.subr.bf16.mxu0 %v9345_v1  ;;  %s9531_s28 = scalar_select %p526_p10, %s9484_s25, 1  ;;  %v9551_v5 = vld [vmem:[%s11513_s3] ss:$0 sm:$0xff] }
  0x2e   : > { %s11521_s9 = sld [smem:[#allocation23_spill]]  ;;  %s11522_s11 = sld [smem:[#allocation25_spill]] }
  0x2f   : > { %s7752_s29 = sshll.u32 %s9531_s28, 3  ;;  %s11440_s28 = smov 60  }
  0x30   : > { %8173 = vmatpush3.bf16.msra.mxu0 %v9522_v2  ;;  %s529_s26 = scalar_lea.vmem %s11512_s20, %s7752_s29  ;;  %s11404_s20 = smov 88  }
  0x31   : > { %8184 = vmatprep.subr.bf16.mxu0 %v9345_v1  ;;  %v9541_v3 = vld [vmem:[%s529_s26] sm:$0xff]  ;;  %s11410_s26 = smov 120   ;;  %s11531_s27 = smov 80  }
  0x32   : > { %v618_v4 = vpack.c.bf16 %v9541_v3, %v9541_v3  ;;  %s11532_s17 = smov 104   ;;  %s11533_s21 = smov 76  }
  0x33   : > { %s11534_s24 = smov 100   ;;  %s11535_s16 = smov 72  }
  0x34   : > { %8175 = vmatmul.mubr.msk.bf16.vlgmr.msra.gmra.mrb[0].mxu0 %vm631_vm1, %v618_v4  ;;  %s11537_s0 = smov 60   ;;  %s11538_s15 = smov 64  }
  0x35   : > { %8186 = vmatprep.mubr.msk.bf16.mxu0 %vm9346_vm0, %v9345_v1  ;;  %s11539_s13 = smov 56   ;;  %s11540_s25 = smov 52  }
  0x36   : > { %s11541_s22 = smov 44   ;;  %s11542_s14 = smov 40  }
  0x37   : > { %s11543_s12 = smov 36  }
 0x107   : > { %v669_v6 = vpop.f32.mrb[0].mxu0 }
 0x108   : > { %v670_v7 = vadd.f32 %v9551_v5, %v669_v6  ;;  %v8176_v8 = vpop.f32.mrb[1].mxu0 }
 0x109   : > { %v672_v9 = vpop.f32.mrb[2].mxu0 }
 0x10a   : > { %v9554_v10 = vpack.c.bf16 %v670_v7, %v670_v7  ;;  %v8177_v11 = vpop.f32.mrb[3].mxu0 }
 0x10c   : > { %790 = vrot.lane.b32.xlu1 %v9554_v10, %s11400_s18  ;;  %677 = vrot.lane.b32.xlu0 %v9554_v10, %s11402_s19  ;;  %s11412_s18 = smov 80   ;;  %s11414_s19 = smov 116  }
 0x110   : > { %904 = vrot.lane.b32.xlu1 %v9554_v10, %s11404_s20  ;;  %792 = vrot.lane.b32.xlu0 %v9554_v10, %s11406_s23  ;;  %s11416_s20 = smov 76   ;;  %s11464_s23 = smov 112  }
 0x114   : > { %1016 = vrot.lane.b32.xlu1 %v9554_v10, %s11408_s30  ;;  %902 = vrot.lane.b32.xlu0 %v9554_v10, %s11410_s26  ;;  %s11420_s30 = smov 72   ;;  %s11456_s26 = smov 108  }
 0x118   : > { %1128 = vrot.lane.b32.xlu1 %v9554_v10, %s11412_s18  ;;  %1014 = vrot.lane.b32.xlu0 %v9554_v10, %s11414_s19  ;;  %s11418_s18 = smov 68   ;;  %s11454_s19 = smov 104  }
 0x11c   : > { %1240 = vrot.lane.b32.xlu1 %v9554_v10, %s11416_s20  ;;  %1126 = vrot.lane.b32.xlu0 %v9554_v10, %s11464_s23  ;;  %s11422_s20 = smov 100  }
 0x120   : > { %1352 = vrot.lane.b32.xlu1 %v9554_v10, %s11420_s30  ;;  %1238 = vrot.lane.b32.xlu0 %v9554_v10, %s11456_s26  ;;  %s11436_s30 = smov 44   ;;  %s11529_s26 = smov 84  }
 0x124   : > { %1464 = vrot.lane.b32.xlu1 %v9554_v10, %s11418_s18  ;;  %1350 = vrot.lane.b32.xlu0 %v9554_v10, %s11454_s19  ;;  %s11426_s18 = smov 56   ;;  %s11523_s19 = smov 92  }
 0x128   : > { %1462 = vrot.lane.b32.xlu0 %v9554_v10, %s11422_s20  ;;  %s533_s20 = scalar_lea.vmem %s11514_s1, %s7752_s29  ;;  %s11428_s29 = smov 64  }
 0x129   : > { %v9632_v35 = vld [vmem:[%s533_s20] sm:$0xff]  ;;  %s11424_s20 = smov 52   ;;  %s11530_s1 = smov 108  }
 0x12a   : > { %vm537_vm3 = vcmp.eq.s32.totalorder %v9632_v35, 0 }
 0x17e   : > { %v678_v12 = vpop.permute.xlu0 %677  ;;  %v791_v15 = vpop.permute.xlu1 %790 }
 0x17f   : > { %v684_v13 = vsel %vm679_vm2, %v678_v12, 0 }
 0x180   : > { %8179 = vmatpush3.bf16.xpose.msra.mxu1 %v684_v13 }
 0x181   : > { %8190 = vmatprep.subr.bf16.mxu1 %v9345_v1 }
 0x182   : > { %v793_v14 = vpop.permute.xlu0 %792  ;;  %v905_v17 = vpop.permute.xlu1 %904 }
 0x183   : > { %v798_v16 = vsel %vm679_vm2, %v793_v14, 0  ;;  %v910_v18 = vsel %vm679_vm2, %v905_v17, 0 }
 0x186   : > { %v1017_v19 = vpop.permute.xlu1 %1016  ;;  %v903_v20 = vpop.permute.xlu0 %902 }
 0x187   : > { %8181 = vmatmul.mubr.msk.bf16.vlgmr.msra.gmra.mrb[0].mxu1 %vm679_vm2, %v9554_v10  ;;  %v1022_v21 = vsel %vm679_vm2, %v1017_v19, 0 }
 0x188   : > { %8191 = vmatpush3.bf16.xpose.msra.mxu1 %v798_v16  ;;  %8192 = vmatprep.mubr.msk.bf16.mxu1 %vm9346_vm0, %v9345_v1 }
 0x189   : > { %8202 = vmatprep.subr.bf16.mxu1 %v9345_v1 }
 0x18a   : > { %v1129_v22 = vpop.permute.xlu1 %1128  ;;  %v1015_v23 = vpop.permute.xlu0 %1014 }
 0x18b   : > { %v1134_v24 = vsel %vm679_vm2, %v1129_v22, 0 }
 0x18e   : > { %v1241_v25 = vpop.permute.xlu1 %1240  ;;  %v1127_v26 = vpop.permute.xlu0 %1126 }
 0x18f   : > { %8193 = vmatmul.mubr.msk.bf16.vlgmr.msra.gmra.mrb[4].mxu1 %vm679_vm2, %v791_v15  ;;  %v1246_v27 = vsel %vm679_vm2, %v1241_v25, 0 }
 0x190   : > { %8203 = vmatpush3.bf16.xpose.msra.mxu1 %v910_v18  ;;  %8204 = vmatprep.mubr.msk.bf16.mxu1 %vm9346_vm0, %v9345_v1 }
 0x191   : > { %8214 = vmatprep.subr.bf16.mxu1 %v9345_v1 }
 0x192   : > { %v1353_v28 = vpop.permute.xlu1 %1352  ;;  %v1239_v29 = vpop.permute.xlu0 %1238 }
 0x193   : > { %v1358_v30 = vsel %vm679_vm2, %v1353_v28, 0 }
 0x196   : > { %v1465_v31 = vpop.permute.xlu1 %1464  ;;  %v1351_v32 = vpop.permute.xlu0 %1350 }
 0x197   : > { %8205 = vmatmul.mubr.msk.bf16.vlgmr.msra.gmra.mrb[8].mxu1 %vm679_vm2, %v903_v20  ;;  %v1470_v33 = vsel %vm679_vm2, %v1465_v31, 0 }
 0x198   : > { %8215 = vmatpush3.bf16.xpose.msra.mxu1 %v1022_v21  ;;  %8216 = vmatprep.mubr.msk.bf16.mxu1 %vm9346_vm0, %v9345_v1 }
 0x199   : > { %8226 = vmatprep.subr.bf16.mxu1 %v9345_v1 }
 0x19a   : > { %v1463_v34 = vpop.permute.xlu0 %1462 }
 0x19f   : > { %8217 = vmatmul.mubr.msk.bf16.vlgmr.msra.gmra.mrb[12].mxu1 %vm679_vm2, %v1015_v23 }
 0x1a0   : > { %8227 = vmatpush3.bf16.xpose.msra.mxu1 %v1134_v24  ;;  %8228 = vmatprep.mubr.msk.bf16.mxu1 %vm9346_vm0, %v9345_v1 }
 0x1a1   : > { %8238 = vmatprep.subr.bf16.mxu1 %v9345_v1 }
 0x1a7   : > { %8229 = vmatmul.mubr.msk.bf16.vlgmr.msra.gmra.mrb[16].mxu1 %vm679_vm2, %v1127_v26 }
 0x1a8   : > { %8239 = vmatpush3.bf16.xpose.msra.mxu1 %v1246_v27  ;;  %8240 = vmatprep.mubr.msk.bf16.mxu1 %vm9346_vm0, %v9345_v1 }
 0x1a9   : > { %8250 = vmatprep.subr.bf16.mxu1 %v9345_v1 }
 0x1af   : > { %8241 = vmatmul.mubr.msk.bf16.vlgmr.msra.gmra.mrb[20].mxu1 %vm679_vm2, %v1239_v29 }
 0x1b0   : > { %8251 = vmatpush3.bf16.xpose.msra.mxu1 %v1358_v30  ;;  %8252 = vmatprep.mubr.msk.bf16.mxu1 %vm9346_vm0, %v9345_v1 }
 0x1b1   : > { %8262 = vmatprep.subr.bf16.mxu1 %v9345_v1 }
 0x1b7   : > { %8253 = vmatmul.mubr.msk.bf16.vlgmr.msra.gmra.mrb[24].mxu1 %vm679_vm2, %v1351_v32 }
 0x1b8   : > { %8263 = vmatpush3.bf16.xpose.msra.mxu1 %v1470_v33  ;;  %8264 = vmatprep.mubr.msk.bf16.mxu1 %vm9346_vm0, %v9345_v1 }
 0x1b9   : > { %8274 = vmatprep.subr.bf16.mxu1 %v9345_v1 }
 0x1bf   : > { %8265 = vmatmul.mubr.msk.bf16.vlgmr.msra.gmra.mrb[28].mxu1 %vm679_vm2, %v1463_v34 }
 0x1c0   : > { %8278 = vmatprep.mubr.msk.bf16.mxu1 %vm9346_vm0, %v9345_v1 }
 0x25a   : > { %v720_v36 = vpop.f32.mrb[0].mxu1 }
 0x25b   : > { %v726_v37 = vmul.f32 0.35355338, %v720_v36  ;;  %v8182_v38 = vpop.f32.mrb[1].mxu1 }
 0x25c   : > { %v723_v39 = vpop.f32.mrb[2].mxu1 }
 0x25d   : > { %v8183_v40 = vpop.f32.mrb[3].mxu1  ;;  %v9637_v41 = vsel %vm537_vm3, -1e+09, %v726_v37 }
 0x25e   : > { %v729_v42 = vsel %vm728_vm4, %v9637_v41, -inf }
 0x25f   : > { %730 = vmax.xlane.f32.xlu1 %v729_v42 }
 0x262   : > { %v834_v43 = vpop.f32.mrb[4].mxu1 }
 0x263   : > { %v840_v44 = vmul.f32 0.35355338, %v834_v43  ;;  %v8194_v45 = vpop.f32.mrb[5].mxu1 }
 0x264   : > { %v837_v46 = vpop.f32.mrb[6].mxu1 }
 0x265   : > { %v8195_v47 = vpop.f32.mrb[7].mxu1  ;;  %v9643_v48 = vsel %vm537_vm3, -1e+09, %v840_v44 }
 0x266   : > { %v842_v49 = vsel %vm728_vm4, %v9643_v48, -inf }
 0x267   : > { %843 = vmax.xlane.f32.xlu0 %v842_v49 }
 0x26a   : > { %v946_v50 = vpop.f32.mrb[8].mxu1 }
 0x26b   : > { %v952_v51 = vmul.f32 0.35355338, %v946_v50  ;;  %v8206_v52 = vpop.f32.mrb[9].mxu1 }
 0x26c   : > { %v949_v53 = vpop.f32.mrb[10].mxu1 }
 0x26d   : > { %v8207_v54 = vpop.f32.mrb[11].mxu1  ;;  %v953_v55 = vsel %vm537_vm3, -1e+09, %v952_v51 }
 0x26e   : > { %v954_v56 = vsel %vm728_vm4, %v953_v55, -inf }
 0x26f   : > { %955 = vmax.xlane.f32.xlu0 %v954_v56 }
 0x272   : > { %v1058_v57 = vpop.f32.mrb[12].mxu1 }
 0x273   : > { %v1064_v58 = vmul.f32 0.35355338, %v1058_v57  ;;  %v8218_v59 = vpop.f32.mrb[13].mxu1 }
 0x274   : > { %v1061_v60 = vpop.f32.mrb[14].mxu1 }
 0x275   : > { %v8219_v61 = vpop.f32.mrb[15].mxu1  ;;  %v1065_v62 = vsel %vm537_vm3, -1e+09, %v1064_v58 }
 0x276   : > { %v1066_v63 = vsel %vm728_vm4, %v1065_v62, -inf }
 0x277   : > { %1067 = vmax.xlane.f32.xlu1 %v1066_v63 }
 0x27a   : > { %v1170_v4 = vpop.f32.mrb[16].mxu1 }
 0x27b   : > { %v1176_v6 = vmul.f32 0.35355338, %v1170_v4  ;;  %v8230_v7 = vpop.f32.mrb[17].mxu1 }
 0x27c   : > { %v1173_v8 = vpop.f32.mrb[18].mxu1 }
 0x27d   : > { %v8231_v9 = vpop.f32.mrb[19].mxu1  ;;  %v1177_v11 = vsel %vm537_vm3, -1e+09, %v1176_v6 }
 0x27e   : > { %v1178_v12 = vsel %vm728_vm4, %v1177_v11, -inf }
 0x27f   : > { %1179 = vmax.xlane.f32.xlu0 %v1178_v12 }
 0x282   : > { %v1282_v13 = vpop.f32.mrb[20].mxu1 }
 0x283   : > { %v1288_v14 = vmul.f32 0.35355338, %v1282_v13  ;;  %v8242_v15 = vpop.f32.mrb[21].mxu1 }
 0x284   : > { %v1285_v16 = vpop.f32.mrb[22].mxu1 }
 0x285   : > { %v8243_v17 = vpop.f32.mrb[23].mxu1  ;;  %v9658_v18 = vsel %vm537_vm3, -1e+09, %v1288_v14 }
 0x286   : > { %v1290_v19 = vsel %vm728_vm4, %v9658_v18, -inf }
 0x287   : > { %1291 = vmax.xlane.f32.xlu1 %v1290_v19 }
 0x28a   : > { %v1394_v20 = vpop.f32.mrb[24].mxu1 }
 0x28b   : > { %v1400_v21 = vmul.f32 0.35355338, %v1394_v20  ;;  %v8254_v22 = vpop.f32.mrb[25].mxu1 }
 0x28c   : > { %v1397_v23 = vpop.f32.mrb[26].mxu1 }
 0x28d   : > { %v8255_v24 = vpop.f32.mrb[27].mxu1  ;;  %v1401_v25 = vsel %vm537_vm3, -1e+09, %v1400_v21 }
 0x28e   : > { %v1402_v26 = vsel %vm728_vm4, %v1401_v25, -inf }
 0x28f   : > { %1403 = vmax.xlane.f32.xlu0 %v1402_v26 }
 0x292   : > { %v1506_v27 = vpop.f32.mrb[28].mxu1 }
 0x293   : > { %v8266_v28 = vpop.f32.mrb[29].mxu1  ;;  %v1512_v31 = vmul.f32 0.35355338, %v1506_v27 }
 0x294   : > { %v1509_v29 = vpop.f32.mrb[30].mxu1 }
 0x295   : > { %v8267_v30 = vpop.f32.mrb[31].mxu1  ;;  %v9671_v32 = vsel %vm537_vm3, -1e+09, %v1512_v31 }
 0x296   : > { %v1514_v33 = vsel %vm728_vm4, %v9671_v32, -inf }
 0x298   : > { %854 = vrot.lane.b32.xlu1 %v9554_v10, %s11440_s28  ;;  %s11450_s28 = smov 24  }
 0x2a5   : > { %741 = vrot.lane.b32.xlu0 %v9554_v10, %s11428_s29  ;;  %s11430_s29 = smov 48  }
 0x2bc   : > { %1515 = vmax.xlane.f32.xlu1 %v1514_v33 }
 0x2cd   : > { %966 = vrot.lane.b32.xlu1 %v9554_v10, %s11426_s18  ;;  %s11432_s18 = smov 36  }
 0x2ec   : > { %v731_v34 = vpop.xlane.xlu1 %730 }
 0x2ed   : > { %v732_v36 = vsub.f32 %v9637_v41, %v731_v34 }
 0x2ef   : > { %v733_v37 = vmul.f32 1.442695, %v732_v36 }
 0x2f1   : > { %9037 = vpow2.f32 %v733_v37 }
 0x2f4   : > { %v844_v38 = vpop.xlane.xlu0 %843 }
 0x2f5   : > { %v845_v39 = vsub.f32 %v9643_v48, %v844_v38 }
 0x2f7   : > { %v846_v40 = vmul.f32 1.442695, %v845_v39 }
 0x2f9   : > { %9039 = vpow2.f32 %v846_v40 }
 0x2fb   : > { %v9679_v42 = vpop.eup %9037 }
 0x2fc   : > { %v956_v43 = vpop.xlane.xlu0 %955  ;;  %v735_v44 = vsel %vm728_vm4, %v9679_v42, 0.0 }
 0x2fd   : > { %v957_v45 = vsub.f32 %v953_v55, %v956_v43  ;;  %736 = vadd.xlane.f32.xlu0 %v735_v44 }
 0x2ff   : > { %v958_v46 = vmul.f32 1.442695, %v957_v45 }
 0x301   : > { %9041 = vpow2.f32 %v958_v46 }
 0x303   : > { %v9683_v47 = vpop.eup %9039 }
 0x304   : > { %v1068_v41 = vpop.xlane.xlu1 %1067  ;;  %v848_v49 = vsel %vm728_vm4, %v9683_v47, 0.0 }
 0x305   : > { %v1069_v50 = vsub.f32 %v1065_v62, %v1068_v41  ;;  %849 = vadd.xlane.f32.xlu1 %v848_v49 }
 0x307   : > { %v1070_v48 = vmul.f32 1.442695, %v1069_v50 }
 0x309   : > { %9043 = vpow2.f32 %v1070_v48 }
 0x30b   : > { %v9687_v51 = vpop.eup %9041 }
 0x30c   : > { %v1180_v52 = vpop.xlane.xlu0 %1179  ;;  %v960_v53 = vsel %vm728_vm4, %v9687_v51, 0.0 }
 0x30d   : > { %v1181_v54 = vsub.f32 %v1177_v11, %v1180_v52  ;;  %961 = vadd.xlane.f32.xlu0 %v960_v53 }
 0x30f   : > { %v1182_v55 = vmul.f32 1.442695, %v1181_v54 }
 0x311   : > { %9045 = vpow2.f32 %v1182_v55 }
 0x313   : > { %v9691_v56 = vpop.eup %9043 }
 0x314   : > { %v1072_v57 = vsel %vm728_vm4, %v9691_v56, 0.0  ;;  %v1292_v6 = vpop.xlane.xlu1 %1291 }
 0x315   : > { %1073 = vadd.xlane.f32.xlu1 %v1072_v57  ;;  %v1293_v8 = vsub.f32 %v9658_v18, %v1292_v6 }
 0x317   : > { %v1294_v11 = vmul.f32 1.442695, %v1293_v8 }
 0x318   : > { %v855_v14 = vpop.permute.xlu1 %854 }
 0x319   : > { %v860_v26 = vsel %vm746_vm5, %v855_v14, 0 }
 0x31b   : > { %v9695_v58 = vpop.eup %9045 }
 0x31c   : > { %v1404_v59 = vpop.xlane.xlu0 %1403  ;;  %v1184_v60 = vsel %vm728_vm4, %v9695_v58, 0.0 }
 0x31d   : > { %v1405_v61 = vsub.f32 %v1401_v25, %v1404_v59  ;;  %1185 = vadd.xlane.f32.xlu1 %v1184_v60 }
 0x31f   : > { %v1406_v62 = vmul.f32 1.442695, %v1405_v61 }
 0x320   : > { %v742_v63 = vpop.permute.xlu0 %741 }
 0x321   : > { %9047 = vpow2.f32 %v1406_v62  ;;  %v748_v4 = vsel %vm746_vm5, %v742_v63, 0 }
 0x322   : > { %8185 = vmatpush3.bf16.msra.mxu0 %v748_v4  ;;  %9049 = vpow2.f32 %v1294_v11 }
 0x323   : > { %1078 = vrot.lane.b32.xlu0 %v9554_v10, %s11424_s20  ;;  %8196 = vmatprep.subr.bf16.mxu0 %v9345_v1  ;;  %s11434_s20 = smov 40  }
 0x32b   : > { %v9703_v7 = vpop.eup %9047 }
 0x32c   : > { %v1408_v9 = vsel %vm728_vm4, %v9703_v7, 0.0  ;;  %v9708_v12 = vpop.eup %9049 }
 0x32d   : > { %1409 = vadd.xlane.f32.xlu1 %v1408_v9  ;;  %v1296_v13 = vsel %vm728_vm4, %v9708_v12, 0.0 }
 0x342   : > { %1297 = vadd.xlane.f32.xlu0 %v1296_v13 }
 0x349   : > { %v1516_v15 = vpop.xlane.xlu1 %1515 }
 0x34a   : > { %v1517_v16 = vsub.f32 %v9671_v32, %v1516_v15 }
 0x34c   : > { %v1518_v17 = vmul.f32 1.442695, %v1517_v16 }
 0x34d   : > { %v967_v21 = vpop.permute.xlu1 %966 }
 0x34e   : > { %9051 = vpow2.f32 %v1518_v17  ;;  %v972_v30 = vsel %vm746_vm5, %v967_v21, 0 }
 0x358   : > { %v9713_v19 = vpop.eup %9051  ;;  %1302 = vrot.lane.b32.xlu0 %v9554_v10, %s11436_s30  ;;  %s11444_s30 = smov 16  }
 0x359   : > { %v1520_v18 = vsel %vm728_vm4, %v9713_v19, 0.0 }
 0x35a   : > { %1521 = vadd.xlane.f32.xlu1 %v1520_v18 }
 0x35c   : > { %1414 = vrot.lane.b32.xlu0 %v9554_v10, %s11434_s20  ;;  %s11442_s20 = smov 12  }
 0x360   : > { %1526 = vrot.lane.b32.xlu0 %v9554_v10, %s11432_s18  ;;  %s11446_s18 = smov 8  }
 0x36b   : > { %1190 = vrot.lane.b32.xlu1 %v9554_v10, %s11430_s29  ;;  %s11438_s29 = smov 4  }
 0x38a   : > { %v737_v20 = vpop.xlane.xlu0 %736 }
 0x38b   : > { %9053 = vrcp.f32 %v737_v20 }
 0x392   : > { %v850_v22 = vpop.xlane.xlu1 %849 }
 0x393   : > { %9055 = vrcp.f32 %v850_v22 }
 0x395   : > { %v9054_v23 = vpop.eup %9053 }
 0x396   : > { %v739_v24 = vmul.f32 %v9054_v23, %v9679_v42 }
 0x398   : > { %v740_v25 = vpack.c.bf16 %v739_v24, %v739_v24 }
 0x39a   : > { %8187 = vmatmul.mubr.msk.bf16.vlgmr.msra.gmra.mrb[4].mxu0 %vm728_vm4, %v740_v25  ;;  %v962_v27 = vpop.xlane.xlu0 %961 }
 0x39b   : > { %8197 = vmatpush3.bf16.msra.mxu0 %v860_v26  ;;  %9057 = vrcp.f32 %v962_v27  ;;  %8198 = vmatprep.mubr.msk.bf16.mxu0 %vm9346_vm0, %v9345_v1  ;;  %v9778_v27 = vld [vmem:[%s11515_s4] sm:$0xff]  }
 0x39c   : > { %8208 = vmatprep.subr.bf16.mxu0 %v9345_v1  ;;  %8275 = vmatpush3.bf16.msra.mxu1 %v9778_v27 }
 0x39d   : > { %v9056_v10 = vpop.eup %9055  ;;  %8276 = vmatprep.subr.bf16.mxu1 %v9345_v1 }
 0x39e   : > { %v852_v28 = vmul.f32 %v9056_v10, %v9683_v47  ;;  %v1079_v34 = vpop.permute.xlu0 %1078 }
 0x39f   : > { %v1084_v37 = vsel %vm746_vm5, %v1079_v34, 0 }
 0x3a0   : > { %v853_v29 = vpack.c.bf16 %v852_v28, %v852_v28 }
 0x3a2   : > { %v1074_v31 = vpop.xlane.xlu1 %1073  ;;  %8199 = vmatmul.mubr.msk.bf16.vlgmr.msra.gmra.mrb[8].mxu0 %vm728_vm4, %v853_v29 }
 0x3a3   : > { %9059 = vrcp.f32 %v1074_v31  ;;  %8209 = vmatpush3.bf16.msra.mxu0 %v972_v30  ;;  %8210 = vmatprep.mubr.msk.bf16.mxu0 %vm9346_vm0, %v9345_v1  ;;  %v9786_v31 = vld [vmem:[%s11515_s4 + $0x8] sm:$0xff]  }
 0x3a4   : > { %8220 = vmatprep.subr.bf16.mxu0 %v9345_v1  ;;  %8277 = vmatpush3.bf16.msra.mxu1 %v9786_v31 }
 0x3a5   : > { %v9058_v32 = vpop.eup %9057  ;;  %8290 = vmatprep.subr.bf16.mxu1 %v9345_v1 }
 0x3a6   : > { %v964_v33 = vmul.f32 %v9058_v32, %v9687_v51 }
 0x3a8   : > { %v965_v36 = vpack.c.bf16 %v964_v33, %v964_v33 }
 0x3aa   : > { %8211 = vmatmul.mubr.msk.bf16.vlgmr.msra.gmra.mrb[12].mxu0 %vm728_vm4, %v965_v36  ;;  %v1186_v42 = vpop.xlane.xlu1 %1185 }
 0x3ab   : > { %8221 = vmatpush3.bf16.msra.mxu0 %v1084_v37  ;;  %8222 = vmatprep.mubr.msk.bf16.mxu0 %vm9346_vm0, %v9345_v1  ;;  %9061 = vrcp.f32 %v1186_v42 }
 0x3ac   : > { %8232 = vmatprep.subr.bf16.mxu0 %v9345_v1 }
 0x3ad   : > { %v9060_v38 = vpop.eup %9059 }
 0x3ae   : > { %v1076_v39 = vmul.f32 %v9060_v38, %v9691_v56 }
 0x3b0   : > { %v1077_v40 = vpack.c.bf16 %v1076_v39, %v1076_v39 }
 0x3b2   : > { %8223 = vmatmul.mubr.msk.bf16.vlgmr.msra.gmra.mrb[16].mxu0 %vm728_vm4, %v1077_v40 }
 0x3b3   : > { %8234 = vmatprep.mubr.msk.bf16.mxu0 %vm9346_vm0, %v9345_v1 }
 0x3b5   : > { %v9062_v45 = vpop.eup %9061 }
 0x3b6   : > { %v1188_v47 = vmul.f32 %v9062_v45, %v9695_v58 }
 0x3b8   : > { %v1189_v48 = vpack.c.bf16 %v1188_v47, %v1188_v47 }
 0x3ba   : > { %v1410_v44 = vpop.xlane.xlu1 %1409 }
 0x3cf   : > { %v1298_v43 = vpop.xlane.xlu0 %1297 }
 0x3d0   : > { %9063 = vrcp.f32 %v1298_v43 }
 0x3d1   : > { %9065 = vrcp.f32 %v1410_v44 }
 0x3d3   : > { %v1303_v50 = vpop.permute.xlu0 %1302 }
 0x3d4   : > { %v1308_v52 = vsel %vm746_vm5, %v1303_v50, 0 }
 0x3d7   : > { %v1415_v54 = vpop.permute.xlu0 %1414 }
 0x3d8   : > { %v1420_v57 = vsel %vm746_vm5, %v1415_v54, 0 }
 0x3da   : > { %v9064_v51 = vpop.eup %9063 }
 0x3db   : > { %v1300_v53 = vmul.f32 %v9064_v51, %v9708_v12  ;;  %v9066_v56 = vpop.eup %9065  ;;  %v1527_v59 = vpop.permute.xlu0 %1526 }
 0x3dc   : > { %v1412_v58 = vmul.f32 %v9066_v56, %v9703_v7  ;;  %v1532_v62 = vsel %vm746_vm5, %v1527_v59, 0  ;;  %v9805_v56 = vld [vmem:[%s11516_s5] ss:$0 sm:$0xff]  ;;  %s11548_s5 = smov 16  }
 0x3dd   : > { %v1301_v55 = vpack.c.bf16 %v1300_v53, %v1300_v53 }
 0x3de   : > { %v1413_v60 = vpack.c.bf16 %v1412_v58, %v1412_v58 }
 0x3e7   : > { %v1522_v46 = vpop.xlane.xlu1 %1521 }
 0x3e8   : > { %9067 = vrcp.f32 %v1522_v46 }
 0x3eb   : > { %v1191_v41 = vpop.permute.xlu1 %1190 }
 0x3ec   : > { %v1196_v49 = vsel %vm746_vm5, %v1191_v41, 0 }
 0x3ed   : > { %8233 = vmatpush3.bf16.msra.mxu0 %v1196_v49 }
 0x3ee   : > { %8244 = vmatprep.subr.bf16.mxu0 %v9345_v1 }
 0x3f0   : > { %8235 = vmatmul.mubr.msk.bf16.vlgmr.msra.gmra.mrb[20].mxu0 %vm728_vm4, %v1189_v48 }
 0x3f1   : > { %8245 = vmatpush3.bf16.msra.mxu0 %v1308_v52  ;;  %8246 = vmatprep.mubr.msk.bf16.mxu0 %vm9346_vm0, %v9345_v1 }
 0x3f2   : > { %8256 = vmatprep.subr.bf16.mxu0 %v9345_v1  ;;  %v9068_v61 = vpop.eup %9067 }
 0x3f3   : > { %v1524_v63 = vmul.f32 %v9068_v61, %v9713_v19 }
 0x3f5   : > { %v1525_v4 = vpack.c.bf16 %v1524_v63, %v1524_v63 }
 0x3f8   : > { %8247 = vmatmul.mubr.msk.bf16.vlgmr.msra.gmra.mrb[24].mxu0 %vm728_vm4, %v1301_v55 }
 0x3f9   : > { %8257 = vmatpush3.bf16.msra.mxu0 %v1420_v57  ;;  %8258 = vmatprep.mubr.msk.bf16.mxu0 %vm9346_vm0, %v9345_v1 }
 0x3fa   : > { %8268 = vmatprep.subr.bf16.mxu0 %v9345_v1 }
 0x400   : > { %8259 = vmatmul.mubr.msk.bf16.vlgmr.msra.gmra.mrb[28].mxu0 %vm728_vm4, %v1413_v60 }
 0x401   : > { %8269 = vmatpush3.bf16.msra.mxu0 %v1532_v62  ;;  %8270 = vmatprep.mubr.msk.bf16.mxu0 %vm9346_vm0, %v9345_v1 }
 0x402   : > { %8282 = vmatprep.subr.bf16.mxu0 %v9345_v1 }
 0x408   : > { %8271 = vmatmul.mubr.msk.bf16.vlgmr.msra.gmra.mrb[32].mxu0 %vm728_vm4, %v1525_v4 }
 0x409   : > { %8286 = vmatprep.mubr.msk.bf16.mxu0 %vm9346_vm0, %v9345_v1 }
 0x46d   : > { %v784_v6 = vpop.f32.mrb[4].mxu0 }
 0x46e   : > { %v8188_v7 = vpop.f32.mrb[5].mxu0 }
 0x46f   : > { %v787_v8 = vpop.f32.mrb[6].mxu0 }
 0x470   : > { %v8189_v9 = vpop.f32.mrb[7].mxu0 }
 0x475   : > { %v896_v11 = vpop.f32.mrb[8].mxu0 }
 0x476   : > { %1575 = vrot.lane.b32.xlu1 %v896_v11, %s11438_s29  ;;  %v8200_v12 = vpop.f32.mrb[9].mxu0  ;;  %s11448_s29 = smov 28   ;;  %v9814_v11 = vld [vmem:[%s11517_s8] sm:$0xff]  }
 0x477   : > { %v899_v13 = vpop.f32.mrb[10].mxu0  ;;  %8283 = vmatpush3.bf16.msra.mxu0 %v9814_v11 }
 0x478   : > { %v8201_v14 = vpop.f32.mrb[11].mxu0  ;;  %8284 = vmatprep.subr.bf16.mxu0 %v9345_v1 }
 0x47d   : > { %v1008_v15 = vpop.f32.mrb[12].mxu0 }
 0x47e   : > { %1579 = vrot.lane.b32.xlu0 %v1008_v15, %s11446_s18  ;;  %v8212_v16 = vpop.f32.mrb[13].mxu0  ;;  %s11527_s18 = smov 116  }
 0x47f   : > { %v1011_v17 = vpop.f32.mrb[14].mxu0  ;;  %v9828_v16 = vld [vmem:[%s11518_s6] ss:$0 sm:$0xff]  ;;  %s11547_s6 = smov 12  }
 0x480   : > { %v8213_v19 = vpop.f32.mrb[15].mxu0 }
 0x481   : > { %v9833_v19 = vld [vmem:[%s11519_s7] ss:$0 sm:$0xff]  ;;  %s11546_s7 = smov 8  }
 0x485   : > { %v1120_v18 = vpop.f32.mrb[16].mxu0 }
 0x486   : > { %1583 = vrot.lane.b32.xlu1 %v1120_v18, %s11442_s20  ;;  %v8224_v20 = vpop.f32.mrb[17].mxu0  ;;  %s11452_s20 = smov 20  }
 0x487   : > { %v1123_v21 = vpop.f32.mrb[18].mxu0 }
 0x488   : > { %v8225_v22 = vpop.f32.mrb[19].mxu0 }
 0x489   : > { %v9847_v22 = vld [vmem:[%s11520_s10] sm:$0xff]  }
 0x4c3   : > { %v1232_v23 = vpop.f32.mrb[20].mxu0 }
 0x4c4   : > { %1587 = vrot.lane.b32.xlu0 %v1232_v23, %s11444_s30  ;;  %v8236_v24 = vpop.f32.mrb[21].mxu0  ;;  %s11528_s30 = smov 88  }
 0x4c5   : > { %v1235_v25 = vpop.f32.mrb[22].mxu0 }
 0x4c6   : > { %v8237_v26 = vpop.f32.mrb[23].mxu0 }
 0x4cb   : > { %v1344_v10 = vpop.f32.mrb[24].mxu0 }
 0x4cc   : > { %1591 = vrot.lane.b32.xlu1 %v1344_v10, %s11452_s20  ;;  %v8248_v28 = vpop.f32.mrb[25].mxu0  ;;  %s11524_s20 = smov 96  }
 0x4cd   : > { %v1347_v29 = vpop.f32.mrb[26].mxu0 }
 0x4ce   : > { %v8249_v30 = vpop.f32.mrb[27].mxu0 }
 0x4d3   : > { %v1456_v32 = vpop.f32.mrb[28].mxu0 }
 0x4d4   : > { %1595 = vrot.lane.b32.xlu0 %v1456_v32, %s11450_s28  ;;  %v8260_v33 = vpop.f32.mrb[29].mxu0  ;;  %v9870_v32 = vld [vmem:[%s11522_s11] ss:$0 sm:$0xff]  ;;  %s11525_s28 = smov 120   ;;  %s11544_s11 = smov 48  }
 0x4d5   : > { %v1459_v34 = vpop.f32.mrb[30].mxu0 }
 0x4d6   : > { %v8261_v36 = vpop.f32.mrb[31].mxu0 }
 0x4db   : > { %v1568_v37 = vpop.f32.mrb[32].mxu0 }
 0x4dc   : > { %1599 = vrot.lane.b32.xlu1 %v1568_v37, %s11448_s29  ;;  %v8272_v38 = vpop.f32.mrb[33].mxu0  ;;  %s11526_s29 = smov 124  }
 0x4dd   : > { %v1571_v39 = vpop.f32.mrb[34].mxu0 }
 0x4de   : > { %v8273_v40 = vpop.f32.mrb[35].mxu0 }
 0x4e8   : > { %v1576_v42 = vpop.permute.xlu1 %1575 }
 0x4e9   : > { %v1602_v46 = vsel %vm679_vm2, %v784_v6, %v1576_v42 }
 0x4f0   : > { %v1580_v43 = vpop.permute.xlu0 %1579 }
 0x4f1   : > { %v1603_v47 = vsel %vm728_vm4, %v1602_v46, %v1580_v43 }
 0x4f8   : > { %v1584_v44 = vpop.permute.xlu1 %1583 }
 0x4f9   : > { %v1605_v49 = vsel %vm1604_vm6, %v1603_v47, %v1584_v44 }
 0x536   : > { %v1588_v45 = vpop.permute.xlu0 %1587 }
 0x537   : > { %v1607_v48 = vsel %vm1606_vm7, %v1605_v49, %v1588_v45 }
 0x53e   : > { %v1592_v41 = vpop.permute.xlu1 %1591 }
 0x53f   : > { %v1609_v51 = vsel %vm1608_vm8, %v1607_v48, %v1592_v41 }
 0x546   : > { %v1596_v50 = vpop.permute.xlu0 %1595 }
 0x547   : > { %v1611_v52 = vsel %vm1610_vm9, %v1609_v51, %v1596_v50 }
 0x54e   : > { %v1600_v53 = vpop.permute.xlu1 %1599 }
 0x54f   : > { %v1613_v54 = vsel %vm1612_vm10, %v1611_v52, %v1600_v53 }
 0x550   : > { %v1614_v55 = vpack.c.bf16 %v1613_v54, %v1613_v54 }
 0x552   : > { %8279 = vmatmul.mubr.msk.bf16.vlgmr.msra.gmra.mrb[32].mxu1 %vm631_vm1, %v1614_v55 }
 0x553   : > { %8294 = vmatprep.mubr.msk.bf16.mxu1 %vm9346_vm0, %v9345_v1  ;;  %8291 = vmatpush3.bf16.msra.mxu1 %v9847_v22 }
 0x554   : > { %8292 = vmatprep.subr.bf16.mxu1 %v9345_v1 }
 0x625   : > { %v1664_v57 = vpop.f32.mrb[32].mxu1 }
 0x626   : > { %v1665_v58 = vadd.f32 %v9805_v56, %v1664_v57  ;;  %v8280_v59 = vpop.f32.mrb[33].mxu1 }
 0x627   : > { %v1667_v60 = vpop.f32.mrb[34].mxu1 }
 0x628   : > { %v8281_v61 = vpop.f32.mrb[35].mxu1  ;;  %v1670_v62 = vadd.f32 %v1665_v58, %v9541_v3  ;;  %v9820_v3 = vld [vmem:[%s11517_s8 + $0x8] sm:$0xff]  }
 0x629   : > { %8285 = vmatpush3.bf16.msra.mxu0 %v9820_v3 }
 0x62a   : > { %v1671_v63 = vsel %vm631_vm1, %v1670_v62, 0.0  ;;  %8298 = vmatprep.subr.bf16.mxu0 %v9345_v1 }
 0x62b   : > { %1672 = vadd.xlane.f32.xlu0 %v1671_v63 }
 0x6b8   : > { %v1673_v4 = vpop.xlane.xlu0 %1672 }
 0x6b9   : > { %v1675_v6 = vmul.f32 0.03125, %v1673_v4 }
 0x6bb   : > { %v1676_v7 = vsub.f32 %v1670_v62, %v1675_v6 }
 0x6bd   : > { %v1677_v8 = vmul.f32 %v1676_v7, %v1676_v7 }
 0x6bf   : > { %v1678_v9 = vsel %vm631_vm1, %v1677_v8, 0.0 }
 0x6c0   : > { %1679 = vadd.xlane.f32.xlu1 %v1678_v9 }
 0x74d   : > { %v1680_v12 = vpop.xlane.xlu1 %1679 }
 0x74e   : > { %v1681_v13 = vmul.f32 0.03125, %v1680_v12 }
 0x750   : > { %v1682_v14 = vadd.f32 1e-05, %v1681_v13 }
 0x752   : > { %9069 = vrsqrt.f32 %v1682_v14 }
 0x75c   : > { %v9070_v15 = vpop.eup %9069 }
 0x75d   : > { %v1684_v17 = vmul.f32 %v9070_v15, %v1676_v7 }
 0x75f   : > { %v1685_v18 = vmul.f32 %v9828_v16, %v1684_v17 }
 0x761   : > { %v1686_v20 = vadd.f32 %v9833_v19, %v1685_v18 }
 0x763   : > { %v1687_v21 = vpack.c.bf16 %v1686_v20, %v1686_v20 }
 0x765   : > { %8287 = vmatmul.mubr.msk.bf16.vlgmr.msra.gmra.mrb[36].mxu0 %vm631_vm1, %v1687_v21 }
 0x766   : > { %8299 = vmatpush3.bf16.msra.mxu0 %v9514_v0  ;;  %8302 = vmatprep.mubr.msk.bf16.mxu0 %vm9346_vm0, %v9345_v1  ;;  %v9854_v0 = vld [vmem:[%s11520_s10 + $0x8] sm:$0xff]   ;;  %s11549_s10 = smov 20  }
 0x767   : > { %8300 = vmatprep.subr.bf16.mxu0 %v9345_v1  ;;  %8293 = vmatpush3.bf16.msra.mxu1 %v9854_v0 }
 0x768   : > { %8306 = vmatprep.subr.bf16.mxu1 %v9345_v1 }
 0x76a   : > { %8301 = vmatpush3.bf16.msra.mxu0 %v9522_v2  ;;  %v9861_v2 = vld [vmem:[%s11521_s9] ss:$0 sm:$0xff]  ;;  %s11545_s9 = smov 4  }
 0x76b   : > { %8312 = vmatprep.subr.bf16.mxu0 %v9345_v1 }
 0x838   : > { %v1737_v23 = vpop.f32.mrb[36].mxu0 }
 0x839   : > { %v1738_v24 = vadd.f32 %v9861_v2, %v1737_v23  ;;  %v8288_v25 = vpop.f32.mrb[37].mxu0 }
 0x83a   : > { %v1740_v26 = vpop.f32.mrb[38].mxu0 }
 0x83b   : > { %vm1743_vm11 = vcmp.ge.f32.partialorder %v1738_v24, 0.0  ;;  %v1744_v10 = vmul.f32 0.01, %v1738_v24  ;;  %v8289_v28 = vpop.f32.mrb[39].mxu0 }
 0x83d   : > { %v1745_v29 = vsel %vm1743_vm11, %v1738_v24, %v1744_v10 }
 0x83e   : > { %v1746_v30 = vpack.c.bf16 %v1745_v29, %v1745_v29 }
 0x840   : > { %8295 = vmatmul.mubr.msk.bf16.vlgmr.msra.gmra.mrb[36].mxu1 %vm631_vm1, %v1746_v30 }
 0x841   : > { %8308 = vmatprep.mubr.msk.bf16.mxu1 %vm9346_vm0, %v9345_v1 }
 0x913   : > { %v1796_v33 = vpop.f32.mrb[36].mxu1 }
 0x914   : > { %v1797_v34 = vadd.f32 %v9870_v32, %v1796_v33  ;;  %v8296_v36 = vpop.f32.mrb[37].mxu1 }
 0x915   : > { %v1799_v37 = vpop.f32.mrb[38].mxu1 }
 0x916   : > { %v8297_v38 = vpop.f32.mrb[39].mxu1  ;;  %v1802_v39 = vadd.f32 %v1797_v34, %v1686_v20 }
 0x918   : > { %v1803_v40 = vsel %vm631_vm1, %v1802_v39, 0.0 }
 0x919   : > { %1804 = vadd.xlane.f32.xlu0 %v1803_v40 }
 0x9a6   : > { %v1805_v42 = vpop.xlane.xlu0 %1804 }
 0x9a7   : > { %v1806_v43 = vmul.f32 0.03125, %v1805_v42 }
 0x9a9   : > { %v1807_v44 = vsub.f32 %v1802_v39, %v1806_v43 }
 0x9ab   : > { %v1808_v45 = vmul.f32 %v1807_v44, %v1807_v44 }
 0x9ad   : > { %v1809_v46 = vsel %vm631_vm1, %v1808_v45, 0.0 }
 0x9ae   : > { %1810 = vadd.xlane.f32.xlu0 %v1809_v46 }
 0xa3b   : > { %v1811_v47 = vpop.xlane.xlu0 %1810 }
 0xa3c   : > { %v1812_v41 = vmul.f32 0.03125, %v1811_v47 }
 0xa3e   : > { %v1813_v49 = vadd.f32 1e-05, %v1812_v41 }
 0xa40   : > { %9071 = vrsqrt.f32 %v1813_v49 }
 0xa4a   : > { %v9072_v50 = vpop.eup %9071 }
 0xa4b   : > { %v1815_v48 = vmul.f32 %v9072_v50, %v1807_v44 }
 0xa4d   : > { %v1816_v51 = vmul.f32 %v9828_v16, %v1815_v48 }
 0xa4f   : > { %v1817_v52 = vadd.f32 %v9833_v19, %v1816_v51 }
 0xa51   : > { %vm1818_vm12 = vcmp.ge.f32.partialorder %v1817_v52, 0.0  ;;  %v1819_v53 = vmul.f32 0.01, %v1817_v52 }
 0xa53   : > { %v9877_v54 = vsel %vm1818_vm12, %v1817_v52, %v1819_v53 }
 0xa54   : > { %v1821_v55 = vpack.c.bf16 %v9877_v54, %v9877_v54 }
 0xa56   : > { %8303 = vmatmul.mubr.msk.bf16.vlgmr.msra.gmra.mrb[40].mxu0 %vm631_vm1, %v1821_v55 }
 0xa57   : > { %8314 = vmatprep.mubr.msk.bf16.mxu0 %vm9346_vm0, %v9345_v1 }
 0xb29   : > { %v1859_v57 = vpop.f32.mrb[40].mxu0 }
 0xb2a   : > { %v1860_v58 = vadd.f32 %v9551_v5, %v1859_v57  ;;  %v8304_v59 = vpop.f32.mrb[41].mxu0 }
 0xb2b   : > { %v1862_v60 = vpop.f32.mrb[42].mxu0 }
 0xb2c   : > { %v9885_v61 = vpack.c.bf16 %v1860_v58, %v1860_v58  ;;  %v8305_v62 = vpop.f32.mrb[43].mxu0 }
 0xb2e   : > { %1979 = vrot.lane.b32.xlu0 %v9885_v61, %s11523_s19  ;;  %1867 = vrot.lane.b32.xlu1 %v9885_v61, %s11524_s20 }
 0xb32   : > { %2089 = vrot.lane.b32.xlu0 %v9885_v61, %s11525_s28  ;;  %1977 = vrot.lane.b32.xlu1 %v9885_v61, %s11526_s29 }
 0xb36   : > { %2201 = vrot.lane.b32.xlu0 %v9885_v61, %s11527_s18  ;;  %2091 = vrot.lane.b32.xlu1 %v9885_v61, %s11528_s30 }
 0xb3a   : > { %2313 = vrot.lane.b32.xlu0 %v9885_v61, %s11464_s23  ;;  %2203 = vrot.lane.b32.xlu1 %v9885_v61, %s11529_s26  ;;  %s11536_s23 = smov 68  }
 0xb3e   : > { %2425 = vrot.lane.b32.xlu0 %v9885_v61, %s11530_s1  ;;  %2315 = vrot.lane.b32.xlu1 %v9885_v61, %s11531_s27 }
 0xb42   : > { %2537 = vrot.lane.b32.xlu0 %v9885_v61, %s11532_s17  ;;  %2427 = vrot.lane.b32.xlu1 %v9885_v61, %s11533_s21 }
 0xb46   : > { %2649 = vrot.lane.b32.xlu0 %v9885_v61, %s11534_s24  ;;  %2539 = vrot.lane.b32.xlu1 %v9885_v61, %s11535_s16 }
 0xb4a   : > { %2651 = vrot.lane.b32.xlu1 %v9885_v61, %s11536_s23 }
 0xba0   : > { %v1868_v5 = vpop.permute.xlu1 %1867  ;;  %v1980_v4 = vpop.permute.xlu0 %1979 }
 0xba1   : > { %v1873_v63 = vsel %vm679_vm2, %v1868_v5, 0  ;;  %v1985_v7 = vsel %vm679_vm2, %v1980_v4, 0 }
 0xba2   : > { %8307 = vmatpush3.bf16.xpose.msra.mxu1 %v1873_v63 }
 0xba3   : > { %8318 = vmatprep.subr.bf16.mxu1 %v9345_v1 }
 0xba4   : > { %v1978_v6 = vpop.permute.xlu1 %1977  ;;  %v2090_v13 = vpop.permute.xlu0 %2089 }
 0xba8   : > { %v2092_v8 = vpop.permute.xlu1 %2091  ;;  %v2202_v17 = vpop.permute.xlu0 %2201 }
 0xba9   : > { %8309 = vmatmul.mubr.msk.bf16.vlgmr.msra.gmra.mrb[40].mxu1 %vm679_vm2, %v9885_v61  ;;  %v2097_v9 = vsel %vm679_vm2, %v2092_v8, 0 }
 0xbaa   : > { %8319 = vmatpush3.bf16.xpose.msra.mxu1 %v1985_v7  ;;  %8320 = vmatprep.mubr.msk.bf16.mxu1 %vm9346_vm0, %v9345_v1 }
 0xbab   : > { %8330 = vmatprep.subr.bf16.mxu1 %v9345_v1 }
 0xbac   : > { %v2204_v12 = vpop.permute.xlu1 %2203  ;;  %v2314_v21 = vpop.permute.xlu0 %2313 }
 0xbad   : > { %v2209_v14 = vsel %vm679_vm2, %v2204_v12, 0 }
 0xbb0   : > { %v2316_v15 = vpop.permute.xlu1 %2315  ;;  %v2426_v25 = vpop.permute.xlu0 %2425 }
 0xbb1   : > { %8321 = vmatmul.mubr.msk.bf16.vlgmr.msra.gmra.mrb[44].mxu1 %vm679_vm2, %v1978_v6  ;;  %v2321_v18 = vsel %vm679_vm2, %v2316_v15, 0 }
 0xbb2   : > { %8331 = vmatpush3.bf16.xpose.msra.mxu1 %v2097_v9  ;;  %8332 = vmatprep.mubr.msk.bf16.mxu1 %vm9346_vm0, %v9345_v1 }
 0xbb3   : > { %8342 = vmatprep.subr.bf16.mxu1 %v9345_v1 }
 0xbb4   : > { %v2428_v20 = vpop.permute.xlu1 %2427  ;;  %v2538_v28 = vpop.permute.xlu0 %2537 }
 0xbb5   : > { %v2433_v23 = vsel %vm679_vm2, %v2428_v20, 0 }
 0xbb8   : > { %v2540_v24 = vpop.permute.xlu1 %2539  ;;  %v2650_v30 = vpop.permute.xlu0 %2649 }
 0xbb9   : > { %8333 = vmatmul.mubr.msk.bf16.vlgmr.msra.gmra.mrb[48].mxu1 %vm679_vm2, %v2090_v13  ;;  %v2545_v26 = vsel %vm679_vm2, %v2540_v24, 0 }
 0xbba   : > { %8343 = vmatpush3.bf16.xpose.msra.mxu1 %v2209_v14  ;;  %8344 = vmatprep.mubr.msk.bf16.mxu1 %vm9346_vm0, %v9345_v1 }
 0xbbb   : > { %8354 = vmatprep.subr.bf16.mxu1 %v9345_v1 }
 0xbbc   : > { %v2652_v10 = vpop.permute.xlu1 %2651 }
 0xbbd   : > { %v2657_v29 = vsel %vm679_vm2, %v2652_v10, 0 }
 0xbc1   : > { %8345 = vmatmul.mubr.msk.bf16.vlgmr.msra.gmra.mrb[52].mxu1 %vm679_vm2, %v2202_v17 }
 0xbc2   : > { %8355 = vmatpush3.bf16.xpose.msra.mxu1 %v2321_v18  ;;  %8356 = vmatprep.mubr.msk.bf16.mxu1 %vm9346_vm0, %v9345_v1 }
 0xbc3   : > { %8366 = vmatprep.subr.bf16.mxu1 %v9345_v1 }
 0xbc9   : > { %8357 = vmatmul.mubr.msk.bf16.vlgmr.msra.gmra.mrb[56].mxu1 %vm679_vm2, %v2314_v21 }
 0xbca   : > { %8367 = vmatpush3.bf16.xpose.msra.mxu1 %v2433_v23  ;;  %8368 = vmatprep.mubr.msk.bf16.mxu1 %vm9346_vm0, %v9345_v1 }
 0xbcb   : > { %8378 = vmatprep.subr.bf16.mxu1 %v9345_v1 }
 0xbd1   : > { %8369 = vmatmul.mubr.msk.bf16.vlgmr.msra.gmra.mrb[60].mxu1 %vm679_vm2, %v2426_v25 }
 0xbd2   : > { %8379 = vmatpush3.bf16.xpose.msra.mxu1 %v2545_v26  ;;  %8380 = vmatprep.mubr.msk.bf16.mxu1 %vm9346_vm0, %v9345_v1 }
 0xbd3   : > { %8390 = vmatprep.subr.bf16.mxu1 %v9345_v1 }
 0xbd9   : > { %8381 = vmatmul.mubr.msk.bf16.vlgmr.msra.gmra.mrb[64].mxu1 %vm679_vm2, %v2538_v28 }
 0xbda   : > { %8391 = vmatpush3.bf16.xpose.msra.mxu1 %v2657_v29  ;;  %8392 = vmatprep.mubr.msk.bf16.mxu1 %vm9346_vm0, %v9345_v1 }
 0xbdb   : > { %8402 = vmatprep.subr.bf16.mxu1 %v9345_v1 }
 0xbe1   : > { %8393 = vmatmul.mubr.msk.bf16.vlgmr.msra.gmra.mrb[68].mxu1 %vm679_vm2, %v2650_v30 }
 0xbe2   : > { %8403 = vmatpush3.bf16.msra.mxu1 %v9778_v27  ;;  %8406 = vmatprep.mubr.msk.bf16.mxu1 %vm9346_vm0, %v9345_v1 }
 0xbe3   : > { %8404 = vmatprep.subr.bf16.mxu1 %v9345_v1 }
 0xbe6   : > { %8405 = vmatpush3.bf16.msra.mxu1 %v9786_v31 }
 0xbe7   : > { %8418 = vmatprep.subr.bf16.mxu1 %v9345_v1 }
 0xc7c   : > { %v1909_v33 = vpop.f32.mrb[40].mxu1 }
 0xc7d   : > { %v1915_v34 = vmul.f32 0.35355338, %v1909_v33  ;;  %v8310_v36 = vpop.f32.mrb[41].mxu1 }
 0xc7e   : > { %v1912_v37 = vpop.f32.mrb[42].mxu1 }
 0xc7f   : > { %v8311_v38 = vpop.f32.mrb[43].mxu1  ;;  %v9964_v39 = vsel %vm537_vm3, -1e+09, %v1915_v34 }
 0xc80   : > { %v1917_v27 = vsel %vm728_vm4, %v9964_v39, -inf }
 0xc81   : > { %1918 = vmax.xlane.f32.xlu1 %v1917_v27 }
 0xc84   : > { %v2021_v40 = vpop.f32.mrb[44].mxu1 }
 0xc85   : > { %v2027_v42 = vmul.f32 0.35355338, %v2021_v40  ;;  %v8322_v43 = vpop.f32.mrb[45].mxu1 }
 0xc86   : > { %v2024_v44 = vpop.f32.mrb[46].mxu1 }
 0xc87   : > { %v8323_v31 = vpop.f32.mrb[47].mxu1  ;;  %v2028_v45 = vsel %vm537_vm3, -1e+09, %v2027_v42 }
 0xc88   : > { %v2029_v46 = vsel %vm728_vm4, %v2028_v45, -inf }
 0xc89   : > { %2030 = vmax.xlane.f32.xlu0 %v2029_v46 }
 0xc8c   : > { %v2133_v47 = vpop.f32.mrb[48].mxu1 }
 0xc8d   : > { %v2139_v41 = vmul.f32 0.35355338, %v2133_v47  ;;  %v8334_v49 = vpop.f32.mrb[49].mxu1 }
 0xc8e   : > { %v2136_v50 = vpop.f32.mrb[50].mxu1 }
 0xc8f   : > { %v8335_v48 = vpop.f32.mrb[51].mxu1  ;;  %v2140_v51 = vsel %vm537_vm3, -1e+09, %v2139_v41 }
 0xc90   : > { %v2141_v52 = vsel %vm728_vm4, %v2140_v51, -inf }
 0xc91   : > { %2142 = vmax.xlane.f32.xlu0 %v2141_v52 }
 0xc94   : > { %v2245_v53 = vpop.f32.mrb[52].mxu1 }
 0xc95   : > { %v2251_v55 = vmul.f32 0.35355338, %v2245_v53  ;;  %v8346_v57 = vpop.f32.mrb[53].mxu1 }
 0xc96   : > { %v2248_v58 = vpop.f32.mrb[54].mxu1 }
 0xc97   : > { %v8347_v59 = vpop.f32.mrb[55].mxu1  ;;  %v2252_v60 = vsel %vm537_vm3, -1e+09, %v2251_v55 }
 0xc98   : > { %v2253_v62 = vsel %vm728_vm4, %v2252_v60, -inf }
 0xc99   : > { %2254 = vmax.xlane.f32.xlu1 %v2253_v62 }
 0xc9c   : > { %v2357_v5 = vpop.f32.mrb[56].mxu1 }
 0xc9d   : > { %v2363_v63 = vmul.f32 0.35355338, %v2357_v5  ;;  %v8358_v4 = vpop.f32.mrb[57].mxu1 }
 0xc9e   : > { %v2360_v6 = vpop.f32.mrb[58].mxu1 }
 0xc9f   : > { %v8359_v7 = vpop.f32.mrb[59].mxu1  ;;  %v2364_v8 = vsel %vm537_vm3, -1e+09, %v2363_v63 }
 0xca0   : > { %v2365_v9 = vsel %vm728_vm4, %v2364_v8, -inf }
 0xca1   : > { %2366 = vmax.xlane.f32.xlu0 %v2365_v9 }
 0xca4   : > { %v2469_v12 = vpop.f32.mrb[60].mxu1 }
 0xca5   : > { %v2475_v13 = vmul.f32 0.35355338, %v2469_v12  ;;  %v8370_v14 = vpop.f32.mrb[61].mxu1 }
 0xca6   : > { %v2472_v15 = vpop.f32.mrb[62].mxu1 }
 0xca7   : > { %v8371_v17 = vpop.f32.mrb[63].mxu1  ;;  %v9982_v18 = vsel %vm537_vm3, -1e+09, %v2475_v13 }
 0xca8   : > { %v2477_v20 = vsel %vm728_vm4, %v9982_v18, -inf }
 0xca9   : > { %2478 = vmax.xlane.f32.xlu1 %v2477_v20 }
 0xcac   : > { %v2581_v21 = vpop.f32.mrb[64].mxu1 }
 0xcad   : > { %v2587_v23 = vmul.f32 0.35355338, %v2581_v21  ;;  %v8382_v24 = vpop.f32.mrb[65].mxu1 }
 0xcae   : > { %v2584_v25 = vpop.f32.mrb[66].mxu1 }
 0xcaf   : > { %v8383_v26 = vpop.f32.mrb[67].mxu1  ;;  %v2588_v10 = vsel %vm537_vm3, -1e+09, %v2587_v23 }
 0xcb0   : > { %v2589_v28 = vsel %vm728_vm4, %v2588_v10, -inf }
 0xcb1   : > { %2590 = vmax.xlane.f32.xlu0 %v2589_v28 }
 0xcb4   : > { %v2693_v29 = vpop.f32.mrb[68].mxu1 }
 0xcb5   : > { %v8394_v30 = vpop.f32.mrb[69].mxu1  ;;  %v2699_v36 = vmul.f32 0.35355338, %v2693_v29 }
 0xcb6   : > { %v2696_v33 = vpop.f32.mrb[70].mxu1 }
 0xcb7   : > { %v8395_v34 = vpop.f32.mrb[71].mxu1  ;;  %v2700_v37 = vsel %vm537_vm3, -1e+09, %v2699_v36 }
 0xcb8   : > { %v2701_v38 = vsel %vm728_vm4, %v2700_v37, -inf }
 0xcba   : > { %2041 = vrot.lane.b32.xlu1 %v9885_v61, %s11537_s0 }
 0xcc7   : > { %1929 = vrot.lane.b32.xlu0 %v9885_v61, %s11538_s15 }
 0xcde   : > { %2702 = vmax.xlane.f32.xlu1 %v2701_v38 }
 0xcef   : > { %2153 = vrot.lane.b32.xlu1 %v9885_v61, %s11539_s13 }
 0xd0e   : > { %v1919_v27 = vpop.xlane.xlu1 %1918 }
 0xd0f   : > { %v1920_v40 = vsub.f32 %v9964_v39, %v1919_v27 }
 0xd11   : > { %v1921_v42 = vmul.f32 1.442695, %v1920_v40 }
 0xd13   : > { %9073 = vpow2.f32 %v1921_v42 }
 0xd16   : > { %v2031_v43 = vpop.xlane.xlu0 %2030 }
 0xd17   : > { %v2032_v44 = vsub.f32 %v2028_v45, %v2031_v43 }
 0xd19   : > { %v2033_v31 = vmul.f32 1.442695, %v2032_v44 }
 0xd1b   : > { %9075 = vpow2.f32 %v2033_v31 }
 0xd1d   : > { %v9999_v46 = vpop.eup %9073 }
 0xd1e   : > { %v2143_v47 = vpop.xlane.xlu0 %2142  ;;  %v1923_v41 = vsel %vm728_vm4, %v9999_v46, 0.0 }
 0xd1f   : > { %v2144_v49 = vsub.f32 %v2140_v51, %v2143_v47  ;;  %1924 = vadd.xlane.f32.xlu0 %v1923_v41 }
 0xd21   : > { %v2145_v50 = vmul.f32 1.442695, %v2144_v49 }
 0xd23   : > { %9077 = vpow2.f32 %v2145_v50 }
 0xd25   : > { %v10003_v48 = vpop.eup %9075 }
 0xd26   : > { %v2255_v52 = vpop.xlane.xlu1 %2254  ;;  %v2035_v39 = vsel %vm728_vm4, %v10003_v48, 0.0 }
 0xd27   : > { %v2256_v53 = vsub.f32 %v2252_v60, %v2255_v52  ;;  %2036 = vadd.xlane.f32.xlu1 %v2035_v39 }
 0xd29   : > { %v2257_v45 = vmul.f32 1.442695, %v2256_v53 }
 0xd2b   : > { %9079 = vpow2.f32 %v2257_v45 }
 0xd2d   : > { %v10007_v55 = vpop.eup %9077 }
 0xd2e   : > { %v2367_v57 = vpop.xlane.xlu0 %2366  ;;  %v2147_v58 = vsel %vm728_vm4, %v10007_v55, 0.0 }
 0xd2f   : > { %v2368_v51 = vsub.f32 %v2364_v8, %v2367_v57  ;;  %2148 = vadd.xlane.f32.xlu0 %v2147_v58 }
 0xd31   : > { %v2369_v59 = vmul.f32 1.442695, %v2368_v51 }
 0xd33   : > { %9081 = vpow2.f32 %v2369_v59 }
 0xd35   : > { %v10011_v62 = vpop.eup %9079 }
 0xd36   : > { %v2259_v5 = vsel %vm728_vm4, %v10011_v62, 0.0  ;;  %v2479_v12 = vpop.xlane.xlu1 %2478 }
 0xd37   : > { %2260 = vadd.xlane.f32.xlu1 %v2259_v5  ;;  %v2480_v14 = vsub.f32 %v9982_v18, %v2479_v12 }
 0xd39   : > { %v2481_v17 = vmul.f32 1.442695, %v2480_v14 }
 0xd3a   : > { %v2042_v23 = vpop.permute.xlu1 %2041 }
 0xd3d   : > { %v10015_v60 = vpop.eup %9081 }
 0xd3e   : > { %v2591_v63 = vpop.xlane.xlu0 %2590  ;;  %v2371_v4 = vsel %vm728_vm4, %v10015_v60, 0.0 }
 0xd3f   : > { %v2592_v6 = vsub.f32 %v2588_v10, %v2591_v63  ;;  %2372 = vadd.xlane.f32.xlu1 %v2371_v4 }
 0xd41   : > { %v2593_v7 = vmul.f32 1.442695, %v2592_v6 }
 0xd42   : > { %v1930_v9 = vpop.permute.xlu0 %1929 }
 0xd43   : > { %9083 = vpow2.f32 %v2593_v7  ;;  %v1935_v8 = vsel %vm746_vm5, %v1930_v9, 0 }
 0xd44   : > { %8313 = vmatpush3.bf16.msra.mxu0 %v1935_v8  ;;  %9085 = vpow2.f32 %v2481_v17 }
 0xd45   : > { %2265 = vrot.lane.b32.xlu0 %v9885_v61, %s11540_s25  ;;  %8324 = vmatprep.subr.bf16.mxu0 %v9345_v1 }
 0xd4d   : > { %v10023_v13 = vpop.eup %9083 }
 0xd4e   : > { %v2595_v15 = vsel %vm728_vm4, %v10023_v13, 0.0  ;;  %v10028_v20 = vpop.eup %9085 }
 0xd4f   : > { %2596 = vadd.xlane.f32.xlu1 %v2595_v15  ;;  %v2483_v21 = vsel %vm728_vm4, %v10028_v20, 0.0 }
 0xd64   : > { %2484 = vadd.xlane.f32.xlu0 %v2483_v21 }
 0xd6b   : > { %v2703_v24 = vpop.xlane.xlu1 %2702 }
 0xd6c   : > { %v2704_v25 = vsub.f32 %v2700_v37, %v2703_v24  ;;  %v2047_v37 = vsel %vm746_vm5, %v2042_v23, 0 }
 0xd6e   : > { %v2705_v26 = vmul.f32 1.442695, %v2704_v25 }
 0xd6f   : > { %v2154_v29 = vpop.permute.xlu1 %2153 }
 0xd70   : > { %9087 = vpow2.f32 %v2705_v26  ;;  %v2159_v42 = vsel %vm746_vm5, %v2154_v29, 0 }
 0xd7a   : > { %v10032_v10 = vpop.eup %9087  ;;  %2489 = vrot.lane.b32.xlu0 %v9885_v61, %s11541_s22 }
 0xd7b   : > { %v2707_v18 = vsel %vm728_vm4, %v10032_v10, 0.0 }
 0xd7c   : > { %2708 = vadd.xlane.f32.xlu1 %v2707_v18 }
 0xd7e   : > { %2601 = vrot.lane.b32.xlu0 %v9885_v61, %s11542_s14 }
 0xd82   : > { %2713 = vrot.lane.b32.xlu0 %v9885_v61, %s11543_s12 }
 0xd8d   : > { %2377 = vrot.lane.b32.xlu1 %v9885_v61, %s11544_s11 }
 0xdac   : > { %v1925_v28 = vpop.xlane.xlu0 %1924 }
 0xdad   : > { %9089 = vrcp.f32 %v1925_v28 }
 0xdb4   : > { %v2037_v30 = vpop.xlane.xlu1 %2036 }
 0xdb5   : > { %9091 = vrcp.f32 %v2037_v30 }
 0xdb7   : > { %v9090_v33 = vpop.eup %9089 }
 0xdb8   : > { %v1927_v34 = vmul.f32 %v9090_v33, %v9999_v46 }
 0xdba   : > { %v1928_v36 = vpack.c.bf16 %v1927_v34, %v1927_v34 }
 0xdbc   : > { %8315 = vmatmul.mubr.msk.bf16.vlgmr.msra.gmra.mrb[44].mxu0 %vm728_vm4, %v1928_v36  ;;  %v2149_v38 = vpop.xlane.xlu0 %2148 }
 0xdbd   : > { %9093 = vrcp.f32 %v2149_v38  ;;  %8325 = vmatpush3.bf16.msra.mxu0 %v2047_v37  ;;  %8326 = vmatprep.mubr.msk.bf16.mxu0 %vm9346_vm0, %v9345_v1 }
 0xdbe   : > { %8336 = vmatprep.subr.bf16.mxu0 %v9345_v1 }
 0xdbf   : > { %v9092_v61 = vpop.eup %9091 }
 0xdc0   : > { %v2039_v27 = vmul.f32 %v9092_v61, %v10003_v48  ;;  %v2266_v46 = vpop.permute.xlu0 %2265 }
 0xdc1   : > { %v2271_v41 = vsel %vm746_vm5, %v2266_v46, 0 }
 0xdc2   : > { %v2040_v40 = vpack.c.bf16 %v2039_v27, %v2039_v27 }
 0xdc4   : > { %8327 = vmatmul.mubr.msk.bf16.vlgmr.msra.gmra.mrb[48].mxu0 %vm728_vm4, %v2040_v40  ;;  %v2261_v43 = vpop.xlane.xlu1 %2260 }
 0xdc5   : > { %8337 = vmatpush3.bf16.msra.mxu0 %v2159_v42  ;;  %9095 = vrcp.f32 %v2261_v43  ;;  %8338 = vmatprep.mubr.msk.bf16.mxu0 %vm9346_vm0, %v9345_v1 }
 0xdc6   : > { %8348 = vmatprep.subr.bf16.mxu0 %v9345_v1 }
 0xdc7   : > { %v9094_v44 = vpop.eup %9093 }
 0xdc8   : > { %v2151_v31 = vmul.f32 %v9094_v44, %v10007_v55 }
 0xdca   : > { %v2152_v47 = vpack.c.bf16 %v2151_v31, %v2151_v31 }
 0xdcc   : > { %8339 = vmatmul.mubr.msk.bf16.vlgmr.msra.gmra.mrb[52].mxu0 %vm728_vm4, %v2152_v47  ;;  %v2373_v52 = vpop.xlane.xlu1 %2372 }
 0xdcd   : > { %8349 = vmatpush3.bf16.msra.mxu0 %v2271_v41  ;;  %8350 = vmatprep.mubr.msk.bf16.mxu0 %vm9346_vm0, %v9345_v1  ;;  %9097 = vrcp.f32 %v2373_v52 }
 0xdce   : > { %8360 = vmatprep.subr.bf16.mxu0 %v9345_v1 }
 0xdcf   : > { %v9096_v49 = vpop.eup %9095 }
 0xdd0   : > { %v2263_v50 = vmul.f32 %v9096_v49, %v10011_v62 }
 0xdd2   : > { %v2264_v48 = vpack.c.bf16 %v2263_v50, %v2263_v50 }
 0xdd4   : > { %8351 = vmatmul.mubr.msk.bf16.vlgmr.msra.gmra.mrb[56].mxu0 %vm728_vm4, %v2264_v48 }
 0xdd5   : > { %8362 = vmatprep.mubr.msk.bf16.mxu0 %vm9346_vm0, %v9345_v1 }
 0xdd7   : > { %v9098_v45 = vpop.eup %9097 }
 0xdd8   : > { %v2375_v57 = vmul.f32 %v9098_v45, %v10015_v60 }
 0xdda   : > { %v2376_v62 = vpack.c.bf16 %v2375_v57, %v2375_v57 }
 0xddc   : > { %v2597_v53 = vpop.xlane.xlu1 %2596 }
 0xdf1   : > { %v2485_v39 = vpop.xlane.xlu0 %2484 }
 0xdf2   : > { %9099 = vrcp.f32 %v2485_v39 }
 0xdf3   : > { %9101 = vrcp.f32 %v2597_v53 }
 0xdf5   : > { %v2490_v59 = vpop.permute.xlu0 %2489 }
 0xdf6   : > { %v2495_v63 = vsel %vm746_vm5, %v2490_v59, 0 }
 0xdf9   : > { %v2602_v4 = vpop.permute.xlu0 %2601 }
 0xdfa   : > { %v2607_v9 = vsel %vm746_vm5, %v2602_v4, 0 }
 0xdfc   : > { %v9100_v5 = vpop.eup %9099 }
 0xdfd   : > { %v2487_v60 = vmul.f32 %v9100_v5, %v10028_v20  ;;  %v9102_v7 = vpop.eup %9101  ;;  %v2714_v12 = vpop.permute.xlu0 %2713 }
 0xdfe   : > { %v2599_v8 = vmul.f32 %v9102_v7, %v10023_v13  ;;  %v2719_v17 = vsel %vm746_vm5, %v2714_v12, 0 }
 0xdff   : > { %v2488_v6 = vpack.c.bf16 %v2487_v60, %v2487_v60 }
 0xe00   : > { %v2600_v14 = vpack.c.bf16 %v2599_v8, %v2599_v8 }
 0xe09   : > { %v2709_v55 = vpop.xlane.xlu1 %2708 }
 0xe0a   : > { %9103 = vrcp.f32 %v2709_v55 }
 0xe0d   : > { %v2378_v58 = vpop.permute.xlu1 %2377 }
 0xe0e   : > { %v2383_v51 = vsel %vm746_vm5, %v2378_v58, 0 }
 0xe0f   : > { %8361 = vmatpush3.bf16.msra.mxu0 %v2383_v51 }
 0xe10   : > { %8372 = vmatprep.subr.bf16.mxu0 %v9345_v1 }
 0xe12   : > { %8363 = vmatmul.mubr.msk.bf16.vlgmr.msra.gmra.mrb[60].mxu0 %vm728_vm4, %v2376_v62 }
 0xe13   : > { %8373 = vmatpush3.bf16.msra.mxu0 %v2495_v63  ;;  %8374 = vmatprep.mubr.msk.bf16.mxu0 %vm9346_vm0, %v9345_v1 }
 0xe14   : > { %8384 = vmatprep.subr.bf16.mxu0 %v9345_v1  ;;  %v9104_v15 = vpop.eup %9103 }
 0xe15   : > { %v2711_v20 = vmul.f32 %v9104_v15, %v10032_v10 }
 0xe17   : > { %v2712_v21 = vpack.c.bf16 %v2711_v20, %v2711_v20 }
 0xe1a   : > { %8375 = vmatmul.mubr.msk.bf16.vlgmr.msra.gmra.mrb[64].mxu0 %vm728_vm4, %v2488_v6 }
 0xe1b   : > { %8385 = vmatpush3.bf16.msra.mxu0 %v2607_v9  ;;  %8386 = vmatprep.mubr.msk.bf16.mxu0 %vm9346_vm0, %v9345_v1 }
 0xe1c   : > { %8396 = vmatprep.subr.bf16.mxu0 %v9345_v1 }
 0xe22   : > { %8387 = vmatmul.mubr.msk.bf16.vlgmr.msra.gmra.mrb[68].mxu0 %vm728_vm4, %v2600_v14 }
 0xe23   : > { %8397 = vmatpush3.bf16.msra.mxu0 %v2719_v17  ;;  %8398 = vmatprep.mubr.msk.bf16.mxu0 %vm9346_vm0, %v9345_v1 }
 0xe24   : > { %8410 = vmatprep.subr.bf16.mxu0 %v9345_v1 }
 0xe2a   : > { %8399 = vmatmul.mubr.msk.bf16.vlgmr.msra.gmra.mrb[72].mxu0 %vm728_vm4, %v2712_v21 }
 0xe2b   : > { %8411 = vmatpush3.bf16.msra.mxu0 %v9814_v11  ;;  %8414 = vmatprep.mubr.msk.bf16.mxu0 %vm9346_vm0, %v9345_v1 }
 0xe2c   : > { %8412 = vmatprep.subr.bf16.mxu0 %v9345_v1 }
 0xe2f   : > { %8413 = vmatpush3.bf16.msra.mxu0 %v9820_v3 }
 0xe30   : > { %8426 = vmatprep.subr.bf16.mxu0 %v9345_v1 }
 0xe8f   : > { %v1971_v13 = vpop.f32.mrb[44].mxu0 }
 0xe90   : > { %v8316_v23 = vpop.f32.mrb[45].mxu0 }
 0xe91   : > { %v1974_v24 = vpop.f32.mrb[46].mxu0 }
 0xe92   : > { %v8317_v25 = vpop.f32.mrb[47].mxu0 }
 0xe97   : > { %v2083_v26 = vpop.f32.mrb[48].mxu0 }
 0xe98   : > { %2762 = vrot.lane.b32.xlu1 %v2083_v26, %s11545_s9  ;;  %v8328_v10 = vpop.f32.mrb[49].mxu0 }
 0xe99   : > { %v2086_v18 = vpop.f32.mrb[50].mxu0 }
 0xe9a   : > { %v8329_v28 = vpop.f32.mrb[51].mxu0 }
 0xe9f   : > { %v2195_v11 = vpop.f32.mrb[52].mxu0 }
 0xea0   : > { %2766 = vrot.lane.b32.xlu0 %v2195_v11, %s11546_s7  ;;  %v8340_v29 = vpop.f32.mrb[53].mxu0  ;;  %s11550_s7 = smov 24  }
 0xea1   : > { %v2198_v30 = vpop.f32.mrb[54].mxu0  ;;  %v10125_v29 = vld [vmem:[%s11511_s2] sm:$0xff]  }
 0xea2   : > { %v8341_v33 = vpop.f32.mrb[55].mxu0  ;;  %v10134_v30 = vld [vmem:[%s11511_s2 + $0x8] sm:$0xff]   ;;  %s11561_s2 = sld [smem:[#allocation20_spill]] }
 0xea7   : > { %v2307_v34 = vpop.f32.mrb[56].mxu0 }
 0xea8   : > { %2770 = vrot.lane.b32.xlu1 %v2307_v34, %s11547_s6  ;;  %v8352_v3 = vpop.f32.mrb[57].mxu0  ;;  %s11551_s6 = smov 28  }
 0xea9   : > { %v2310_v36 = vpop.f32.mrb[58].mxu0 }
 0xeaa   : > { %v8353_v37 = vpop.f32.mrb[59].mxu0 }
 0xee5   : > { %v2419_v38 = vpop.f32.mrb[60].mxu0 }
 0xee6   : > { %2774 = vrot.lane.b32.xlu0 %v2419_v38, %s11548_s5  ;;  %v8364_v61 = vpop.f32.mrb[61].mxu0  ;;  %s11555_s5 = smov 16  }
 0xee7   : > { %v2422_v27 = vpop.f32.mrb[62].mxu0 }
 0xee8   : > { %v8365_v40 = vpop.f32.mrb[63].mxu0 }
 0xeed   : > { %v2531_v42 = vpop.f32.mrb[64].mxu0 }
 0xeee   : > { %2778 = vrot.lane.b32.xlu1 %v2531_v42, %s11549_s10  ;;  %v8376_v43 = vpop.f32.mrb[65].mxu0  ;;  %s11554_s10 = smov 12  }
 0xeef   : > { %v2534_v44 = vpop.f32.mrb[66].mxu0 }
 0xef0   : > { %v8377_v31 = vpop.f32.mrb[67].mxu0 }
 0xef5   : > { %v2643_v46 = vpop.f32.mrb[68].mxu0 }
 0xef6   : > { %2782 = vrot.lane.b32.xlu0 %v2643_v46, %s11550_s7  ;;  %v8388_v47 = vpop.f32.mrb[69].mxu0  ;;  %s11552_s7 = smov 112  }
 0xef7   : > { %v2646_v41 = vpop.f32.mrb[70].mxu0 }
 0xef8   : > { %v8389_v49 = vpop.f32.mrb[71].mxu0 }
 0xefd   : > { %v2755_v50 = vpop.f32.mrb[72].mxu0 }
 0xefe   : > { %2786 = vrot.lane.b32.xlu1 %v2755_v50, %s11551_s6  ;;  %v8400_v48 = vpop.f32.mrb[73].mxu0  ;;  %s11556_s6 = smov 20  }
 0xeff   : > { %v2758_v52 = vpop.f32.mrb[74].mxu0 }
 0xf00   : > { %v8401_v39 = vpop.f32.mrb[75].mxu0 }
 0xf0a   : > { %v2763_v53 = vpop.permute.xlu1 %2762 }
 0xf0b   : > { %v2789_v58 = vsel %vm679_vm2, %v1971_v13, %v2763_v53 }
 0xf12   : > { %v2767_v45 = vpop.permute.xlu0 %2766 }
 0xf13   : > { %v2790_v51 = vsel %vm728_vm4, %v2789_v58, %v2767_v45 }
 0xf1a   : > { %v2771_v55 = vpop.permute.xlu1 %2770 }
 0xf1b   : > { %v2791_v62 = vsel %vm1604_vm6, %v2790_v51, %v2771_v55 }
 0xf58   : > { %v2775_v57 = vpop.permute.xlu0 %2774 }
 0xf59   : > { %v2792_v63 = vsel %vm1606_vm7, %v2791_v62, %v2775_v57 }
 0xf60   : > { %v2779_v59 = vpop.permute.xlu1 %2778 }
 0xf61   : > { %v2793_v60 = vsel %vm1608_vm8, %v2792_v63, %v2779_v59 }
 0xf68   : > { %v2783_v5 = vpop.permute.xlu0 %2782 }
 0xf69   : > { %v2794_v4 = vsel %vm1610_vm9, %v2793_v60, %v2783_v5  ;;  %v10157_v5 = vld [vmem:[%s11513_s3] ss:$0 sm:$0xff]  ;;  %s11553_s3 = smov 8  }
 0xf70   : > { %v2787_v6 = vpop.permute.xlu1 %2786 }
 0xf71   : > { %v2795_v7 = vsel %vm1612_vm10, %v2794_v4, %v2787_v6 }
 0xf72   : > { %v2796_v9 = vpack.c.bf16 %v2795_v7, %v2795_v7 }
 0xf74   : > { %8407 = vmatmul.mubr.msk.bf16.vlgmr.msra.gmra.mrb[72].mxu1 %vm631_vm1, %v2796_v9 }
 0xf75   : > { %8419 = vmatpush3.bf16.msra.mxu1 %v9847_v22  ;;  %8422 = vmatprep.mubr.msk.bf16.mxu1 %vm9346_vm0, %v9345_v1 }
 0xf76   : > { %8420 = vmatprep.subr.bf16.mxu1 %v9345_v1 }
 0xf79   : > { %8421 = vmatpush3.bf16.msra.mxu1 %v9854_v0 }
 0xf7a   : > { %8434 = vmatprep.subr.bf16.mxu1 %v9345_v1 }
0x1047   : > { %v2834_v8 = vpop.f32.mrb[72].mxu1 }
0x1048   : > { %v2835_v12 = vadd.f32 %v9805_v56, %v2834_v8  ;;  %v8408_v14 = vpop.f32.mrb[73].mxu1 }
0x1049   : > { %v2837_v15 = vpop.f32.mrb[74].mxu1 }
0x104a   : > { %v8409_v17 = vpop.f32.mrb[75].mxu1  ;;  %v2840_v20 = vadd.f32 %v2835_v12, %v9877_v54 }
0x104c   : > { %v2841_v21 = vsel %vm631_vm1, %v2840_v20, 0.0 }
0x104d   : > { %2842 = vadd.xlane.f32.xlu0 %v2841_v21 }
0x10da   : > { %v2843_v22 = vpop.xlane.xlu0 %2842 }
0x10db   : > { %v2844_v13 = vmul.f32 0.03125, %v2843_v22 }
0x10dd   : > { %v2845_v23 = vsub.f32 %v2840_v20, %v2844_v13 }
0x10df   : > { %v2846_v24 = vmul.f32 %v2845_v23, %v2845_v23 }
0x10e1   : > { %v2847_v25 = vsel %vm631_vm1, %v2846_v24, 0.0 }
0x10e2   : > { %2848 = vadd.xlane.f32.xlu1 %v2847_v25 }
0x116f   : > { %v2849_v0 = vpop.xlane.xlu1 %2848 }
0x1170   : > { %v2850_v26 = vmul.f32 0.03125, %v2849_v0 }
0x1172   : > { %v2851_v10 = vadd.f32 1e-05, %v2850_v26 }
0x1174   : > { %9105 = vrsqrt.f32 %v2851_v10 }
0x117e   : > { %v9106_v56 = vpop.eup %9105 }
0x117f   : > { %v2853_v18 = vmul.f32 %v9106_v56, %v2845_v23 }
0x1181   : > { %v2854_v28 = vmul.f32 %v9828_v16, %v2853_v18 }
0x1183   : > { %v2855_v54 = vadd.f32 %v9833_v19, %v2854_v28 }
0x1185   : > { %v2856_v11 = vpack.c.bf16 %v2855_v54, %v2855_v54 }
0x1187   : > { %8415 = vmatmul.mubr.msk.bf16.vlgmr.msra.gmra.mrb[76].mxu0 %vm631_vm1, %v2856_v11 }
0x1188   : > { %8427 = vmatpush3.bf16.msra.mxu0 %v10125_v29  ;;  %8430 = vmatprep.mubr.msk.bf16.mxu0 %vm9346_vm0, %v9345_v1 }
0x1189   : > { %8428 = vmatprep.subr.bf16.mxu0 %v9345_v1 }
0x118c   : > { %8429 = vmatpush3.bf16.msra.mxu0 %v10134_v30 }
0x118d   : > { %8440 = vmatprep.subr.bf16.mxu0 %v9345_v1 }
0x125a   : > { %v2894_v33 = vpop.f32.mrb[76].mxu0 }
0x125b   : > { %v2895_v34 = vadd.f32 %v9861_v2, %v2894_v33  ;;  %v8416_v3 = vpop.f32.mrb[77].mxu0  ;;  %v10234_v33 = vld [vmem:[%s11515_s4] sm:$0xff]  }
0x125c   : > { %v2897_v36 = vpop.f32.mrb[78].mxu0 }
0x125d   : > { %vm2900_vm13 = vcmp.ge.f32.partialorder %v2895_v34, 0.0  ;;  %v2901_v37 = vmul.f32 0.01, %v2895_v34  ;;  %v8417_v38 = vpop.f32.mrb[79].mxu0 }
0x125f   : > { %v2902_v61 = vsel %vm2900_vm13, %v2895_v34, %v2901_v37  ;;  %v10243_v34 = vld [vmem:[%s11515_s4 + $0x8] sm:$0xff]   ;;  %s11558_s4 = smov 28  }
0x1260   : > { %v2903_v27 = vpack.c.bf16 %v2902_v61, %v2902_v61 }
0x1262   : > { %8423 = vmatmul.mubr.msk.bf16.vlgmr.msra.gmra.mrb[76].mxu1 %vm631_vm1, %v2903_v27 }
0x1263   : > { %8436 = vmatprep.mubr.msk.bf16.mxu1 %vm9346_vm0, %v9345_v1 }
0x1335   : > { %v2941_v40 = vpop.f32.mrb[76].mxu1 }
0x1336   : > { %v2942_v42 = vadd.f32 %v9870_v32, %v2941_v40  ;;  %v8424_v43 = vpop.f32.mrb[77].mxu1 }
0x1337   : > { %v2944_v44 = vpop.f32.mrb[78].mxu1 }
0x1338   : > { %v2947_v31 = vadd.f32 %v2942_v42, %v2855_v54  ;;  %v8425_v46 = vpop.f32.mrb[79].mxu1 }
0x133a   : > { %v2948_v2 = vsel %vm631_vm1, %v2947_v31, 0.0 }
0x133b   : > { %2949 = vadd.xlane.f32.xlu0 %v2948_v2 }
0x13c8   : > { %v2950_v47 = vpop.xlane.xlu0 %2949 }
0x13c9   : > { %v2951_v41 = vmul.f32 0.03125, %v2950_v47 }
0x13cb   : > { %v2952_v49 = vsub.f32 %v2947_v31, %v2951_v41 }
0x13cd   : > { %v2953_v50 = vmul.f32 %v2952_v49, %v2952_v49 }
0x13cf   : > { %v2954_v48 = vsel %vm631_vm1, %v2953_v50, 0.0 }
0x13d0   : > { %2955 = vadd.xlane.f32.xlu0 %v2954_v48 }
0x145d   : > { %v2956_v52 = vpop.xlane.xlu0 %2955 }
0x145e   : > { %v2957_v39 = vmul.f32 0.03125, %v2956_v52 }
0x1460   : > { %v2958_v53 = vadd.f32 1e-05, %v2957_v39 }
0x1462   : > { %9107 = vrsqrt.f32 %v2958_v53 }
0x146c   : > { %v9108_v45 = vpop.eup %9107 }
0x146d   : > { %v2960_v32 = vmul.f32 %v9108_v45, %v2952_v49 }
0x146f   : > { %v2961_v55 = vmul.f32 %v9828_v16, %v2960_v32 }
0x1471   : > { %v2962_v57 = vadd.f32 %v9833_v19, %v2961_v55 }
0x1473   : > { %vm2963_vm14 = vcmp.ge.f32.partialorder %v2962_v57, 0.0  ;;  %v2964_v58 = vmul.f32 0.01, %v2962_v57 }
0x1475   : > { %v10147_v51 = vsel %vm2963_vm14, %v2962_v57, %v2964_v58 }
0x1476   : > { %v2966_v59 = vpack.c.bf16 %v10147_v51, %v10147_v51 }
0x1478   : > { %8431 = vmatmul.mubr.msk.bf16.vlgmr.msra.gmra.mrb[80].mxu0 %vm631_vm1, %v2966_v59 }
0x1479   : > { %8442 = vmatprep.mubr.msk.bf16.mxu0 %vm9346_vm0, %v9345_v1 }
0x154b   : > { %v3004_v62 = vpop.f32.mrb[80].mxu0 }
0x154c   : > { %v3005_v16 = vadd.f32 %v10157_v5, %v3004_v62  ;;  %v8432_v19 = vpop.f32.mrb[81].mxu0 }
0x154d   : > { %v3007_v63 = vpop.f32.mrb[82].mxu0 }
0x154e   : > { %v10160_v60 = vpack.c.bf16 %v3005_v16, %v3005_v16  ;;  %v8433_v4 = vpop.f32.mrb[83].mxu0 }
0x1550   : > { %3124 = vrot.lane.b32.xlu0 %v10160_v60, %s11523_s19  ;;  %3012 = vrot.lane.b32.xlu1 %v10160_v60, %s11524_s20 }
0x1554   : > { %3234 = vrot.lane.b32.xlu0 %v10160_v60, %s11525_s28  ;;  %3122 = vrot.lane.b32.xlu1 %v10160_v60, %s11526_s29 }
0x1558   : > { %3346 = vrot.lane.b32.xlu0 %v10160_v60, %s11527_s18  ;;  %3236 = vrot.lane.b32.xlu1 %v10160_v60, %s11528_s30 }
0x155c   : > { %3458 = vrot.lane.b32.xlu0 %v10160_v60, %s11552_s7  ;;  %3348 = vrot.lane.b32.xlu1 %v10160_v60, %s11529_s26 }
0x1560   : > { %3570 = vrot.lane.b32.xlu0 %v10160_v60, %s11530_s1  ;;  %3460 = vrot.lane.b32.xlu1 %v10160_v60, %s11531_s27 }
0x1564   : > { %3682 = vrot.lane.b32.xlu0 %v10160_v60, %s11532_s17  ;;  %3572 = vrot.lane.b32.xlu1 %v10160_v60, %s11533_s21 }
0x1568   : > { %3794 = vrot.lane.b32.xlu0 %v10160_v60, %s11534_s24  ;;  %3684 = vrot.lane.b32.xlu1 %v10160_v60, %s11535_s16 }
0x156c   : > { %3796 = vrot.lane.b32.xlu1 %v10160_v60, %s11536_s23 }
0x15c2   : > { %v3013_v6 = vpop.permute.xlu1 %3012  ;;  %v3125_v9 = vpop.permute.xlu0 %3124 }
0x15c3   : > { %v3018_v7 = vsel %vm679_vm2, %v3013_v6, 0  ;;  %v3130_v12 = vsel %vm679_vm2, %v3125_v9, 0 }
0x15c4   : > { %8435 = vmatpush3.bf16.xpose.msra.mxu1 %v3018_v7 }
0x15c5   : > { %8446 = vmatprep.subr.bf16.mxu1 %v9345_v1 }
0x15c6   : > { %v3123_v8 = vpop.permute.xlu1 %3122  ;;  %v3235_v20 = vpop.permute.xlu0 %3234 }
0x15ca   : > { %v3237_v14 = vpop.permute.xlu1 %3236  ;;  %v3347_v13 = vpop.permute.xlu0 %3346 }
0x15cb   : > { %8437 = vmatmul.mubr.msk.bf16.vlgmr.msra.gmra.mrb[80].mxu1 %vm679_vm2, %v10160_v60  ;;  %v3242_v15 = vsel %vm679_vm2, %v3237_v14, 0 }
0x15cc   : > { %8447 = vmatpush3.bf16.xpose.msra.mxu1 %v3130_v12  ;;  %8448 = vmatprep.mubr.msk.bf16.mxu1 %vm9346_vm0, %v9345_v1 }
0x15cd   : > { %8458 = vmatprep.subr.bf16.mxu1 %v9345_v1 }
0x15ce   : > { %v3349_v17 = vpop.permute.xlu1 %3348  ;;  %v3459_v25 = vpop.permute.xlu0 %3458 }
0x15cf   : > { %v3354_v21 = vsel %vm679_vm2, %v3349_v17, 0 }
0x15d2   : > { %v3461_v22 = vpop.permute.xlu1 %3460  ;;  %v3571_v10 = vpop.permute.xlu0 %3570 }
0x15d3   : > { %8449 = vmatmul.mubr.msk.bf16.vlgmr.msra.gmra.mrb[84].mxu1 %vm679_vm2, %v3123_v8  ;;  %v3466_v23 = vsel %vm679_vm2, %v3461_v22, 0 }
0x15d4   : > { %8459 = vmatpush3.bf16.xpose.msra.mxu1 %v3242_v15  ;;  %8460 = vmatprep.mubr.msk.bf16.mxu1 %vm9346_vm0, %v9345_v1 }
0x15d5   : > { %8470 = vmatprep.subr.bf16.mxu1 %v9345_v1 }
0x15d6   : > { %v3573_v24 = vpop.permute.xlu1 %3572  ;;  %v3683_v28 = vpop.permute.xlu0 %3682 }
0x15d7   : > { %v3578_v0 = vsel %vm679_vm2, %v3573_v24, 0 }
0x15da   : > { %v3685_v26 = vpop.permute.xlu1 %3684  ;;  %v3795_v11 = vpop.permute.xlu0 %3794 }
0x15db   : > { %8461 = vmatmul.mubr.msk.bf16.vlgmr.msra.gmra.mrb[88].mxu1 %vm679_vm2, %v3235_v20  ;;  %v3690_v56 = vsel %vm679_vm2, %v3685_v26, 0 }
0x15dc   : > { %8471 = vmatpush3.bf16.xpose.msra.mxu1 %v3354_v21  ;;  %8472 = vmatprep.mubr.msk.bf16.mxu1 %vm9346_vm0, %v9345_v1 }
0x15dd   : > { %8482 = vmatprep.subr.bf16.mxu1 %v9345_v1 }
0x15de   : > { %v3797_v18 = vpop.permute.xlu1 %3796 }
0x15df   : > { %v3802_v54 = vsel %vm679_vm2, %v3797_v18, 0 }
0x15e3   : > { %8473 = vmatmul.mubr.msk.bf16.vlgmr.msra.gmra.mrb[92].mxu1 %vm679_vm2, %v3347_v13 }
0x15e4   : > { %8483 = vmatpush3.bf16.xpose.msra.mxu1 %v3466_v23  ;;  %8484 = vmatprep.mubr.msk.bf16.mxu1 %vm9346_vm0, %v9345_v1 }
0x15e5   : > { %8494 = vmatprep.subr.bf16.mxu1 %v9345_v1 }
0x15eb   : > { %8485 = vmatmul.mubr.msk.bf16.vlgmr.msra.gmra.mrb[96].mxu1 %vm679_vm2, %v3459_v25 }
0x15ec   : > { %8495 = vmatpush3.bf16.xpose.msra.mxu1 %v3578_v0  ;;  %8496 = vmatprep.mubr.msk.bf16.mxu1 %vm9346_vm0, %v9345_v1 }
0x15ed   : > { %8506 = vmatprep.subr.bf16.mxu1 %v9345_v1 }
0x15f3   : > { %8497 = vmatmul.mubr.msk.bf16.vlgmr.msra.gmra.mrb[100].mxu1 %vm679_vm2, %v3571_v10 }
0x15f4   : > { %8507 = vmatpush3.bf16.xpose.msra.mxu1 %v3690_v56  ;;  %8508 = vmatprep.mubr.msk.bf16.mxu1 %vm9346_vm0, %v9345_v1 }
0x15f5   : > { %8518 = vmatprep.subr.bf16.mxu1 %v9345_v1 }
0x15fb   : > { %8509 = vmatmul.mubr.msk.bf16.vlgmr.msra.gmra.mrb[104].mxu1 %vm679_vm2, %v3683_v28 }
0x15fc   : > { %8519 = vmatpush3.bf16.xpose.msra.mxu1 %v3802_v54  ;;  %8520 = vmatprep.mubr.msk.bf16.mxu1 %vm9346_vm0, %v9345_v1 }
0x15fd   : > { %8530 = vmatprep.subr.bf16.mxu1 %v9345_v1 }
0x1603   : > { %8521 = vmatmul.mubr.msk.bf16.vlgmr.msra.gmra.mrb[108].mxu1 %vm679_vm2, %v3795_v11 }
0x1604   : > { %8531 = vmatpush3.bf16.msra.mxu1 %v10234_v33  ;;  %8534 = vmatprep.mubr.msk.bf16.mxu1 %vm9346_vm0, %v9345_v1 }
0x1605   : > { %8532 = vmatprep.subr.bf16.mxu1 %v9345_v1 }
0x1608   : > { %8533 = vmatpush3.bf16.msra.mxu1 %v10243_v34 }
0x1609   : > { %8546 = vmatprep.subr.bf16.mxu1 %v9345_v1 }
0x169e   : > { %v3054_v3 = vpop.f32.mrb[80].mxu1 }
0x169f   : > { %v3060_v36 = vmul.f32 0.35355338, %v3054_v3  ;;  %v8438_v37 = vpop.f32.mrb[81].mxu1 }
0x16a0   : > { %v3057_v38 = vpop.f32.mrb[82].mxu1 }
0x16a1   : > { %v10249_v61 = vsel %vm537_vm3, -1e+09, %v3060_v36  ;;  %v8439_v27 = vpop.f32.mrb[83].mxu1 }
0x16a2   : > { %v3062_v40 = vsel %vm728_vm4, %v10249_v61, -inf }
0x16a3   : > { %3063 = vmax.xlane.f32.xlu1 %v3062_v40 }
0x16a6   : > { %v3166_v42 = vpop.f32.mrb[84].mxu1 }
0x16a7   : > { %v3172_v43 = vmul.f32 0.35355338, %v3166_v42  ;;  %v8450_v44 = vpop.f32.mrb[85].mxu1 }
0x16a8   : > { %v3169_v31 = vpop.f32.mrb[86].mxu1 }
0x16a9   : > { %v3173_v46 = vsel %vm537_vm3, -1e+09, %v3172_v43  ;;  %v8451_v2 = vpop.f32.mrb[87].mxu1 }
0x16aa   : > { %v3174_v47 = vsel %vm728_vm4, %v3173_v46, -inf }
0x16ab   : > { %3175 = vmax.xlane.f32.xlu0 %v3174_v47 }
0x16ae   : > { %v3278_v41 = vpop.f32.mrb[88].mxu1 }
0x16af   : > { %v3284_v49 = vmul.f32 0.35355338, %v3278_v41  ;;  %v8462_v50 = vpop.f32.mrb[89].mxu1 }
0x16b0   : > { %v3281_v48 = vpop.f32.mrb[90].mxu1 }
0x16b1   : > { %v3285_v52 = vsel %vm537_vm3, -1e+09, %v3284_v49  ;;  %v8463_v39 = vpop.f32.mrb[91].mxu1 }
0x16b2   : > { %v3286_v53 = vsel %vm728_vm4, %v3285_v52, -inf }
0x16b3   : > { %3287 = vmax.xlane.f32.xlu0 %v3286_v53 }
0x16b6   : > { %v3390_v45 = vpop.f32.mrb[92].mxu1 }
0x16b7   : > { %v3396_v32 = vmul.f32 0.35355338, %v3390_v45  ;;  %v8474_v55 = vpop.f32.mrb[93].mxu1 }
0x16b8   : > { %v3393_v57 = vpop.f32.mrb[94].mxu1 }
0x16b9   : > { %v3397_v58 = vsel %vm537_vm3, -1e+09, %v3396_v32  ;;  %v8475_v59 = vpop.f32.mrb[95].mxu1 }
0x16ba   : > { %v3398_v62 = vsel %vm728_vm4, %v3397_v58, -inf }
0x16bb   : > { %3399 = vmax.xlane.f32.xlu1 %v3398_v62 }
0x16be   : > { %v3502_v16 = vpop.f32.mrb[96].mxu1 }
0x16bf   : > { %v3508_v19 = vmul.f32 0.35355338, %v3502_v16  ;;  %v8486_v63 = vpop.f32.mrb[97].mxu1 }
0x16c0   : > { %v3505_v4 = vpop.f32.mrb[98].mxu1 }
0x16c1   : > { %v3509_v6 = vsel %vm537_vm3, -1e+09, %v3508_v19  ;;  %v8487_v7 = vpop.f32.mrb[99].mxu1 }
0x16c2   : > { %v3510_v9 = vsel %vm728_vm4, %v3509_v6, -inf }
0x16c3   : > { %3511 = vmax.xlane.f32.xlu0 %v3510_v9 }
0x16c6   : > { %v3614_v8 = vpop.f32.mrb[100].mxu1 }
0x16c7   : > { %v3620_v12 = vmul.f32 0.35355338, %v3614_v8  ;;  %v8498_v14 = vpop.f32.mrb[101].mxu1 }
0x16c8   : > { %v3617_v15 = vpop.f32.mrb[102].mxu1 }
0x16c9   : > { %v10267_v17 = vsel %vm537_vm3, -1e+09, %v3620_v12  ;;  %v8499_v20 = vpop.f32.mrb[103].mxu1 }
0x16ca   : > { %v3622_v21 = vsel %vm728_vm4, %v10267_v17, -inf }
0x16cb   : > { %3623 = vmax.xlane.f32.xlu1 %v3622_v21 }
0x16ce   : > { %v3726_v22 = vpop.f32.mrb[104].mxu1 }
0x16cf   : > { %v3732_v13 = vmul.f32 0.35355338, %v3726_v22  ;;  %v8510_v23 = vpop.f32.mrb[105].mxu1 }
0x16d0   : > { %v3729_v24 = vpop.f32.mrb[106].mxu1 }
0x16d1   : > { %v3733_v25 = vsel %vm537_vm3, -1e+09, %v3732_v13  ;;  %v8511_v0 = vpop.f32.mrb[107].mxu1 }
0x16d2   : > { %v3734_v26 = vsel %vm728_vm4, %v3733_v25, -inf }
0x16d3   : > { %3735 = vmax.xlane.f32.xlu0 %v3734_v26 }
0x16d6   : > { %v3838_v10 = vpop.f32.mrb[108].mxu1 }
0x16d7   : > { %v8522_v56 = vpop.f32.mrb[109].mxu1  ;;  %v3844_v54 = vmul.f32 0.35355338, %v3838_v10 }
0x16d8   : > { %v3841_v18 = vpop.f32.mrb[110].mxu1 }
0x16d9   : > { %v8523_v28 = vpop.f32.mrb[111].mxu1  ;;  %v3845_v11 = vsel %vm537_vm3, -1e+09, %v3844_v54 }
0x16da   : > { %v3846_v3 = vsel %vm728_vm4, %v3845_v11, -inf }
0x16dc   : > { %3186 = vrot.lane.b32.xlu1 %v10160_v60, %s11537_s0 }
0x16e9   : > { %3074 = vrot.lane.b32.xlu0 %v10160_v60, %s11538_s15 }
0x1700   : > { %3847 = vmax.xlane.f32.xlu1 %v3846_v3 }
0x1711   : > { %3298 = vrot.lane.b32.xlu1 %v10160_v60, %s11539_s13 }
0x1730   : > { %v3064_v36 = vpop.xlane.xlu1 %3063 }
0x1731   : > { %v3065_v37 = vsub.f32 %v10249_v61, %v3064_v36 }
0x1733   : > { %v3066_v38 = vmul.f32 1.442695, %v3065_v37 }
0x1735   : > { %9109 = vpow2.f32 %v3066_v38 }
0x1738   : > { %v3176_v27 = vpop.xlane.xlu0 %3175 }
0x1739   : > { %v3177_v40 = vsub.f32 %v3173_v46, %v3176_v27 }
0x173b   : > { %v3178_v42 = vmul.f32 1.442695, %v3177_v40 }
0x173d   : > { %9111 = vpow2.f32 %v3178_v42 }
0x173f   : > { %v10284_v43 = vpop.eup %9109 }
0x1740   : > { %v3288_v44 = vpop.xlane.xlu0 %3287  ;;  %v3068_v31 = vsel %vm728_vm4, %v10284_v43, 0.0 }
0x1741   : > { %v3289_v2 = vsub.f32 %v3285_v52, %v3288_v44  ;;  %3069 = vadd.xlane.f32.xlu0 %v3068_v31 }
0x1743   : > { %v3290_v47 = vmul.f32 1.442695, %v3289_v2 }
0x1745   : > { %9113 = vpow2.f32 %v3290_v47 }
0x1747   : > { %v10288_v41 = vpop.eup %9111 }
0x1748   : > { %v3400_v49 = vpop.xlane.xlu1 %3399  ;;  %v3180_v61 = vsel %vm728_vm4, %v10288_v41, 0.0 }
0x1749   : > { %v3401_v50 = vsub.f32 %v3397_v58, %v3400_v49  ;;  %3181 = vadd.xlane.f32.xlu1 %v3180_v61 }
0x174b   : > { %v3402_v46 = vmul.f32 1.442695, %v3401_v50 }
0x174d   : > { %9115 = vpow2.f32 %v3402_v46 }
0x174f   : > { %v10292_v48 = vpop.eup %9113 }
0x1750   : > { %v3512_v39 = vpop.xlane.xlu0 %3511  ;;  %v3292_v53 = vsel %vm728_vm4, %v10292_v48, 0.0 }
0x1751   : > { %v3513_v52 = vsub.f32 %v3509_v6, %v3512_v39  ;;  %3293 = vadd.xlane.f32.xlu0 %v3292_v53 }
0x1753   : > { %v3514_v45 = vmul.f32 1.442695, %v3513_v52 }
0x1755   : > { %9117 = vpow2.f32 %v3514_v45 }
0x1757   : > { %v10296_v32 = vpop.eup %9115 }
0x1758   : > { %v3404_v55 = vsel %vm728_vm4, %v10296_v32, 0.0  ;;  %v3624_v4 = vpop.xlane.xlu1 %3623 }
0x1759   : > { %3405 = vadd.xlane.f32.xlu1 %v3404_v55  ;;  %v3625_v7 = vsub.f32 %v10267_v17, %v3624_v4 }
0x175b   : > { %v3626_v8 = vmul.f32 1.442695, %v3625_v7 }
0x175c   : > { %v3187_v15 = vpop.permute.xlu1 %3186 }
0x175d   : > { %v3192_v56 = vsel %vm746_vm5, %v3187_v15, 0 }
0x175f   : > { %v10300_v57 = vpop.eup %9117 }
0x1760   : > { %v3736_v58 = vpop.xlane.xlu0 %3735  ;;  %v3516_v59 = vsel %vm728_vm4, %v10300_v57, 0.0 }
0x1761   : > { %v3737_v62 = vsub.f32 %v3733_v25, %v3736_v58  ;;  %3517 = vadd.xlane.f32.xlu1 %v3516_v59 }
0x1763   : > { %v3738_v16 = vmul.f32 1.442695, %v3737_v62 }
0x1764   : > { %v3075_v19 = vpop.permute.xlu0 %3074 }
0x1765   : > { %9119 = vpow2.f32 %v3738_v16  ;;  %v3080_v63 = vsel %vm746_vm5, %v3075_v19, 0 }
0x1766   : > { %8441 = vmatpush3.bf16.msra.mxu0 %v3080_v63  ;;  %9121 = vpow2.f32 %v3626_v8 }
0x1767   : > { %3410 = vrot.lane.b32.xlu0 %v10160_v60, %s11540_s25  ;;  %8452 = vmatprep.subr.bf16.mxu0 %v9345_v1 }
0x176f   : > { %v10308_v6 = vpop.eup %9119 }
0x1770   : > { %v3740_v9 = vsel %vm728_vm4, %v10308_v6, 0.0  ;;  %v10313_v12 = vpop.eup %9121 }
0x1771   : > { %3741 = vadd.xlane.f32.xlu1 %v3740_v9  ;;  %v3628_v14 = vsel %vm728_vm4, %v10313_v12, 0.0  ;;  %v10385_v9 = vld [vmem:[%s11517_s8 + $0x8] sm:$0xff]  }
0x1786   : > { %3629 = vadd.xlane.f32.xlu0 %v3628_v14 }
0x178d   : > { %v3848_v20 = vpop.xlane.xlu1 %3847 }
0x178e   : > { %v3849_v21 = vsub.f32 %v3845_v11, %v3848_v20 }
0x1790   : > { %v3850_v22 = vmul.f32 1.442695, %v3849_v21 }
0x1791   : > { %v3299_v24 = vpop.permute.xlu1 %3298 }
0x1792   : > { %9123 = vpow2.f32 %v3850_v22  ;;  %v3304_v11 = vsel %vm746_vm5, %v3299_v24, 0 }
0x179c   : > { %v10317_v13 = vpop.eup %9123  ;;  %3634 = vrot.lane.b32.xlu0 %v10160_v60, %s11541_s22 }
0x179d   : > { %v3852_v17 = vsel %vm728_vm4, %v10317_v13, 0.0 }
0x179e   : > { %3853 = vadd.xlane.f32.xlu1 %v3852_v17 }
0x17a0   : > { %3746 = vrot.lane.b32.xlu0 %v10160_v60, %s11542_s14 }
0x17a4   : > { %3858 = vrot.lane.b32.xlu0 %v10160_v60, %s11543_s12 }
0x17af   : > { %3522 = vrot.lane.b32.xlu1 %v10160_v60, %s11544_s11 }
0x17ce   : > { %v3070_v23 = vpop.xlane.xlu0 %3069 }
0x17cf   : > { %9125 = vrcp.f32 %v3070_v23 }
0x17d6   : > { %v3182_v25 = vpop.xlane.xlu1 %3181 }
0x17d7   : > { %9127 = vrcp.f32 %v3182_v25 }
0x17d9   : > { %v9126_v0 = vpop.eup %9125 }
0x17da   : > { %v3072_v26 = vmul.f32 %v9126_v0, %v10284_v43 }
0x17dc   : > { %v3073_v10 = vpack.c.bf16 %v3072_v26, %v3072_v26 }
0x17de   : > { %8443 = vmatmul.mubr.msk.bf16.vlgmr.msra.gmra.mrb[84].mxu0 %vm728_vm4, %v3073_v10  ;;  %v3294_v18 = vpop.xlane.xlu0 %3293 }
0x17df   : > { %9129 = vrcp.f32 %v3294_v18  ;;  %8453 = vmatpush3.bf16.msra.mxu0 %v3192_v56  ;;  %8454 = vmatprep.mubr.msk.bf16.mxu0 %vm9346_vm0, %v9345_v1 }
0x17e0   : > { %8464 = vmatprep.subr.bf16.mxu0 %v9345_v1 }
0x17e1   : > { %v9128_v60 = vpop.eup %9127 }
0x17e2   : > { %v3184_v28 = vmul.f32 %v9128_v60, %v10288_v41  ;;  %v3411_v38 = vpop.permute.xlu0 %3410 }
0x17e3   : > { %v3416_v40 = vsel %vm746_vm5, %v3411_v38, 0 }
0x17e4   : > { %v3185_v54 = vpack.c.bf16 %v3184_v28, %v3184_v28 }
0x17e6   : > { %8455 = vmatmul.mubr.msk.bf16.vlgmr.msra.gmra.mrb[88].mxu0 %vm728_vm4, %v3185_v54  ;;  %v3406_v3 = vpop.xlane.xlu1 %3405 }
0x17e7   : > { %8465 = vmatpush3.bf16.msra.mxu0 %v3304_v11  ;;  %9131 = vrcp.f32 %v3406_v3  ;;  %8466 = vmatprep.mubr.msk.bf16.mxu0 %vm9346_vm0, %v9345_v1 }
0x17e8   : > { %8476 = vmatprep.subr.bf16.mxu0 %v9345_v1 }
0x17e9   : > { %v9130_v36 = vpop.eup %9129 }
0x17ea   : > { %v3296_v37 = vmul.f32 %v9130_v36, %v10292_v48 }
0x17ec   : > { %v3297_v27 = vpack.c.bf16 %v3296_v37, %v3296_v37 }
0x17ee   : > { %8467 = vmatmul.mubr.msk.bf16.vlgmr.msra.gmra.mrb[92].mxu0 %vm728_vm4, %v3297_v27  ;;  %v3518_v31 = vpop.xlane.xlu1 %3517 }
0x17ef   : > { %8477 = vmatpush3.bf16.msra.mxu0 %v3416_v40  ;;  %8478 = vmatprep.mubr.msk.bf16.mxu0 %vm9346_vm0, %v9345_v1  ;;  %9133 = vrcp.f32 %v3518_v31 }
0x17f0   : > { %8488 = vmatprep.subr.bf16.mxu0 %v9345_v1 }
0x17f1   : > { %v9132_v42 = vpop.eup %9131 }
0x17f2   : > { %v3408_v43 = vmul.f32 %v9132_v42, %v10296_v32 }
0x17f4   : > { %v3409_v44 = vpack.c.bf16 %v3408_v43, %v3408_v43 }
0x17f6   : > { %8479 = vmatmul.mubr.msk.bf16.vlgmr.msra.gmra.mrb[96].mxu0 %vm728_vm4, %v3409_v44 }
0x17f7   : > { %8490 = vmatprep.mubr.msk.bf16.mxu0 %vm9346_vm0, %v9345_v1 }
0x17f9   : > { %v9134_v41 = vpop.eup %9133 }
0x17fa   : > { %v3520_v61 = vmul.f32 %v9134_v41, %v10300_v57 }
0x17fc   : > { %v3521_v39 = vpack.c.bf16 %v3520_v61, %v3520_v61 }
0x17fe   : > { %v3742_v47 = vpop.xlane.xlu1 %3741 }
0x1813   : > { %v3630_v2 = vpop.xlane.xlu0 %3629 }
0x1814   : > { %9135 = vrcp.f32 %v3630_v2 }
0x1815   : > { %9137 = vrcp.f32 %v3742_v47 }
0x1817   : > { %v3635_v48 = vpop.permute.xlu0 %3634 }
0x1818   : > { %v3640_v52 = vsel %vm746_vm5, %v3635_v48, 0 }
0x181b   : > { %v3747_v32 = vpop.permute.xlu0 %3746 }
0x181c   : > { %v3752_v58 = vsel %vm746_vm5, %v3747_v32, 0 }
0x181e   : > { %v9136_v53 = vpop.eup %9135 }
0x181f   : > { %v3632_v45 = vmul.f32 %v9136_v53, %v10313_v12  ;;  %v9138_v57 = vpop.eup %9137  ;;  %v3859_v62 = vpop.permute.xlu0 %3858 }
0x1820   : > { %v3744_v59 = vmul.f32 %v9138_v57, %v10308_v6  ;;  %v3864_v63 = vsel %vm746_vm5, %v3859_v62, 0  ;;  %v10376_v6 = vld [vmem:[%s11517_s8] sm:$0xff]   ;;  %s11557_s8 = smov 24  }
0x1821   : > { %v3633_v55 = vpack.c.bf16 %v3632_v45, %v3632_v45 }
0x1822   : > { %v3745_v16 = vpack.c.bf16 %v3744_v59, %v3744_v59 }
0x182b   : > { %v3854_v49 = vpop.xlane.xlu1 %3853 }
0x182c   : > { %9139 = vrcp.f32 %v3854_v49 }
0x182f   : > { %v3523_v50 = vpop.permute.xlu1 %3522 }
0x1830   : > { %v3528_v46 = vsel %vm746_vm5, %v3523_v50, 0 }
0x1831   : > { %8489 = vmatpush3.bf16.msra.mxu0 %v3528_v46 }
0x1832   : > { %8500 = vmatprep.subr.bf16.mxu0 %v9345_v1 }
0x1834   : > { %8491 = vmatmul.mubr.msk.bf16.vlgmr.msra.gmra.mrb[100].mxu0 %vm728_vm4, %v3521_v39 }
0x1835   : > { %8501 = vmatpush3.bf16.msra.mxu0 %v3640_v52  ;;  %8502 = vmatprep.mubr.msk.bf16.mxu0 %vm9346_vm0, %v9345_v1 }
0x1836   : > { %8512 = vmatprep.subr.bf16.mxu0 %v9345_v1  ;;  %v9140_v19 = vpop.eup %9139 }
0x1837   : > { %v3856_v4 = vmul.f32 %v9140_v19, %v10317_v13 }
0x1839   : > { %v3857_v7 = vpack.c.bf16 %v3856_v4, %v3856_v4 }
0x183c   : > { %8503 = vmatmul.mubr.msk.bf16.vlgmr.msra.gmra.mrb[104].mxu0 %vm728_vm4, %v3633_v55 }
0x183d   : > { %8513 = vmatpush3.bf16.msra.mxu0 %v3752_v58  ;;  %8514 = vmatprep.mubr.msk.bf16.mxu0 %vm9346_vm0, %v9345_v1 }
0x183e   : > { %8524 = vmatprep.subr.bf16.mxu0 %v9345_v1 }
0x1844   : > { %8515 = vmatmul.mubr.msk.bf16.vlgmr.msra.gmra.mrb[108].mxu0 %vm728_vm4, %v3745_v16 }
0x1845   : > { %8525 = vmatpush3.bf16.msra.mxu0 %v3864_v63  ;;  %8526 = vmatprep.mubr.msk.bf16.mxu0 %vm9346_vm0, %v9345_v1 }
0x1846   : > { %8538 = vmatprep.subr.bf16.mxu0 %v9345_v1 }
0x184c   : > { %8527 = vmatmul.mubr.msk.bf16.vlgmr.msra.gmra.mrb[112].mxu0 %vm728_vm4, %v3857_v7 }
0x184d   : > { %8539 = vmatpush3.bf16.msra.mxu0 %v10376_v6  ;;  %8542 = vmatprep.mubr.msk.bf16.mxu0 %vm9346_vm0, %v9345_v1 }
0x184e   : > { %8540 = vmatprep.subr.bf16.mxu0 %v9345_v1 }
0x1851   : > { %8541 = vmatpush3.bf16.msra.mxu0 %v10385_v9 }
0x1852   : > { %8554 = vmatprep.subr.bf16.mxu0 %v9345_v1 }
0x18b1   : > { %v3116_v8 = vpop.f32.mrb[84].mxu0 }
0x18b2   : > { %v8444_v12 = vpop.f32.mrb[85].mxu0 }
0x18b3   : > { %v3119_v14 = vpop.f32.mrb[86].mxu0 }
0x18b4   : > { %v8445_v15 = vpop.f32.mrb[87].mxu0 }
0x18b9   : > { %v3228_v20 = vpop.f32.mrb[88].mxu0 }
0x18ba   : > { %3907 = vrot.lane.b32.xlu1 %v3228_v20, %s11545_s9  ;;  %v8456_v21 = vpop.f32.mrb[89].mxu0 }
0x18bb   : > { %v3231_v22 = vpop.f32.mrb[90].mxu0 }
0x18bc   : > { %v8457_v13 = vpop.f32.mrb[91].mxu0 }
0x18c1   : > { %v3340_v17 = vpop.f32.mrb[92].mxu0 }
0x18c2   : > { %3911 = vrot.lane.b32.xlu0 %v3340_v17, %s11553_s3  ;;  %v8468_v23 = vpop.f32.mrb[93].mxu0 }
0x18c3   : > { %v3343_v24 = vpop.f32.mrb[94].mxu0 }
0x18c4   : > { %v8469_v25 = vpop.f32.mrb[95].mxu0 }
0x18c9   : > { %v3452_v0 = vpop.f32.mrb[96].mxu0 }
0x18ca   : > { %3915 = vrot.lane.b32.xlu1 %v3452_v0, %s11554_s10  ;;  %v8480_v26 = vpop.f32.mrb[97].mxu0  ;;  %s11560_s10 = sld [smem:[#allocation19_spill]] }
0x18cb   : > { %v3455_v10 = vpop.f32.mrb[98].mxu0 }
0x18cc   : > { %v8481_v56 = vpop.f32.mrb[99].mxu0 }
0x18d0   : > { %v10423_v19 = vld [vmem:[%s11560_s10] ss:$0 sm:$0xff]  ;;  %s11564_s10 = sld [smem:[#allocation25_spill]] }
0x1907   : > { %v3564_v18 = vpop.f32.mrb[100].mxu0 }
0x1908   : > { %3919 = vrot.lane.b32.xlu0 %v3564_v18, %s11555_s5  ;;  %v8492_v60 = vpop.f32.mrb[101].mxu0  ;;  %s11566_s5 = smov 16  }
0x1909   : > { %v3567_v28 = vpop.f32.mrb[102].mxu0 }
0x190a   : > { %v8493_v54 = vpop.f32.mrb[103].mxu0 }
0x190f   : > { %v3676_v11 = vpop.f32.mrb[104].mxu0 }
0x1910   : > { %3923 = vrot.lane.b32.xlu1 %v3676_v11, %s11556_s6  ;;  %v8504_v3 = vpop.f32.mrb[105].mxu0  ;;  %s11563_s6 = sld [smem:[#allocation23_spill]] }
0x1911   : > { %v3679_v36 = vpop.f32.mrb[106].mxu0 }
0x1912   : > { %v8505_v37 = vpop.f32.mrb[107].mxu0 }
0x1916   : > { %v10451_v28 = vld [vmem:[%s11563_s6] ss:$0 sm:$0xff]  ;;  %s11569_s6 = smov 28  }
0x1917   : > { %v3788_v38 = vpop.f32.mrb[108].mxu0 }
0x1918   : > { %3927 = vrot.lane.b32.xlu0 %v3788_v38, %s11557_s8  ;;  %v8516_v27 = vpop.f32.mrb[109].mxu0  ;;  %s11559_s8 = sld [smem:[#allocation24_spill]] }
0x1919   : > { %v3791_v40 = vpop.f32.mrb[110].mxu0  ;;  %v10460_v27 = vld [vmem:[%s11564_s10] ss:$0 sm:$0xff]  ;;  %s11568_s10 = smov 24  }
0x191a   : > { %v8517_v42 = vpop.f32.mrb[111].mxu0 }
0x191e   : > { %v10407_v59 = vld [vmem:[%s11559_s8] sm:$0xff]   ;;  %v10416_v62 = vld [vmem:[%s11559_s8 + $0x8] sm:$0xff]   ;;  %s11562_s8 = sld [smem:[#allocation21_spill]] }
0x191f   : > { %v3900_v43 = vpop.f32.mrb[112].mxu0 }
0x1920   : > { %3931 = vrot.lane.b32.xlu1 %v3900_v43, %s11558_s4  ;;  %v8528_v44 = vpop.f32.mrb[113].mxu0  ;;  %s11567_s4 = smov 20  }
0x1921   : > { %v3903_v31 = vpop.f32.mrb[114].mxu0 }
0x1922   : > { %v8529_v2 = vpop.f32.mrb[115].mxu0 }
0x1924   : > { %v10438_v10 = vld [vmem:[%s11562_s8] ss:$0 sm:$0xff]  ;;  %s11565_s8 = smov 12  }
0x192c   : > { %v3908_v47 = vpop.permute.xlu1 %3907 }
0x192d   : > { %v3934_v50 = vsel %vm679_vm2, %v3116_v8, %v3908_v47 }
0x1934   : > { %v3912_v41 = vpop.permute.xlu0 %3911 }
0x1935   : > { %v3935_v46 = vsel %vm728_vm4, %v3934_v50, %v3912_v41 }
0x193c   : > { %v3916_v49 = vpop.permute.xlu1 %3915 }
0x193d   : > { %v3936_v39 = vsel %vm1604_vm6, %v3935_v46, %v3916_v49 }
0x197a   : > { %v3920_v61 = vpop.permute.xlu0 %3919 }
0x197b   : > { %v3937_v52 = vsel %vm1606_vm7, %v3936_v39, %v3920_v61 }
0x1982   : > { %v3924_v48 = vpop.permute.xlu1 %3923 }
0x1983   : > { %v3938_v45 = vsel %vm1608_vm8, %v3937_v52, %v3924_v48 }
0x198a   : > { %v3928_v53 = vpop.permute.xlu0 %3927 }
0x198b   : > { %v3939_v32 = vsel %vm1610_vm9, %v3938_v45, %v3928_v53 }
0x1992   : > { %v3932_v55 = vpop.permute.xlu1 %3931 }
0x1993   : > { %v3940_v57 = vsel %vm1612_vm10, %v3939_v32, %v3932_v55 }
0x1994   : > { %v3941_v58 = vpack.c.bf16 %v3940_v57, %v3940_v57 }
0x1996   : > { %8535 = vmatmul.mubr.msk.bf16.vlgmr.msra.gmra.mrb[112].mxu1 %vm631_vm1, %v3941_v58 }
0x1997   : > { %8547 = vmatpush3.bf16.msra.mxu1 %v10407_v59  ;;  %8550 = vmatprep.mubr.msk.bf16.mxu1 %vm9346_vm0, %v9345_v1 }
0x1998   : > { %8548 = vmatprep.subr.bf16.mxu1 %v9345_v1 }
0x199b   : > { %8549 = vmatpush3.bf16.msra.mxu1 %v10416_v62 }
0x199c   : > { %8562 = vmatprep.subr.bf16.mxu1 %v9345_v1 }
0x1a69   : > { %v3979_v16 = vpop.f32.mrb[112].mxu1 }
0x1a6a   : > { %v3980_v63 = vadd.f32 %v10423_v19, %v3979_v16  ;;  %v8536_v4 = vpop.f32.mrb[113].mxu1 }
0x1a6b   : > { %v3982_v7 = vpop.f32.mrb[114].mxu1 }
0x1a6c   : > { %v3985_v8 = vadd.f32 %v3980_v63, %v10147_v51  ;;  %v8537_v12 = vpop.f32.mrb[115].mxu1  ;;  %v10432_v51 = vld [vmem:[%s11561_s2] ss:$0 sm:$0xff]  ;;  %s11572_s2 = sld [smem:[#allocation18_spill]] }
0x1a6e   : > { %v3986_v14 = vsel %vm631_vm1, %v3985_v8, 0.0 }
0x1a6f   : > { %3987 = vadd.xlane.f32.xlu0 %v3986_v14 }
0x1afc   : > { %v3988_v15 = vpop.xlane.xlu0 %3987 }
0x1afd   : > { %v3989_v20 = vmul.f32 0.03125, %v3988_v15 }
0x1aff   : > { %v3990_v21 = vsub.f32 %v3985_v8, %v3989_v20 }
0x1b01   : > { %v3991_v22 = vmul.f32 %v3990_v21, %v3990_v21 }
0x1b03   : > { %v3992_v13 = vsel %vm631_vm1, %v3991_v22, 0.0 }
0x1b04   : > { %3993 = vadd.xlane.f32.xlu1 %v3992_v13 }
0x1b91   : > { %v3994_v17 = vpop.xlane.xlu1 %3993 }
0x1b92   : > { %v3995_v23 = vmul.f32 0.03125, %v3994_v17 }
0x1b94   : > { %v3996_v24 = vadd.f32 1e-05, %v3995_v23 }
0x1b96   : > { %9141 = vrsqrt.f32 %v3996_v24 }
0x1ba0   : > { %v9142_v25 = vpop.eup %9141 }
0x1ba1   : > { %v3998_v0 = vmul.f32 %v9142_v25, %v3990_v21 }
0x1ba3   : > { %v3999_v26 = vmul.f32 %v10432_v51, %v3998_v0 }
0x1ba5   : > { %v4000_v56 = vadd.f32 %v10438_v10, %v3999_v26 }
0x1ba7   : > { %v4001_v18 = vpack.c.bf16 %v4000_v56, %v4000_v56 }
0x1ba9   : > { %8543 = vmatmul.mubr.msk.bf16.vlgmr.msra.gmra.mrb[116].mxu0 %vm631_vm1, %v4001_v18 }
0x1baa   : > { %8555 = vmatpush3.bf16.msra.mxu0 %v10125_v29  ;;  %8558 = vmatprep.mubr.msk.bf16.mxu0 %vm9346_vm0, %v9345_v1 }
0x1bab   : > { %8556 = vmatprep.subr.bf16.mxu0 %v9345_v1 }
0x1bae   : > { %8557 = vmatpush3.bf16.msra.mxu0 %v10134_v30 }
0x1baf   : > { %8568 = vmatprep.subr.bf16.mxu0 %v9345_v1 }
0x1c7c   : > { %v4039_v60 = vpop.f32.mrb[116].mxu0 }
0x1c7d   : > { %v4040_v54 = vadd.f32 %v10451_v28, %v4039_v60  ;;  %v8544_v11 = vpop.f32.mrb[117].mxu0 }
0x1c7e   : > { %v4042_v3 = vpop.f32.mrb[118].mxu0 }
0x1c7f   : > { %vm4045_vm15 = vcmp.ge.f32.partialorder %v4040_v54, 0.0  ;;  %v4046_v29 = vmul.f32 0.01, %v4040_v54  ;;  %v8545_v36 = vpop.f32.mrb[119].mxu0 }
0x1c81   : > { %v4047_v37 = vsel %vm4045_vm15, %v4040_v54, %v4046_v29 }
0x1c82   : > { %v4048_v38 = vpack.c.bf16 %v4047_v37, %v4047_v37 }
0x1c84   : > { %8551 = vmatmul.mubr.msk.bf16.vlgmr.msra.gmra.mrb[116].mxu1 %vm631_vm1, %v4048_v38 }
0x1c85   : > { %8564 = vmatprep.mubr.msk.bf16.mxu1 %vm9346_vm0, %v9345_v1 }
0x1d57   : > { %v4086_v30 = vpop.f32.mrb[116].mxu1 }
0x1d58   : > { %v4087_v40 = vadd.f32 %v10460_v27, %v4086_v30  ;;  %v8552_v42 = vpop.f32.mrb[117].mxu1 }
0x1d59   : > { %v4089_v43 = vpop.f32.mrb[118].mxu1 }
0x1d5a   : > { %v4092_v44 = vadd.f32 %v4087_v40, %v4000_v56  ;;  %v8553_v31 = vpop.f32.mrb[119].mxu1 }
0x1d5c   : > { %v4093_v2 = vsel %vm631_vm1, %v4092_v44, 0.0 }
0x1d5d   : > { %4094 = vadd.xlane.f32.xlu0 %v4093_v2 }
0x1dea   : > { %v4095_v47 = vpop.xlane.xlu0 %4094 }
0x1deb   : > { %v4096_v41 = vmul.f32 0.03125, %v4095_v47 }
0x1ded   : > { %v4097_v49 = vsub.f32 %v4092_v44, %v4096_v41 }
0x1def   : > { %v4098_v61 = vmul.f32 %v4097_v49, %v4097_v49 }
0x1df1   : > { %v4099_v50 = vsel %vm631_vm1, %v4098_v61, 0.0 }
0x1df2   : > { %4100 = vadd.xlane.f32.xlu0 %v4099_v50 }
0x1e7f   : > { %v4101_v46 = vpop.xlane.xlu0 %4100 }
0x1e80   : > { %v4102_v48 = vmul.f32 0.03125, %v4101_v46 }
0x1e82   : > { %v4103_v39 = vadd.f32 1e-05, %v4102_v48 }
0x1e84   : > { %9143 = vrsqrt.f32 %v4103_v39 }
0x1e8e   : > { %v9144_v53 = vpop.eup %9143 }
0x1e8f   : > { %v4105_v52 = vmul.f32 %v9144_v53, %v4097_v49 }
0x1e91   : > { %v4106_v45 = vmul.f32 %v10432_v51, %v4105_v52 }
0x1e93   : > { %v4107_v32 = vadd.f32 %v10438_v10, %v4106_v45 }
0x1e95   : > { %vm4108_vm11 = vcmp.ge.f32.partialorder %v4107_v32, 0.0  ;;  %v4109_v55 = vmul.f32 0.01, %v4107_v32 }
0x1e97   : > { %v10467_v57 = vsel %vm4108_vm11, %v4107_v32, %v4109_v55 }
0x1e98   : > { %v4111_v58 = vpack.c.bf16 %v10467_v57, %v10467_v57 }
0x1e9a   : > { %8559 = vmatmul.mubr.msk.bf16.vlgmr.msra.gmra.mrb[120].mxu0 %vm631_vm1, %v4111_v58 }
0x1e9b   : > { %8570 = vmatprep.mubr.msk.bf16.mxu0 %vm9346_vm0, %v9345_v1 }
0x1f6d   : > { %v4149_v16 = vpop.f32.mrb[120].mxu0 }
0x1f6e   : > { %v4150_v63 = vadd.f32 %v10157_v5, %v4149_v16  ;;  %v8560_v4 = vpop.f32.mrb[121].mxu0 }
0x1f6f   : > { %v4152_v7 = vpop.f32.mrb[122].mxu0 }
0x1f70   : > { %v10475_v8 = vpack.c.bf16 %v4150_v63, %v4150_v63  ;;  %v8561_v12 = vpop.f32.mrb[123].mxu0 }
0x1f72   : > { %4269 = vrot.lane.b32.xlu0 %v10475_v8, %s11523_s19  ;;  %4157 = vrot.lane.b32.xlu1 %v10475_v8, %s11524_s20 }
0x1f76   : > { %4379 = vrot.lane.b32.xlu0 %v10475_v8, %s11525_s28  ;;  %4267 = vrot.lane.b32.xlu1 %v10475_v8, %s11526_s29 }
0x1f7a   : > { %4491 = vrot.lane.b32.xlu0 %v10475_v8, %s11527_s18  ;;  %4381 = vrot.lane.b32.xlu1 %v10475_v8, %s11528_s30 }
0x1f7e   : > { %4603 = vrot.lane.b32.xlu0 %v10475_v8, %s11552_s7  ;;  %4493 = vrot.lane.b32.xlu1 %v10475_v8, %s11529_s26 }
0x1f82   : > { %4715 = vrot.lane.b32.xlu0 %v10475_v8, %s11530_s1  ;;  %4605 = vrot.lane.b32.xlu1 %v10475_v8, %s11531_s27 }
0x1f86   : > { %4827 = vrot.lane.b32.xlu0 %v10475_v8, %s11532_s17  ;;  %4717 = vrot.lane.b32.xlu1 %v10475_v8, %s11533_s21 }
0x1f8a   : > { %4939 = vrot.lane.b32.xlu0 %v10475_v8, %s11534_s24  ;;  %4829 = vrot.lane.b32.xlu1 %v10475_v8, %s11535_s16 }
0x1f8e   : > { %4941 = vrot.lane.b32.xlu1 %v10475_v8, %s11536_s23 }
0x1fe4   : > { %v4158_v5 = vpop.permute.xlu1 %4157  ;;  %v4270_v15 = vpop.permute.xlu0 %4269 }
0x1fe5   : > { %v4163_v14 = vsel %vm679_vm2, %v4158_v5, 0  ;;  %v4275_v21 = vsel %vm679_vm2, %v4270_v15, 0 }
0x1fe6   : > { %8563 = vmatpush3.bf16.xpose.msra.mxu1 %v4163_v14 }
0x1fe7   : > { %8574 = vmatprep.subr.bf16.mxu1 %v9345_v1 }
0x1fe8   : > { %v4268_v20 = vpop.permute.xlu1 %4267  ;;  %v4380_v23 = vpop.permute.xlu0 %4379 }
0x1fec   : > { %v4382_v22 = vpop.permute.xlu1 %4381  ;;  %v4492_v0 = vpop.permute.xlu0 %4491 }
0x1fed   : > { %8565 = vmatmul.mubr.msk.bf16.vlgmr.msra.gmra.mrb[120].mxu1 %vm679_vm2, %v10475_v8  ;;  %v4387_v13 = vsel %vm679_vm2, %v4382_v22, 0 }
0x1fee   : > { %8575 = vmatpush3.bf16.xpose.msra.mxu1 %v4275_v21  ;;  %8576 = vmatprep.mubr.msk.bf16.mxu1 %vm9346_vm0, %v9345_v1 }
0x1fef   : > { %8586 = vmatprep.subr.bf16.mxu1 %v9345_v1 }
0x1ff0   : > { %v4494_v17 = vpop.permute.xlu1 %4493  ;;  %v4604_v18 = vpop.permute.xlu0 %4603 }
0x1ff1   : > { %v4499_v24 = vsel %vm679_vm2, %v4494_v17, 0 }
0x1ff4   : > { %v4606_v25 = vpop.permute.xlu1 %4605  ;;  %v4716_v11 = vpop.permute.xlu0 %4715 }
0x1ff5   : > { %8577 = vmatmul.mubr.msk.bf16.vlgmr.msra.gmra.mrb[124].mxu1 %vm679_vm2, %v4268_v20  ;;  %v4611_v26 = vsel %vm679_vm2, %v4606_v25, 0 }
0x1ff6   : > { %8587 = vmatpush3.bf16.xpose.msra.mxu1 %v4387_v13  ;;  %8588 = vmatprep.mubr.msk.bf16.mxu1 %vm9346_vm0, %v9345_v1 }
0x1ff7   : > { %8598 = vmatprep.subr.bf16.mxu1 %v9345_v1 }
0x1ff8   : > { %v4718_v56 = vpop.permute.xlu1 %4717  ;;  %v4828_v36 = vpop.permute.xlu0 %4827 }
0x1ff9   : > { %v4723_v60 = vsel %vm679_vm2, %v4718_v56, 0 }
0x1ffc   : > { %v4830_v54 = vpop.permute.xlu1 %4829  ;;  %v4940_v38 = vpop.permute.xlu0 %4939 }
0x1ffd   : > { %8589 = vmatmul.mubr.msk.bf16.vlgmr.msra.gmra.mrb[128].mxu1 %vm679_vm2, %v4380_v23  ;;  %v4835_v3 = vsel %vm679_vm2, %v4830_v54, 0 }
0x1ffe   : > { %8599 = vmatpush3.bf16.xpose.msra.mxu1 %v4499_v24  ;;  %8600 = vmatprep.mubr.msk.bf16.mxu1 %vm9346_vm0, %v9345_v1 }
0x1fff   : > { %8610 = vmatprep.subr.bf16.mxu1 %v9345_v1 }
0x2000   : > { %v4942_v29 = vpop.permute.xlu1 %4941 }
0x2001   : > { %v4947_v37 = vsel %vm679_vm2, %v4942_v29, 0 }
0x2005   : > { %8601 = vmatmul.mubr.msk.bf16.vlgmr.msra.gmra.mrb[132].mxu1 %vm679_vm2, %v4492_v0 }
0x2006   : > { %8611 = vmatpush3.bf16.xpose.msra.mxu1 %v4611_v26  ;;  %8612 = vmatprep.mubr.msk.bf16.mxu1 %vm9346_vm0, %v9345_v1 }
0x2007   : > { %8622 = vmatprep.subr.bf16.mxu1 %v9345_v1 }
0x200d   : > { %8613 = vmatmul.mubr.msk.bf16.vlgmr.msra.gmra.mrb[136].mxu1 %vm679_vm2, %v4604_v18 }
0x200e   : > { %8623 = vmatpush3.bf16.xpose.msra.mxu1 %v4723_v60  ;;  %8624 = vmatprep.mubr.msk.bf16.mxu1 %vm9346_vm0, %v9345_v1 }
0x200f   : > { %8634 = vmatprep.subr.bf16.mxu1 %v9345_v1 }
0x2015   : > { %8625 = vmatmul.mubr.msk.bf16.vlgmr.msra.gmra.mrb[140].mxu1 %vm679_vm2, %v4716_v11 }
0x2016   : > { %8635 = vmatpush3.bf16.xpose.msra.mxu1 %v4835_v3  ;;  %8636 = vmatprep.mubr.msk.bf16.mxu1 %vm9346_vm0, %v9345_v1 }
0x2017   : > { %8646 = vmatprep.subr.bf16.mxu1 %v9345_v1 }
0x201d   : > { %8637 = vmatmul.mubr.msk.bf16.vlgmr.msra.gmra.mrb[144].mxu1 %vm679_vm2, %v4828_v36 }
0x201e   : > { %8647 = vmatpush3.bf16.xpose.msra.mxu1 %v4947_v37  ;;  %8648 = vmatprep.mubr.msk.bf16.mxu1 %vm9346_vm0, %v9345_v1 }
0x201f   : > { %8658 = vmatprep.subr.bf16.mxu1 %v9345_v1 }
0x2025   : > { %8649 = vmatmul.mubr.msk.bf16.vlgmr.msra.gmra.mrb[148].mxu1 %vm679_vm2, %v4940_v38 }
0x2026   : > { %8659 = vmatpush3.bf16.msra.mxu1 %v10234_v33  ;;  %8662 = vmatprep.mubr.msk.bf16.mxu1 %vm9346_vm0, %v9345_v1 }
0x2027   : > { %8660 = vmatprep.subr.bf16.mxu1 %v9345_v1 }
0x202a   : > { %8661 = vmatpush3.bf16.msra.mxu1 %v10243_v34 }
0x202b   : > { %8674 = vmatprep.subr.bf16.mxu1 %v9345_v1 }
0x20c0   : > { %v4199_v30 = vpop.f32.mrb[120].mxu1 }
0x20c1   : > { %v4205_v40 = vmul.f32 0.35355338, %v4199_v30  ;;  %v8566_v42 = vpop.f32.mrb[121].mxu1 }
0x20c2   : > { %v4202_v43 = vpop.f32.mrb[122].mxu1 }
0x20c3   : > { %v10554_v44 = vsel %vm537_vm3, -1e+09, %v4205_v40  ;;  %v8567_v31 = vpop.f32.mrb[123].mxu1 }
0x20c4   : > { %v4207_v33 = vsel %vm728_vm4, %v10554_v44, -inf }
0x20c5   : > { %4208 = vmax.xlane.f32.xlu1 %v4207_v33 }
0x20c8   : > { %v4311_v2 = vpop.f32.mrb[124].mxu1 }
0x20c9   : > { %v4317_v47 = vmul.f32 0.35355338, %v4311_v2  ;;  %v8578_v41 = vpop.f32.mrb[125].mxu1 }
0x20ca   : > { %v4314_v49 = vpop.f32.mrb[126].mxu1 }
0x20cb   : > { %v4318_v34 = vsel %vm537_vm3, -1e+09, %v4317_v47  ;;  %v8579_v61 = vpop.f32.mrb[127].mxu1 }
0x20cc   : > { %v4319_v50 = vsel %vm728_vm4, %v4318_v34, -inf }
0x20cd   : > { %4320 = vmax.xlane.f32.xlu0 %v4319_v50 }
0x20d0   : > { %v4423_v46 = vpop.f32.mrb[128].mxu1 }
0x20d1   : > { %v4429_v48 = vmul.f32 0.35355338, %v4423_v46  ;;  %v8590_v39 = vpop.f32.mrb[129].mxu1 }
0x20d2   : > { %v4426_v53 = vpop.f32.mrb[130].mxu1 }
0x20d3   : > { %v4430_v52 = vsel %vm537_vm3, -1e+09, %v4429_v48  ;;  %v8591_v45 = vpop.f32.mrb[131].mxu1 }
0x20d4   : > { %v4431_v32 = vsel %vm728_vm4, %v4430_v52, -inf }
0x20d5   : > { %4432 = vmax.xlane.f32.xlu0 %v4431_v32 }
0x20d8   : > { %v4535_v55 = vpop.f32.mrb[132].mxu1 }
0x20d9   : > { %v4541_v58 = vmul.f32 0.35355338, %v4535_v55  ;;  %v8602_v16 = vpop.f32.mrb[133].mxu1 }
0x20da   : > { %v4538_v63 = vpop.f32.mrb[134].mxu1 }
0x20db   : > { %v4542_v4 = vsel %vm537_vm3, -1e+09, %v4541_v58  ;;  %v8603_v7 = vpop.f32.mrb[135].mxu1 }
0x20dc   : > { %v4543_v12 = vsel %vm728_vm4, %v4542_v4, -inf }
0x20dd   : > { %4544 = vmax.xlane.f32.xlu1 %v4543_v12 }
0x20e0   : > { %v4647_v5 = vpop.f32.mrb[136].mxu1 }
0x20e1   : > { %v4653_v14 = vmul.f32 0.35355338, %v4647_v5  ;;  %v8614_v15 = vpop.f32.mrb[137].mxu1 }
0x20e2   : > { %v4650_v20 = vpop.f32.mrb[138].mxu1 }
0x20e3   : > { %v4654_v21 = vsel %vm537_vm3, -1e+09, %v4653_v14  ;;  %v8615_v22 = vpop.f32.mrb[139].mxu1 }
0x20e4   : > { %v4655_v13 = vsel %vm728_vm4, %v4654_v21, -inf }
0x20e5   : > { %4656 = vmax.xlane.f32.xlu0 %v4655_v13 }
0x20e8   : > { %v4759_v17 = vpop.f32.mrb[140].mxu1 }
0x20e9   : > { %v4765_v23 = vmul.f32 0.35355338, %v4759_v17  ;;  %v8626_v24 = vpop.f32.mrb[141].mxu1 }
0x20ea   : > { %v4762_v25 = vpop.f32.mrb[142].mxu1 }
0x20eb   : > { %v10572_v0 = vsel %vm537_vm3, -1e+09, %v4765_v23  ;;  %v8627_v26 = vpop.f32.mrb[143].mxu1 }
0x20ec   : > { %v4767_v56 = vsel %vm728_vm4, %v10572_v0, -inf }
0x20ed   : > { %4768 = vmax.xlane.f32.xlu1 %v4767_v56 }
0x20f0   : > { %v4871_v18 = vpop.f32.mrb[144].mxu1 }
0x20f1   : > { %v4877_v60 = vmul.f32 0.35355338, %v4871_v18  ;;  %v8638_v54 = vpop.f32.mrb[145].mxu1 }
0x20f2   : > { %v4874_v11 = vpop.f32.mrb[146].mxu1 }
0x20f3   : > { %v4878_v3 = vsel %vm537_vm3, -1e+09, %v4877_v60  ;;  %v8639_v29 = vpop.f32.mrb[147].mxu1 }
0x20f4   : > { %v4879_v36 = vsel %vm728_vm4, %v4878_v3, -inf }
0x20f5   : > { %4880 = vmax.xlane.f32.xlu0 %v4879_v36 }
0x20f8   : > { %v4983_v37 = vpop.f32.mrb[148].mxu1 }
0x20f9   : > { %v8650_v38 = vpop.f32.mrb[149].mxu1  ;;  %v4989_v42 = vmul.f32 0.35355338, %v4983_v37 }
0x20fa   : > { %v4986_v30 = vpop.f32.mrb[150].mxu1 }
0x20fb   : > { %v8651_v40 = vpop.f32.mrb[151].mxu1  ;;  %v4990_v43 = vsel %vm537_vm3, -1e+09, %v4989_v42 }
0x20fc   : > { %v4991_v31 = vsel %vm728_vm4, %v4990_v43, -inf }
0x20fe   : > { %4331 = vrot.lane.b32.xlu1 %v10475_v8, %s11537_s0 }
0x210b   : > { %4219 = vrot.lane.b32.xlu0 %v10475_v8, %s11538_s15 }
0x2122   : > { %4992 = vmax.xlane.f32.xlu1 %v4991_v31 }
0x2133   : > { %4443 = vrot.lane.b32.xlu1 %v10475_v8, %s11539_s13 }
0x2152   : > { %v4209_v33 = vpop.xlane.xlu1 %4208 }
0x2153   : > { %v4210_v2 = vsub.f32 %v10554_v44, %v4209_v33 }
0x2155   : > { %v4211_v47 = vmul.f32 1.442695, %v4210_v2 }
0x2157   : > { %9145 = vpow2.f32 %v4211_v47 }
0x215a   : > { %v4321_v41 = vpop.xlane.xlu0 %4320 }
0x215b   : > { %v4322_v49 = vsub.f32 %v4318_v34, %v4321_v41 }
0x215d   : > { %v4323_v61 = vmul.f32 1.442695, %v4322_v49 }
0x215f   : > { %9147 = vpow2.f32 %v4323_v61 }
0x2161   : > { %v10589_v50 = vpop.eup %9145 }
0x2162   : > { %v4433_v46 = vpop.xlane.xlu0 %4432  ;;  %v4213_v48 = vsel %vm728_vm4, %v10589_v50, 0.0 }
0x2163   : > { %v4434_v39 = vsub.f32 %v4430_v52, %v4433_v46  ;;  %4214 = vadd.xlane.f32.xlu0 %v4213_v48 }
0x2165   : > { %v4435_v53 = vmul.f32 1.442695, %v4434_v39 }
0x2167   : > { %9149 = vpow2.f32 %v4435_v53 }
0x2169   : > { %v10593_v45 = vpop.eup %9147 }
0x216a   : > { %v4545_v32 = vpop.xlane.xlu1 %4544  ;;  %v4325_v44 = vsel %vm728_vm4, %v10593_v45, 0.0 }
0x216b   : > { %v4546_v55 = vsub.f32 %v4542_v4, %v4545_v32  ;;  %4326 = vadd.xlane.f32.xlu1 %v4325_v44 }
0x216d   : > { %v4547_v34 = vmul.f32 1.442695, %v4546_v55 }
0x216f   : > { %9151 = vpow2.f32 %v4547_v34 }
0x2171   : > { %v10597_v58 = vpop.eup %9149 }
0x2172   : > { %v4657_v16 = vpop.xlane.xlu0 %4656  ;;  %v4437_v63 = vsel %vm728_vm4, %v10597_v58, 0.0 }
0x2173   : > { %v4658_v52 = vsub.f32 %v4654_v21, %v4657_v16  ;;  %4438 = vadd.xlane.f32.xlu0 %v4437_v63 }
0x2175   : > { %v4659_v7 = vmul.f32 1.442695, %v4658_v52 }
0x2177   : > { %9153 = vpow2.f32 %v4659_v7 }
0x2179   : > { %v10601_v12 = vpop.eup %9151 }
0x217a   : > { %v4549_v5 = vsel %vm728_vm4, %v10601_v12, 0.0  ;;  %v4769_v17 = vpop.xlane.xlu1 %4768 }
0x217b   : > { %4550 = vadd.xlane.f32.xlu1 %v4549_v5  ;;  %v4770_v24 = vsub.f32 %v10572_v0, %v4769_v17 }
0x217d   : > { %v4771_v26 = vmul.f32 1.442695, %v4770_v24 }
0x217e   : > { %v4332_v60 = vpop.permute.xlu1 %4331 }
0x2181   : > { %v10605_v4 = vpop.eup %9153 }
0x2182   : > { %v4881_v14 = vpop.xlane.xlu0 %4880  ;;  %v4661_v15 = vsel %vm728_vm4, %v10605_v4, 0.0 }
0x2183   : > { %v4882_v20 = vsub.f32 %v4878_v3, %v4881_v14  ;;  %4662 = vadd.xlane.f32.xlu1 %v4661_v15 }
0x2185   : > { %v4883_v22 = vmul.f32 1.442695, %v4882_v20 }
0x2186   : > { %v4220_v13 = vpop.permute.xlu0 %4219 }
0x2187   : > { %9155 = vpow2.f32 %v4883_v22  ;;  %v4225_v21 = vsel %vm746_vm5, %v4220_v13, 0 }
0x2188   : > { %8569 = vmatpush3.bf16.msra.mxu0 %v4225_v21  ;;  %9157 = vpow2.f32 %v4771_v26 }
0x2189   : > { %4555 = vrot.lane.b32.xlu0 %v10475_v8, %s11540_s25  ;;  %8580 = vmatprep.subr.bf16.mxu0 %v9345_v1 }
0x2191   : > { %v10613_v23 = vpop.eup %9155 }
0x2192   : > { %v4885_v25 = vsel %vm728_vm4, %v10613_v23, 0.0  ;;  %v10618_v56 = vpop.eup %9157 }
0x2193   : > { %4886 = vadd.xlane.f32.xlu1 %v4885_v25  ;;  %v4773_v18 = vsel %vm728_vm4, %v10618_v56, 0.0 }
0x21a8   : > { %4774 = vadd.xlane.f32.xlu0 %v4773_v18 }
0x21af   : > { %v4993_v54 = vpop.xlane.xlu1 %4992 }
0x21b0   : > { %v4994_v11 = vsub.f32 %v4990_v43, %v4993_v54  ;;  %v4337_v43 = vsel %vm746_vm5, %v4332_v60, 0 }
0x21b2   : > { %v4995_v3 = vmul.f32 1.442695, %v4994_v11 }
0x21b3   : > { %v4444_v37 = vpop.permute.xlu1 %4443 }
0x21b4   : > { %9159 = vpow2.f32 %v4995_v3  ;;  %v4449_v47 = vsel %vm746_vm5, %v4444_v37, 0 }
0x21be   : > { %v10622_v29 = vpop.eup %9159  ;;  %4779 = vrot.lane.b32.xlu0 %v10475_v8, %s11541_s22 }
0x21bf   : > { %v4997_v0 = vsel %vm728_vm4, %v10622_v29, 0.0 }
0x21c0   : > { %4998 = vadd.xlane.f32.xlu1 %v4997_v0 }
0x21c2   : > { %4891 = vrot.lane.b32.xlu0 %v10475_v8, %s11542_s14 }
0x21c6   : > { %5003 = vrot.lane.b32.xlu0 %v10475_v8, %s11543_s12 }
0x21d1   : > { %4667 = vrot.lane.b32.xlu1 %v10475_v8, %s11544_s11 }
0x21f0   : > { %v4215_v36 = vpop.xlane.xlu0 %4214 }
0x21f1   : > { %9161 = vrcp.f32 %v4215_v36 }
0x21f8   : > { %v4327_v38 = vpop.xlane.xlu1 %4326 }
0x21f9   : > { %9163 = vrcp.f32 %v4327_v38 }
0x21fb   : > { %v9162_v30 = vpop.eup %9161 }
0x21fc   : > { %v4217_v40 = vmul.f32 %v9162_v30, %v10589_v50 }
0x21fe   : > { %v4218_v42 = vpack.c.bf16 %v4217_v40, %v4217_v40 }
0x2200   : > { %8571 = vmatmul.mubr.msk.bf16.vlgmr.msra.gmra.mrb[124].mxu0 %vm728_vm4, %v4218_v42  ;;  %v4439_v31 = vpop.xlane.xlu0 %4438 }
0x2201   : > { %9165 = vrcp.f32 %v4439_v31  ;;  %8581 = vmatpush3.bf16.msra.mxu0 %v4337_v43  ;;  %8582 = vmatprep.mubr.msk.bf16.mxu0 %vm9346_vm0, %v9345_v1 }
0x2202   : > { %8592 = vmatprep.subr.bf16.mxu0 %v9345_v1 }
0x2203   : > { %v9164_v8 = vpop.eup %9163 }
0x2204   : > { %v4329_v33 = vmul.f32 %v9164_v8, %v10593_v45  ;;  %v4556_v50 = vpop.permute.xlu0 %4555 }
0x2205   : > { %v4561_v48 = vsel %vm746_vm5, %v4556_v50, 0 }
0x2206   : > { %v4330_v2 = vpack.c.bf16 %v4329_v33, %v4329_v33 }
0x2208   : > { %8583 = vmatmul.mubr.msk.bf16.vlgmr.msra.gmra.mrb[128].mxu0 %vm728_vm4, %v4330_v2  ;;  %v4551_v41 = vpop.xlane.xlu1 %4550 }
0x2209   : > { %8593 = vmatpush3.bf16.msra.mxu0 %v4449_v47  ;;  %9167 = vrcp.f32 %v4551_v41  ;;  %8594 = vmatprep.mubr.msk.bf16.mxu0 %vm9346_vm0, %v9345_v1 }
0x220a   : > { %8604 = vmatprep.subr.bf16.mxu0 %v9345_v1 }
0x220b   : > { %v9166_v49 = vpop.eup %9165 }
0x220c   : > { %v4441_v61 = vmul.f32 %v9166_v49, %v10597_v58 }
0x220e   : > { %v4442_v46 = vpack.c.bf16 %v4441_v61, %v4441_v61 }
0x2210   : > { %8595 = vmatmul.mubr.msk.bf16.vlgmr.msra.gmra.mrb[132].mxu0 %vm728_vm4, %v4442_v46  ;;  %v4663_v32 = vpop.xlane.xlu1 %4662 }
0x2211   : > { %8605 = vmatpush3.bf16.msra.mxu0 %v4561_v48  ;;  %8606 = vmatprep.mubr.msk.bf16.mxu0 %vm9346_vm0, %v9345_v1  ;;  %9169 = vrcp.f32 %v4663_v32 }
0x2212   : > { %8616 = vmatprep.subr.bf16.mxu0 %v9345_v1 }
0x2213   : > { %v9168_v39 = vpop.eup %9167 }
0x2214   : > { %v4553_v53 = vmul.f32 %v9168_v39, %v10601_v12 }
0x2216   : > { %v4554_v45 = vpack.c.bf16 %v4553_v53, %v4553_v53 }
0x2218   : > { %8607 = vmatmul.mubr.msk.bf16.vlgmr.msra.gmra.mrb[136].mxu0 %vm728_vm4, %v4554_v45 }
0x2219   : > { %8618 = vmatprep.mubr.msk.bf16.mxu0 %vm9346_vm0, %v9345_v1 }
0x221b   : > { %v9170_v34 = vpop.eup %9169 }
0x221c   : > { %v4665_v16 = vmul.f32 %v9170_v34, %v10605_v4 }
0x221e   : > { %v4666_v12 = vpack.c.bf16 %v4665_v16, %v4665_v16 }
0x2220   : > { %v4887_v55 = vpop.xlane.xlu1 %4886 }
0x2235   : > { %v4775_v44 = vpop.xlane.xlu0 %4774 }
0x2236   : > { %9171 = vrcp.f32 %v4775_v44 }
0x2237   : > { %9173 = vrcp.f32 %v4887_v55 }
0x2239   : > { %v4780_v7 = vpop.permute.xlu0 %4779 }
0x223a   : > { %v4785_v14 = vsel %vm746_vm5, %v4780_v7, 0 }
0x223d   : > { %v4892_v15 = vpop.permute.xlu0 %4891 }
0x223e   : > { %v4897_v13 = vsel %vm746_vm5, %v4892_v15, 0 }
0x2240   : > { %v9172_v5 = vpop.eup %9171 }
0x2241   : > { %v4777_v4 = vmul.f32 %v9172_v5, %v10618_v56  ;;  %v9174_v22 = vpop.eup %9173  ;;  %v5004_v17 = vpop.permute.xlu0 %5003 }
0x2242   : > { %v4889_v21 = vmul.f32 %v9174_v22, %v10613_v23  ;;  %v5009_v26 = vsel %vm746_vm5, %v5004_v17, 0 }
0x2243   : > { %v4778_v20 = vpack.c.bf16 %v4777_v4, %v4777_v4 }
0x2244   : > { %v4890_v24 = vpack.c.bf16 %v4889_v21, %v4889_v21 }
0x224d   : > { %v4999_v58 = vpop.xlane.xlu1 %4998 }
0x224e   : > { %9175 = vrcp.f32 %v4999_v58 }
0x2251   : > { %v4668_v63 = vpop.permute.xlu1 %4667 }
0x2252   : > { %v4673_v52 = vsel %vm746_vm5, %v4668_v63, 0 }
0x2253   : > { %8617 = vmatpush3.bf16.msra.mxu0 %v4673_v52 }
0x2254   : > { %8628 = vmatprep.subr.bf16.mxu0 %v9345_v1 }
0x2256   : > { %8619 = vmatmul.mubr.msk.bf16.vlgmr.msra.gmra.mrb[140].mxu0 %vm728_vm4, %v4666_v12 }
0x2257   : > { %8629 = vmatpush3.bf16.msra.mxu0 %v4785_v14  ;;  %8630 = vmatprep.mubr.msk.bf16.mxu0 %vm9346_vm0, %v9345_v1 }
0x2258   : > { %8640 = vmatprep.subr.bf16.mxu0 %v9345_v1  ;;  %v9176_v25 = vpop.eup %9175 }
0x2259   : > { %v5001_v56 = vmul.f32 %v9176_v25, %v10622_v29 }
0x225b   : > { %v5002_v18 = vpack.c.bf16 %v5001_v56, %v5001_v56 }
0x225e   : > { %8631 = vmatmul.mubr.msk.bf16.vlgmr.msra.gmra.mrb[144].mxu0 %vm728_vm4, %v4778_v20 }
0x225f   : > { %8641 = vmatpush3.bf16.msra.mxu0 %v4897_v13  ;;  %8642 = vmatprep.mubr.msk.bf16.mxu0 %vm9346_vm0, %v9345_v1 }
0x2260   : > { %8652 = vmatprep.subr.bf16.mxu0 %v9345_v1 }
0x2266   : > { %8643 = vmatmul.mubr.msk.bf16.vlgmr.msra.gmra.mrb[148].mxu0 %vm728_vm4, %v4890_v24 }
0x2267   : > { %8653 = vmatpush3.bf16.msra.mxu0 %v5009_v26  ;;  %8654 = vmatprep.mubr.msk.bf16.mxu0 %vm9346_vm0, %v9345_v1 }
0x2268   : > { %8666 = vmatprep.subr.bf16.mxu0 %v9345_v1 }
0x226e   : > { %8655 = vmatmul.mubr.msk.bf16.vlgmr.msra.gmra.mrb[152].mxu0 %vm728_vm4, %v5002_v18 }
0x226f   : > { %8667 = vmatpush3.bf16.msra.mxu0 %v10376_v6  ;;  %8670 = vmatprep.mubr.msk.bf16.mxu0 %vm9346_vm0, %v9345_v1 }
0x2270   : > { %8668 = vmatprep.subr.bf16.mxu0 %v9345_v1 }
0x2273   : > { %8669 = vmatpush3.bf16.msra.mxu0 %v10385_v9 }
0x2274   : > { %8682 = vmatprep.subr.bf16.mxu0 %v9345_v1 }
0x22d3   : > { %v4261_v23 = vpop.f32.mrb[124].mxu0 }
0x22d4   : > { %v8572_v60 = vpop.f32.mrb[125].mxu0 }
0x22d5   : > { %v4264_v54 = vpop.f32.mrb[126].mxu0 }
0x22d6   : > { %v8573_v11 = vpop.f32.mrb[127].mxu0 }
0x22db   : > { %v4373_v3 = vpop.f32.mrb[128].mxu0 }
0x22dc   : > { %5052 = vrot.lane.b32.xlu1 %v4373_v3, %s11545_s9  ;;  %v8584_v29 = vpop.f32.mrb[129].mxu0 }
0x22dd   : > { %v4376_v0 = vpop.f32.mrb[130].mxu0 }
0x22de   : > { %v8585_v36 = vpop.f32.mrb[131].mxu0 }
0x22e3   : > { %v4485_v6 = vpop.f32.mrb[132].mxu0 }
0x22e4   : > { %5056 = vrot.lane.b32.xlu0 %v4485_v6, %s11553_s3  ;;  %v8596_v37 = vpop.f32.mrb[133].mxu0 }
0x22e5   : > { %v4488_v38 = vpop.f32.mrb[134].mxu0 }
0x22e6   : > { %v8597_v30 = vpop.f32.mrb[135].mxu0 }
0x22eb   : > { %v4597_v40 = vpop.f32.mrb[136].mxu0 }
0x22ec   : > { %5060 = vrot.lane.b32.xlu1 %v4597_v40, %s11565_s8  ;;  %v8608_v9 = vpop.f32.mrb[137].mxu0 }
0x22ed   : > { %v4600_v42 = vpop.f32.mrb[138].mxu0 }
0x22ee   : > { %v8609_v43 = vpop.f32.mrb[139].mxu0 }
0x2329   : > { %v4709_v31 = vpop.f32.mrb[140].mxu0 }
0x232a   : > { %5064 = vrot.lane.b32.xlu0 %v4709_v31, %s11566_s5  ;;  %v8620_v8 = vpop.f32.mrb[141].mxu0  ;;  %s11574_s5 = smov 16  }
0x232b   : > { %v4712_v33 = vpop.f32.mrb[142].mxu0 }
0x232c   : > { %v8621_v2 = vpop.f32.mrb[143].mxu0 }
0x2331   : > { %v4821_v47 = vpop.f32.mrb[144].mxu0 }
0x2332   : > { %5068 = vrot.lane.b32.xlu1 %v4821_v47, %s11567_s4  ;;  %v8632_v41 = vpop.f32.mrb[145].mxu0  ;;  %s11575_s4 = smov 20  }
0x2333   : > { %v4824_v49 = vpop.f32.mrb[146].mxu0 }
0x2334   : > { %v8633_v61 = vpop.f32.mrb[147].mxu0 }
0x2339   : > { %v4933_v50 = vpop.f32.mrb[148].mxu0 }
0x233a   : > { %5072 = vrot.lane.b32.xlu0 %v4933_v50, %s11568_s10  ;;  %v8644_v46 = vpop.f32.mrb[149].mxu0  ;;  %s11570_s10 = sld [smem:[#allocation16_spill]] }
0x233b   : > { %v4936_v48 = vpop.f32.mrb[150].mxu0 }
0x233c   : > { %v8645_v39 = vpop.f32.mrb[151].mxu0 }
0x2340   : > { %v10715_v37 = vld [vmem:[%s11570_s10] sm:$0xff]   ;;  %v10724_v38 = vld [vmem:[%s11570_s10 + $0x8] sm:$0xff]   ;;  %s11571_s10 = sld [smem:[#allocation17_spill]] }
0x2341   : > { %v5045_v53 = vpop.f32.mrb[152].mxu0 }
0x2342   : > { %5076 = vrot.lane.b32.xlu1 %v5045_v53, %s11569_s6  ;;  %v8656_v45 = vpop.f32.mrb[153].mxu0  ;;  %s11577_s6 = smov 28  }
0x2343   : > { %v5048_v32 = vpop.f32.mrb[154].mxu0 }
0x2344   : > { %v8657_v44 = vpop.f32.mrb[155].mxu0 }
0x234e   : > { %v5053_v55 = vpop.permute.xlu1 %5052 }
0x234f   : > { %v5079_v63 = vsel %vm679_vm2, %v4261_v23, %v5053_v55 }
0x2356   : > { %v5057_v34 = vpop.permute.xlu0 %5056 }
0x2357   : > { %v5080_v52 = vsel %vm728_vm4, %v5079_v63, %v5057_v34 }
0x235e   : > { %v5061_v58 = vpop.permute.xlu1 %5060 }
0x235f   : > { %v5081_v12 = vsel %vm1604_vm6, %v5080_v52, %v5061_v58 }
0x239c   : > { %v5065_v16 = vpop.permute.xlu0 %5064 }
0x239d   : > { %v5082_v14 = vsel %vm1606_vm7, %v5081_v12, %v5065_v16 }
0x23a4   : > { %v5069_v7 = vpop.permute.xlu1 %5068 }
0x23a5   : > { %v5083_v4 = vsel %vm1608_vm8, %v5082_v14, %v5069_v7 }
0x23ac   : > { %v5073_v5 = vpop.permute.xlu0 %5072 }
0x23ad   : > { %v5084_v15 = vsel %vm1610_vm9, %v5083_v4, %v5073_v5  ;;  %v10747_v5 = vld [vmem:[%s11571_s10] ss:$0 sm:$0xff]  ;;  %s11581_s10 = sld [smem:[#allocation21_spill]] }
0x23b4   : > { %v5077_v20 = vpop.permute.xlu1 %5076 }
0x23b5   : > { %v5085_v22 = vsel %vm1612_vm10, %v5084_v15, %v5077_v20 }
0x23b6   : > { %v5086_v13 = vpack.c.bf16 %v5085_v22, %v5085_v22 }
0x23b8   : > { %8663 = vmatmul.mubr.msk.bf16.vlgmr.msra.gmra.mrb[152].mxu1 %vm631_vm1, %v5086_v13 }
0x23b9   : > { %8675 = vmatpush3.bf16.msra.mxu1 %v10407_v59  ;;  %8678 = vmatprep.mubr.msk.bf16.mxu1 %vm9346_vm0, %v9345_v1 }
0x23ba   : > { %8676 = vmatprep.subr.bf16.mxu1 %v9345_v1 }
0x23bd   : > { %8677 = vmatpush3.bf16.msra.mxu1 %v10416_v62 }
0x23be   : > { %8690 = vmatprep.subr.bf16.mxu1 %v9345_v1 }
0x248b   : > { %v5124_v21 = vpop.f32.mrb[152].mxu1 }
0x248c   : > { %v5125_v17 = vadd.f32 %v10423_v19, %v5124_v21  ;;  %v8664_v24 = vpop.f32.mrb[153].mxu1 }
0x248d   : > { %v5127_v25 = vpop.f32.mrb[154].mxu1 }
0x248e   : > { %v5130_v26 = vadd.f32 %v5125_v17, %v10467_v57  ;;  %v8665_v56 = vpop.f32.mrb[155].mxu1 }
0x2490   : > { %v5131_v18 = vsel %vm631_vm1, %v5130_v26, 0.0 }
0x2491   : > { %5132 = vadd.xlane.f32.xlu0 %v5131_v18 }
0x251e   : > { %v5133_v59 = vpop.xlane.xlu0 %5132 }
0x251f   : > { %v5134_v23 = vmul.f32 0.03125, %v5133_v59 }
0x2521   : > { %v5135_v60 = vsub.f32 %v5130_v26, %v5134_v23 }
0x2523   : > { %v5136_v54 = vmul.f32 %v5135_v60, %v5135_v60 }
0x2525   : > { %v5137_v11 = vsel %vm631_vm1, %v5136_v54, 0.0 }
0x2526   : > { %5138 = vadd.xlane.f32.xlu1 %v5137_v11 }
0x25b3   : > { %v5139_v62 = vpop.xlane.xlu1 %5138 }
0x25b4   : > { %v5140_v3 = vmul.f32 0.03125, %v5139_v62 }
0x25b6   : > { %v5141_v29 = vadd.f32 1e-05, %v5140_v3 }
0x25b8   : > { %9177 = vrsqrt.f32 %v5141_v29 }
0x25c2   : > { %v9178_v19 = vpop.eup %9177 }
0x25c3   : > { %v5143_v0 = vmul.f32 %v9178_v19, %v5135_v60 }
0x25c5   : > { %v5144_v36 = vmul.f32 %v10432_v51, %v5143_v0 }
0x25c7   : > { %v5145_v57 = vadd.f32 %v10438_v10, %v5144_v36 }
0x25c9   : > { %v5146_v6 = vpack.c.bf16 %v5145_v57, %v5145_v57 }
0x25cb   : > { %8671 = vmatmul.mubr.msk.bf16.vlgmr.msra.gmra.mrb[156].mxu0 %vm631_vm1, %v5146_v6 }
0x25cc   : > { %8683 = vmatpush3.bf16.msra.mxu0 %v10715_v37  ;;  %8686 = vmatprep.mubr.msk.bf16.mxu0 %vm9346_vm0, %v9345_v1 }
0x25cd   : > { %8684 = vmatprep.subr.bf16.mxu0 %v9345_v1 }
0x25d0   : > { %8685 = vmatpush3.bf16.msra.mxu0 %v10724_v38 }
0x25d1   : > { %8696 = vmatprep.subr.bf16.mxu0 %v9345_v1 }
0x269e   : > { %v5184_v30 = vpop.f32.mrb[156].mxu0 }
0x269f   : > { %v5185_v40 = vadd.f32 %v10451_v28, %v5184_v30  ;;  %v8672_v9 = vpop.f32.mrb[157].mxu0  ;;  %v10824_v30 = vld [vmem:[%s11572_s2] sm:$0xff]  }
0x26a0   : > { %v5187_v42 = vpop.f32.mrb[158].mxu0 }
0x26a1   : > { %vm5190_vm12 = vcmp.ge.f32.partialorder %v5185_v40, 0.0  ;;  %v5191_v43 = vmul.f32 0.01, %v5185_v40  ;;  %v8673_v31 = vpop.f32.mrb[159].mxu0 }
0x26a3   : > { %v5192_v8 = vsel %vm5190_vm12, %v5185_v40, %v5191_v43  ;;  %v10833_v40 = vld [vmem:[%s11572_s2 + $0x8] sm:$0xff]   ;;  %s11573_s2 = sld [smem:[#allocation22_spill]] }
0x26a4   : > { %v5193_v33 = vpack.c.bf16 %v5192_v8, %v5192_v8 }
0x26a6   : > { %8679 = vmatmul.mubr.msk.bf16.vlgmr.msra.gmra.mrb[156].mxu1 %vm631_vm1, %v5193_v33 }
0x26a7   : > { %8692 = vmatprep.mubr.msk.bf16.mxu1 %vm9346_vm0, %v9345_v1 }
0x2779   : > { %v5231_v2 = vpop.f32.mrb[156].mxu1 }
0x277a   : > { %v5232_v47 = vadd.f32 %v10460_v27, %v5231_v2  ;;  %v8680_v41 = vpop.f32.mrb[157].mxu1 }
0x277b   : > { %v5234_v49 = vpop.f32.mrb[158].mxu1 }
0x277c   : > { %v5237_v61 = vadd.f32 %v5232_v47, %v5145_v57  ;;  %v8681_v50 = vpop.f32.mrb[159].mxu1 }
0x277e   : > { %v5238_v28 = vsel %vm631_vm1, %v5237_v61, 0.0 }
0x277f   : > { %5239 = vadd.xlane.f32.xlu0 %v5238_v28 }
0x280c   : > { %v5240_v46 = vpop.xlane.xlu0 %5239 }
0x280d   : > { %v5241_v48 = vmul.f32 0.03125, %v5240_v46 }
0x280f   : > { %v5242_v39 = vsub.f32 %v5237_v61, %v5241_v48 }
0x2811   : > { %v5243_v53 = vmul.f32 %v5242_v39, %v5242_v39 }
0x2813   : > { %v5244_v45 = vsel %vm631_vm1, %v5243_v53, 0.0 }
0x2814   : > { %5245 = vadd.xlane.f32.xlu0 %v5244_v45 }
0x28a1   : > { %v5246_v32 = vpop.xlane.xlu0 %5245 }
0x28a2   : > { %v5247_v44 = vmul.f32 0.03125, %v5246_v32 }
0x28a4   : > { %v5248_v55 = vadd.f32 1e-05, %v5247_v44 }
0x28a6   : > { %9179 = vrsqrt.f32 %v5248_v55 }
0x28b0   : > { %v9180_v34 = vpop.eup %9179 }
0x28b1   : > { %v5250_v27 = vmul.f32 %v9180_v34, %v5242_v39 }
0x28b3   : > { %v5251_v58 = vmul.f32 %v10432_v51, %v5250_v27 }
0x28b5   : > { %v5252_v16 = vadd.f32 %v10438_v10, %v5251_v58 }
0x28b7   : > { %vm5253_vm13 = vcmp.ge.f32.partialorder %v5252_v16, 0.0  ;;  %v5254_v63 = vmul.f32 0.01, %v5252_v16 }
0x28b9   : > { %v10737_v52 = vsel %vm5253_vm13, %v5252_v16, %v5254_v63 }
0x28ba   : > { %v5256_v7 = vpack.c.bf16 %v10737_v52, %v10737_v52 }
0x28bc   : > { %8687 = vmatmul.mubr.msk.bf16.vlgmr.msra.gmra.mrb[160].mxu0 %vm631_vm1, %v5256_v7 }
0x28bd   : > { %8698 = vmatprep.mubr.msk.bf16.mxu0 %vm9346_vm0, %v9345_v1 }
0x298f   : > { %v5294_v12 = vpop.f32.mrb[160].mxu0 }
0x2990   : > { %v5295_v51 = vadd.f32 %v10747_v5, %v5294_v12  ;;  %v8688_v10 = vpop.f32.mrb[161].mxu0 }
0x2991   : > { %v5297_v14 = vpop.f32.mrb[162].mxu0 }
0x2992   : > { %v10750_v4 = vpack.c.bf16 %v5295_v51, %v5295_v51  ;;  %v8689_v15 = vpop.f32.mrb[163].mxu0 }
0x2994   : > { %5414 = vrot.lane.b32.xlu0 %v10750_v4, %s11523_s19  ;;  %5302 = vrot.lane.b32.xlu1 %v10750_v4, %s11524_s20 }
0x2998   : > { %5524 = vrot.lane.b32.xlu0 %v10750_v4, %s11525_s28  ;;  %5412 = vrot.lane.b32.xlu1 %v10750_v4, %s11526_s29 }
0x299c   : > { %5636 = vrot.lane.b32.xlu0 %v10750_v4, %s11527_s18  ;;  %5526 = vrot.lane.b32.xlu1 %v10750_v4, %s11528_s30 }
0x29a0   : > { %5748 = vrot.lane.b32.xlu0 %v10750_v4, %s11552_s7  ;;  %5638 = vrot.lane.b32.xlu1 %v10750_v4, %s11529_s26 }
0x29a4   : > { %5860 = vrot.lane.b32.xlu0 %v10750_v4, %s11530_s1  ;;  %5750 = vrot.lane.b32.xlu1 %v10750_v4, %s11531_s27 }
0x29a8   : > { %5972 = vrot.lane.b32.xlu0 %v10750_v4, %s11532_s17  ;;  %5862 = vrot.lane.b32.xlu1 %v10750_v4, %s11533_s21 }
0x29ac   : > { %6084 = vrot.lane.b32.xlu0 %v10750_v4, %s11534_s24  ;;  %5974 = vrot.lane.b32.xlu1 %v10750_v4, %s11535_s16 }
0x29b0   : > { %6086 = vrot.lane.b32.xlu1 %v10750_v4, %s11536_s23 }
0x2a06   : > { %v5303_v20 = vpop.permute.xlu1 %5302  ;;  %v5415_v13 = vpop.permute.xlu0 %5414 }
0x2a07   : > { %v5308_v22 = vsel %vm679_vm2, %v5303_v20, 0  ;;  %v5420_v17 = vsel %vm679_vm2, %v5415_v13, 0 }
0x2a08   : > { %8691 = vmatpush3.bf16.xpose.msra.mxu1 %v5308_v22 }
0x2a09   : > { %8702 = vmatprep.subr.bf16.mxu1 %v9345_v1 }
0x2a0a   : > { %v5413_v21 = vpop.permute.xlu1 %5412  ;;  %v5525_v56 = vpop.permute.xlu0 %5524 }
0x2a0e   : > { %v5527_v24 = vpop.permute.xlu1 %5526  ;;  %v5637_v23 = vpop.permute.xlu0 %5636 }
0x2a0f   : > { %8693 = vmatmul.mubr.msk.bf16.vlgmr.msra.gmra.mrb[160].mxu1 %vm679_vm2, %v10750_v4  ;;  %v5532_v25 = vsel %vm679_vm2, %v5527_v24, 0 }
0x2a10   : > { %8703 = vmatpush3.bf16.xpose.msra.mxu1 %v5420_v17  ;;  %8704 = vmatprep.mubr.msk.bf16.mxu1 %vm9346_vm0, %v9345_v1 }
0x2a11   : > { %8714 = vmatprep.subr.bf16.mxu1 %v9345_v1 }
0x2a12   : > { %v5639_v26 = vpop.permute.xlu1 %5638  ;;  %v5749_v11 = vpop.permute.xlu0 %5748 }
0x2a13   : > { %v5644_v18 = vsel %vm679_vm2, %v5639_v26, 0 }
0x2a16   : > { %v5751_v59 = vpop.permute.xlu1 %5750  ;;  %v5861_v29 = vpop.permute.xlu0 %5860 }
0x2a17   : > { %8705 = vmatmul.mubr.msk.bf16.vlgmr.msra.gmra.mrb[164].mxu1 %vm679_vm2, %v5413_v21  ;;  %v5756_v60 = vsel %vm679_vm2, %v5751_v59, 0 }
0x2a18   : > { %8715 = vmatpush3.bf16.xpose.msra.mxu1 %v5532_v25  ;;  %8716 = vmatprep.mubr.msk.bf16.mxu1 %vm9346_vm0, %v9345_v1 }
0x2a19   : > { %8726 = vmatprep.subr.bf16.mxu1 %v9345_v1 }
0x2a1a   : > { %v5863_v54 = vpop.permute.xlu1 %5862  ;;  %v5973_v36 = vpop.permute.xlu0 %5972 }
0x2a1b   : > { %v5868_v62 = vsel %vm679_vm2, %v5863_v54, 0 }
0x2a1e   : > { %v5975_v3 = vpop.permute.xlu1 %5974  ;;  %v6085_v6 = vpop.permute.xlu0 %6084 }
0x2a1f   : > { %8717 = vmatmul.mubr.msk.bf16.vlgmr.msra.gmra.mrb[168].mxu1 %vm679_vm2, %v5525_v56  ;;  %v5980_v19 = vsel %vm679_vm2, %v5975_v3, 0 }
0x2a20   : > { %8727 = vmatpush3.bf16.xpose.msra.mxu1 %v5644_v18  ;;  %8728 = vmatprep.mubr.msk.bf16.mxu1 %vm9346_vm0, %v9345_v1 }
0x2a21   : > { %8738 = vmatprep.subr.bf16.mxu1 %v9345_v1 }
0x2a22   : > { %v6087_v0 = vpop.permute.xlu1 %6086 }
0x2a23   : > { %v6092_v57 = vsel %vm679_vm2, %v6087_v0, 0 }
0x2a27   : > { %8729 = vmatmul.mubr.msk.bf16.vlgmr.msra.gmra.mrb[172].mxu1 %vm679_vm2, %v5637_v23 }
0x2a28   : > { %8739 = vmatpush3.bf16.xpose.msra.mxu1 %v5756_v60  ;;  %8740 = vmatprep.mubr.msk.bf16.mxu1 %vm9346_vm0, %v9345_v1 }
0x2a29   : > { %8750 = vmatprep.subr.bf16.mxu1 %v9345_v1 }
0x2a2f   : > { %8741 = vmatmul.mubr.msk.bf16.vlgmr.msra.gmra.mrb[176].mxu1 %vm679_vm2, %v5749_v11 }
0x2a30   : > { %8751 = vmatpush3.bf16.xpose.msra.mxu1 %v5868_v62  ;;  %8752 = vmatprep.mubr.msk.bf16.mxu1 %vm9346_vm0, %v9345_v1 }
0x2a31   : > { %8762 = vmatprep.subr.bf16.mxu1 %v9345_v1 }
0x2a37   : > { %8753 = vmatmul.mubr.msk.bf16.vlgmr.msra.gmra.mrb[180].mxu1 %vm679_vm2, %v5861_v29 }
0x2a38   : > { %8763 = vmatpush3.bf16.xpose.msra.mxu1 %v5980_v19  ;;  %8764 = vmatprep.mubr.msk.bf16.mxu1 %vm9346_vm0, %v9345_v1 }
0x2a39   : > { %8774 = vmatprep.subr.bf16.mxu1 %v9345_v1 }
0x2a3f   : > { %8765 = vmatmul.mubr.msk.bf16.vlgmr.msra.gmra.mrb[184].mxu1 %vm679_vm2, %v5973_v36 }
0x2a40   : > { %8775 = vmatpush3.bf16.xpose.msra.mxu1 %v6092_v57  ;;  %8776 = vmatprep.mubr.msk.bf16.mxu1 %vm9346_vm0, %v9345_v1 }
0x2a41   : > { %8786 = vmatprep.subr.bf16.mxu1 %v9345_v1 }
0x2a47   : > { %8777 = vmatmul.mubr.msk.bf16.vlgmr.msra.gmra.mrb[188].mxu1 %vm679_vm2, %v6085_v6 }
0x2a48   : > { %8787 = vmatpush3.bf16.msra.mxu1 %v10824_v30  ;;  %8790 = vmatprep.mubr.msk.bf16.mxu1 %vm9346_vm0, %v9345_v1 }
0x2a49   : > { %8788 = vmatprep.subr.bf16.mxu1 %v9345_v1 }
0x2a4c   : > { %8789 = vmatpush3.bf16.msra.mxu1 %v10833_v40 }
0x2a4d   : > { %8802 = vmatprep.subr.bf16.mxu1 %v9345_v1 }
0x2ae2   : > { %v5344_v9 = vpop.f32.mrb[160].mxu1 }
0x2ae3   : > { %v5350_v42 = vmul.f32 0.35355338, %v5344_v9  ;;  %v8694_v43 = vpop.f32.mrb[161].mxu1 }
0x2ae4   : > { %v5347_v31 = vpop.f32.mrb[162].mxu1 }
0x2ae5   : > { %v10839_v8 = vsel %vm537_vm3, -1e+09, %v5350_v42  ;;  %v8695_v33 = vpop.f32.mrb[163].mxu1 }
0x2ae6   : > { %v5352_v2 = vsel %vm728_vm4, %v10839_v8, -inf }
0x2ae7   : > { %5353 = vmax.xlane.f32.xlu1 %v5352_v2 }
0x2aea   : > { %v5456_v47 = vpop.f32.mrb[164].mxu1 }
0x2aeb   : > { %v5462_v41 = vmul.f32 0.35355338, %v5456_v47  ;;  %v8706_v49 = vpop.f32.mrb[165].mxu1 }
0x2aec   : > { %v5459_v61 = vpop.f32.mrb[166].mxu1 }
0x2aed   : > { %v5463_v50 = vsel %vm537_vm3, -1e+09, %v5462_v41  ;;  %v8707_v28 = vpop.f32.mrb[167].mxu1 }
0x2aee   : > { %v5464_v46 = vsel %vm728_vm4, %v5463_v50, -inf }
0x2aef   : > { %5465 = vmax.xlane.f32.xlu0 %v5464_v46 }
0x2af2   : > { %v5568_v48 = vpop.f32.mrb[168].mxu1 }
0x2af3   : > { %v5574_v39 = vmul.f32 0.35355338, %v5568_v48  ;;  %v8718_v53 = vpop.f32.mrb[169].mxu1 }
0x2af4   : > { %v5571_v45 = vpop.f32.mrb[170].mxu1 }
0x2af5   : > { %v5575_v32 = vsel %vm537_vm3, -1e+09, %v5574_v39  ;;  %v8719_v44 = vpop.f32.mrb[171].mxu1 }
0x2af6   : > { %v5576_v55 = vsel %vm728_vm4, %v5575_v32, -inf }
0x2af7   : > { %5577 = vmax.xlane.f32.xlu0 %v5576_v55 }
0x2afa   : > { %v5680_v34 = vpop.f32.mrb[172].mxu1 }
0x2afb   : > { %v5686_v27 = vmul.f32 0.35355338, %v5680_v34  ;;  %v8730_v58 = vpop.f32.mrb[173].mxu1 }
0x2afc   : > { %v5683_v16 = vpop.f32.mrb[174].mxu1 }
0x2afd   : > { %v5687_v63 = vsel %vm537_vm3, -1e+09, %v5686_v27  ;;  %v8731_v7 = vpop.f32.mrb[175].mxu1 }
0x2afe   : > { %v5688_v12 = vsel %vm728_vm4, %v5687_v63, -inf }
0x2aff   : > { %5689 = vmax.xlane.f32.xlu1 %v5688_v12 }
0x2b02   : > { %v5792_v51 = vpop.f32.mrb[176].mxu1 }
0x2b03   : > { %v5798_v10 = vmul.f32 0.35355338, %v5792_v51  ;;  %v8742_v14 = vpop.f32.mrb[177].mxu1 }
0x2b04   : > { %v5795_v15 = vpop.f32.mrb[178].mxu1 }
0x2b05   : > { %v5799_v20 = vsel %vm537_vm3, -1e+09, %v5798_v10  ;;  %v8743_v22 = vpop.f32.mrb[179].mxu1 }
0x2b06   : > { %v5800_v13 = vsel %vm728_vm4, %v5799_v20, -inf }
0x2b07   : > { %5801 = vmax.xlane.f32.xlu0 %v5800_v13 }
0x2b0a   : > { %v5904_v21 = vpop.f32.mrb[180].mxu1 }
0x2b0b   : > { %v5910_v17 = vmul.f32 0.35355338, %v5904_v21  ;;  %v8754_v24 = vpop.f32.mrb[181].mxu1 }
0x2b0c   : > { %v5907_v25 = vpop.f32.mrb[182].mxu1 }
0x2b0d   : > { %v10857_v26 = vsel %vm537_vm3, -1e+09, %v5910_v17  ;;  %v8755_v56 = vpop.f32.mrb[183].mxu1 }
0x2b0e   : > { %v5912_v18 = vsel %vm728_vm4, %v10857_v26, -inf }
0x2b0f   : > { %5913 = vmax.xlane.f32.xlu1 %v5912_v18 }
0x2b12   : > { %v6016_v59 = vpop.f32.mrb[184].mxu1 }
0x2b13   : > { %v6022_v23 = vmul.f32 0.35355338, %v6016_v59  ;;  %v8766_v60 = vpop.f32.mrb[185].mxu1 }
0x2b14   : > { %v6019_v54 = vpop.f32.mrb[186].mxu1 }
0x2b15   : > { %v6023_v11 = vsel %vm537_vm3, -1e+09, %v6022_v23  ;;  %v8767_v62 = vpop.f32.mrb[187].mxu1 }
0x2b16   : > { %v6024_v3 = vsel %vm728_vm4, %v6023_v11, -inf }
0x2b17   : > { %6025 = vmax.xlane.f32.xlu0 %v6024_v3 }
0x2b1a   : > { %v6128_v29 = vpop.f32.mrb[188].mxu1 }
0x2b1b   : > { %v8778_v19 = vpop.f32.mrb[189].mxu1  ;;  %v6134_v57 = vmul.f32 0.35355338, %v6128_v29 }
0x2b1c   : > { %v6131_v0 = vpop.f32.mrb[190].mxu1 }
0x2b1d   : > { %v8779_v36 = vpop.f32.mrb[191].mxu1  ;;  %v6135_v6 = vsel %vm537_vm3, -1e+09, %v6134_v57 }
0x2b1e   : > { %v6136_v9 = vsel %vm728_vm4, %v6135_v6, -inf }
0x2b20   : > { %5476 = vrot.lane.b32.xlu1 %v10750_v4, %s11537_s0 }
0x2b2d   : > { %5364 = vrot.lane.b32.xlu0 %v10750_v4, %s11538_s15 }
0x2b44   : > { %6137 = vmax.xlane.f32.xlu1 %v6136_v9 }
0x2b55   : > { %5588 = vrot.lane.b32.xlu1 %v10750_v4, %s11539_s13 }
0x2b74   : > { %v5354_v42 = vpop.xlane.xlu1 %5353 }
0x2b75   : > { %v5355_v43 = vsub.f32 %v10839_v8, %v5354_v42 }
0x2b77   : > { %v5356_v31 = vmul.f32 1.442695, %v5355_v43 }
0x2b79   : > { %9181 = vpow2.f32 %v5356_v31 }
0x2b7c   : > { %v5466_v33 = vpop.xlane.xlu0 %5465 }
0x2b7d   : > { %v5467_v2 = vsub.f32 %v5463_v50, %v5466_v33 }
0x2b7f   : > { %v5468_v47 = vmul.f32 1.442695, %v5467_v2 }
0x2b81   : > { %9183 = vpow2.f32 %v5468_v47 }
0x2b83   : > { %v10874_v41 = vpop.eup %9181 }
0x2b84   : > { %v5578_v49 = vpop.xlane.xlu0 %5577  ;;  %v5358_v61 = vsel %vm728_vm4, %v10874_v41, 0.0 }
0x2b85   : > { %v5579_v28 = vsub.f32 %v5575_v32, %v5578_v49  ;;  %5359 = vadd.xlane.f32.xlu0 %v5358_v61 }
0x2b87   : > { %v5580_v46 = vmul.f32 1.442695, %v5579_v28 }
0x2b89   : > { %9185 = vpow2.f32 %v5580_v46 }
0x2b8b   : > { %v10878_v48 = vpop.eup %9183 }
0x2b8c   : > { %v5690_v39 = vpop.xlane.xlu1 %5689  ;;  %v5470_v8 = vsel %vm728_vm4, %v10878_v48, 0.0 }
0x2b8d   : > { %v5691_v53 = vsub.f32 %v5687_v63, %v5690_v39  ;;  %5471 = vadd.xlane.f32.xlu1 %v5470_v8 }
0x2b8f   : > { %v5692_v50 = vmul.f32 1.442695, %v5691_v53 }
0x2b91   : > { %9187 = vpow2.f32 %v5692_v50 }
0x2b93   : > { %v10882_v45 = vpop.eup %9185 }
0x2b94   : > { %v5802_v44 = vpop.xlane.xlu0 %5801  ;;  %v5582_v55 = vsel %vm728_vm4, %v10882_v45, 0.0 }
0x2b95   : > { %v5803_v32 = vsub.f32 %v5799_v20, %v5802_v44  ;;  %5583 = vadd.xlane.f32.xlu0 %v5582_v55 }
0x2b97   : > { %v5804_v34 = vmul.f32 1.442695, %v5803_v32 }
0x2b99   : > { %9189 = vpow2.f32 %v5804_v34 }
0x2b9b   : > { %v10886_v27 = vpop.eup %9187 }
0x2b9c   : > { %v5694_v58 = vsel %vm728_vm4, %v10886_v27, 0.0  ;;  %v5914_v15 = vpop.xlane.xlu1 %5913 }
0x2b9d   : > { %5695 = vadd.xlane.f32.xlu1 %v5694_v58  ;;  %v5915_v22 = vsub.f32 %v10857_v26, %v5914_v15 }
0x2b9f   : > { %v5916_v21 = vmul.f32 1.442695, %v5915_v22 }
0x2ba0   : > { %v5477_v25 = vpop.permute.xlu1 %5476 }
0x2ba1   : > { %v5482_v19 = vsel %vm746_vm5, %v5477_v25, 0 }
0x2ba3   : > { %v10890_v16 = vpop.eup %9189 }
0x2ba4   : > { %v6026_v63 = vpop.xlane.xlu0 %6025  ;;  %v5806_v7 = vsel %vm728_vm4, %v10890_v16, 0.0 }
0x2ba5   : > { %v6027_v12 = vsub.f32 %v6023_v11, %v6026_v63  ;;  %5807 = vadd.xlane.f32.xlu1 %v5806_v7 }
0x2ba7   : > { %v6028_v51 = vmul.f32 1.442695, %v6027_v12 }
0x2ba8   : > { %v5365_v10 = vpop.permute.xlu0 %5364 }
0x2ba9   : > { %9191 = vpow2.f32 %v6028_v51  ;;  %v5370_v14 = vsel %vm746_vm5, %v5365_v10, 0 }
0x2baa   : > { %8697 = vmatpush3.bf16.msra.mxu0 %v5370_v14  ;;  %9193 = vpow2.f32 %v5916_v21 }
0x2bab   : > { %5700 = vrot.lane.b32.xlu0 %v10750_v4, %s11540_s25  ;;  %8708 = vmatprep.subr.bf16.mxu0 %v9345_v1 }
0x2bb3   : > { %v10898_v20 = vpop.eup %9191 }
0x2bb4   : > { %v6030_v13 = vsel %vm728_vm4, %v10898_v20, 0.0  ;;  %v10903_v17 = vpop.eup %9193 }
0x2bb5   : > { %6031 = vadd.xlane.f32.xlu1 %v6030_v13  ;;  %v5918_v24 = vsel %vm728_vm4, %v10903_v17, 0.0  ;;  %v10975_v13 = vld [vmem:[%s11573_s2 + $0x8] sm:$0xff]  }
0x2bca   : > { %5919 = vadd.xlane.f32.xlu0 %v5918_v24 }
0x2bd1   : > { %v6138_v56 = vpop.xlane.xlu1 %6137 }
0x2bd2   : > { %v6139_v18 = vsub.f32 %v6135_v6, %v6138_v56 }
0x2bd4   : > { %v6140_v59 = vmul.f32 1.442695, %v6139_v18 }
0x2bd5   : > { %v5589_v54 = vpop.permute.xlu1 %5588 }
0x2bd6   : > { %9195 = vpow2.f32 %v6140_v59  ;;  %v5594_v6 = vsel %vm746_vm5, %v5589_v54, 0 }
0x2be0   : > { %v10907_v23 = vpop.eup %9195  ;;  %5924 = vrot.lane.b32.xlu0 %v10750_v4, %s11541_s22 }
0x2be1   : > { %v6142_v26 = vsel %vm728_vm4, %v10907_v23, 0.0 }
0x2be2   : > { %6143 = vadd.xlane.f32.xlu1 %v6142_v26 }
0x2be4   : > { %6036 = vrot.lane.b32.xlu0 %v10750_v4, %s11542_s14 }
0x2be8   : > { %6148 = vrot.lane.b32.xlu0 %v10750_v4, %s11543_s12 }
0x2bf3   : > { %5812 = vrot.lane.b32.xlu1 %v10750_v4, %s11544_s11 }
0x2c12   : > { %v5360_v60 = vpop.xlane.xlu0 %5359 }
0x2c13   : > { %9197 = vrcp.f32 %v5360_v60 }
0x2c1a   : > { %v5472_v11 = vpop.xlane.xlu1 %5471 }
0x2c1b   : > { %9199 = vrcp.f32 %v5472_v11 }
0x2c1d   : > { %v9198_v62 = vpop.eup %9197 }
0x2c1e   : > { %v5362_v3 = vmul.f32 %v9198_v62, %v10874_v41 }
0x2c20   : > { %v5363_v29 = vpack.c.bf16 %v5362_v3, %v5362_v3 }
0x2c22   : > { %8699 = vmatmul.mubr.msk.bf16.vlgmr.msra.gmra.mrb[164].mxu0 %vm728_vm4, %v5363_v29  ;;  %v5584_v0 = vpop.xlane.xlu0 %5583 }
0x2c23   : > { %9201 = vrcp.f32 %v5584_v0  ;;  %8709 = vmatpush3.bf16.msra.mxu0 %v5482_v19  ;;  %8710 = vmatprep.mubr.msk.bf16.mxu0 %vm9346_vm0, %v9345_v1 }
0x2c24   : > { %8720 = vmatprep.subr.bf16.mxu0 %v9345_v1 }
0x2c25   : > { %v9200_v4 = vpop.eup %9199 }
0x2c26   : > { %v5474_v36 = vmul.f32 %v9200_v4, %v10878_v48  ;;  %v5701_v31 = vpop.permute.xlu0 %5700 }
0x2c27   : > { %v5706_v2 = vsel %vm746_vm5, %v5701_v31, 0 }
0x2c28   : > { %v5475_v57 = vpack.c.bf16 %v5474_v36, %v5474_v36 }
0x2c2a   : > { %8711 = vmatmul.mubr.msk.bf16.vlgmr.msra.gmra.mrb[168].mxu0 %vm728_vm4, %v5475_v57  ;;  %v5696_v9 = vpop.xlane.xlu1 %5695 }
0x2c2b   : > { %8721 = vmatpush3.bf16.msra.mxu0 %v5594_v6  ;;  %9203 = vrcp.f32 %v5696_v9  ;;  %8722 = vmatprep.mubr.msk.bf16.mxu0 %vm9346_vm0, %v9345_v1 }
0x2c2c   : > { %8732 = vmatprep.subr.bf16.mxu0 %v9345_v1 }
0x2c2d   : > { %v9202_v42 = vpop.eup %9201 }
0x2c2e   : > { %v5586_v43 = vmul.f32 %v9202_v42, %v10882_v45 }
0x2c30   : > { %v5587_v33 = vpack.c.bf16 %v5586_v43, %v5586_v43 }
0x2c32   : > { %8723 = vmatmul.mubr.msk.bf16.vlgmr.msra.gmra.mrb[172].mxu0 %vm728_vm4, %v5587_v33  ;;  %v5808_v61 = vpop.xlane.xlu1 %5807 }
0x2c33   : > { %8733 = vmatpush3.bf16.msra.mxu0 %v5706_v2  ;;  %8734 = vmatprep.mubr.msk.bf16.mxu0 %vm9346_vm0, %v9345_v1  ;;  %9205 = vrcp.f32 %v5808_v61 }
0x2c34   : > { %8744 = vmatprep.subr.bf16.mxu0 %v9345_v1 }
0x2c35   : > { %v9204_v47 = vpop.eup %9203 }
0x2c36   : > { %v5698_v41 = vmul.f32 %v9204_v47, %v10886_v27 }
0x2c38   : > { %v5699_v49 = vpack.c.bf16 %v5698_v41, %v5698_v41 }
0x2c3a   : > { %8735 = vmatmul.mubr.msk.bf16.vlgmr.msra.gmra.mrb[176].mxu0 %vm728_vm4, %v5699_v49 }
0x2c3b   : > { %8746 = vmatprep.mubr.msk.bf16.mxu0 %vm9346_vm0, %v9345_v1 }
0x2c3d   : > { %v9206_v48 = vpop.eup %9205 }
0x2c3e   : > { %v5810_v8 = vmul.f32 %v9206_v48, %v10890_v16 }
0x2c40   : > { %v5811_v44 = vpack.c.bf16 %v5810_v8, %v5810_v8 }
0x2c42   : > { %v6032_v46 = vpop.xlane.xlu1 %6031 }
0x2c57   : > { %v5920_v28 = vpop.xlane.xlu0 %5919 }
0x2c58   : > { %9207 = vrcp.f32 %v5920_v28 }
0x2c59   : > { %9209 = vrcp.f32 %v6032_v46 }
0x2c5b   : > { %v5925_v45 = vpop.permute.xlu0 %5924 }
0x2c5c   : > { %v5930_v32 = vsel %vm746_vm5, %v5925_v45, 0 }
0x2c5f   : > { %v6037_v27 = vpop.permute.xlu0 %6036 }
0x2c60   : > { %v6042_v63 = vsel %vm746_vm5, %v6037_v27, 0 }
0x2c62   : > { %v9208_v55 = vpop.eup %9207 }
0x2c63   : > { %v5922_v34 = vmul.f32 %v9208_v55, %v10903_v17  ;;  %v9210_v16 = vpop.eup %9209  ;;  %v6149_v12 = vpop.permute.xlu0 %6148 }
0x2c64   : > { %v6034_v7 = vmul.f32 %v9210_v16, %v10898_v20  ;;  %v6154_v14 = vsel %vm746_vm5, %v6149_v12, 0  ;;  %v10966_v20 = vld [vmem:[%s11573_s2] sm:$0xff]   ;;  %s11576_s2 = smov 24  }
0x2c65   : > { %v5923_v58 = vpack.c.bf16 %v5922_v34, %v5922_v34 }
0x2c66   : > { %v6035_v51 = vpack.c.bf16 %v6034_v7, %v6034_v7 }
0x2c6f   : > { %v6144_v39 = vpop.xlane.xlu1 %6143 }
0x2c70   : > { %9211 = vrcp.f32 %v6144_v39 }
0x2c73   : > { %v5813_v53 = vpop.permute.xlu1 %5812 }
0x2c74   : > { %v5818_v50 = vsel %vm746_vm5, %v5813_v53, 0 }
0x2c75   : > { %8745 = vmatpush3.bf16.msra.mxu0 %v5818_v50 }
0x2c76   : > { %8756 = vmatprep.subr.bf16.mxu0 %v9345_v1 }
0x2c78   : > { %8747 = vmatmul.mubr.msk.bf16.vlgmr.msra.gmra.mrb[180].mxu0 %vm728_vm4, %v5811_v44 }
0x2c79   : > { %8757 = vmatpush3.bf16.msra.mxu0 %v5930_v32  ;;  %8758 = vmatprep.mubr.msk.bf16.mxu0 %vm9346_vm0, %v9345_v1 }
0x2c7a   : > { %8768 = vmatprep.subr.bf16.mxu0 %v9345_v1  ;;  %v9212_v10 = vpop.eup %9211 }
0x2c7b   : > { %v6146_v15 = vmul.f32 %v9212_v10, %v10907_v23 }
0x2c7d   : > { %v6147_v22 = vpack.c.bf16 %v6146_v15, %v6146_v15 }
0x2c80   : > { %8759 = vmatmul.mubr.msk.bf16.vlgmr.msra.gmra.mrb[184].mxu0 %vm728_vm4, %v5923_v58 }
0x2c81   : > { %8769 = vmatpush3.bf16.msra.mxu0 %v6042_v63  ;;  %8770 = vmatprep.mubr.msk.bf16.mxu0 %vm9346_vm0, %v9345_v1 }
0x2c82   : > { %8780 = vmatprep.subr.bf16.mxu0 %v9345_v1 }
0x2c88   : > { %8771 = vmatmul.mubr.msk.bf16.vlgmr.msra.gmra.mrb[188].mxu0 %vm728_vm4, %v6035_v51 }
0x2c89   : > { %8781 = vmatpush3.bf16.msra.mxu0 %v6154_v14  ;;  %8782 = vmatprep.mubr.msk.bf16.mxu0 %vm9346_vm0, %v9345_v1 }
0x2c8a   : > { %8794 = vmatprep.subr.bf16.mxu0 %v9345_v1 }
0x2c90   : > { %8783 = vmatmul.mubr.msk.bf16.vlgmr.msra.gmra.mrb[192].mxu0 %vm728_vm4, %v6147_v22 }
0x2c91   : > { %8795 = vmatpush3.bf16.msra.mxu0 %v10966_v20  ;;  %8798 = vmatprep.mubr.msk.bf16.mxu0 %vm9346_vm0, %v9345_v1 }
0x2c92   : > { %8796 = vmatprep.subr.bf16.mxu0 %v9345_v1 }
0x2c95   : > { %8797 = vmatpush3.bf16.msra.mxu0 %v10975_v13 }
0x2c96   : > { %8810 = vmatprep.subr.bf16.mxu0 %v9345_v1 }
0x2cf5   : > { %v5406_v21 = vpop.f32.mrb[164].mxu0 }
0x2cf6   : > { %v8700_v17 = vpop.f32.mrb[165].mxu0 }
0x2cf7   : > { %v5409_v24 = vpop.f32.mrb[166].mxu0 }
0x2cf8   : > { %v8701_v25 = vpop.f32.mrb[167].mxu0 }
0x2cfd   : > { %v5518_v56 = vpop.f32.mrb[168].mxu0 }
0x2cfe   : > { %6197 = vrot.lane.b32.xlu1 %v5518_v56, %s11545_s9  ;;  %v8712_v18 = vpop.f32.mrb[169].mxu0 }
0x2cff   : > { %v5521_v59 = vpop.f32.mrb[170].mxu0 }
0x2d00   : > { %v8713_v23 = vpop.f32.mrb[171].mxu0 }
0x2d05   : > { %v5630_v26 = vpop.f32.mrb[172].mxu0 }
0x2d06   : > { %6201 = vrot.lane.b32.xlu0 %v5630_v26, %s11553_s3  ;;  %v8724_v60 = vpop.f32.mrb[173].mxu0 }
0x2d07   : > { %v5633_v54 = vpop.f32.mrb[174].mxu0 }
0x2d08   : > { %v8725_v11 = vpop.f32.mrb[175].mxu0 }
0x2d0d   : > { %v5742_v62 = vpop.f32.mrb[176].mxu0 }
0x2d0e   : > { %6205 = vrot.lane.b32.xlu1 %v5742_v62, %s11565_s8  ;;  %v8736_v3 = vpop.f32.mrb[177].mxu0  ;;  %s11579_s8 = sld [smem:[#allocation19_spill]] }
0x2d0f   : > { %v5745_v29 = vpop.f32.mrb[178].mxu0 }
0x2d10   : > { %v8737_v19 = vpop.f32.mrb[179].mxu0  ;;  %v11028_v29 = vld [vmem:[%s11581_s10] ss:$0 sm:$0xff]  ;;  %s11583_s10 = sld [smem:[#allocation25_spill]] }
0x2d14   : > { %v11013_v10 = vld [vmem:[%s11579_s8] ss:$0 sm:$0xff] }
0x2d4b   : > { %v5854_v0 = vpop.f32.mrb[180].mxu0 }
0x2d4c   : > { %6209 = vrot.lane.b32.xlu0 %v5854_v0, %s11574_s5  ;;  %v8748_v4 = vpop.f32.mrb[181].mxu0 }
0x2d4d   : > { %v5857_v36 = vpop.f32.mrb[182].mxu0 }
0x2d4e   : > { %v8749_v57 = vpop.f32.mrb[183].mxu0 }
0x2d53   : > { %v5966_v6 = vpop.f32.mrb[184].mxu0 }
0x2d54   : > { %6213 = vrot.lane.b32.xlu1 %v5966_v6, %s11575_s4  ;;  %v8760_v9 = vpop.f32.mrb[185].mxu0  ;;  %s11580_s4 = sld [smem:[#allocation20_spill]] }
0x2d55   : > { %v5969_v42 = vpop.f32.mrb[186].mxu0 }
0x2d56   : > { %v8761_v43 = vpop.f32.mrb[187].mxu0 }
0x2d5b   : > { %v6078_v31 = vpop.f32.mrb[188].mxu0 }
0x2d5c   : > { %6217 = vrot.lane.b32.xlu0 %v6078_v31, %s11576_s2  ;;  %v8772_v33 = vpop.f32.mrb[189].mxu0  ;;  %s11578_s2 = sld [smem:[#allocation24_spill]] }
0x2d5d   : > { %v6081_v2 = vpop.f32.mrb[190].mxu0  ;;  %v11050_v33 = vld [vmem:[%s11583_s10] ss:$0 sm:$0xff] }
0x2d5e   : > { %v8773_v47 = vpop.f32.mrb[191].mxu0 }
0x2d62   : > { %v10997_v7 = vld [vmem:[%s11578_s2] sm:$0xff]   ;;  %v11006_v12 = vld [vmem:[%s11578_s2 + $0x8] sm:$0xff]  }
0x2d63   : > { %v6190_v41 = vpop.f32.mrb[192].mxu0 }
0x2d64   : > { %6221 = vrot.lane.b32.xlu1 %v6190_v41, %s11577_s6  ;;  %v8784_v49 = vpop.f32.mrb[193].mxu0 }
0x2d65   : > { %v6193_v61 = vpop.f32.mrb[194].mxu0 }
0x2d66   : > { %v8785_v28 = vpop.f32.mrb[195].mxu0 }
0x2d70   : > { %v6198_v46 = vpop.permute.xlu1 %6197 }
0x2d71   : > { %v6224_v53 = vsel %vm679_vm2, %v5406_v21, %v6198_v46 }
0x2d78   : > { %v6202_v48 = vpop.permute.xlu0 %6201 }
0x2d79   : > { %v6225_v50 = vsel %vm728_vm4, %v6224_v53, %v6202_v48 }
0x2d80   : > { %v6206_v39 = vpop.permute.xlu1 %6205 }
0x2d81   : > { %v6226_v44 = vsel %vm1604_vm6, %v6225_v50, %v6206_v39 }
0x2dbe   : > { %v6210_v8 = vpop.permute.xlu0 %6209 }
0x2dbf   : > { %v6227_v32 = vsel %vm1606_vm7, %v6226_v44, %v6210_v8 }
0x2dc6   : > { %v6214_v45 = vpop.permute.xlu1 %6213 }
0x2dc7   : > { %v6228_v34 = vsel %vm1608_vm8, %v6227_v32, %v6214_v45 }
0x2dce   : > { %v6218_v55 = vpop.permute.xlu0 %6217 }
0x2dcf   : > { %v6229_v27 = vsel %vm1610_vm9, %v6228_v34, %v6218_v55 }
0x2dd6   : > { %v6222_v58 = vpop.permute.xlu1 %6221 }
0x2dd7   : > { %v6230_v16 = vsel %vm1612_vm10, %v6229_v27, %v6222_v58 }
0x2dd8   : > { %v6231_v63 = vpack.c.bf16 %v6230_v16, %v6230_v16 }
0x2dda   : > { %8791 = vmatmul.mubr.msk.bf16.vlgmr.msra.gmra.mrb[192].mxu1 %vm631_vm1, %v6231_v63 }
0x2ddb   : > { %8803 = vmatpush3.bf16.msra.mxu1 %v10997_v7  ;;  %8806 = vmatprep.mubr.msk.bf16.mxu1 %vm9346_vm0, %v9345_v1 }
0x2ddc   : > { %8804 = vmatprep.subr.bf16.mxu1 %v9345_v1 }
0x2ddf   : > { %8805 = vmatpush3.bf16.msra.mxu1 %v11006_v12 }
0x2de0   : > { %8818 = vmatprep.subr.bf16.mxu1 %v9345_v1 }
0x2ead   : > { %v6269_v51 = vpop.f32.mrb[192].mxu1 }
0x2eae   : > { %v6270_v14 = vadd.f32 %v11013_v10, %v6269_v51  ;;  %v8792_v15 = vpop.f32.mrb[193].mxu1 }
0x2eaf   : > { %v6272_v22 = vpop.f32.mrb[194].mxu1 }
0x2eb0   : > { %v6275_v21 = vadd.f32 %v6270_v14, %v10737_v52  ;;  %v8793_v17 = vpop.f32.mrb[195].mxu1  ;;  %v11022_v52 = vld [vmem:[%s11580_s4] ss:$0 sm:$0xff]  ;;  %s11582_s4 = sld [smem:[#allocation23_spill]] }
0x2eb2   : > { %v6276_v24 = vsel %vm631_vm1, %v6275_v21, 0.0 }
0x2eb3   : > { %6277 = vadd.xlane.f32.xlu0 %v6276_v24 }
0x2eb6   : > { %v11041_v36 = vld [vmem:[%s11582_s4] ss:$0 sm:$0xff] }
0x2f40   : > { %v6278_v25 = vpop.xlane.xlu0 %6277 }
0x2f41   : > { %v6279_v56 = vmul.f32 0.03125, %v6278_v25 }
0x2f43   : > { %v6280_v18 = vsub.f32 %v6275_v21, %v6279_v56 }
0x2f45   : > { %v6281_v59 = vmul.f32 %v6280_v18, %v6280_v18 }
0x2f47   : > { %v6282_v23 = vsel %vm631_vm1, %v6281_v59, 0.0 }
0x2f48   : > { %6283 = vadd.xlane.f32.xlu1 %v6282_v23 }
0x2fd5   : > { %v6284_v26 = vpop.xlane.xlu1 %6283 }
0x2fd6   : > { %v6285_v60 = vmul.f32 0.03125, %v6284_v26 }
0x2fd8   : > { %v6286_v54 = vadd.f32 1e-05, %v6285_v60 }
0x2fda   : > { %9213 = vrsqrt.f32 %v6286_v54 }
0x2fe4   : > { %v9214_v11 = vpop.eup %9213 }
0x2fe5   : > { %v6288_v62 = vmul.f32 %v9214_v11, %v6280_v18 }
0x2fe7   : > { %v6289_v3 = vmul.f32 %v11022_v52, %v6288_v62 }
0x2fe9   : > { %v6290_v19 = vadd.f32 %v11028_v29, %v6289_v3 }
0x2feb   : > { %v6291_v0 = vpack.c.bf16 %v6290_v19, %v6290_v19 }
0x2fed   : > { %8799 = vmatmul.mubr.msk.bf16.vlgmr.msra.gmra.mrb[196].mxu0 %vm631_vm1, %v6291_v0 }
0x2fee   : > { %8811 = vmatpush3.bf16.msra.mxu0 %v10715_v37  ;;  %8814 = vmatprep.mubr.msk.bf16.mxu0 %vm9346_vm0, %v9345_v1 }
0x2fef   : > { %8812 = vmatprep.subr.bf16.mxu0 %v9345_v1 }
0x2ff2   : > { %8813 = vmatpush3.bf16.msra.mxu0 %v10724_v38 }
0x2ff3   : > { %8824 = vmatprep.subr.bf16.mxu0 %v9345_v1 }
0x30c0   : > { %v6329_v4 = vpop.f32.mrb[196].mxu0 }
0x30c1   : > { %v6330_v57 = vadd.f32 %v11041_v36, %v6329_v4  ;;  %v8800_v6 = vpop.f32.mrb[197].mxu0 }
0x30c2   : > { %v6332_v9 = vpop.f32.mrb[198].mxu0 }
0x30c3   : > { %vm6335_vm14 = vcmp.ge.f32.partialorder %v6330_v57, 0.0  ;;  %v6336_v37 = vmul.f32 0.01, %v6330_v57  ;;  %v8801_v42 = vpop.f32.mrb[199].mxu0 }
0x30c5   : > { %v6337_v43 = vsel %vm6335_vm14, %v6330_v57, %v6336_v37 }
0x30c6   : > { %v6338_v31 = vpack.c.bf16 %v6337_v43, %v6337_v43 }
0x30c8   : > { %8807 = vmatmul.mubr.msk.bf16.vlgmr.msra.gmra.mrb[196].mxu1 %vm631_vm1, %v6338_v31 }
0x30c9   : > { %8820 = vmatprep.mubr.msk.bf16.mxu1 %vm9346_vm0, %v9345_v1 }
0x319b   : > { %v6376_v38 = vpop.f32.mrb[196].mxu1 }
0x319c   : > { %v6377_v2 = vadd.f32 %v11050_v33, %v6376_v38  ;;  %v8808_v47 = vpop.f32.mrb[197].mxu1 }
0x319d   : > { %v6379_v41 = vpop.f32.mrb[198].mxu1 }
0x319e   : > { %v6382_v49 = vadd.f32 %v6377_v2, %v6290_v19  ;;  %v8809_v61 = vpop.f32.mrb[199].mxu1 }
0x31a0   : > { %v6383_v28 = vsel %vm631_vm1, %v6382_v49, 0.0 }
0x31a1   : > { %6384 = vadd.xlane.f32.xlu0 %v6383_v28 }
0x322e   : > { %v6385_v46 = vpop.xlane.xlu0 %6384 }
0x322f   : > { %v6386_v48 = vmul.f32 0.03125, %v6385_v46 }
0x3231   : > { %v6387_v39 = vsub.f32 %v6382_v49, %v6386_v48 }
0x3233   : > { %v6388_v8 = vmul.f32 %v6387_v39, %v6387_v39 }
0x3235   : > { %v6389_v53 = vsel %vm631_vm1, %v6388_v8, 0.0 }
0x3236   : > { %6390 = vadd.xlane.f32.xlu0 %v6389_v53 }
0x32c3   : > { %v6391_v50 = vpop.xlane.xlu0 %6390 }
0x32c4   : > { %v6392_v45 = vmul.f32 0.03125, %v6391_v50 }
0x32c6   : > { %v6393_v44 = vadd.f32 1e-05, %v6392_v45 }
0x32c8   : > { %9215 = vrsqrt.f32 %v6393_v44 }
0x32d2   : > { %v9216_v55 = vpop.eup %9215 }
0x32d3   : > { %v6395_v32 = vmul.f32 %v9216_v55, %v6387_v39 }
0x32d5   : > { %v6396_v34 = vmul.f32 %v11022_v52, %v6395_v32 }
0x32d7   : > { %v6397_v27 = vadd.f32 %v11028_v29, %v6396_v34 }
0x32d9   : > { %vm6398_vm15 = vcmp.ge.f32.partialorder %v6397_v27, 0.0  ;;  %v6399_v58 = vmul.f32 0.01, %v6397_v27 }
0x32db   : > { %v11057_v16 = vsel %vm6398_vm15, %v6397_v27, %v6399_v58 }
0x32dc   : > { %v6401_v63 = vpack.c.bf16 %v11057_v16, %v11057_v16 }
0x32de   : > { %8815 = vmatmul.mubr.msk.bf16.vlgmr.msra.gmra.mrb[200].mxu0 %vm631_vm1, %v6401_v63 }
0x32df   : > { %8826 = vmatprep.mubr.msk.bf16.mxu0 %vm9346_vm0, %v9345_v1 }
0x33b1   : > { %v6439_v51 = vpop.f32.mrb[200].mxu0 }
0x33b2   : > { %v6440_v14 = vadd.f32 %v10747_v5, %v6439_v51  ;;  %v8816_v15 = vpop.f32.mrb[201].mxu0 }
0x33b3   : > { %v6442_v22 = vpop.f32.mrb[202].mxu0 }
0x33b4   : > { %v11065_v21 = vpack.c.bf16 %v6440_v14, %v6440_v14  ;;  %v8817_v17 = vpop.f32.mrb[203].mxu0 }
0x33b6   : > { %6559 = vrot.lane.b32.xlu0 %v11065_v21, %s11523_s19  ;;  %6447 = vrot.lane.b32.xlu1 %v11065_v21, %s11524_s20 }
0x33ba   : > { %6669 = vrot.lane.b32.xlu0 %v11065_v21, %s11525_s28  ;;  %6557 = vrot.lane.b32.xlu1 %v11065_v21, %s11526_s29  ;;  %s11593_s28 = sld [smem:[#allocation27_spill]] }
0x33be   : > { %6781 = vrot.lane.b32.xlu0 %v11065_v21, %s11527_s18  ;;  %6671 = vrot.lane.b32.xlu1 %v11065_v21, %s11528_s30 }
0x33c2   : > { %6893 = vrot.lane.b32.xlu0 %v11065_v21, %s11552_s7  ;;  %6783 = vrot.lane.b32.xlu1 %v11065_v21, %s11529_s26  ;;  %s11592_s26 = sld [smem:[#allocation9_spill]] }
0x33c6   : > { %7005 = vrot.lane.b32.xlu0 %v11065_v21, %s11530_s1  ;;  %6895 = vrot.lane.b32.xlu1 %v11065_v21, %s11531_s27  ;;  %s11584_s1 = smov 12   ;;  %s11590_s27 = sld [smem:[#allocation28_spill]] }
0x33c8   : > { %s7897_s5 = sshll.u32 %s11592_s26, 7 }
0x33ca   : > { %7117 = vrot.lane.b32.xlu0 %v11065_v21, %s11532_s17  ;;  %7007 = vrot.lane.b32.xlu1 %v11065_v21, %s11533_s21 }
0x33ce   : > { %7229 = vrot.lane.b32.xlu0 %v11065_v21, %s11534_s24  ;;  %7119 = vrot.lane.b32.xlu1 %v11065_v21, %s11535_s16  ;;  %s11589_s16 = sld [smem:[#allocation26_spill]] }
0x33d2   : > { %7231 = vrot.lane.b32.xlu1 %v11065_v21, %s11536_s23 }
0x3428   : > { %v6448_v5 = vpop.permute.xlu1 %6447  ;;  %v6560_v25 = vpop.permute.xlu0 %6559 }
0x3429   : > { %v6453_v24 = vsel %vm679_vm2, %v6448_v5, 0  ;;  %v6565_v18 = vsel %vm679_vm2, %v6560_v25, 0 }
0x342a   : > { %8819 = vmatpush3.bf16.xpose.msra.mxu1 %v6453_v24 }
0x342b   : > { %8830 = vmatprep.subr.bf16.mxu1 %v9345_v1 }
0x342c   : > { %v6558_v56 = vpop.permute.xlu1 %6557  ;;  %v6670_v60 = vpop.permute.xlu0 %6669 }
0x3430   : > { %v6672_v59 = vpop.permute.xlu1 %6671  ;;  %v6782_v62 = vpop.permute.xlu0 %6781 }
0x3431   : > { %8821 = vmatmul.mubr.msk.bf16.vlgmr.msra.gmra.mrb[200].mxu1 %vm679_vm2, %v11065_v21  ;;  %v6677_v23 = vsel %vm679_vm2, %v6672_v59, 0 }
0x3432   : > { %8831 = vmatpush3.bf16.xpose.msra.mxu1 %v6565_v18  ;;  %8832 = vmatprep.mubr.msk.bf16.mxu1 %vm9346_vm0, %v9345_v1 }
0x3433   : > { %8842 = vmatprep.subr.bf16.mxu1 %v9345_v1 }
0x3434   : > { %v6784_v26 = vpop.permute.xlu1 %6783  ;;  %v6894_v0 = vpop.permute.xlu0 %6893 }
0x3435   : > { %v6789_v54 = vsel %vm679_vm2, %v6784_v26, 0 }
0x3438   : > { %v6896_v11 = vpop.permute.xlu1 %6895  ;;  %v7006_v6 = vpop.permute.xlu0 %7005 }
0x3439   : > { %8833 = vmatmul.mubr.msk.bf16.vlgmr.msra.gmra.mrb[204].mxu1 %vm679_vm2, %v6558_v56  ;;  %v6901_v3 = vsel %vm679_vm2, %v6896_v11, 0 }
0x343a   : > { %8843 = vmatpush3.bf16.xpose.msra.mxu1 %v6677_v23  ;;  %8844 = vmatprep.mubr.msk.bf16.mxu1 %vm9346_vm0, %v9345_v1 }
0x343b   : > { %8854 = vmatprep.subr.bf16.mxu1 %v9345_v1 }
0x343c   : > { %v7008_v19 = vpop.permute.xlu1 %7007  ;;  %v7118_v42 = vpop.permute.xlu0 %7117 }
0x343d   : > { %v7013_v4 = vsel %vm679_vm2, %v7008_v19, 0 }
0x3440   : > { %v7120_v57 = vpop.permute.xlu1 %7119  ;;  %v7230_v31 = vpop.permute.xlu0 %7229 }
0x3441   : > { %8845 = vmatmul.mubr.msk.bf16.vlgmr.msra.gmra.mrb[208].mxu1 %vm679_vm2, %v6670_v60  ;;  %v7125_v9 = vsel %vm679_vm2, %v7120_v57, 0 }
0x3442   : > { %8855 = vmatpush3.bf16.xpose.msra.mxu1 %v6789_v54  ;;  %8856 = vmatprep.mubr.msk.bf16.mxu1 %vm9346_vm0, %v9345_v1 }
0x3443   : > { %8866 = vmatprep.subr.bf16.mxu1 %v9345_v1 }
0x3444   : > { %v7232_v37 = vpop.permute.xlu1 %7231 }
0x3445   : > { %v7237_v43 = vsel %vm679_vm2, %v7232_v37, 0 }
0x3449   : > { %8857 = vmatmul.mubr.msk.bf16.vlgmr.msra.gmra.mrb[212].mxu1 %vm679_vm2, %v6782_v62 }
0x344a   : > { %8867 = vmatpush3.bf16.xpose.msra.mxu1 %v6901_v3  ;;  %8868 = vmatprep.mubr.msk.bf16.mxu1 %vm9346_vm0, %v9345_v1 }
0x344b   : > { %8878 = vmatprep.subr.bf16.mxu1 %v9345_v1 }
0x3451   : > { %8869 = vmatmul.mubr.msk.bf16.vlgmr.msra.gmra.mrb[216].mxu1 %vm679_vm2, %v6894_v0 }
0x3452   : > { %8879 = vmatpush3.bf16.xpose.msra.mxu1 %v7013_v4  ;;  %8880 = vmatprep.mubr.msk.bf16.mxu1 %vm9346_vm0, %v9345_v1 }
0x3453   : > { %8890 = vmatprep.subr.bf16.mxu1 %v9345_v1 }
0x3459   : > { %8881 = vmatmul.mubr.msk.bf16.vlgmr.msra.gmra.mrb[220].mxu1 %vm679_vm2, %v7006_v6 }
0x345a   : > { %8891 = vmatpush3.bf16.xpose.msra.mxu1 %v7125_v9  ;;  %8892 = vmatprep.mubr.msk.bf16.mxu1 %vm9346_vm0, %v9345_v1 }
0x345b   : > { %8902 = vmatprep.subr.bf16.mxu1 %v9345_v1 }
0x3461   : > { %8893 = vmatmul.mubr.msk.bf16.vlgmr.msra.gmra.mrb[224].mxu1 %vm679_vm2, %v7118_v42 }
0x3462   : > { %8903 = vmatpush3.bf16.xpose.msra.mxu1 %v7237_v43  ;;  %8904 = vmatprep.mubr.msk.bf16.mxu1 %vm9346_vm0, %v9345_v1 }
0x3463   : > { %8914 = vmatprep.subr.bf16.mxu1 %v9345_v1 }
0x3469   : > { %8905 = vmatmul.mubr.msk.bf16.vlgmr.msra.gmra.mrb[228].mxu1 %vm679_vm2, %v7230_v31 }
0x346a   : > { %8915 = vmatpush3.bf16.msra.mxu1 %v10824_v30  ;;  %8918 = vmatprep.mubr.msk.bf16.mxu1 %vm9346_vm0, %v9345_v1 }
0x346b   : > { %8916 = vmatprep.subr.bf16.mxu1 %v9345_v1 }
0x346e   : > { %8917 = vmatpush3.bf16.msra.mxu1 %v10833_v40 }
0x346f   : > { %8930 = vmatprep.subr.bf16.mxu1 %v9345_v1 }
0x3504   : > { %v6489_v38 = vpop.f32.mrb[200].mxu1 }
0x3505   : > { %v6495_v2 = vmul.f32 0.35355338, %v6489_v38  ;;  %v8822_v47 = vpop.f32.mrb[201].mxu1 }
0x3506   : > { %v6492_v41 = vpop.f32.mrb[202].mxu1 }
0x3507   : > { %v11144_v49 = vsel %vm537_vm3, -1e+09, %v6495_v2  ;;  %v8823_v61 = vpop.f32.mrb[203].mxu1 }
0x3508   : > { %v6497_v30 = vsel %vm728_vm4, %v11144_v49, -inf }
0x3509   : > { %6498 = vmax.xlane.f32.xlu1 %v6497_v30 }
0x350c   : > { %v6601_v28 = vpop.f32.mrb[204].mxu1 }
0x350d   : > { %v6607_v46 = vmul.f32 0.35355338, %v6601_v28  ;;  %v8834_v48 = vpop.f32.mrb[205].mxu1 }
0x350e   : > { %v6604_v39 = vpop.f32.mrb[206].mxu1 }
0x350f   : > { %v6608_v40 = vsel %vm537_vm3, -1e+09, %v6607_v46  ;;  %v8835_v8 = vpop.f32.mrb[207].mxu1 }
0x3510   : > { %v6609_v53 = vsel %vm728_vm4, %v6608_v40, -inf }
0x3511   : > { %6610 = vmax.xlane.f32.xlu0 %v6609_v53 }
0x3514   : > { %v6713_v50 = vpop.f32.mrb[208].mxu1 }
0x3515   : > { %v6719_v45 = vmul.f32 0.35355338, %v6713_v50  ;;  %v8846_v44 = vpop.f32.mrb[209].mxu1 }
0x3516   : > { %v6716_v55 = vpop.f32.mrb[210].mxu1 }
0x3517   : > { %v6720_v32 = vsel %vm537_vm3, -1e+09, %v6719_v45  ;;  %v8847_v34 = vpop.f32.mrb[211].mxu1 }
0x3518   : > { %v6721_v27 = vsel %vm728_vm4, %v6720_v32, -inf }
0x3519   : > { %6722 = vmax.xlane.f32.xlu0 %v6721_v27 }
0x351c   : > { %v6825_v58 = vpop.f32.mrb[212].mxu1 }
0x351d   : > { %v6831_v63 = vmul.f32 0.35355338, %v6825_v58  ;;  %v8858_v51 = vpop.f32.mrb[213].mxu1 }
0x351e   : > { %v6828_v14 = vpop.f32.mrb[214].mxu1 }
0x351f   : > { %v6832_v15 = vsel %vm537_vm3, -1e+09, %v6831_v63  ;;  %v8859_v22 = vpop.f32.mrb[215].mxu1 }
0x3520   : > { %v6833_v17 = vsel %vm728_vm4, %v6832_v15, -inf }
0x3521   : > { %6834 = vmax.xlane.f32.xlu1 %v6833_v17 }
0x3524   : > { %v6937_v5 = vpop.f32.mrb[216].mxu1 }
0x3525   : > { %v6943_v24 = vmul.f32 0.35355338, %v6937_v5  ;;  %v8870_v25 = vpop.f32.mrb[217].mxu1 }
0x3526   : > { %v6940_v56 = vpop.f32.mrb[218].mxu1 }
0x3527   : > { %v6944_v18 = vsel %vm537_vm3, -1e+09, %v6943_v24  ;;  %v8871_v59 = vpop.f32.mrb[219].mxu1 }
0x3528   : > { %v6945_v23 = vsel %vm728_vm4, %v6944_v18, -inf }
0x3529   : > { %6946 = vmax.xlane.f32.xlu0 %v6945_v23 }
0x352c   : > { %v7049_v26 = vpop.f32.mrb[220].mxu1 }
0x352d   : > { %v7055_v60 = vmul.f32 0.35355338, %v7049_v26  ;;  %v8882_v54 = vpop.f32.mrb[221].mxu1 }
0x352e   : > { %v7052_v11 = vpop.f32.mrb[222].mxu1 }
0x352f   : > { %v11162_v62 = vsel %vm537_vm3, -1e+09, %v7055_v60  ;;  %v8883_v3 = vpop.f32.mrb[223].mxu1 }
0x3530   : > { %v7057_v19 = vsel %vm728_vm4, %v11162_v62, -inf }
0x3531   : > { %7058 = vmax.xlane.f32.xlu1 %v7057_v19 }
0x3534   : > { %v7161_v0 = vpop.f32.mrb[224].mxu1 }
0x3535   : > { %v7167_v4 = vmul.f32 0.35355338, %v7161_v0  ;;  %v8894_v57 = vpop.f32.mrb[225].mxu1 }
0x3536   : > { %v7164_v6 = vpop.f32.mrb[226].mxu1 }
0x3537   : > { %v7168_v9 = vsel %vm537_vm3, -1e+09, %v7167_v4  ;;  %v8895_v37 = vpop.f32.mrb[227].mxu1 }
0x3538   : > { %v7169_v42 = vsel %vm728_vm4, %v7168_v9, -inf }
0x3539   : > { %7170 = vmax.xlane.f32.xlu0 %v7169_v42 }
0x353c   : > { %v7273_v43 = vpop.f32.mrb[228].mxu1 }
0x353d   : > { %v8906_v31 = vpop.f32.mrb[229].mxu1  ;;  %v7279_v47 = vmul.f32 0.35355338, %v7273_v43 }
0x353e   : > { %v7276_v38 = vpop.f32.mrb[230].mxu1 }
0x353f   : > { %v8907_v2 = vpop.f32.mrb[231].mxu1  ;;  %v7280_v41 = vsel %vm537_vm3, -1e+09, %v7279_v47 }
0x3540   : > { %v7281_v61 = vsel %vm728_vm4, %v7280_v41, -inf }
0x3542   : > { %6621 = vrot.lane.b32.xlu1 %v11065_v21, %s11537_s0  ;;  %s11591_s0 = sld [smem:[#allocation6_spill]] }
0x3548   : > { %s523_s29 = sand.u32 1, %s11591_s0  }
0x3549   : > { %s7751_s18 = sshll.u32 %s523_s29, 3 }
0x354a   : > { %s525_s4 = scalar_lea.vmem [#allocation2], %s7751_s18 }
0x354b   : > { %s7676_s2 = sshll.u32 %s525_s4, 4  ;;  %s11342_s2 = int_to_ptr.vmem [resolvable:$true] %s7676_s2 }
0x354f   : > { %6509 = vrot.lane.b32.xlu0 %v11065_v21, %s11538_s15 }
0x3566   : > { %7282 = vmax.xlane.f32.xlu1 %v7281_v61 }
0x3577   : > { %6733 = vrot.lane.b32.xlu1 %v11065_v21, %s11539_s13  ;;  %s11588_s13 = smov 28  }
0x3596   : > { %v6499_v30 = vpop.xlane.xlu1 %6498 }
0x3597   : > { %v6500_v28 = vsub.f32 %v11144_v49, %v6499_v30 }
0x3599   : > { %v6501_v46 = vmul.f32 1.442695, %v6500_v28 }
0x359b   : > { %9217 = vpow2.f32 %v6501_v46 }
0x359e   : > { %v6611_v48 = vpop.xlane.xlu0 %6610 }
0x359f   : > { %v6612_v39 = vsub.f32 %v6608_v40, %v6611_v48 }
0x35a1   : > { %v6613_v8 = vmul.f32 1.442695, %v6612_v39 }
0x35a3   : > { %9219 = vpow2.f32 %v6613_v8 }
0x35a5   : > { %v11179_v53 = vpop.eup %9217 }
0x35a6   : > { %v6723_v50 = vpop.xlane.xlu0 %6722  ;;  %v6503_v35 = vsel %vm728_vm4, %v11179_v53, 0.0 }
0x35a7   : > { %v6724_v45 = vsub.f32 %v6720_v32, %v6723_v50  ;;  %6504 = vadd.xlane.f32.xlu0 %v6503_v35 }
0x35a9   : > { %v6725_v44 = vmul.f32 1.442695, %v6724_v45 }
0x35ab   : > { %9221 = vpow2.f32 %v6725_v44 }
0x35ad   : > { %v11183_v55 = vpop.eup %9219 }
0x35ae   : > { %v6835_v34 = vpop.xlane.xlu1 %6834  ;;  %v6615_v49 = vsel %vm728_vm4, %v11183_v55, 0.0 }
0x35af   : > { %v6836_v27 = vsub.f32 %v6832_v15, %v6835_v34  ;;  %6616 = vadd.xlane.f32.xlu1 %v6615_v49 }
0x35b1   : > { %v6837_v40 = vmul.f32 1.442695, %v6836_v27 }
0x35b3   : > { %9223 = vpow2.f32 %v6837_v40 }
0x35b5   : > { %v11187_v58 = vpop.eup %9221 }
0x35b6   : > { %v6947_v63 = vpop.xlane.xlu0 %6946  ;;  %v6727_v51 = vsel %vm728_vm4, %v11187_v58, 0.0 }
0x35b7   : > { %v6948_v32 = vsub.f32 %v6944_v18, %v6947_v63  ;;  %6728 = vadd.xlane.f32.xlu0 %v6727_v51 }
0x35b9   : > { %v6949_v14 = vmul.f32 1.442695, %v6948_v32 }
0x35bb   : > { %9225 = vpow2.f32 %v6949_v14 }
0x35bd   : > { %v11191_v22 = vpop.eup %9223 }
0x35be   : > { %v6839_v17 = vsel %vm728_vm4, %v11191_v22, 0.0  ;;  %v7059_v23 = vpop.xlane.xlu1 %7058 }
0x35bf   : > { %6840 = vadd.xlane.f32.xlu1 %v6839_v17  ;;  %v7060_v60 = vsub.f32 %v11162_v62, %v7059_v23 }
0x35c1   : > { %v7061_v11 = vmul.f32 1.442695, %v7060_v60 }
0x35c2   : > { %v6622_v0 = vpop.permute.xlu1 %6621 }
0x35c3   : > { %v6627_v47 = vsel %vm746_vm5, %v6622_v0, 0 }
0x35c5   : > { %v11195_v15 = vpop.eup %9225 }
0x35c6   : > { %v7171_v5 = vpop.xlane.xlu0 %7170  ;;  %v6951_v24 = vsel %vm728_vm4, %v11195_v15, 0.0 }
0x35c7   : > { %v7172_v25 = vsub.f32 %v7168_v9, %v7171_v5  ;;  %6952 = vadd.xlane.f32.xlu1 %v6951_v24 }
0x35c9   : > { %v7173_v56 = vmul.f32 1.442695, %v7172_v25 }
0x35ca   : > { %v6510_v59 = vpop.permute.xlu0 %6509 }
0x35cb   : > { %9227 = vpow2.f32 %v7173_v56  ;;  %v6515_v18 = vsel %vm746_vm5, %v6510_v59, 0 }
0x35cc   : > { %8825 = vmatpush3.bf16.msra.mxu0 %v6515_v18  ;;  %9229 = vpow2.f32 %v7061_v11 }
0x35cd   : > { %6845 = vrot.lane.b32.xlu0 %v11065_v21, %s11540_s25  ;;  %8836 = vmatprep.subr.bf16.mxu0 %v9345_v1 }
0x35d5   : > { %v11203_v26 = vpop.eup %9227 }
0x35d6   : > { %v7175_v54 = vsel %vm728_vm4, %v11203_v26, 0.0  ;;  %v11208_v3 = vpop.eup %9229 }
0x35d7   : > { %7176 = vadd.xlane.f32.xlu1 %v7175_v54  ;;  %v7063_v19 = vsel %vm728_vm4, %v11208_v3, 0.0 }
0x35ec   : > { %7064 = vadd.xlane.f32.xlu0 %v7063_v19 }
0x35f3   : > { %v7283_v4 = vpop.xlane.xlu1 %7282 }
0x35f4   : > { %v7284_v57 = vsub.f32 %v7280_v41, %v7283_v4 }
0x35f6   : > { %v7285_v6 = vmul.f32 1.442695, %v7284_v57 }
0x35f7   : > { %v6734_v42 = vpop.permute.xlu1 %6733 }
0x35f8   : > { %9231 = vpow2.f32 %v7285_v6  ;;  %v6739_v28 = vsel %vm746_vm5, %v6734_v42, 0 }
0x3602   : > { %v11212_v9 = vpop.eup %9231  ;;  %7069 = vrot.lane.b32.xlu0 %v11065_v21, %s11541_s22 }
0x3603   : > { %v7287_v62 = vsel %vm728_vm4, %v11212_v9, 0.0 }
0x3604   : > { %7288 = vadd.xlane.f32.xlu1 %v7287_v62 }
0x3606   : > { %7181 = vrot.lane.b32.xlu0 %v11065_v21, %s11542_s14 }
0x360a   : > { %7293 = vrot.lane.b32.xlu0 %v11065_v21, %s11543_s12  ;;  %s11587_s12 = smov 24  }
0x3615   : > { %6957 = vrot.lane.b32.xlu1 %v11065_v21, %s11544_s11  ;;  %s11585_s11 = smov 16  }
0x3634   : > { %v6505_v37 = vpop.xlane.xlu0 %6504 }
0x3635   : > { %9233 = vrcp.f32 %v6505_v37 }
0x363c   : > { %v6617_v43 = vpop.xlane.xlu1 %6616 }
0x363d   : > { %9235 = vrcp.f32 %v6617_v43 }
0x363f   : > { %v9234_v31 = vpop.eup %9233 }
0x3640   : > { %v6507_v38 = vmul.f32 %v9234_v31, %v11179_v53 }
0x3642   : > { %v6508_v2 = vpack.c.bf16 %v6507_v38, %v6507_v38 }
0x3644   : > { %8827 = vmatmul.mubr.msk.bf16.vlgmr.msra.gmra.mrb[204].mxu0 %vm728_vm4, %v6508_v2  ;;  %v6729_v41 = vpop.xlane.xlu0 %6728 }
0x3645   : > { %9237 = vrcp.f32 %v6729_v41  ;;  %8837 = vmatpush3.bf16.msra.mxu0 %v6627_v47  ;;  %8838 = vmatprep.mubr.msk.bf16.mxu0 %vm9346_vm0, %v9345_v1 }
0x3646   : > { %8848 = vmatprep.subr.bf16.mxu0 %v9345_v1 }
0x3647   : > { %v9236_v21 = vpop.eup %9235 }
0x3648   : > { %v6619_v61 = vmul.f32 %v9236_v21, %v11183_v55  ;;  %v6846_v8 = vpop.permute.xlu0 %6845 }
0x3649   : > { %v6851_v50 = vsel %vm746_vm5, %v6846_v8, 0 }
0x364a   : > { %v6620_v30 = vpack.c.bf16 %v6619_v61, %v6619_v61 }
0x364c   : > { %8839 = vmatmul.mubr.msk.bf16.vlgmr.msra.gmra.mrb[208].mxu0 %vm728_vm4, %v6620_v30  ;;  %v6841_v46 = vpop.xlane.xlu1 %6840 }
0x364d   : > { %8849 = vmatpush3.bf16.msra.mxu0 %v6739_v28  ;;  %9239 = vrcp.f32 %v6841_v46  ;;  %8850 = vmatprep.mubr.msk.bf16.mxu0 %vm9346_vm0, %v9345_v1 }
0x364e   : > { %8860 = vmatprep.subr.bf16.mxu0 %v9345_v1 }
0x364f   : > { %v9238_v48 = vpop.eup %9237 }
0x3650   : > { %v6731_v39 = vmul.f32 %v9238_v48, %v11187_v58 }
0x3652   : > { %v6732_v53 = vpack.c.bf16 %v6731_v39, %v6731_v39 }
0x3654   : > { %8851 = vmatmul.mubr.msk.bf16.vlgmr.msra.gmra.mrb[212].mxu0 %vm728_vm4, %v6732_v53  ;;  %v6953_v55 = vpop.xlane.xlu1 %6952 }
0x3655   : > { %8861 = vmatpush3.bf16.msra.mxu0 %v6851_v50  ;;  %8862 = vmatprep.mubr.msk.bf16.mxu0 %vm9346_vm0, %v9345_v1  ;;  %9241 = vrcp.f32 %v6953_v55 }
0x3656   : > { %8872 = vmatprep.subr.bf16.mxu0 %v9345_v1 }
0x3657   : > { %v9240_v35 = vpop.eup %9239 }
0x3658   : > { %v6843_v45 = vmul.f32 %v9240_v35, %v11191_v22 }
0x365a   : > { %v6844_v44 = vpack.c.bf16 %v6843_v45, %v6843_v45 }
0x365c   : > { %8863 = vmatmul.mubr.msk.bf16.vlgmr.msra.gmra.mrb[216].mxu0 %vm728_vm4, %v6844_v44 }
0x365d   : > { %8874 = vmatprep.mubr.msk.bf16.mxu0 %vm9346_vm0, %v9345_v1 }
0x365f   : > { %v9242_v27 = vpop.eup %9241 }
0x3660   : > { %v6955_v58 = vmul.f32 %v9242_v27, %v11195_v15 }
0x3662   : > { %v6956_v14 = vpack.c.bf16 %v6955_v58, %v6955_v58 }
0x3664   : > { %v7177_v49 = vpop.xlane.xlu1 %7176 }
0x3679   : > { %v7065_v34 = vpop.xlane.xlu0 %7064 }
0x367a   : > { %9243 = vrcp.f32 %v7065_v34 }
0x367b   : > { %9245 = vrcp.f32 %v7177_v49 }
0x367d   : > { %v7070_v32 = vpop.permute.xlu0 %7069 }
0x367e   : > { %v7075_v17 = vsel %vm746_vm5, %v7070_v32, 0 }
0x3681   : > { %v7182_v5 = vpop.permute.xlu0 %7181 }
0x3682   : > { %v7187_v56 = vsel %vm746_vm5, %v7182_v5, 0 }
0x3684   : > { %v9244_v22 = vpop.eup %9243 }
0x3685   : > { %v7067_v15 = vmul.f32 %v9244_v22, %v11208_v3  ;;  %v9246_v25 = vpop.eup %9245  ;;  %v7294_v18 = vpop.permute.xlu0 %7293 }
0x3686   : > { %v7179_v59 = vmul.f32 %v9246_v25, %v11203_v26  ;;  %v7299_v54 = vsel %vm746_vm5, %v7294_v18, 0 }
0x3687   : > { %v7068_v24 = vpack.c.bf16 %v7067_v15, %v7067_v15 }
0x3688   : > { %v7180_v23 = vpack.c.bf16 %v7179_v59, %v7179_v59 }
0x3691   : > { %v7289_v40 = vpop.xlane.xlu1 %7288 }
0x3692   : > { %9247 = vrcp.f32 %v7289_v40 }
0x3695   : > { %v6958_v63 = vpop.permute.xlu1 %6957 }
0x3696   : > { %v6963_v51 = vsel %vm746_vm5, %v6958_v63, 0 }
0x3697   : > { %8873 = vmatpush3.bf16.msra.mxu0 %v6963_v51 }
0x3698   : > { %8884 = vmatprep.subr.bf16.mxu0 %v9345_v1 }
0x369a   : > { %8875 = vmatmul.mubr.msk.bf16.vlgmr.msra.gmra.mrb[220].mxu0 %vm728_vm4, %v6956_v14 }
0x369b   : > { %8885 = vmatpush3.bf16.msra.mxu0 %v7075_v17  ;;  %8886 = vmatprep.mubr.msk.bf16.mxu0 %vm9346_vm0, %v9345_v1 }
0x369c   : > { %8896 = vmatprep.subr.bf16.mxu0 %v9345_v1  ;;  %v9248_v60 = vpop.eup %9247 }
0x369d   : > { %v7291_v11 = vmul.f32 %v9248_v60, %v11212_v9 }
0x369f   : > { %v7292_v3 = vpack.c.bf16 %v7291_v11, %v7291_v11 }
0x36a2   : > { %8887 = vmatmul.mubr.msk.bf16.vlgmr.msra.gmra.mrb[224].mxu0 %vm728_vm4, %v7068_v24 }
0x36a3   : > { %8897 = vmatpush3.bf16.msra.mxu0 %v7187_v56  ;;  %8898 = vmatprep.mubr.msk.bf16.mxu0 %vm9346_vm0, %v9345_v1 }
0x36a4   : > { %8908 = vmatprep.subr.bf16.mxu0 %v9345_v1 }
0x36aa   : > { %8899 = vmatmul.mubr.msk.bf16.vlgmr.msra.gmra.mrb[228].mxu0 %vm728_vm4, %v7180_v23 }
0x36ab   : > { %8909 = vmatpush3.bf16.msra.mxu0 %v7299_v54  ;;  %8910 = vmatprep.mubr.msk.bf16.mxu0 %vm9346_vm0, %v9345_v1 }
0x36ac   : > { %8922 = vmatprep.subr.bf16.mxu0 %v9345_v1 }
0x36b2   : > { %8911 = vmatmul.mubr.msk.bf16.vlgmr.msra.gmra.mrb[232].mxu0 %vm728_vm4, %v7292_v3 }
0x36b3   : > { %8923 = vmatpush3.bf16.msra.mxu0 %v10966_v20  ;;  %8926 = vmatprep.mubr.msk.bf16.mxu0 %vm9346_vm0, %v9345_v1 }
0x36b4   : > { %8924 = vmatprep.subr.bf16.mxu0 %v9345_v1 }
0x36b7   : > { %8925 = vmatpush3.bf16.msra.mxu0 %v10975_v13 }
0x36b8   : > { %8938 = vmatprep.subr.bf16.mxu0 %v9345_v1 }
0x3717   : > { %v6551_v26 = vpop.f32.mrb[204].mxu0 }
0x3718   : > { %v8828_v19 = vpop.f32.mrb[205].mxu0 }
0x3719   : > { %v6554_v0 = vpop.f32.mrb[206].mxu0 }
0x371a   : > { %v8829_v4 = vpop.f32.mrb[207].mxu0 }
0x371f   : > { %v6663_v57 = vpop.f32.mrb[208].mxu0 }
0x3720   : > { %7342 = vrot.lane.b32.xlu1 %v6663_v57, %s11545_s9  ;;  %v8840_v6 = vpop.f32.mrb[209].mxu0  ;;  %s11586_s9 = smov 20  }
0x3721   : > { %v6666_v9 = vpop.f32.mrb[210].mxu0 }
0x3722   : > { %v8841_v62 = vpop.f32.mrb[211].mxu0 }
0x3727   : > { %v6775_v20 = vpop.f32.mrb[212].mxu0 }
0x3728   : > { %7346 = vrot.lane.b32.xlu0 %v6775_v20, %s11553_s3  ;;  %v8852_v37 = vpop.f32.mrb[213].mxu0  ;;  %s11594_s3 = sld [smem:[#allocation29_spill]] }
0x3729   : > { %v6778_v42 = vpop.f32.mrb[214].mxu0 }
0x372a   : > { %v8853_v43 = vpop.f32.mrb[215].mxu0 }
0x372f   : > { %v6887_v31 = vpop.f32.mrb[216].mxu0 }
0x3730   : > { %7350 = vrot.lane.b32.xlu1 %v6887_v31, %s11584_s1  ;;  %v8864_v13 = vpop.f32.mrb[217].mxu0  ;;  %s11596_s1 = sld [smem:[#allocation30_spill]] }
0x3731   : > { %v6890_v38 = vpop.f32.mrb[218].mxu0 }
0x3732   : > { %v8865_v2 = vpop.f32.mrb[219].mxu0 }
0x376d   : > { %v6999_v47 = vpop.f32.mrb[220].mxu0 }
0x376e   : > { %7354 = vrot.lane.b32.xlu0 %v6999_v47, %s11585_s11  ;;  %v8876_v41 = vpop.f32.mrb[221].mxu0  ;;  %s11340_s11 = scalar_lea.hbm %s11596_s1, %s7897_s5 }
0x376f   : > { %v7002_v21 = vpop.f32.mrb[222].mxu0 }
0x3770   : > { %v8877_v61 = vpop.f32.mrb[223].mxu0 }
0x3775   : > { %v7111_v30 = vpop.f32.mrb[224].mxu0 }
0x3776   : > { %7358 = vrot.lane.b32.xlu1 %v7111_v30, %s11586_s9  ;;  %v8888_v28 = vpop.f32.mrb[225].mxu0  ;;  %s7663_s9 = scalar_lea.sflag [#allocation3], %s523_s29 }
0x3777   : > { %v7114_v46 = vpop.f32.mrb[226].mxu0 }
0x3778   : > { %v8889_v48 = vpop.f32.mrb[227].mxu0 }
0x377d   : > { %v7223_v39 = vpop.f32.mrb[228].mxu0 }
0x377e   : > { %7362 = vrot.lane.b32.xlu0 %v7223_v39, %s11587_s12  ;;  %v8900_v8 = vpop.f32.mrb[229].mxu0  ;;  %s9281_s12 = scalar_lea.vmem %s11342_s2, 128 }
0x377f   : > { %v7226_v53 = vpop.f32.mrb[230].mxu0  ;;  %p9282_p11 = scmp.ne.s32.totalorder %s11342_s2, %s9281_s12 }
0x3780   : > { %v8901_v50 = vpop.f32.mrb[231].mxu0 }
0x3781   : > { %v9033_v50 = vld [vmem:[%s11589_s16] sm:$0xff]   ;;  %p9283_p12 = pnand %p9282_p11, %p9501_p5 }
0x3783   : > { %p9284_p13 = pneg %p9283_p12 }
0x3785   : > { %v7335_v35 = vpop.f32.mrb[232].mxu0 }
0x3786   : > { %7366 = vrot.lane.b32.xlu1 %v7335_v35, %s11588_s13  ;;  %v8912_v45 = vpop.f32.mrb[233].mxu0  ;;  %s9377_s13 = smov [#allocation2]  }
0x3787   : > { %v7338_v44 = vpop.f32.mrb[234].mxu0  ;;  %s9285_s14 = sshll.u32 %s9377_s13, 4  ;;  %s9286_s14 = int_to_ptr.vmem [resolvable:$false] %s9285_s14 }
0x3788   : > { %v8913_v55 = vpop.f32.mrb[235].mxu0  ;;  %s9287_s15 = scalar_lea.vmem %s9286_s14, 256  ;;  %p9288_p0 = scmp.lt.s32.totalorder %s11342_s2, %s9286_s14 }
0x3789   : > { %p9289_p1 = scmp.lt.s32.totalorder %s9287_s15, %s9281_s12 }
0x378b   : > { %p9290_p2 = por %p9289_p1, %p9288_p0 }
0x378d   : > { %p9291_p3 = pnand %p9290_p2, %p9284_p13 }
0x3792   : > { %v7343_v34 = vpop.permute.xlu1 %7342 }
0x3793   : > { %v7369_v58 = vsel %vm679_vm2, %v6551_v26, %v7343_v34 }
0x379a   : > { %v7347_v49 = vpop.permute.xlu0 %7346 }
0x379b   : > { %v7370_v63 = vsel %vm728_vm4, %v7369_v58, %v7347_v49 }
0x37a2   : > { %v7351_v27 = vpop.permute.xlu1 %7350 }
0x37a3   : > { %v7371_v32 = vsel %vm1604_vm6, %v7370_v63, %v7351_v27 }
0x37e0   : > { %v7355_v40 = vpop.permute.xlu0 %7354 }
0x37e1   : > { %v7372_v22 = vsel %vm1606_vm7, %v7371_v32, %v7355_v40 }
0x37e8   : > { %v7359_v51 = vpop.permute.xlu1 %7358 }
0x37e9   : > { %v7373_v17 = vsel %vm1608_vm8, %v7372_v22, %v7359_v51  ;;  %v9035_v51 = vld [vmem:[%s11590_s27] sm:$0xff]  }
0x37f0   : > { %v7363_v14 = vpop.permute.xlu0 %7362 }
0x37f1   : > { %v7374_v15 = vsel %vm1610_vm9, %v7373_v17, %v7363_v14 }
0x37f8   : > { %v7367_v5 = vpop.permute.xlu1 %7366 }
0x37f9   : > { %v7375_v24 = vsel %vm1612_vm10, %v7374_v15, %v7367_v5 }
0x37fa   : > { %v7376_v25 = vpack.c.bf16 %v7375_v24, %v7375_v24 }
0x37fc   : > { %8919 = vmatmul.mubr.msk.bf16.vlgmr.msra.gmra.mrb[232].mxu1 %vm631_vm1, %v7376_v25 }
0x37fd   : > { %8931 = vmatpush3.bf16.msra.mxu1 %v10997_v7  ;;  %8934 = vmatprep.mubr.msk.bf16.mxu1 %vm9346_vm0, %v9345_v1 }
0x37fe   : > { %8932 = vmatprep.subr.bf16.mxu1 %v9345_v1 }
0x3801   : > { %8933 = vmatpush3.bf16.msra.mxu1 %v11006_v12 }
0x3802   : > { %8946 = vmatprep.subr.bf16.mxu1 %v9345_v1 }
0x38cf   : > { %v7414_v56 = vpop.f32.mrb[232].mxu1 }
0x38d0   : > { %v7415_v59 = vadd.f32 %v11013_v10, %v7414_v56  ;;  %v8920_v18 = vpop.f32.mrb[233].mxu1 }
0x38d1   : > { %v7417_v23 = vpop.f32.mrb[234].mxu1 }
0x38d2   : > { %v7420_v60 = vadd.f32 %v7415_v59, %v11057_v16  ;;  %v8921_v54 = vpop.f32.mrb[235].mxu1 }
0x38d4   : > { %v7421_v11 = vsel %vm631_vm1, %v7420_v60, 0.0 }
0x38d5   : > { %7422 = vadd.xlane.f32.xlu0 %v7421_v11 }
0x3962   : > { %v7423_v7 = vpop.xlane.xlu0 %7422 }
0x3963   : > { %v7424_v3 = vmul.f32 0.03125, %v7423_v7 }
0x3965   : > { %v7425_v26 = vsub.f32 %v7420_v60, %v7424_v3 }
0x3967   : > { %v7426_v19 = vmul.f32 %v7425_v26, %v7425_v26 }
0x3969   : > { %v7427_v0 = vsel %vm631_vm1, %v7426_v19, 0.0 }
0x396a   : > { %7428 = vadd.xlane.f32.xlu1 %v7427_v0 }
0x39f7   : > { %v7429_v12 = vpop.xlane.xlu1 %7428 }
0x39f8   : > { %v7430_v4 = vmul.f32 0.03125, %v7429_v12 }
0x39fa   : > { %v7431_v57 = vadd.f32 1e-05, %v7430_v4 }
0x39fc   : > { %9249 = vrsqrt.f32 %v7431_v57 }
0x3a06   : > { %v9250_v10 = vpop.eup %9249 }
0x3a07   : > { %v7433_v6 = vmul.f32 %v9250_v10, %v7425_v26 }
0x3a09   : > { %v7434_v9 = vmul.f32 %v11022_v52, %v7433_v6 }
0x3a0b   : > { %v7435_v16 = vadd.f32 %v11028_v29, %v7434_v9 }
0x3a0d   : > { %v7436_v62 = vpack.c.bf16 %v7435_v16, %v7435_v16 }
0x3a0f   : > { %8927 = vmatmul.mubr.msk.bf16.vlgmr.msra.gmra.mrb[236].mxu0 %vm631_vm1, %v7436_v62 }
0x3a10   : > { %8942 = vmatprep.mubr.msk.bf16.mxu0 %vm9346_vm0, %v9345_v1  ;;  %8939 = vmatpush3.bf16.msra.mxu0 %v9033_v50 }
0x3a11   : > { %8940 = vmatprep.subr.bf16.mxu0 %v9345_v1 }
0x3ae2   : > { %v7474_v20 = vpop.f32.mrb[236].mxu0 }
0x3ae3   : > { %v7475_v37 = vadd.f32 %v11041_v36, %v7474_v20  ;;  %v8928_v42 = vpop.f32.mrb[237].mxu0 }
0x3ae4   : > { %v7477_v43 = vpop.f32.mrb[238].mxu0 }
0x3ae5   : > { %vm7480_vm2 = vcmp.ge.f32.partialorder %v7475_v37, 0.0  ;;  %v7481_v31 = vmul.f32 0.01, %v7475_v37  ;;  %v8929_v13 = vpop.f32.mrb[239].mxu0 }
0x3ae7   : > { %v7482_v38 = vsel %vm7480_vm2, %v7475_v37, %v7481_v31 }
0x3ae8   : > { %v7483_v2 = vpack.c.bf16 %v7482_v38, %v7482_v38 }
0x3aea   : > { %8935 = vmatmul.mubr.msk.bf16.vlgmr.msra.gmra.mrb[236].mxu1 %vm631_vm1, %v7483_v2 }
0x3aeb   : > { %8950 = vmatprep.mubr.msk.bf16.mxu1 %vm9346_vm0, %v9345_v1  ;;  %8947 = vmatpush3.bf16.msra.mxu1 %v9035_v51 }
0x3aec   : > { %8948 = vmatprep.subr.bf16.mxu1 %v9345_v1  ;;  %v7761_v1 = vld [vmem:[%s11594_s3] ss:$0 sm:$0xff] }
0x3bbd   : > { %v7521_v47 = vpop.f32.mrb[236].mxu1 }
0x3bbe   : > { %v7522_v41 = vadd.f32 %v11050_v33, %v7521_v47  ;;  %v8936_v21 = vpop.f32.mrb[237].mxu1  ;;  %v9034_v33 = vld [vmem:[%s11589_s16 + $0x8] sm:$0xff]  }
0x3bbf   : > { %v7524_v61 = vpop.f32.mrb[238].mxu1  ;;  %8941 = vmatpush3.bf16.msra.mxu0 %v9034_v33 }
0x3bc0   : > { %v7527_v30 = vadd.f32 %v7522_v41, %v7435_v16  ;;  %v8937_v28 = vpop.f32.mrb[239].mxu1 }
0x3bc2   : > { %v7528_v36 = vsel %vm631_vm1, %v7527_v30, 0.0 }
0x3bc3   : > { %7529 = vadd.xlane.f32.xlu0 %v7528_v36 }
0x3c50   : > { %v7530_v46 = vpop.xlane.xlu0 %7529 }
0x3c51   : > { %v7531_v48 = vmul.f32 0.03125, %v7530_v46 }
0x3c53   : > { %v7532_v39 = vsub.f32 %v7527_v30, %v7531_v48 }
0x3c55   : > { %v7533_v8 = vmul.f32 %v7532_v39, %v7532_v39 }
0x3c57   : > { %v7534_v53 = vsel %vm631_vm1, %v7533_v8, 0.0 }
0x3c58   : > { %7535 = vadd.xlane.f32.xlu0 %v7534_v53 }
0x3ce5   : > { %v7536_v35 = vpop.xlane.xlu0 %7535 }
0x3ce6   : > { %v7537_v45 = vmul.f32 0.03125, %v7536_v35 }
0x3ce8   : > { %v7538_v44 = vadd.f32 1e-05, %v7537_v45 }
0x3cea   : > { %9251 = vrsqrt.f32 %v7538_v44 }
0x3cf4   : > { %v9252_v55 = vpop.eup %9251 }
0x3cf5   : > { %v7540_v34 = vmul.f32 %v9252_v55, %v7532_v39 }
0x3cf7   : > { %v7541_v49 = vmul.f32 %v11022_v52, %v7540_v34  ;;  %v9036_v52 = vld [vmem:[%s11590_s27 + $0x8] sm:$0xff]  }
0x3cf8   : > { %8949 = vmatpush3.bf16.msra.mxu1 %v9036_v52 }
0x3cf9   : > { %v7542_v27 = vadd.f32 %v11028_v29, %v7541_v49  ;;  %v7760_v29 = vld [vmem:[%s11593_s28] ss:$0 sm:$0xff] }
0x3cfb   : > { %vm7543_vm0 = vcmp.ge.f32.partialorder %v7542_v27, 0.0  ;;  %v7544_v40 = vmul.f32 0.01, %v7542_v27 }
0x3cfd   : > { %v7545_v58 = vsel %vm7543_vm0, %v7542_v27, %v7544_v40 }
0x3cfe   : > { %v7546_v63 = vpack.c.bf16 %v7545_v58, %v7545_v58 }
0x3d00   : > { %8943 = vmatmul.mubr.msk.bf16.vlgmr.msra.gmra.mrb[240].mxu0 %vm631_vm1, %v7546_v63 }
0x3dd3   : > { %v7596_v32 = vpop.f32.mrb[240].mxu0 }
0x3dd4   : > { %v7597_v14 = vadd.f32 %v7760_v29, %v7596_v32  ;;  %v8944_v22 = vpop.f32.mrb[241].mxu0 }
0x3dd5   : > { %v7599_v17 = vpop.f32.mrb[242].mxu0 }
0x3dd6   : > { %vm7602_vm3 = vcmp.ge.f32.partialorder %v7597_v14, 0.0  ;;  %v7603_v15 = vmul.f32 0.01, %v7597_v14  ;;  %v8945_v5 = vpop.f32.mrb[243].mxu0 }
0x3dd8   : > { %v7604_v24 = vsel %vm7602_vm3, %v7597_v14, %v7603_v15 }
0x3dd9   : > { %v7605_v25 = vpack.c.bf16 %v7604_v24, %v7604_v24 }
0x3ddb   : > { %8951 = vmatmul.mubr.msk.bf16.vlgmr.msra.gmra.mrb[240].mxu1 %vm631_vm1, %v7605_v25 }
0x3eae   : > { %v7655_v56 = vpop.f32.mrb[240].mxu1 }
0x3eaf   : > { %v7656_v59 = vadd.f32 %v7761_v1, %v7655_v56  ;;  %v8952_v18 = vpop.f32.mrb[241].mxu1 }
0x3eb0   : > { %v7658_v23 = vpop.f32.mrb[242].mxu1 }
0x3eb1   : > { %7661 = vst [vmem:[%s525_s4] sm:$0xff] %v7656_v59  ;;  %v8953_v60 = vpop.f32.mrb[243].mxu1 }
0x3eb2   : > { %9294 = shalt.err (!%p9291_p3)
}
0x3eb3   : > { %s9295_s21 = scalar_lea.hbm %s11340_s11, 128  ;;  %s9299_s25 = scalar_lea.hbm %s11596_s1, 256 }
0x3eb4   : > { %p9296_p4 = scmp.ne.s32.totalorder %s11340_s11, %s9295_s21  ;;  %p9300_p9 = scmp.lt.u32.totalorder %s11340_s11, %s11596_s1 }
0x3eb5   : > { %p9301_p10 = scmp.lt.u32.totalorder %s9299_s25, %s9295_s21  ;;  %p9303_p12 = scmp.lt.u32.totalorder %s9295_s21, %s11340_s11 }
0x3eb6   : > { %p9297_p7 = pnand %p9296_p4, %p9501_p5 }
0x3eb7   : > { %p9302_p11 = por %p9301_p10, %p9300_p9 }
0x3eb8   : > { %p9298_p8 = pneg %p9297_p7 }
0x3eb9   : > { %p9304_p13 = por %p9303_p12, %p9302_p11 }
0x3ebb   : > { %p9305_p0 = pnand %p9304_p13, %p9298_p8 }
0x3ebd   : > { %9308 = shalt.err (!%p9305_p0)
}
0x3ebe   : > { %8954 = dma.vmem_to_hbm [thread:$0]  (%p9501_p5), %s11342_s2, 128, %s11340_s11, %s7663_s9  }
0x3ebf PF: > { %s11597_s23 = sld [smem:[#allocation8_spill]]  ;;  %s11598_s26 = sld [smem:[#allocation5_spill]] }
0x3ec5   : > { %p8960_p1 = scmp.ge.s32.totalorder %s11597_s23, 2  ;;  %s7688_s20 = sand.u32 1, %s11598_s26  }
0x3ec6   : > { %s7689_s28 = scalar_lea.sflag [#allocation3], %s7688_s20 }
0x3ec7   : > { %p8957_p2 = pnand %p8960_p1, %p9505_p6 }
0x3ec9   : > { %9326 = dma.done.wait (!%p8957_p2), %s7689_s28, 128  }
0x3eca   : > { %9328 = vsyncadd (!%p8957_p2), %s7689_s28, 4294967168  ;;  %s11600_s24 = sld [smem:[#allocation10_spill]]  ;;  %s11601_s21 = sld [smem:[#allocation6_spill]] }
0x3ecb   : > { %s11602_s22 = sld [smem:[#allocation7_spill]]  ;;  %s11603_s23 = sld [smem:[#allocation11_spill]] }
0x3ed0   : > { %p26_p3 = scmp.ge.s32.totalorder %s11600_s24, 4  }
0x3ed2   :  { %28 = sbr.rel (!%p26_p3) target bundleno = 21 (0x15), region = 122 }
0x3ed9   :  { %7694 = vsyncpa [#allocation3], 1 }
0x3eda   :  { %7696 = vsyncpa [#allocation3 + $0x1], 1 }

</bundles_post_ra>
